<compile_context>
chip_gen: v7x
topology: tpu7x:2x2x1
jax: 0.10.0
libtpu: 0.0.40
codegen_flags: <defaults>
</compile_context>

<pallas_src>
import functools

import jax
import jax.numpy as jnp
from jax.experimental import pallas as pl
from jax.experimental.pallas import tpu as pltpu


def _round_up(x, m):
    return ((x + m - 1) // m) * m


def _tensorcores_per_chip():
    """Best-effort TC-per-chip detection (heuristic; correctness-neutral)."""
    try:
        kind = jax.devices()[0].device_kind.lower()
    except Exception:
        return 1
    return 2 if any(t in kind for t in ("v4", "v5p", "v7", "7x")) else 1


def _convlstm_kernel(comb_ref, w_ref, b_ref, c_ref, h_out_ref, c_out_ref,
                     acc_ref, *, offsets, hidden_dim):
    """One grid step.  All operands channel-major; spatial(+batch) on lanes.

    comb_ref  : (Cp, N)      f32   zero-padded concat([x, h]) at padded res.
    w_ref     : (T, 4C, Cp)  bf16  per-tap transposed conv weights
    b_ref     : (4C, 1)      f32   conv bias (column vector)
    c_ref     : (C_hid, N)   f32   current cell state (interior cols valid)
    h_out_ref : (C_hid, N)
    c_out_ref : (C_hid, N)
    acc_ref   : VMEM scratch (4C, N) f32  conv pre-activation accumulator
    """
    n_out, n_cols = acc_ref.shape
    hd = hidden_dim

    # Accumulator starts at the bias (lane broadcast) -> no separate bias pass.
    acc_ref[...] = jnp.broadcast_to(b_ref[...], (n_out, n_cols))

    comb = comb_ref[...]                                        # (Cp, N) f32
    for t, off in enumerate(offsets):
        # Tap (dy, dx): source columns shifted by off = dy*WP + dx.
        # The roll is the XLU's job; the per-batch zero-padded lane tail
        # guarantees kept output columns never wrap / cross a batch slab.
        src = comb if off == 0 else pltpu.roll(comb, shift=n_cols - off, axis=1)
        acc_ref[...] += jnp.dot(w_ref[t], src.astype(jnp.bfloat16),
                                preferred_element_type=jnp.float32)

    # Gates: 8-aligned sublane slices of the channel-major accumulator,
    # sigmoid / tanh each applied only where needed, at full lane width.
    i = jax.nn.sigmoid(acc_ref[0 * hd:1 * hd, :])
    f = jax.nn.sigmoid(acc_ref[1 * hd:2 * hd, :])
    o = jax.nn.sigmoid(acc_ref[2 * hd:3 * hd, :])
    g = jnp.tanh(acc_ref[3 * hd:4 * hd, :])

    c_cur = c_ref[...]                                          # (C_hid, N) f32
    c_next = f * c_cur + i * g
    h_next = o * jnp.tanh(c_next)

    h_out_ref[...] = h_next.astype(h_out_ref.dtype)
    c_out_ref[...] = c_next.astype(c_out_ref.dtype)


def _group_lanes(a, num_steps, bs):
    """(B, C, L) -> (num_steps, C, bs*L); batch folded onto lanes, b-major."""
    B, C, L = a.shape
    a = a.reshape(num_steps, bs, C, L)
    a = jnp.transpose(a, (0, 2, 1, 3))
    return a.reshape(num_steps, C, bs * L)


def _ungroup_lanes(a, B, bs):
    """(num_steps, C, bs*L) -> (B, C, L)."""
    num_steps, C, NL = a.shape
    L = NL // bs
    a = a.reshape(num_steps, C, bs, L)
    a = jnp.transpose(a, (0, 2, 1, 3))
    return a.reshape(B, C, L)


def conv_lstm_cell_forward(x_nchw, h_nchw, c_nchw, weight_oihw, bias,
                           kernel_size, batch_per_step=None):
    """Pallas ConvLSTMCell forward.  PyTorch-convention arguments:

    x_nchw      : (B, input_dim, H, W)
    h_nchw      : (B, hidden_dim, H, W)
    c_nchw      : (B, hidden_dim, H, W)
    weight_oihw : (4*hidden_dim, input_dim+hidden_dim, kh, kw)
    bias        : (4*hidden_dim,)
    Returns (h_next, c_next) in NCHW.
    """
    B, Cin, H, W = x_nchw.shape
    C_hid = h_nchw.shape[1]
    KH, KW = kernel_size
    # PyTorch Conv2d(padding=kernel_size//2) is only 'same' for odd kernels.
    assert KH % 2 == 1 and KW % 2 == 1, "kernel_size must be odd (same-padding)"
    pad_h, pad_w = KH // 2, KW // 2
    HP, WP = H + 2 * pad_h, W + 2 * pad_w
    C_comb = Cin + C_hid
    C4 = 4 * C_hid
    Cp = _round_up(C_comb, 128)          # padded conv K dim (full 128 lanes)
    Lsp = HP * WP                        # flattened padded spatial length
    L = _round_up(Lsp, 128)              # per-batch lane slab (zero tail)

    # Grid plan: one batch element per parallel step on 2-TC chips (v7x);
    # fold the whole batch into lanes on single-TC chips (v5e / v6e).
    if batch_per_step is None:
        batch_per_step = 1 if _tensorcores_per_chip() >= 2 else B
    bs = max(1, min(int(batch_per_step), B))
    while B % bs:
        bs -= 1
    num_steps = B // bs
    N = bs * L

    f32 = jnp.float32

    # ---- combined input, channel-major (NCHW already is), zero-padded ------
    comb = jnp.concatenate([x_nchw, h_nchw], axis=1).astype(f32)  # (B,Cc,H,W)
    comb = jnp.pad(comb, ((0, 0), (0, Cp - C_comb),
                          (pad_h, pad_h), (pad_w, pad_w)))        # (B,Cp,HP,WP)
    comb = comb.reshape(B, Cp, Lsp)
    comb = jnp.pad(comb, ((0, 0), (0, 0), (0, L - Lsp)))          # (B,Cp,L)
    comb = _group_lanes(comb, num_steps, bs)                      # (S,Cp,bs*L)

    # ---- cell state embedded at the same flat (padded-resolution) columns --
    c = jnp.pad(c_nchw.astype(f32),
                ((0, 0), (0, 0), (0, HP - H), (0, WP - W)))
    c = c.reshape(B, C_hid, Lsp)
    c = jnp.pad(c, ((0, 0), (0, 0), (0, L - Lsp)))
    c = _group_lanes(c, num_steps, bs)                            # (S,Chid,bs*L)

    # ---- per-tap transposed conv weights (bf16), zero-padded K rows ---------
    w = jnp.transpose(weight_oihw, (2, 3, 0, 1))                  # (KH,KW,4C,Cc)
    w = jnp.pad(w, ((0, 0), (0, 0), (0, 0), (0, Cp - C_comb)))
    w = w.reshape(KH * KW, C4, Cp).astype(jnp.bfloat16)
    b2 = bias.reshape(C4, 1).astype(f32)

    # flat-lane shift of tap (dy, dx)
    offsets = tuple(dy * WP + dx for dy in range(KH) for dx in range(KW))

    kernel = functools.partial(_convlstm_kernel, offsets=offsets,
                               hidden_dim=C_hid)
    out_sds = jax.ShapeDtypeStruct((num_steps, C_hid, N), x_nchw.dtype)

    h_pk, c_pk = pl.pallas_call(
        kernel,
        out_shape=(out_sds, out_sds),
        grid_spec=pltpu.PrefetchScalarGridSpec(
            num_scalar_prefetch=0,
            grid=(num_steps,),
            in_specs=[
                pl.BlockSpec((None, Cp, N), lambda s: (s, 0, 0)),       # comb
                pl.BlockSpec((KH * KW, C4, Cp), lambda s: (0, 0, 0)),   # weights
                pl.BlockSpec((C4, 1), lambda s: (0, 0)),                # bias
                pl.BlockSpec((None, C_hid, N), lambda s: (s, 0, 0)),    # c_cur
            ],
            out_specs=(
                pl.BlockSpec((None, C_hid, N), lambda s: (s, 0, 0)),    # h_next
                pl.BlockSpec((None, C_hid, N), lambda s: (s, 0, 0)),    # c_next
            ),
            scratch_shapes=[
                pltpu.VMEM((C4, N), jnp.float32),                       # conv acc
            ],
        ),
        compiler_params=pltpu.CompilerParams(
            dimension_semantics=("parallel",)),
    )(comb, w, b2, c)

    # ---- unpack: drop lane padding, crop the padded-resolution interior -----
    def unpack(pk):
        a = _ungroup_lanes(pk, B, bs)[:, :, :Lsp]        # (B, C_hid, HP*WP)
        a = a.reshape(B, C_hid, HP, WP)[:, :, :H, :W]    # NCHW, no transpose
        return a

    return unpack(h_pk), unpack(c_pk)


def _reference_forward(x, h, c, w_oihw, bias):
    """Pure-JAX reference matching the PyTorch module (NCHW, full f32)."""
    combined = jnp.concatenate([x, h], axis=1)
    kh, kw = w_oihw.shape[2], w_oihw.shape[3]
    out = jax.lax.conv_general_dilated(
        combined, w_oihw,
        window_strides=(1, 1),
        padding=((kh // 2, kh // 2), (kw // 2, kw // 2)),
        dimension_numbers=("NCHW", "OIHW", "NCHW"),
        precision=jax.lax.Precision.HIGHEST,
    ) + bias[None, :, None, None]
    cc_i, cc_f, cc_o, cc_g = jnp.split(out, 4, axis=1)
    i = jax.nn.sigmoid(cc_i)
    f = jax.nn.sigmoid(cc_f)
    o = jax.nn.sigmoid(cc_o)
    g = jnp.tanh(cc_g)
    c_next = f * c + i * g
    h_next = o * jnp.tanh(c_next)
    return h_next, c_next


if __name__ == "__main__":
    # Module config: input_size=(16,16), input_dim=4, hidden_dim=32,
    # kernel_size=(3,3), bias=True
    B, Cin, C_hid, H, W = 2, 4, 32, 16, 16
    KH, KW = 3, 3

    key = jax.random.PRNGKey(0)
    kx, khk, kck, kwk, kbk = jax.random.split(key, 5)

    x = jax.random.normal(kx, (B, Cin, H, W), jnp.float32)
    h_cur = jax.random.normal(khk, (B, C_hid, H, W), jnp.float32)
    c_cur = jax.random.normal(kck, (B, C_hid, H, W), jnp.float32)

    # deterministic synthetic conv parameters (shapes from nn.Conv2d)
    fan_in = (Cin + C_hid) * KH * KW
    bound = 1.0 / (fan_in ** 0.5)
    weight = jax.random.uniform(
        kwk, (4 * C_hid, Cin + C_hid, KH, KW), jnp.float32, -bound, bound)
    bias = jax.random.uniform(kbk, (4 * C_hid,), jnp.float32, -bound, bound)

    fwd = jax.jit(functools.partial(conv_lstm_cell_forward,
                                    kernel_size=(KH, KW)))
    h_next, c_next = fwd(x, h_cur, c_cur, weight, bias)
    jax.block_until_ready((h_next, c_next))

    h_ref, c_ref = _reference_forward(x, h_cur, c_cur, weight, bias)
    jax.block_until_ready((h_ref, c_ref))

    assert h_next.shape == (B, C_hid, H, W) and c_next.shape == (B, C_hid, H, W)
    # Kernel uses explicit bf16 MXU operands (f32 accumulate); reference is
    # full-f32 HIGHEST precision -> tolerance sized for bf16 operand rounding.
    assert jnp.allclose(h_next, h_ref, atol=2e-2, rtol=2e-2)
    assert jnp.allclose(c_next, c_ref, atol=2e-2, rtol=2e-2)

    print("KERNEL_OK")
</pallas_src>

<mosaic_0001>
module attributes {stable_mosaic.version = 11 : i64} {
  func.func @_convlstm_kernel(%arg0: i32, %arg1: memref<1x128x768xf32, #tpu.memory_space<vmem>>, %arg2: memref<9x128x128xbf16, #tpu.memory_space<vmem>>, %arg3: memref<128x1xf32, #tpu.memory_space<vmem>>, %arg4: memref<1x32x768xf32, #tpu.memory_space<vmem>>, %arg5: memref<1x32x768xf32, #tpu.memory_space<vmem>>, %arg6: memref<1x32x768xf32, #tpu.memory_space<vmem>>, %arg7: memref<128x768xf32, #tpu.memory_space<vmem>>) attributes {dimension_semantics = [#tpu.dimension_semantics<parallel>], iteration_bounds = array<i64: 1>, scalar_prefetch = 0 : i64, scratch_operands = 1 : i64, tpu.core_type = #tpu.core_type<tc>, window_params = [{transform_indices = @transform_0, window_bounds = array<i64: 1, 128, 768>}, {pipeline_mode = #tpu.pipeline_mode<synchronous>, transform_indices = @transform_1, window_bounds = array<i64: 9, 128, 128>}, {pipeline_mode = #tpu.pipeline_mode<synchronous>, transform_indices = @transform_2, window_bounds = array<i64: 128, 1>}, {transform_indices = @transform_3, window_bounds = array<i64: 1, 32, 768>}, {transform_indices = @transform_4, window_bounds = array<i64: 1, 32, 768>}, {transform_indices = @transform_5, window_bounds = array<i64: 1, 32, 768>}]} {
    %c0 = arith.constant 0 : index
    %c0_0 = arith.constant 0 : index
    %0 = vector.load %arg3[%c0, %c0_0] : memref<128x1xf32, #tpu.memory_space<vmem>>, vector<128x1xf32>
    %1 = vector.shape_cast %0 : vector<128x1xf32> to vector<128x1xf32>
    %2 = vector.broadcast %1 : vector<128x1xf32> to vector<128x768xf32>
    %c0_1 = arith.constant 0 : index
    %c0_2 = arith.constant 0 : index
    %3 = vector.load %arg7[%c0_1, %c0_2] : memref<128x768xf32, #tpu.memory_space<vmem>>, vector<128x768xf32>
    tpu.vector_store %arg7[%c0_1, %c0_2], %2 {strides = array<i32>} : memref<128x768xf32, #tpu.memory_space<vmem>>, vector<128x768xf32>,
    %c0_3 = arith.constant 0 : index
    %c0_4 = arith.constant 0 : index
    %c0_5 = arith.constant 0 : index
    %4 = vector.load %arg1[%c0_3, %c0_4, %c0_5] : memref<1x128x768xf32, #tpu.memory_space<vmem>>, vector<1x128x768xf32>
    %5 = vector.shape_cast %4 : vector<1x128x768xf32> to vector<128x768xf32>
    %c0_6 = arith.constant 0 : index
    %c0_7 = arith.constant 0 : index
    %6 = vector.load %arg7[%c0_6, %c0_7] : memref<128x768xf32, #tpu.memory_space<vmem>>, vector<128x768xf32>
    %c0_8 = arith.constant 0 : index
    %c0_9 = arith.constant 0 : index
    %c0_10 = arith.constant 0 : index
    %7 = vector.load %arg2[%c0_8, %c0_9, %c0_10] : memref<9x128x128xbf16, #tpu.memory_space<vmem>>, vector<1x128x128xbf16>
    %8 = vector.shape_cast %7 : vector<1x128x128xbf16> to vector<128x128xbf16>
    %9 = arith.truncf %5 : vector<128x768xf32> to vector<128x768xbf16>
    %cst = arith.constant dense<0.000000e+00> : vector<128x768xf32>
    %10 = tpu.matmul %8, %9, %cst {dimension_numbers = #tpu.dot_dimension_numbers<[1], [0], [0], [1], [0, 0, 1, 1], [], []>} : vector<128x128xbf16>, vector<128x768xbf16>, vector<128x768xf32> -> vector<128x768xf32>
    %11 = arith.addf %6, %10 : vector<128x768xf32>
    %c0_11 = arith.constant 0 : index
    %c0_12 = arith.constant 0 : index
    %12 = vector.load %arg7[%c0_11, %c0_12] : memref<128x768xf32, #tpu.memory_space<vmem>>, vector<128x768xf32>
    tpu.vector_store %arg7[%c0_11, %c0_12], %11 {strides = array<i32>} : memref<128x768xf32, #tpu.memory_space<vmem>>, vector<128x768xf32>,
    %c767_i32 = arith.constant 767 : i32
    %13 = tpu.dynamic_rotate %5 by %c767_i32 dim 1 : vector<128x768xf32>, i32 -> vector<128x768xf32>
    %c0_13 = arith.constant 0 : index
    %c0_14 = arith.constant 0 : index
    %14 = vector.load %arg7[%c0_13, %c0_14] : memref<128x768xf32, #tpu.memory_space<vmem>>, vector<128x768xf32>
    %c1 = arith.constant 1 : index
    %c0_15 = arith.constant 0 : index
    %c0_16 = arith.constant 0 : index
    %15 = vector.load %arg2[%c1, %c0_15, %c0_16] : memref<9x128x128xbf16, #tpu.memory_space<vmem>>, vector<1x128x128xbf16>
    %16 = vector.shape_cast %15 : vector<1x128x128xbf16> to vector<128x128xbf16>
    %17 = arith.truncf %13 : vector<128x768xf32> to vector<128x768xbf16>
    %cst_17 = arith.constant dense<0.000000e+00> : vector<128x768xf32>
    %18 = tpu.matmul %16, %17, %cst_17 {dimension_numbers = #tpu.dot_dimension_numbers<[1], [0], [0], [1], [0, 0, 1, 1], [], []>} : vector<128x128xbf16>, vector<128x768xbf16>, vector<128x768xf32> -> vector<128x768xf32>
    %19 = arith.addf %14, %18 : vector<128x768xf32>
    %c0_18 = arith.constant 0 : index
    %c0_19 = arith.constant 0 : index
    %20 = vector.load %arg7[%c0_18, %c0_19] : memref<128x768xf32, #tpu.memory_space<vmem>>, vector<128x768xf32>
    tpu.vector_store %arg7[%c0_18, %c0_19], %19 {strides = array<i32>} : memref<128x768xf32, #tpu.memory_space<vmem>>, vector<128x768xf32>,
    %c766_i32 = arith.constant 766 : i32
    %21 = tpu.dynamic_rotate %5 by %c766_i32 dim 1 : vector<128x768xf32>, i32 -> vector<128x768xf32>
    %c0_20 = arith.constant 0 : index
    %c0_21 = arith.constant 0 : index
    %22 = vector.load %arg7[%c0_20, %c0_21] : memref<128x768xf32, #tpu.memory_space<vmem>>, vector<128x768xf32>
    %c2 = arith.constant 2 : index
    %c0_22 = arith.constant 0 : index
    %c0_23 = arith.constant 0 : index
    %23 = vector.load %arg2[%c2, %c0_22, %c0_23] : memref<9x128x128xbf16, #tpu.memory_space<vmem>>, vector<1x128x128xbf16>
    %24 = vector.shape_cast %23 : vector<1x128x128xbf16> to vector<128x128xbf16>
    %25 = arith.truncf %21 : vector<128x768xf32> to vector<128x768xbf16>
    %cst_24 = arith.constant dense<0.000000e+00> : vector<128x768xf32>
    %26 = tpu.matmul %24, %25, %cst_24 {dimension_numbers = #tpu.dot_dimension_numbers<[1], [0], [0], [1], [0, 0, 1, 1], [], []>} : vector<128x128xbf16>, vector<128x768xbf16>, vector<128x768xf32> -> vector<128x768xf32>
    %27 = arith.addf %22, %26 : vector<128x768xf32>
    %c0_25 = arith.constant 0 : index
    %c0_26 = arith.constant 0 : index
    %28 = vector.load %arg7[%c0_25, %c0_26] : memref<128x768xf32, #tpu.memory_space<vmem>>, vector<128x768xf32>
    tpu.vector_store %arg7[%c0_25, %c0_26], %27 {strides = array<i32>} : memref<128x768xf32, #tpu.memory_space<vmem>>, vector<128x768xf32>,
    %c750_i32 = arith.constant 750 : i32
    %29 = tpu.dynamic_rotate %5 by %c750_i32 dim 1 : vector<128x768xf32>, i32 -> vector<128x768xf32>
    %c0_27 = arith.constant 0 : index
    %c0_28 = arith.constant 0 : index
    %30 = vector.load %arg7[%c0_27, %c0_28] : memref<128x768xf32, #tpu.memory_space<vmem>>, vector<128x768xf32>
    %c3 = arith.constant 3 : index
    %c0_29 = arith.constant 0 : index
    %c0_30 = arith.constant 0 : index
    %31 = vector.load %arg2[%c3, %c0_29, %c0_30] : memref<9x128x128xbf16, #tpu.memory_space<vmem>>, vector<1x128x128xbf16>
    %32 = vector.shape_cast %31 : vector<1x128x128xbf16> to vector<128x128xbf16>
    %33 = arith.truncf %29 : vector<128x768xf32> to vector<128x768xbf16>
    %cst_31 = arith.constant dense<0.000000e+00> : vector<128x768xf32>
    %34 = tpu.matmul %32, %33, %cst_31 {dimension_numbers = #tpu.dot_dimension_numbers<[1], [0], [0], [1], [0, 0, 1, 1], [], []>} : vector<128x128xbf16>, vector<128x768xbf16>, vector<128x768xf32> -> vector<128x768xf32>
    %35 = arith.addf %30, %34 : vector<128x768xf32>
    %c0_32 = arith.constant 0 : index
    %c0_33 = arith.constant 0 : index
    %36 = vector.load %arg7[%c0_32, %c0_33] : memref<128x768xf32, #tpu.memory_space<vmem>>, vector<128x768xf32>
    tpu.vector_store %arg7[%c0_32, %c0_33], %35 {strides = array<i32>} : memref<128x768xf32, #tpu.memory_space<vmem>>, vector<128x768xf32>,
    %c749_i32 = arith.constant 749 : i32
    %37 = tpu.dynamic_rotate %5 by %c749_i32 dim 1 : vector<128x768xf32>, i32 -> vector<128x768xf32>
    %c0_34 = arith.constant 0 : index
    %c0_35 = arith.constant 0 : index
    %38 = vector.load %arg7[%c0_34, %c0_35] : memref<128x768xf32, #tpu.memory_space<vmem>>, vector<128x768xf32>
    %c4 = arith.constant 4 : index
    %c0_36 = arith.constant 0 : index
    %c0_37 = arith.constant 0 : index
    %39 = vector.load %arg2[%c4, %c0_36, %c0_37] : memref<9x128x128xbf16, #tpu.memory_space<vmem>>, vector<1x128x128xbf16>
    %40 = vector.shape_cast %39 : vector<1x128x128xbf16> to vector<128x128xbf16>
    %41 = arith.truncf %37 : vector<128x768xf32> to vector<128x768xbf16>
    %cst_38 = arith.constant dense<0.000000e+00> : vector<128x768xf32>
    %42 = tpu.matmul %40, %41, %cst_38 {dimension_numbers = #tpu.dot_dimension_numbers<[1], [0], [0], [1], [0, 0, 1, 1], [], []>} : vector<128x128xbf16>, vector<128x768xbf16>, vector<128x768xf32> -> vector<128x768xf32>
    %43 = arith.addf %38, %42 : vector<128x768xf32>
    %c0_39 = arith.constant 0 : index
    %c0_40 = arith.constant 0 : index
    %44 = vector.load %arg7[%c0_39, %c0_40] : memref<128x768xf32, #tpu.memory_space<vmem>>, vector<128x768xf32>
    tpu.vector_store %arg7[%c0_39, %c0_40], %43 {strides = array<i32>} : memref<128x768xf32, #tpu.memory_space<vmem>>, vector<128x768xf32>,
    %c748_i32 = arith.constant 748 : i32
    %45 = tpu.dynamic_rotate %5 by %c748_i32 dim 1 : vector<128x768xf32>, i32 -> vector<128x768xf32>
    %c0_41 = arith.constant 0 : index
    %c0_42 = arith.constant 0 : index
    %46 = vector.load %arg7[%c0_41, %c0_42] : memref<128x768xf32, #tpu.memory_space<vmem>>, vector<128x768xf32>
    %c5 = arith.constant 5 : index
    %c0_43 = arith.constant 0 : index
    %c0_44 = arith.constant 0 : index
    %47 = vector.load %arg2[%c5, %c0_43, %c0_44] : memref<9x128x128xbf16, #tpu.memory_space<vmem>>, vector<1x128x128xbf16>
    %48 = vector.shape_cast %47 : vector<1x128x128xbf16> to vector<128x128xbf16>
    %49 = arith.truncf %45 : vector<128x768xf32> to vector<128x768xbf16>
    %cst_45 = arith.constant dense<0.000000e+00> : vector<128x768xf32>
    %50 = tpu.matmul %48, %49, %cst_45 {dimension_numbers = #tpu.dot_dimension_numbers<[1], [0], [0], [1], [0, 0, 1, 1], [], []>} : vector<128x128xbf16>, vector<128x768xbf16>, vector<128x768xf32> -> vector<128x768xf32>
    %51 = arith.addf %46, %50 : vector<128x768xf32>
    %c0_46 = arith.constant 0 : index
    %c0_47 = arith.constant 0 : index
    %52 = vector.load %arg7[%c0_46, %c0_47] : memref<128x768xf32, #tpu.memory_space<vmem>>, vector<128x768xf32>
    tpu.vector_store %arg7[%c0_46, %c0_47], %51 {strides = array<i32>} : memref<128x768xf32, #tpu.memory_space<vmem>>, vector<128x768xf32>,
    %c732_i32 = arith.constant 732 : i32
    %53 = tpu.dynamic_rotate %5 by %c732_i32 dim 1 : vector<128x768xf32>, i32 -> vector<128x768xf32>
    %c0_48 = arith.constant 0 : index
    %c0_49 = arith.constant 0 : index
    %54 = vector.load %arg7[%c0_48, %c0_49] : memref<128x768xf32, #tpu.memory_space<vmem>>, vector<128x768xf32>
    %c6 = arith.constant 6 : index
    %c0_50 = arith.constant 0 : index
    %c0_51 = arith.constant 0 : index
    %55 = vector.load %arg2[%c6, %c0_50, %c0_51] : memref<9x128x128xbf16, #tpu.memory_space<vmem>>, vector<1x128x128xbf16>
    %56 = vector.shape_cast %55 : vector<1x128x128xbf16> to vector<128x128xbf16>
    %57 = arith.truncf %53 : vector<128x768xf32> to vector<128x768xbf16>
    %cst_52 = arith.constant dense<0.000000e+00> : vector<128x768xf32>
    %58 = tpu.matmul %56, %57, %cst_52 {dimension_numbers = #tpu.dot_dimension_numbers<[1], [0], [0], [1], [0, 0, 1, 1], [], []>} : vector<128x128xbf16>, vector<128x768xbf16>, vector<128x768xf32> -> vector<128x768xf32>
    %59 = arith.addf %54, %58 : vector<128x768xf32>
    %c0_53 = arith.constant 0 : index
    %c0_54 = arith.constant 0 : index
    %60 = vector.load %arg7[%c0_53, %c0_54] : memref<128x768xf32, #tpu.memory_space<vmem>>, vector<128x768xf32>
    tpu.vector_store %arg7[%c0_53, %c0_54], %59 {strides = array<i32>} : memref<128x768xf32, #tpu.memory_space<vmem>>, vector<128x768xf32>,
    %c731_i32 = arith.constant 731 : i32
    %61 = tpu.dynamic_rotate %5 by %c731_i32 dim 1 : vector<128x768xf32>, i32 -> vector<128x768xf32>
    %c0_55 = arith.constant 0 : index
    %c0_56 = arith.constant 0 : index
    %62 = vector.load %arg7[%c0_55, %c0_56] : memref<128x768xf32, #tpu.memory_space<vmem>>, vector<128x768xf32>
    %c7 = arith.constant 7 : index
    %c0_57 = arith.constant 0 : index
    %c0_58 = arith.constant 0 : index
    %63 = vector.load %arg2[%c7, %c0_57, %c0_58] : memref<9x128x128xbf16, #tpu.memory_space<vmem>>, vector<1x128x128xbf16>
    %64 = vector.shape_cast %63 : vector<1x128x128xbf16> to vector<128x128xbf16>
    %65 = arith.truncf %61 : vector<128x768xf32> to vector<128x768xbf16>
    %cst_59 = arith.constant dense<0.000000e+00> : vector<128x768xf32>
    %66 = tpu.matmul %64, %65, %cst_59 {dimension_numbers = #tpu.dot_dimension_numbers<[1], [0], [0], [1], [0, 0, 1, 1], [], []>} : vector<128x128xbf16>, vector<128x768xbf16>, vector<128x768xf32> -> vector<128x768xf32>
    %67 = arith.addf %62, %66 : vector<128x768xf32>
    %c0_60 = arith.constant 0 : index
    %c0_61 = arith.constant 0 : index
    %68 = vector.load %arg7[%c0_60, %c0_61] : memref<128x768xf32, #tpu.memory_space<vmem>>, vector<128x768xf32>
    tpu.vector_store %arg7[%c0_60, %c0_61], %67 {strides = array<i32>} : memref<128x768xf32, #tpu.memory_space<vmem>>, vector<128x768xf32>,
    %c730_i32 = arith.constant 730 : i32
    %69 = tpu.dynamic_rotate %5 by %c730_i32 dim 1 : vector<128x768xf32>, i32 -> vector<128x768xf32>
    %c0_62 = arith.constant 0 : index
    %c0_63 = arith.constant 0 : index
    %70 = vector.load %arg7[%c0_62, %c0_63] : memref<128x768xf32, #tpu.memory_space<vmem>>, vector<128x768xf32>
    %c8 = arith.constant 8 : index
    %c0_64 = arith.constant 0 : index
    %c0_65 = arith.constant 0 : index
    %71 = vector.load %arg2[%c8, %c0_64, %c0_65] : memref<9x128x128xbf16, #tpu.memory_space<vmem>>, vector<1x128x128xbf16>
    %72 = vector.shape_cast %71 : vector<1x128x128xbf16> to vector<128x128xbf16>
    %73 = arith.truncf %69 : vector<128x768xf32> to vector<128x768xbf16>
    %cst_66 = arith.constant dense<0.000000e+00> : vector<128x768xf32>
    %74 = tpu.matmul %72, %73, %cst_66 {dimension_numbers = #tpu.dot_dimension_numbers<[1], [0], [0], [1], [0, 0, 1, 1], [], []>} : vector<128x128xbf16>, vector<128x768xbf16>, vector<128x768xf32> -> vector<128x768xf32>
    %75 = arith.addf %70, %74 : vector<128x768xf32>
    %c0_67 = arith.constant 0 : index
    %c0_68 = arith.constant 0 : index
    %76 = vector.load %arg7[%c0_67, %c0_68] : memref<128x768xf32, #tpu.memory_space<vmem>>, vector<128x768xf32>
    tpu.vector_store %arg7[%c0_67, %c0_68], %75 {strides = array<i32>} : memref<128x768xf32, #tpu.memory_space<vmem>>, vector<128x768xf32>,
    %c0_69 = arith.constant 0 : index
    %c0_70 = arith.constant 0 : index
    %77 = vector.load %arg7[%c0_69, %c0_70] : memref<128x768xf32, #tpu.memory_space<vmem>>, vector<32x768xf32>
    %78 = arith.negf %77 : vector<32x768xf32>
    %79 = math.exp %78 : vector<32x768xf32>
    %cst_71 = arith.constant 1.000000e+00 : f32
    %80 = vector.broadcast %cst_71 : f32 to vector<32x768xf32>
    %81 = arith.addf %80, %79 : vector<32x768xf32>
    %82 = arith.divf %80, %81 : vector<32x768xf32>
    %c32 = arith.constant 32 : index
    %c0_72 = arith.constant 0 : index
    %83 = vector.load %arg7[%c32, %c0_72] : memref<128x768xf32, #tpu.memory_space<vmem>>, vector<32x768xf32>
    %84 = arith.negf %83 : vector<32x768xf32>
    %85 = math.exp %84 : vector<32x768xf32>
    %cst_73 = arith.constant 1.000000e+00 : f32
    %86 = vector.broadcast %cst_73 : f32 to vector<32x768xf32>
    %87 = arith.addf %86, %85 : vector<32x768xf32>
    %88 = arith.divf %86, %87 : vector<32x768xf32>
    %c64 = arith.constant 64 : index
    %c0_74 = arith.constant 0 : index
    %89 = vector.load %arg7[%c64, %c0_74] : memref<128x768xf32, #tpu.memory_space<vmem>>, vector<32x768xf32>
    %90 = arith.negf %89 : vector<32x768xf32>
    %91 = math.exp %90 : vector<32x768xf32>
    %cst_75 = arith.constant 1.000000e+00 : f32
    %92 = vector.broadcast %cst_75 : f32 to vector<32x768xf32>
    %93 = arith.addf %92, %91 : vector<32x768xf32>
    %94 = arith.divf %92, %93 : vector<32x768xf32>
    %c96 = arith.constant 96 : index
    %c0_76 = arith.constant 0 : index
    %95 = vector.load %arg7[%c96, %c0_76] : memref<128x768xf32, #tpu.memory_space<vmem>>, vector<32x768xf32>
    %96 = math.tanh %95 : vector<32x768xf32>
    %c0_77 = arith.constant 0 : index
    %c0_78 = arith.constant 0 : index
    %c0_79 = arith.constant 0 : index
    %97 = vector.load %arg4[%c0_77, %c0_78, %c0_79] : memref<1x32x768xf32, #tpu.memory_space<vmem>>, vector<1x32x768xf32>
    %98 = vector.shape_cast %97 : vector<1x32x768xf32> to vector<32x768xf32>
    %99 = arith.mulf %88, %98 : vector<32x768xf32>
    %100 = arith.mulf %82, %96 : vector<32x768xf32>
    %101 = arith.addf %99, %100 : vector<32x768xf32>
    %102 = math.tanh %101 : vector<32x768xf32>
    %103 = arith.mulf %94, %102 : vector<32x768xf32>
    %c0_80 = arith.constant 0 : index
    %c0_81 = arith.constant 0 : index
    %c0_82 = arith.constant 0 : index
    %104 = vector.load %arg5[%c0_80, %c0_81, %c0_82] : memref<1x32x768xf32, #tpu.memory_space<vmem>>, vector<1x32x768xf32>
    %105 = vector.shape_cast %104 : vector<1x32x768xf32> to vector<32x768xf32>
    %106 = vector.shape_cast %103 : vector<32x768xf32> to vector<1x32x768xf32>
    tpu.vector_store %arg5[%c0_80, %c0_81, %c0_82], %106 {strides = array<i32>} : memref<1x32x768xf32, #tpu.memory_space<vmem>>, vector<1x32x768xf32>,
    %c0_83 = arith.constant 0 : index
    %c0_84 = arith.constant 0 : index
    %c0_85 = arith.constant 0 : index
    %107 = vector.load %arg6[%c0_83, %c0_84, %c0_85] : memref<1x32x768xf32, #tpu.memory_space<vmem>>, vector<1x32x768xf32>
    %108 = vector.shape_cast %107 : vector<1x32x768xf32> to vector<32x768xf32>
    %109 = vector.shape_cast %101 : vector<32x768xf32> to vector<1x32x768xf32>
    tpu.vector_store %arg6[%c0_83, %c0_84, %c0_85], %109 {strides = array<i32>} : memref<1x32x768xf32, #tpu.memory_space<vmem>>, vector<1x32x768xf32>,
    return
  }
  func.func @transform_0(%arg0: i32) -> (i32, i32, i32) {
    %c0_i32 = arith.constant 0 : i32
    %c0_i32_0 = arith.constant 0 : i32
    %c0_i32_1 = arith.constant 0 : i32
    return %arg0, %c0_i32, %c0_i32_0 : i32, i32, i32
  }
  func.func @transform_1(%arg0: i32) -> (i32, i32, i32) {
    %c0_i32 = arith.constant 0 : i32
    %c0_i32_0 = arith.constant 0 : i32
    %c0_i32_1 = arith.constant 0 : i32
    %c0_i32_2 = arith.constant 0 : i32
    return %c0_i32, %c0_i32_0, %c0_i32_1 : i32, i32, i32
  }
  func.func @transform_2(%arg0: i32) -> (i32, i32) {
    %c0_i32 = arith.constant 0 : i32
    %c0_i32_0 = arith.constant 0 : i32
    %c0_i32_1 = arith.constant 0 : i32
    return %c0_i32, %c0_i32_0 : i32, i32
  }
  func.func @transform_3(%arg0: i32) -> (i32, i32, i32) {
    %c0_i32 = arith.constant 0 : i32
    %c0_i32_0 = arith.constant 0 : i32
    %c0_i32_1 = arith.constant 0 : i32
    return %arg0, %c0_i32, %c0_i32_0 : i32, i32, i32
  }
  func.func @transform_4(%arg0: i32) -> (i32, i32, i32) {
    %c0_i32 = arith.constant 0 : i32
    %c0_i32_0 = arith.constant 0 : i32
    %c0_i32_1 = arith.constant 0 : i32
    return %arg0, %c0_i32, %c0_i32_0 : i32, i32, i32
  }
  func.func @transform_5(%arg0: i32) -> (i32, i32, i32) {
    %c0_i32 = arith.constant 0 : i32
    %c0_i32_0 = arith.constant 0 : i32
    %c0_i32_1 = arith.constant 0 : i32
    return %arg0, %c0_i32, %c0_i32_0 : i32, i32, i32
  }
}

</mosaic_0001>

<bundles_post_ra>
// kernel: conv_lstm_cell_forward.1
= control target key start
LH: loop header
LB: loop body
LE: loop exit
PB: predicated region body
PF: predicated region fallthrough
CT: control target
= control target key end

     0   :  { %v24439_v0 = vmov 0   ;;  %s13990_s23 = smov 127   ;;  %s13991_s8 = smov 126   ;;  %s24433_s2 = inlined_call_operand.vmem [shape: f32[128,1], index: 2, kind: input, shape index: {}]   ;;  %s24434_s0 = inlined_call_operand.vmem [shape: f32[1,128,768], index: 0, kind: input, shape index: {}]   ;;  %s24435_s1 = inlined_call_operand.vmem [shape: bf16[9,128,128], index: 1, kind: input, shape index: {}]   ;;  %s24436_s3 = inlined_call_operand.vmem [shape: f32[1,32,768], index: 3, kind: input, shape index: {}]   ;;  %s24437_s5 = inlined_call_operand.vmem [shape: f32[1,32,768], index: 5, kind: output, shape index: {1}]   ;;  %s24438_s4 = inlined_call_operand.vmem [shape: f32[1,32,768], index: 4, kind: output, shape index: {0}]  }
   0x1   :  { %11195 = vset.pattern.permute.xlu1 %v24439_v0  ;;  %11194 = vset.pattern.permute.xlu0 %v24439_v0  ;;  %v22_v1 = vld [vmem:[%s24433_s2 + $0x10] sm:$0xff]  ;;  %v20_v2 = vld [vmem:[%s24433_s2] sm:$0xff]  ;;  %v23_v3 = vld [vmem:[%s24433_s2 + $0x18] sm:$0xff]  ;;  %s13992_s21 = smov 110   ;;  %s13993_s10 = smov 109  }
   0x2   :  { %48 = vperm.xlu1 %11195, %v22_v1   ;;  %38 = vperm.xlu0 %11194, %v20_v2   ;;  %v14042_v4 = vld [vmem:[%s24434_s0 + $0x8] sm:$0xff]  ;;  %v14047_v5 = vld [vmem:[%s24434_s0 + $0x38] sm:$0xff]  ;;  %v14057_v8 = vld [vmem:[%s24434_s0] sm:$0xff]  ;;  %s13994_s15 = smov 108   ;;  %s13995_s12 = smov 92  }
   0x3   :  { %v21_v6 = vld [vmem:[%s24433_s2 + $0x8] sm:$0xff]  ;;  %v421_v7 = vpack.c.bf16 %v14047_v5, %v14042_v4  ;;  %v14062_v9 = vld [vmem:[%s24434_s0 + $0x30] sm:$0xff]  ;;  %548 = vmatprep.mubr.bf16.mxu1 %v24439_v0  ;;  %2608 = vmatprep.mubr.bf16.mxu0 %v24439_v0  ;;  %v14076_v12 = vld [vmem:[%s24434_s0 + $0x98] sm:$0xff]  ;;  %s13996_s19 = smov 91   ;;  %s13997_s18 = smov 90  }
   0x4   :  { %v420_v10 = vpack.c.bf16 %v14062_v9, %v14057_v8  ;;  %v14071_v11 = vld [vmem:[%s24434_s0 + $0x68] sm:$0xff]  ;;  %v14083_v14 = vld [vmem:[%s24434_s0 + $0x60] sm:$0xff]  ;;  %v14088_v15 = vld [vmem:[%s24434_s0 + $0x90] sm:$0xff] }
   0x5   :  { %516 = vmatprep.subr.bf16.mxu1 %v421_v7  ;;  %v427_v13 = vpack.c.bf16 %v14076_v12, %v14071_v11  ;;  %v14093_v16 = vld [vmem:[%s24434_s0 + $0xc8] sm:$0xff]  ;;  %v14098_v17 = vld [vmem:[%s24434_s0 + $0xf8] sm:$0xff]  ;;  %v24_v19 = vld [vmem:[%s24433_s2 + $0x20] sm:$0xff]  ;;  %v426_v20 = vpack.c.bf16 %v14088_v15, %v14083_v14 }
   0x6   :  { %53 = vperm.xlu1 %11195, %v23_v3   ;;  %43 = vperm.xlu0 %11194, %v21_v6   ;;  %v25_v18 = vld [vmem:[%s24433_s2 + $0x28] sm:$0xff]  ;;  %v433_v21 = vpack.c.bf16 %v14098_v17, %v14093_v16  ;;  %v14113_v22 = vld [vmem:[%s24434_s0 + $0xc0] sm:$0xff]  ;;  %v14118_v23 = vld [vmem:[%s24434_s0 + $0xf0] sm:$0xff]  ;;  %v14266_v3 = vpack.i.bf16 %v14088_v15, %v14083_v14  ;;  %v14270_v6 = vpack.i.bf16 %v14062_v9, %v14057_v8 }
   0x7   :  { %517 = vmatpush1.bf16.msra.mxu1 %v420_v10  ;;  %v14123_v24 = vld [vmem:[%s24434_s0 + $0x128] sm:$0xff]  ;;  %v14128_v25 = vld [vmem:[%s24434_s0 + $0x158] sm:$0xff]  ;;  %v26_v27 = vld [vmem:[%s24433_s2 + $0x30] sm:$0xff]  ;;  %v432_v28 = vpack.c.bf16 %v14118_v23, %v14113_v22 }
   0x8   :  { %518 = vmatprep.subr.bf16.mxu1 %v427_v13  ;;  %v27_v26 = vld [vmem:[%s24433_s2 + $0x38] sm:$0xff]  ;;  %v439_v29 = vpack.c.bf16 %v14128_v25, %v14123_v24  ;;  %v14143_v30 = vld [vmem:[%s24434_s0 + $0x120] sm:$0xff]  ;;  %v14148_v31 = vld [vmem:[%s24434_s0 + $0x150] sm:$0xff] }
   0x9   :  { %v14153_v32 = vld [vmem:[%s24434_s0 + $0x188] sm:$0xff]  ;;  %v14158_v33 = vld [vmem:[%s24434_s0 + $0x1b8] sm:$0xff]  ;;  %v28_v35 = vld [vmem:[%s24433_s2 + $0x40] sm:$0xff]  ;;  %v438_v36 = vpack.c.bf16 %v14148_v31, %v14143_v30  ;;  %v14295_v9 = vpack.i.bf16 %v14148_v31, %v14143_v30 }
   0xa   :  { %63 = vperm.xlu1 %11195, %v25_v18   ;;  %58 = vperm.xlu0 %11194, %v24_v19   ;;  %v29_v34 = vld [vmem:[%s24433_s2 + $0x48] sm:$0xff]  ;;  %v445_v37 = vpack.c.bf16 %v14158_v33, %v14153_v32  ;;  %v14173_v38 = vld [vmem:[%s24434_s0 + $0x180] sm:$0xff]  ;;  %v14178_v39 = vld [vmem:[%s24434_s0 + $0x1b0] sm:$0xff]  ;;  %v14309_v19 = vpack.i.bf16 %v14118_v23, %v14113_v22 }
   0xb   :  { %519 = vmatpush1.bf16.msra.mxu1 %v426_v20  ;;  %v14183_v40 = vld [vmem:[%s24434_s0 + $0x1e8] sm:$0xff]  ;;  %v31_v41 = vld [vmem:[%s24433_s2 + $0x58] sm:$0xff]  ;;  %v30_v42 = vld [vmem:[%s24433_s2 + $0x50] sm:$0xff]  ;;  %v444_v45 = vpack.c.bf16 %v14178_v39, %v14173_v38 }
   0xc   :  { %520 = vmatprep.subr.bf16.mxu1 %v433_v21  ;;  %v14194_v43 = vld [vmem:[%s24434_s0 + $0x218] sm:$0xff]  ;;  %v272_v44 = vld [vmem:[%s24434_s0 + $0x1e0] sm:$0xff]  ;;  %v278_v46 = vld [vmem:[%s24434_s0 + $0x210] sm:$0xff] }
   0xd   :  { %v451_v47 = vpack.c.bf16 %v14194_v43, %v14183_v40  ;;  %v14209_v48 = vld [vmem:[%s24434_s0 + $0x248] sm:$0xff]  ;;  %v14214_v49 = vld [vmem:[%s24434_s0 + $0x278] sm:$0xff]  ;;  %v32_v51 = vld [vmem:[%s24433_s2 + $0x60] sm:$0xff]  ;;  %v450_v52 = vpack.c.bf16 %v278_v46, %v272_v44  ;;  %v14328_v22 = vpack.i.bf16 %v278_v46, %v272_v44 }
   0xe   :  { %73 = vperm.xlu1 %11195, %v27_v26   ;;  %68 = vperm.xlu0 %11194, %v26_v27   ;;  %v33_v50 = vld [vmem:[%s24433_s2 + $0x68] sm:$0xff]  ;;  %v457_v53 = vpack.c.bf16 %v14214_v49, %v14209_v48  ;;  %v284_v54 = vld [vmem:[%s24434_s0 + $0x240] sm:$0xff]  ;;  %v290_v55 = vld [vmem:[%s24434_s0 + $0x270] sm:$0xff] }
   0xf   :  { %521 = vmatpush1.bf16.msra.mxu1 %v432_v28  ;;  %v14233_v56 = vld [vmem:[%s24434_s0 + $0x2a8] sm:$0xff]  ;;  %v14238_v57 = vld [vmem:[%s24434_s0 + $0x2d8] sm:$0xff]  ;;  %v34_v59 = vld [vmem:[%s24433_s2 + $0x70] sm:$0xff]  ;;  %v456_v60 = vpack.c.bf16 %v290_v55, %v284_v54 }
  0x10   :  { %522 = vmatprep.subr.bf16.mxu1 %v439_v29  ;;  %v35_v58 = vld [vmem:[%s24433_s2 + $0x78] sm:$0xff]  ;;  %v463_v61 = vpack.c.bf16 %v14238_v57, %v14233_v56  ;;  %v296_v62 = vld [vmem:[%s24434_s0 + $0x2a0] sm:$0xff]  ;;  %v302_v63 = vld [vmem:[%s24434_s0 + $0x2d0] sm:$0xff]  ;;  %v14345_v29 = vpack.i.bf16 %v14178_v39, %v14173_v38 }
  0x11   :  { %v14257_v1 = vld [vmem:[%s24434_s0 + $0x18] sm:$0xff]  ;;  %v14262_v2 = vld [vmem:[%s24434_s0 + $0x48] sm:$0xff]  ;;  %v462_v7 = vpack.c.bf16 %v302_v63, %v296_v62  ;;  %v14275_v10 = vld [vmem:[%s24435_s1] sm:$0xff]  }
  0x12   :  { %83 = vperm.xlu1 %11195, %v29_v34   ;;  %78 = vperm.xlu0 %11194, %v28_v35   ;;  %v423_v13 = vpack.c.bf16 %v14262_v2, %v14257_v1  ;;  %v14282_v14 = vld [vmem:[%s24434_s0 + $0x10] sm:$0xff]  ;;  %v14287_v8 = vld [vmem:[%s24434_s0 + $0x40] sm:$0xff]  ;;  %v14300_v15 = vld [vmem:[%s24434_s0 + $0x78] sm:$0xff] }
  0x13   :  { %523 = vmatpush1.bf16.msra.mxu1 %v438_v36  ;;  %v14305_v18 = vld [vmem:[%s24434_s0 + $0xa8] sm:$0xff]  ;;  %v422_v20 = vpack.c.bf16 %v14287_v8, %v14282_v14  ;;  %v14318_v26 = vld [vmem:[%s24434_s0 + $0x70] sm:$0xff]  ;;  %v14323_v27 = vld [vmem:[%s24434_s0 + $0xa0] sm:$0xff] }
  0x14   :  { %524 = vmatprep.subr.bf16.mxu1 %v445_v37  ;;  %v429_v21 = vpack.c.bf16 %v14305_v18, %v14300_v15  ;;  %v14333_v23 = vld [vmem:[%s24434_s0 + $0xd8] sm:$0xff]  ;;  %v14338_v28 = vld [vmem:[%s24434_s0 + $0x108] sm:$0xff]  ;;  %v428_v30 = vpack.c.bf16 %v14323_v27, %v14318_v26  ;;  %v14354_v34 = vld [vmem:[%s24434_s0 + $0xd0] sm:$0xff]  ;;  %v14368_v37 = vpack.i.bf16 %v302_v63, %v296_v62  ;;  %v14480_v62 = vpack.i.bf16 %v14194_v43, %v14183_v40 }
  0x15   :  { %v435_v31 = vpack.c.bf16 %v14338_v28, %v14333_v23  ;;  %v14359_v35 = vld [vmem:[%s24434_s0 + $0x100] sm:$0xff]  ;;  %v14364_v36 = vld [vmem:[%s24435_s1 + $0x8] sm:$0xff]   ;;  %v14373_v38 = vld [vmem:[%s24434_s0 + $0x138] sm:$0xff]  ;;  %v14486_v63 = vpack.i.bf16 %v14158_v33, %v14153_v32 }
  0x16   :  { %93 = vperm.xlu1 %11195, %v31_v41   ;;  %88 = vperm.xlu0 %11194, %v30_v42   ;;  %v14378_v39 = vld [vmem:[%s24434_s0 + $0x168] sm:$0xff]  ;;  %v14382_v41 = vpack.i.bf16 %v290_v55, %v284_v54  ;;  %v434_v42 = vpack.c.bf16 %v14359_v35, %v14354_v34  ;;  %v14389_v44 = vld [vmem:[%s24434_s0 + $0x130] sm:$0xff]  ;;  %v14445_v55 = vpack.i.bf16 %v14128_v25, %v14123_v24  ;;  %v14496_v40 = vld [vmem:[%s24434_s0 + $0x2b8] sm:$0xff] }
  0x17   :  { %525 = vmatpush1.bf16.msra.mxu1 %v444_v45  ;;  %v14394_v45 = vld [vmem:[%s24434_s0 + $0x160] sm:$0xff]  ;;  %v441_v46 = vpack.c.bf16 %v14378_v39, %v14373_v38  ;;  %v14465_v24 = vld [vmem:[%s24434_s0 + $0x288] sm:$0xff]  ;;  %v274_v25 = vld [vmem:[%s24434_s0 + $0x1f0] sm:$0xff] }
  0x18   :  { %526 = vmatprep.subr.bf16.mxu1 %v451_v47  ;;  %v11241_v47 = vpack.i.bf16 %v14076_v12, %v14071_v11  ;;  %v14421_v11 = vld [vmem:[%s24434_s0 + $0x190] sm:$0xff]  ;;  %v14426_v12 = vld [vmem:[%s24434_s0 + $0x1c0] sm:$0xff]  ;;  %v440_v54 = vpack.c.bf16 %v14394_v45, %v14389_v44  ;;  %v14501_v43 = vld [vmem:[%s24434_s0 + $0x2e8] sm:$0xff] }
  0x19   :  { %v286_v32 = vld [vmem:[%s24434_s0 + $0x250] sm:$0xff]  ;;  %v292_v33 = vld [vmem:[%s24434_s0 + $0x280] sm:$0xff] }
  0x1a   :  { %103 = vperm.xlu1 %11195, %v33_v50   ;;  %98 = vperm.xlu0 %11194, %v32_v51   ;;  %v14406_v50 = vld [vmem:[%s24434_s0 + $0x198] sm:$0xff]  ;;  %v14411_v51 = vld [vmem:[%s24434_s0 + $0x1c8] sm:$0xff] }
  0x1b   :  { %527 = vmatpush1.bf16.msra.mxu1 %v450_v52  ;;  %v11236_v52 = vpack.i.bf16 %v14047_v5, %v14042_v4  ;;  %v14438_v4 = vld [vmem:[%s24434_s0 + $0x1f8] sm:$0xff]  ;;  %v447_v5 = vpack.c.bf16 %v14411_v51, %v14406_v50 }
  0x1c   :  { %528 = vmatprep.subr.bf16.mxu1 %v457_v53  ;;  %v14431_v53 = vld [vmem:[%s24435_s1 + $0x10] sm:$0xff]  }
  0x1e   :  { %113 = vperm.xlu1 %11195, %v35_v58   ;;  %108 = vperm.xlu0 %11194, %v34_v59   ;;  %v14450_v58 = vld [vmem:[%s24434_s0 + $0x228] sm:$0xff]  ;;  %v11246_v59 = vpack.i.bf16 %v14098_v17, %v14093_v16  ;;  %v280_v16 = vld [vmem:[%s24434_s0 + $0x220] sm:$0xff] }
  0x1f   :  { %529 = vmatpush1.bf16.msra.mxu1 %v456_v60  ;;  %v446_v60 = vpack.c.bf16 %v14426_v12, %v14421_v11  ;;  %v453_v17 = vpack.c.bf16 %v14450_v58, %v14438_v4 }
  0x20   :  { %530 = vmatprep.subr.bf16.mxu1 %v463_v61  ;;  %v14460_v61 = vld [vmem:[%s24434_s0 + $0x258] sm:$0xff] }
  0x22   :  { %11202 = vrot.lane.b32.xlu1 %v14266_v3, %s13990_s23  ;;  %11197 = vrot.lane.b32.xlu0 %v14270_v6, %s13990_s23 }
  0x23   :  { %531 = vmatpush1.bf16.msra.mxu1 %v462_v7  ;;  %v14491_v7 = vld [vmem:[%s24435_s1 + $0x18] sm:$0xff]  }
  0x24   :  { %629 = vmatprep.subr.bf16.mxu1 %v423_v13  ;;  %v452_v13 = vpack.c.bf16 %v280_v16, %v274_v25 }
  0x26   :  { %549 = vmatmul.mubr.bf16.vlgmr.msra.gmra.mrb[0].mxu1 %v14275_v10  ;;  %11212 = vrot.lane.b32.xlu1 %v14295_v9, %s13990_s23 }
  0x27   :  { %558 = vmatprep.mubr.bf16.mxu1 %v24439_v0  ;;  %11207 = vrot.lane.b32.xlu0 %v14309_v19, %s13990_s23 }
  0x28   :  { %630 = vmatpush1.bf16.msra.mxu1 %v422_v20  ;;  %v459_v20 = vpack.c.bf16 %v14465_v24, %v14460_v61 }
  0x29   :  { %631 = vmatprep.subr.bf16.mxu1 %v429_v21  ;;  %v14515_v21 = vpack.i.bf16 %v14238_v57, %v14233_v56  ;;  %v465_v56 = vpack.c.bf16 %v14501_v43, %v14496_v40  ;;  %v14546_v57 = vld [vmem:[%s24434_s0 + $0x58] sm:$0xff] }
  0x2a   :  { %11222 = vrot.lane.b32.xlu1 %v14328_v22, %s13990_s23 }
  0x2b   :  { %11217 = vrot.lane.b32.xlu0 %v14345_v29, %s13990_s23 }
  0x2c   :  { %632 = vmatpush1.bf16.msra.mxu1 %v428_v30  ;;  %v14521_v30 = vpack.i.bf16 %v14214_v49, %v14209_v48  ;;  %v14536_v48 = vpack.i.bf16 %v14323_v27, %v14318_v26  ;;  %v14541_v49 = vld [vmem:[%s24434_s0 + $0x28] sm:$0xff]  ;;  %v14558_v26 = vld [vmem:[%s24435_s1 + $0x20] sm:$0xff]  }
  0x2d   :  { %633 = vmatprep.subr.bf16.mxu1 %v435_v31  ;;  %v458_v31 = vpack.c.bf16 %v292_v33, %v286_v32 }
  0x2e   :  { %559 = vmatmul.mubr.bf16.gmra.mrb[4].mxu1 %v14364_v36  ;;  %11232 = vrot.lane.b32.xlu1 %v14368_v37, %s13990_s23 }
  0x2f   :  { %568 = vmatprep.mubr.bf16.mxu1 %v24439_v0  ;;  %11227 = vrot.lane.b32.xlu0 %v14382_v41, %s13990_s23 }
  0x30   :  { %634 = vmatpush1.bf16.msra.mxu1 %v434_v42  ;;  %v298_v42 = vld [vmem:[%s24434_s0 + $0x2b0] sm:$0xff] }
  0x31   :  { %635 = vmatprep.subr.bf16.mxu1 %v441_v46  ;;  %v304_v46 = vld [vmem:[%s24434_s0 + $0x2e0] sm:$0xff] }
  0x32   :  { %11242 = vrot.lane.b32.xlu1 %v11241_v47, %s13990_s23  ;;  %v14553_v47 = vpack.i.bf16 %v14287_v8, %v14282_v14  ;;  %v464_v27 = vpack.c.bf16 %v304_v46, %v298_v42  ;;  %v14572_v14 = vpack.i.bf16 %v14359_v35, %v14354_v34  ;;  %v14577_v8 = vpack.i.bf16 %v280_v16, %v274_v25  ;;  %v14589_v34 = vld [vmem:[%s24435_s1 + $0x28] sm:$0xff]   ;;  %v246_v25 = vld [vmem:[%s24434_s0 + $0x110] sm:$0xff] }
  0x33   :  { %11237 = vrot.lane.b32.xlu0 %v11236_v52, %s13990_s23  ;;  %v425_v52 = vpack.c.bf16 %v14546_v57, %v14541_v49  ;;  %v14593_v35 = vpack.i.bf16 %v304_v46, %v298_v42 }
  0x34   :  { %636 = vmatpush1.bf16.msra.mxu1 %v440_v54  ;;  %v14566_v54 = vpack.i.bf16 %v14394_v45, %v14389_v44  ;;  %v14584_v44 = vpack.i.bf16 %v14426_v12, %v14421_v11  ;;  %v14597_v45 = vpack.i.bf16 %v292_v33, %v286_v32  ;;  %v14604_v11 = vpack.i.bf16 %v14305_v18, %v14300_v15  ;;  %v14721_v32 = vld [vmem:[%s24434_s0 + $0x1d0] sm:$0xff]  ;;  %v229_v33 = vld [vmem:[%s24434_s0 + $0x88] sm:$0xff] }
  0x35   :  { %637 = vmatprep.subr.bf16.mxu1 %v447_v5  ;;  %v14611_v12 = vpack.i.bf16 %v14262_v2, %v14257_v1  ;;  %v14616_v5 = vld [vmem:[%s24435_s1 + $0x30] sm:$0xff]   ;;  %v14622_v15 = vpack.i.bf16 %v14378_v39, %v14373_v38  ;;  %v14628_v18 = vpack.i.bf16 %v14338_v28, %v14333_v23  ;;  %v14635_v1 = vpack.i.bf16 %v14450_v58, %v14438_v4  ;;  %v14647_v23 = vld [vmem:[%s24435_s1 + $0x38] sm:$0xff]   ;;  %v228_v39 = vld [vmem:[%s24434_s0 + $0x80] sm:$0xff] }
  0x36   :  { %569 = vmatmul.mubr.bf16.gmra.mrb[8].mxu1 %v14431_v53  ;;  %11252 = vrot.lane.b32.xlu1 %v14445_v55, %s13990_s23  ;;  %v14642_v2 = vpack.i.bf16 %v14411_v51, %v14406_v50  ;;  %v14653_v28 = vpack.i.bf16 %v14501_v43, %v14496_v40  ;;  %v14659_v38 = vpack.i.bf16 %v14465_v24, %v14460_v61  ;;  %v234_v50 = vld [vmem:[%s24434_s0 + $0xb0] sm:$0xff]  ;;  %v216_v51 = vld [vmem:[%s24434_s0 + $0x20] sm:$0xff] }
  0x37   :  { %578 = vmatprep.mubr.bf16.mxu1 %v24439_v0  ;;  %11247 = vrot.lane.b32.xlu0 %v11246_v59, %s13990_s23  ;;  %v222_v4 = vld [vmem:[%s24434_s0 + $0x50] sm:$0xff]  ;;  %v14676_v58 = vpack.i.bf16 %v234_v50, %v228_v39  ;;  %v240_v24 = vld [vmem:[%s24434_s0 + $0xe0] sm:$0xff] }
  0x38   :  { %638 = vmatpush1.bf16.msra.mxu1 %v446_v60  ;;  %25014 = vst [vmem:[#allocation3_spill] sm:$0xff] %v14653_v28  ;;  %25015 = vst [vmem:[#allocation4_spill] sm:$0xff] %v14659_v38  ;;  %v14681_v59 = vpack.i.bf16 %v222_v4, %v216_v51  ;;  %v252_v60 = vld [vmem:[%s24434_s0 + $0x140] sm:$0xff]  ;;  %v258_v61 = vld [vmem:[%s24434_s0 + $0x170] sm:$0xff] }
  0x39   :  { %639 = vmatprep.subr.bf16.mxu1 %v453_v17  ;;  %25016 = vst [vmem:[#allocation5_spill] sm:$0xff] %v14676_v58  ;;  %v14697_v16 = vpack.i.bf16 %v258_v61, %v252_v60  ;;  %v14701_v17 = vpack.i.bf16 %v246_v25, %v240_v24  ;;  %v14711_v40 = vld [vmem:[%s24434_s0 + $0x230] sm:$0xff]  ;;  %v14716_v43 = vld [vmem:[%s24434_s0 + $0x1a0] sm:$0xff] }
  0x3a   :  { %11262 = vrot.lane.b32.xlu1 %v14480_v62, %s13990_s23  ;;  %25017 = vst [vmem:[#allocation6_spill] sm:$0xff] %v14681_v59 }
  0x3b   :  { %11257 = vrot.lane.b32.xlu0 %v14486_v63, %s13990_s23  ;;  %25018 = vst [vmem:[#allocation7_spill] sm:$0xff] %v14697_v16  ;;  %25019 = vst [vmem:[#allocation8_spill] sm:$0xff] %v14701_v17 }
  0x3c   :  { %640 = vmatpush1.bf16.msra.mxu1 %v452_v13  ;;  %v14706_v13 = vld [vmem:[%s24434_s0 + $0x200] sm:$0xff] }
  0x3d   :  { %641 = vmatprep.subr.bf16.mxu1 %v459_v20  ;;  %v235_v20 = vld [vmem:[%s24434_s0 + $0xb8] sm:$0xff]  ;;  %v14734_v46 = vpack.i.bf16 %v14711_v40, %v14706_v13 }
  0x3e   :  { %579 = vmatmul.mubr.bf16.gmra.mrb[12].mxu1 %v14491_v7  ;;  %11272 = vrot.lane.b32.xlu1 %v14515_v21, %s13990_s23  ;;  %v431_v42 = vpack.c.bf16 %v235_v20, %v229_v33 }
  0x3f   :  { %588 = vmatprep.mubr.bf16.mxu1 %v24439_v0  ;;  %11267 = vrot.lane.b32.xlu0 %v14521_v30, %s13990_s23  ;;  %25020 = vst [vmem:[#allocation9_spill] sm:$0xff] %v14734_v46 }
  0x40   :  { %642 = vmatpush1.bf16.msra.mxu1 %v458_v31  ;;  %v424_v31 = vpack.c.bf16 %v222_v4, %v216_v51  ;;  %v14756_v51 = vld [vmem:[%s24434_s0 + $0x260] sm:$0xff]  ;;  %v14761_v4 = vld [vmem:[%s24434_s0 + $0x290] sm:$0xff] }
  0x41   :  { %643 = vmatprep.subr.bf16.mxu1 %v465_v56  ;;  %v14741_v56 = vpack.i.bf16 %v14721_v32, %v14716_v43 }
  0x42   :  { %11282 = vrot.lane.b32.xlu1 %v14536_v48, %s13990_s23 }
  0x43   :  { %11277 = vrot.lane.b32.xlu0 %v14553_v47, %s13990_s23  ;;  %25021 = vst [vmem:[#allocation10_spill] sm:$0xff] %v14741_v56 }
  0x44   :  { %644 = vmatpush1.bf16.msra.mxu1 %v464_v27  ;;  %v14746_v27 = vld [vmem:[%s24434_s0 + $0x2c0] sm:$0xff] }
  0x45   :  { %742 = vmatprep.subr.bf16.mxu1 %v425_v52  ;;  %v14751_v52 = vld [vmem:[%s24434_s0 + $0x2f0] sm:$0xff] }
  0x46   :  { %589 = vmatmul.mubr.bf16.gmra.mrb[16].mxu1 %v14558_v26  ;;  %11292 = vrot.lane.b32.xlu1 %v14566_v54, %s13990_s23 }
  0x47   :  { %598 = vmatprep.mubr.bf16.mxu1 %v24439_v0  ;;  %11287 = vrot.lane.b32.xlu0 %v14572_v14, %s13990_s23 }
  0x4a   :  { %11302 = vrot.lane.b32.xlu1 %v14577_v8, %s13990_s23 }
  0x4b   :  { %11297 = vrot.lane.b32.xlu0 %v14584_v44, %s13990_s23 }
  0x4e   :  { %599 = vmatmul.mubr.bf16.gmra.mrb[20].mxu1 %v14589_v34  ;;  %11312 = vrot.lane.b32.xlu1 %v14593_v35, %s13990_s23 }
  0x4f   :  { %608 = vmatprep.mubr.bf16.mxu1 %v24439_v0  ;;  %11307 = vrot.lane.b32.xlu0 %v14597_v45, %s13990_s23 }
  0x52   :  { %11322 = vrot.lane.b32.xlu1 %v14604_v11, %s13990_s23 }
  0x53   :  { %11317 = vrot.lane.b32.xlu0 %v14611_v12, %s13990_s23 }
  0x56   :  { %609 = vmatmul.mubr.bf16.gmra.mrb[24].mxu1 %v14616_v5  ;;  %11332 = vrot.lane.b32.xlu1 %v14622_v15, %s13990_s23 }
  0x57   :  { %618 = vmatprep.mubr.bf16.mxu1 %v24439_v0  ;;  %11327 = vrot.lane.b32.xlu0 %v14628_v18, %s13990_s23 }
  0x5a   :  { %11342 = vrot.lane.b32.xlu1 %v14635_v1, %s13990_s23 }
  0x5b   :  { %11337 = vrot.lane.b32.xlu0 %v14642_v2, %s13990_s23 }
  0x5e   :  { %619 = vmatmul.mubr.bf16.gmra.mrb[28].mxu1 %v14647_v23  ;;  %11352 = vrot.lane.b32.xlu1 %v14653_v28, %s13990_s23  ;;  %v14797_v28 = vpack.i.bf16 %v14546_v57, %v14541_v49  ;;  %v277_v57 = vld [vmem:[%s24434_s0 + $0x208] sm:$0xff] }
  0x5f   :  { %661 = vmatprep.mubr.bf16.mxu1 %v24439_v0  ;;  %11347 = vrot.lane.b32.xlu0 %v14659_v38, %s13990_s23  ;;  %v14779_v38 = vpack.i.bf16 %v14761_v4, %v14756_v51 }
  0x62   :  { %11362 = vrot.lane.b32.xlu1 %v14676_v58, %s13990_s23  ;;  %v14773_v58 = vpack.i.bf16 %v14751_v52, %v14746_v27 }
  0x63   :  { %11357 = vrot.lane.b32.xlu0 %v14681_v59, %s13990_s23 }
  0x66   :  { %662 = vmatmul.mubr.bf16.vlgmr.msra.gmra.mrb[32].mxu1 %v14275_v10  ;;  %11372 = vrot.lane.b32.xlu1 %v14697_v16, %s13990_s23  ;;  %v430_v16 = vpack.c.bf16 %v234_v50, %v228_v39  ;;  %v253_v39 = vld [vmem:[%s24434_s0 + $0x148] sm:$0xff]  ;;  %v259_v50 = vld [vmem:[%s24434_s0 + $0x178] sm:$0xff] }
  0x67   :  { %671 = vmatprep.mubr.bf16.mxu1 %v24439_v0  ;;  %11367 = vrot.lane.b32.xlu0 %v14701_v17, %s13990_s23  ;;  %v241_v0 = vld [vmem:[%s24434_s0 + $0xe8] sm:$0xff]  ;;  %v247_v17 = vld [vmem:[%s24434_s0 + $0x118] sm:$0xff] }
  0x68   :  { %743 = vmatpush1.bf16.msra.mxu1 %v424_v31  ;;  %v437_v59 = vpack.c.bf16 %v247_v17, %v241_v0  ;;  %v436_v31 = vpack.c.bf16 %v246_v25, %v240_v24  ;;  %v271_v24 = vld [vmem:[%s24434_s0 + $0x1d8] sm:$0xff]  ;;  %v442_v25 = vpack.c.bf16 %v258_v61, %v252_v60  ;;  %v14811_v49 = vpack.i.bf16 %v247_v17, %v241_v0 }
  0x69   :  { %744 = vmatprep.subr.bf16.mxu1 %v431_v42  ;;  %v443_v42 = vpack.c.bf16 %v259_v50, %v253_v39  ;;  %v283_v60 = vld [vmem:[%s24434_s0 + $0x238] sm:$0xff]  ;;  %v448_v61 = vpack.c.bf16 %v14721_v32, %v14716_v43  ;;  %v301_v43 = vld [vmem:[%s24434_s0 + $0x2c8] sm:$0xff] }
  0x6a   :  { %11382 = vrot.lane.b32.xlu1 %v14734_v46, %s13990_s23  ;;  %v25022_v46 = vmov 0   ;;  %v14824_v0 = vpack.i.bf16 %v283_v60, %v277_v57  ;;  %v307_v32 = vld [vmem:[%s24434_s0 + $0x2f8] sm:$0xff] }
  0x6b   :  { %11377 = vrot.lane.b32.xlu0 %v14741_v56, %s13990_s23  ;;  %v14790_v56 = vpack.i.bf16 %v235_v20, %v229_v33  ;;  %v14807_v33 = vpack.i.bf16 %v259_v50, %v253_v39  ;;  %v455_v20 = vpack.c.bf16 %v283_v60, %v277_v57  ;;  %v289_v39 = vld [vmem:[%s24434_s0 + $0x268] sm:$0xff]  ;;  %v295_v50 = vld [vmem:[%s24434_s0 + $0x298] sm:$0xff] }
  0x6c   :  { %745 = vmatpush1.bf16.msra.mxu1 %v430_v16 }
  0x6d   :  { %746 = vmatprep.subr.bf16.mxu1 %v437_v59  ;;  %v265_v59 = vld [vmem:[%s24434_s0 + $0x1a8] sm:$0xff] }
  0x6e   :  { %672 = vmatmul.mubr.bf16.gmra.mrb[36].mxu1 %v14364_v36  ;;  %11392 = vrot.lane.b32.xlu1 %v14773_v58, %s13990_s23  ;;  %v449_v16 = vpack.c.bf16 %v271_v24, %v265_v59  ;;  %v14829_v17 = vpack.i.bf16 %v271_v24, %v265_v59  ;;  %v14847_v59 = vpack.i.bf16 %v307_v32, %v301_v43 }
  0x6f   :  { %681 = vmatprep.mubr.bf16.mxu1 %v25022_v46  ;;  %11387 = vrot.lane.b32.xlu0 %v14779_v38, %s13990_s23  ;;  %v14851_v24 = vpack.i.bf16 %v295_v50, %v289_v39 }
  0x70   :  { %747 = vmatpush1.bf16.msra.mxu1 %v436_v31  ;;  %v454_v31 = vpack.c.bf16 %v14711_v40, %v14706_v13  ;;  %v466_v13 = vpack.c.bf16 %v14751_v52, %v14746_v27 }
  0x71   :  { %748 = vmatprep.subr.bf16.mxu1 %v443_v42  ;;  %v461_v42 = vpack.c.bf16 %v295_v50, %v289_v39 }
  0x72   :  { %11402 = vrot.lane.b32.xlu1 %v14790_v56, %s13990_s23 }
  0x73   :  { %11397 = vrot.lane.b32.xlu0 %v14797_v28, %s13990_s23 }
  0x74   :  { %749 = vmatpush1.bf16.msra.mxu1 %v442_v25  ;;  %v460_v25 = vpack.c.bf16 %v14761_v4, %v14756_v51 }
  0x75   :  { %750 = vmatprep.subr.bf16.mxu1 %v449_v16  ;;  %v467_v16 = vpack.c.bf16 %v307_v32, %v301_v43  ;;  %v13572_v43 = vld [vmem:[%s24434_s0 + $0xf8] sm:$0xff] }
  0x76   :  { %682 = vmatmul.mubr.bf16.gmra.mrb[40].mxu1 %v14431_v53  ;;  %11412 = vrot.lane.b32.xlu1 %v14807_v33, %s13990_s23 }
  0x77   :  { %691 = vmatprep.mubr.bf16.mxu1 %v25022_v46  ;;  %11407 = vrot.lane.b32.xlu0 %v14811_v49, %s13990_s23 }
  0x78   :  { %751 = vmatpush1.bf16.msra.mxu1 %v448_v61 }
  0x79   :  { %752 = vmatprep.subr.bf16.mxu1 %v455_v20 }
  0x7a   :  { %11422 = vrot.lane.b32.xlu1 %v14824_v0, %s13990_s23 }
  0x7b   :  { %11417 = vrot.lane.b32.xlu0 %v14829_v17, %s13990_s23 }
  0x7c   :  { %753 = vmatpush1.bf16.msra.mxu1 %v454_v31 }
  0x7d   :  { %754 = vmatprep.subr.bf16.mxu1 %v461_v42 }
  0x7e   :  { %692 = vmatmul.mubr.bf16.gmra.mrb[44].mxu1 %v14491_v7  ;;  %11432 = vrot.lane.b32.xlu1 %v14847_v59, %s13990_s23 }
  0x7f   :  { %701 = vmatprep.mubr.bf16.mxu1 %v25022_v46  ;;  %11427 = vrot.lane.b32.xlu0 %v14851_v24, %s13990_s23 }
  0x80   :  { %755 = vmatpush1.bf16.msra.mxu1 %v460_v25 }
  0x81   :  { %v14863_v40 = vpop.permute.xlu1 %48  ;;  %v14865_v57 = vpop.permute.xlu0 %38  ;;  %756 = vmatprep.subr.bf16.mxu1 %v467_v16 }
  0x82   :  { %25023 = vst [vmem:[#allocation11_spill] sm:$0xff] %v14863_v40  ;;  %25024 = vst [vmem:[#allocation12_spill] sm:$0xff] %v14865_v57  ;;  %11442 = vrot.lane.b32.xlu1 %v14266_v3, %s13991_s8 }
  0x83   :  { %11437 = vrot.lane.b32.xlu0 %v14270_v6, %s13991_s8 }
  0x84   :  { %757 = vmatpush1.bf16.msra.mxu1 %v466_v13 }
  0x85   :  { %v14871_v51 = vpop.permute.xlu1 %53  ;;  %v14873_v4 = vpop.permute.xlu0 %43 }
  0x86   :  { %25025 = vst [vmem:[#allocation13_spill] sm:$0xff] %v14871_v51  ;;  %25026 = vst [vmem:[#allocation14_spill] sm:$0xff] %v14873_v4  ;;  %702 = vmatmul.mubr.bf16.gmra.mrb[48].mxu1 %v14558_v26  ;;  %11452 = vrot.lane.b32.xlu1 %v14295_v9, %s13991_s8  ;;  %v13567_v9 = vld [vmem:[%s24434_s0 + $0x68] sm:$0xff] }
  0x87   :  { %711 = vmatprep.mubr.bf16.mxu1 %v25022_v46  ;;  %11447 = vrot.lane.b32.xlu0 %v14309_v19, %s13991_s8  ;;  %v13568_v19 = vld [vmem:[%s24434_s0 + $0x98] sm:$0xff] }
  0x89   :  { %v14881_v27 = vpop.permute.xlu1 %63  ;;  %v14883_v3 = vpop.permute.xlu0 %58 }
  0x8a   :  { %25027 = vst [vmem:[#allocation15_spill] sm:$0xff] %v14881_v27  ;;  %25028 = vst [vmem:[#allocation16_spill] sm:$0xff] %v14883_v3  ;;  %11462 = vrot.lane.b32.xlu1 %v14328_v22, %s13991_s8  ;;  %v14902_v22 = vpack.i.bf16 %v13568_v19, %v13567_v9 }
  0x8b   :  { %11457 = vrot.lane.b32.xlu0 %v14345_v29, %s13991_s8  ;;  %v13569_v29 = vld [vmem:[%s24434_s0 + $0x8] sm:$0xff] }
  0x8d   :  { %v14889_v6 = vpop.permute.xlu1 %73  ;;  %v14891_v52 = vpop.permute.xlu0 %68 }
  0x8e   :  { %25029 = vst [vmem:[#allocation17_spill] sm:$0xff] %v14889_v6  ;;  %25030 = vst [vmem:[#allocation18_spill] sm:$0xff] %v14891_v52  ;;  %712 = vmatmul.mubr.bf16.gmra.mrb[52].mxu1 %v14589_v34  ;;  %11472 = vrot.lane.b32.xlu1 %v14368_v37, %s13991_s8  ;;  %v13570_v37 = vld [vmem:[%s24434_s0 + $0x38] sm:$0xff] }
  0x8f   :  { %721 = vmatprep.mubr.bf16.mxu1 %v25022_v46  ;;  %11467 = vrot.lane.b32.xlu0 %v14382_v41, %s13991_s8  ;;  %v14913_v60 = vpack.i.bf16 %v13570_v37, %v13569_v29  ;;  %v13571_v41 = vld [vmem:[%s24434_s0 + $0xc8] sm:$0xff] }
  0x90   :  { %v14929_v32 = vpack.i.bf16 %v13572_v43, %v13571_v41 }
  0x91   :  { %v14915_v61 = vpop.permute.xlu1 %83  ;;  %v14917_v20 = vpop.permute.xlu0 %78 }
  0x92   :  { %25031 = vst [vmem:[#allocation19_spill] sm:$0xff] %v14915_v61  ;;  %25032 = vst [vmem:[#allocation20_spill] sm:$0xff] %v14917_v20  ;;  %11482 = vrot.lane.b32.xlu1 %v14902_v22, %s13991_s8 }
  0x93   :  { %11477 = vrot.lane.b32.xlu0 %v14913_v60, %s13991_s8 }
  0x95   :  { %v14931_v39 = vpop.permute.xlu1 %93  ;;  %v14933_v50 = vpop.permute.xlu0 %88 }
  0x96   :  { %25033 = vst [vmem:[#allocation21_spill] sm:$0xff] %v14931_v39  ;;  %25034 = vst [vmem:[#allocation22_spill] sm:$0xff] %v14933_v50  ;;  %722 = vmatmul.mubr.bf16.gmra.mrb[56].mxu1 %v14616_v5  ;;  %11492 = vrot.lane.b32.xlu1 %v14445_v55, %s13991_s8 }
  0x97   :  { %731 = vmatprep.mubr.bf16.mxu1 %v25022_v46  ;;  %11487 = vrot.lane.b32.xlu0 %v14929_v32, %s13991_s8 }
  0x99   :  { %v14941_v31 = vpop.permute.xlu1 %103  ;;  %v14943_v42 = vpop.permute.xlu0 %98 }
  0x9a   :  { %25035 = vst [vmem:[#allocation23_spill] sm:$0xff] %v14941_v31  ;;  %25036 = vst [vmem:[#allocation24_spill] sm:$0xff] %v14943_v42  ;;  %11502 = vrot.lane.b32.xlu1 %v14480_v62, %s13991_s8 }
  0x9b   :  { %11497 = vrot.lane.b32.xlu0 %v14486_v63, %s13991_s8 }
  0x9d   :  { %v14949_v25 = vpop.permute.xlu1 %113  ;;  %v14951_v16 = vpop.permute.xlu0 %108 }
  0x9e   :  { %25037 = vst [vmem:[#allocation25_spill] sm:$0xff] %v14949_v25  ;;  %25038 = vst [vmem:[#allocation26_spill] sm:$0xff] %v14951_v16  ;;  %732 = vmatmul.mubr.bf16.gmra.mrb[60].mxu1 %v14647_v23  ;;  %11512 = vrot.lane.b32.xlu1 %v14515_v21, %s13991_s8 }
  0x9f   :  { %774 = vmatprep.mubr.bf16.mxu1 %v25022_v46  ;;  %11507 = vrot.lane.b32.xlu0 %v14521_v30, %s13991_s8 }
  0xa1   :  { %v14959_v55 = vpop.permute.xlu1 %11202  ;;  %v14961_v62 = vpop.permute.xlu0 %11197 }
  0xa2   :  { %11522 = vrot.lane.b32.xlu1 %v14536_v48, %s13991_s8  ;;  %v24450_v9 = vunpack.i.h.bf16 %v14961_v62  ;;  %v24460_v31 = vunpack.i.l.bf16 %v14959_v55 }
  0xa3   :  { %11517 = vrot.lane.b32.xlu0 %v14553_v47, %s13991_s8 }
  0xa5   :  { %v14967_v63 = vpop.permute.xlu1 %11212  ;;  %v14969_v13 = vpop.permute.xlu0 %11207 }
  0xa6   :  { %775 = vmatmul.mubr.bf16.vlgmr.msra.gmra.mrb[64].mxu1 %v14275_v10  ;;  %11532 = vrot.lane.b32.xlu1 %v14566_v54, %s13991_s8 }
  0xa7   :  { %784 = vmatprep.mubr.bf16.mxu1 %v25022_v46  ;;  %11527 = vrot.lane.b32.xlu0 %v14572_v14, %s13991_s8 }
  0xa9   :  { %v14977_v21 = vpop.permute.xlu1 %11222  ;;  %v14979_v30 = vpop.permute.xlu0 %11217 }
  0xaa   :  { %11542 = vrot.lane.b32.xlu1 %v14577_v8, %s13991_s8 }
  0xab   :  { %11537 = vrot.lane.b32.xlu0 %v14584_v44, %s13991_s8 }
  0xad   :  { %v14985_v48 = vpop.permute.xlu1 %11232  ;;  %v14987_v10 = vpop.permute.xlu0 %11227 }
  0xae   :  { %785 = vmatmul.mubr.bf16.gmra.mrb[68].mxu1 %v14364_v36  ;;  %11552 = vrot.lane.b32.xlu1 %v14593_v35, %s13991_s8  ;;  %v1239_v36 = vlaneseq }
  0xaf   :  { %794 = vmatprep.mubr.bf16.mxu1 %v25022_v46  ;;  %11547 = vrot.lane.b32.xlu0 %v14597_v45, %s13991_s8 }
  0xb0   :  { %v15013_v45 = vand.u32 127, %v1239_v36 }
  0xb1   :  { %v11243_v47 = vpop.permute.xlu1 %11242  ;;  %v11238_v54 = vpop.permute.xlu0 %11237 }
  0xb2   :  { %11562 = vrot.lane.b32.xlu1 %v14604_v11, %s13991_s8  ;;  %v11239_v11 = vunpack.i.l.bf16 %v11238_v54  ;;  %vm1241_vm0 = vcmp.lt.s32.totalorder %v15013_v45, 127  ;;  %v11245_v19 = vunpack.i.h.bf16 %v11243_v47  ;;  %v11244_v29 = vunpack.i.l.bf16 %v11243_v47 }
  0xb3   :  { %11557 = vrot.lane.b32.xlu0 %v14611_v12, %s13991_s8  ;;  %vm2270_vm1 = vcmp.lt.s32.totalorder %v15013_v45, 126  ;;  %vm3299_vm2 = vcmp.lt.s32.totalorder %v15013_v45, 110  ;;  %vm4328_vm3 = vcmp.lt.s32.totalorder %v15013_v45, 109  ;;  %vm5357_vm4 = vcmp.lt.s32.totalorder %v15013_v45, 108 }
  0xb4   :  { %v1308_v16 = vsel %vm1241_vm0, %v24460_v31, %v11244_v29  ;;  %vm6386_vm5 = vcmp.lt.s32.totalorder %v15013_v45, 92  ;;  %vm7415_vm6 = vcmp.lt.s32.totalorder %v15013_v45, 91  ;;  %vm8444_vm7 = vcmp.lt.s32.totalorder %v15013_v45, 90 }
  0xb5   :  { %v14999_v14 = vpop.permute.xlu1 %11252  ;;  %v15001_v8 = vpop.permute.xlu0 %11247 }
  0xb6   :  { %795 = vmatmul.mubr.bf16.gmra.mrb[72].mxu1 %v14431_v53  ;;  %11572 = vrot.lane.b32.xlu1 %v14622_v15, %s13991_s8  ;;  %v11240_v53 = vunpack.i.h.bf16 %v11238_v54  ;;  %v11249_v42 = vunpack.i.l.bf16 %v15001_v8 }
  0xb7   :  { %804 = vmatprep.mubr.bf16.mxu1 %v25022_v46  ;;  %11567 = vrot.lane.b32.xlu0 %v14628_v18, %s13991_s8  ;;  %v25039_v18 = vld [vmem:[#allocation3_spill] sm:$0xff] }
  0xb9   :  { %v15009_v44 = vpop.permute.xlu1 %11262  ;;  %v15011_v35 = vpop.permute.xlu0 %11257 }
  0xba   :  { %11582 = vrot.lane.b32.xlu1 %v14635_v1, %s13991_s8  ;;  %v24449_v1 = vunpack.i.l.bf16 %v14961_v62 }
  0xbb   :  { %11577 = vrot.lane.b32.xlu0 %v14642_v2, %s13991_s8  ;;  %v25040_v2 = vld [vmem:[#allocation4_spill] sm:$0xff] }
  0xbc   :  { %v1306_v37 = vsel %vm1241_vm0, %v24449_v1, %v11239_v11  ;;  %v25042_v1 = vld [vmem:[#allocation6_spill] sm:$0xff] }
  0xbd   :  { %v15019_v12 = vpop.permute.xlu1 %11272  ;;  %v15021_v15 = vpop.permute.xlu0 %11267 }
  0xbe   :  { %805 = vmatmul.mubr.bf16.gmra.mrb[76].mxu1 %v14491_v7  ;;  %11592 = vrot.lane.b32.xlu1 %v25039_v18, %s13991_s8  ;;  %v1307_v7 = vsel %vm1241_vm0, %v24450_v9, %v11240_v53 }
  0xbf   :  { %814 = vmatprep.mubr.bf16.mxu1 %v25022_v46  ;;  %11587 = vrot.lane.b32.xlu0 %v25040_v2, %s13991_s8  ;;  %v25041_v2 = vld [vmem:[#allocation5_spill] sm:$0xff] }
  0xc1   :  { %v15040_v41 = vpop.permute.xlu1 %11282  ;;  %v15042_v43 = vpop.permute.xlu0 %11277 }
  0xc2   :  { %v24458_v36 = vunpack.i.l.bf16 %v15040_v41  ;;  %v24456_v47 = vunpack.i.h.bf16 %v15042_v43  ;;  %v24454_v18 = vunpack.i.l.bf16 %v15042_v43  ;;  %11602 = vrot.lane.b32.xlu1 %v25041_v2, %s13991_s8  ;;  %v25043_v2 = vunpack.i.h.bf16 %v15040_v41 }
  0xc3   :  { %11597 = vrot.lane.b32.xlu0 %v25042_v1, %s13991_s8 }
  0xc4   :  { %v1290_v9 = vsel %vm1241_vm0, %v11239_v11, %v24454_v18  ;;  %v1291_v54 = vsel %vm1241_vm0, %v11240_v53, %v24456_v47  ;;  %v1292_v25 = vsel %vm1241_vm0, %v11244_v29, %v24458_v36  ;;  %v1293_v1 = vsel %vm1241_vm0, %v11245_v19, %v25043_v2  ;;  %v25044_v2 = vld [vmem:[#allocation7_spill] sm:$0xff] }
  0xc5   :  { %v15070_v11 = vpop.permute.xlu1 %11292  ;;  %v15072_v18 = vpop.permute.xlu0 %11287  ;;  %v1452_v39 = vpack.c.bf16 %v1291_v54, %v1290_v9  ;;  %v1451_v53 = vpack.c.bf16 %v1307_v7, %v1306_v37  ;;  %v11250_v47 = vunpack.i.h.bf16 %v15001_v8  ;;  %v25045_v9 = vunpack.i.h.bf16 %v14959_v55 }
  0xc6   :  { %v24462_v36 = vunpack.i.h.bf16 %v15072_v18  ;;  %v24461_v50 = vunpack.i.l.bf16 %v15072_v18  ;;  %815 = vmatmul.mubr.bf16.gmra.mrb[80].mxu1 %v14558_v26  ;;  %11612 = vrot.lane.b32.xlu1 %v25044_v2, %s13991_s8  ;;  %v1458_v8 = vpack.c.bf16 %v1293_v1, %v1292_v25  ;;  %v24464_v25 = vunpack.i.l.bf16 %v14969_v13 }
  0xc7   :  { %v1309_v37 = vsel %vm1241_vm0, %v25045_v9, %v11245_v19  ;;  %1547 = vmatprep.subr.bf16.mxu1 %v1452_v39  ;;  %824 = vmatprep.mubr.bf16.mxu1 %v25022_v46  ;;  %v24463_v39 = vunpack.i.h.bf16 %v14969_v13  ;;  %v11255_v2 = vunpack.i.h.bf16 %v14999_v14  ;;  %v11254_v9 = vunpack.i.l.bf16 %v14999_v14 }
  0xc8   :  { %1548 = vmatpush1.bf16.msra.mxu1 %v1451_v53  ;;  %v1294_v54 = vsel %vm1241_vm0, %v11249_v42, %v24461_v50  ;;  %v1295_v29 = vsel %vm1241_vm0, %v11250_v47, %v24462_v36  ;;  %v25046_v53 = vld [vmem:[#allocation8_spill] sm:$0xff]  ;;  %v1457_v31 = vpack.c.bf16 %v1309_v37, %v1308_v16  ;;  %v25047_v50 = vld [vmem:[#allocation9_spill] sm:$0xff]  ;;  %v1310_v36 = vsel %vm1241_vm0, %v24464_v25, %v11249_v42 }
  0xc9   :  { %v15102_v19 = vpop.permute.xlu1 %11302  ;;  %v15104_v1 = vpop.permute.xlu0 %11297  ;;  %1549 = vmatprep.subr.bf16.mxu1 %v1458_v8  ;;  %11607 = vrot.lane.b32.xlu0 %v25046_v53, %s13991_s8  ;;  %v1311_v8 = vsel %vm1241_vm0, %v24463_v39, %v11250_v47  ;;  %v1464_v7 = vpack.c.bf16 %v1295_v29, %v1294_v54  ;;  %v25048_v16 = vunpack.i.l.bf16 %v15070_v11  ;;  %v25049_v14 = vunpack.i.h.bf16 %v15070_v11 }
  0xca   :  { %11622 = vrot.lane.b32.xlu1 %v25047_v50, %s13991_s8  ;;  %v24467_v53 = vunpack.i.h.bf16 %v15104_v1  ;;  %v24468_v26 = vunpack.i.l.bf16 %v15104_v1  ;;  %v24465_v37 = vunpack.i.h.bf16 %v14967_v63  ;;  %v24466_v47 = vunpack.i.l.bf16 %v14967_v63 }
  0xcb   :  { %v1296_v50 = vsel %vm1241_vm0, %v11254_v9, %v25048_v16  ;;  %v1297_v42 = vsel %vm1241_vm0, %v11255_v2, %v25049_v14  ;;  %v11260_v39 = vunpack.i.h.bf16 %v15011_v35  ;;  %v11259_v16 = vunpack.i.l.bf16 %v15011_v35 }
  0xcc   :  { %1550 = vmatpush1.bf16.msra.mxu1 %v1457_v31  ;;  %v25050_v31 = vld [vmem:[#allocation10_spill] sm:$0xff]  ;;  %v1463_v25 = vpack.c.bf16 %v1311_v8, %v1310_v36  ;;  %v1312_v14 = vsel %vm1241_vm0, %v24466_v47, %v11254_v9  ;;  %v24481_v35 = vunpack.i.h.bf16 %v15102_v19  ;;  %v24470_v9 = vunpack.i.l.bf16 %v14979_v30 }
  0xcd   :  { %v15132_v54 = vpop.permute.xlu1 %11312  ;;  %v15134_v29 = vpop.permute.xlu0 %11307  ;;  %1551 = vmatprep.subr.bf16.mxu1 %v1464_v7  ;;  %11617 = vrot.lane.b32.xlu0 %v25050_v31, %s13991_s8  ;;  %v1313_v7 = vsel %vm1241_vm0, %v24465_v37, %v11255_v2  ;;  %v1470_v31 = vpack.c.bf16 %v1297_v42, %v1296_v50  ;;  %v1299_v36 = vsel %vm1241_vm0, %v11260_v39, %v24467_v53  ;;  %v24469_v2 = vunpack.i.h.bf16 %v14979_v30 }
  0xce   :  { %825 = vmatmul.mubr.bf16.gmra.mrb[84].mxu1 %v14589_v34  ;;  %11632 = vrot.lane.b32.xlu1 %v14773_v58, %s13991_s8  ;;  %v24482_v34 = vunpack.i.l.bf16 %v15102_v19  ;;  %v1298_v58 = vsel %vm1241_vm0, %v11259_v16, %v24468_v26  ;;  %v11264_v42 = vunpack.i.l.bf16 %v15009_v44  ;;  %v1469_v37 = vpack.c.bf16 %v1313_v7, %v1312_v14 }
  0xcf   :  { %834 = vmatprep.mubr.bf16.mxu1 %v25022_v46  ;;  %v24472_v47 = vunpack.i.l.bf16 %v14977_v21  ;;  %v1314_v53 = vsel %vm1241_vm0, %v24470_v9, %v11259_v16  ;;  %v24479_v26 = vunpack.i.h.bf16 %v15134_v29  ;;  %v24471_v14 = vunpack.i.h.bf16 %v14977_v21 }
  0xd0   :  { %1552 = vmatpush1.bf16.msra.mxu1 %v1463_v25  ;;  %v11265_v25 = vunpack.i.h.bf16 %v15009_v44  ;;  %v24480_v44 = vunpack.i.l.bf16 %v15134_v29  ;;  %v24478_v9 = vunpack.i.l.bf16 %v15132_v54 }
  0xd1   :  { %v15164_v8 = vpop.permute.xlu1 %11322  ;;  %v15166_v50 = vpop.permute.xlu0 %11317  ;;  %1553 = vmatprep.subr.bf16.mxu1 %v1470_v31  ;;  %11627 = vrot.lane.b32.xlu0 %v14779_v38, %s13991_s8  ;;  %v1315_v38 = vsel %vm1241_vm0, %v24469_v2, %v11260_v39  ;;  %v1476_v31 = vpack.c.bf16 %v1299_v36, %v1298_v58  ;;  %v11270_v58 = vunpack.i.h.bf16 %v15021_v15  ;;  %v11269_v36 = vunpack.i.l.bf16 %v15021_v15 }
  0xd2   :  { %11642 = vrot.lane.b32.xlu1 %v14790_v56, %s13991_s8  ;;  %v1300_v56 = vsel %vm1241_vm0, %v11264_v42, %v24482_v34  ;;  %v1301_v16 = vsel %vm1241_vm0, %v11265_v25, %v24481_v35  ;;  %v1475_v2 = vpack.c.bf16 %v1315_v38, %v1314_v53  ;;  %v24475_v15 = vunpack.i.l.bf16 %v14987_v10 }
  0xd3   :  { %v24474_v53 = vunpack.i.h.bf16 %v14987_v10  ;;  %v11274_v38 = vunpack.i.l.bf16 %v15019_v12  ;;  %v25054_v35 = vunpack.i.l.bf16 %v15042_v43 }
  0xd4   :  { %1554 = vmatpush1.bf16.msra.mxu1 %v1469_v37  ;;  %v1316_v37 = vsel %vm1241_vm0, %v24472_v47, %v11264_v42  ;;  %v1482_v42 = vpack.c.bf16 %v1301_v16, %v1300_v56 }
  0xd5   :  { %v15194_v7 = vpop.permute.xlu1 %11332  ;;  %v15196_v39 = vpop.permute.xlu0 %11327  ;;  %1555 = vmatprep.subr.bf16.mxu1 %v1476_v31  ;;  %11637 = vrot.lane.b32.xlu0 %v14797_v28, %s13991_s8  ;;  %v1317_v28 = vsel %vm1241_vm0, %v24471_v14, %v11265_v25  ;;  %v24477_v31 = vunpack.i.h.bf16 %v15132_v54  ;;  %v11275_v25 = vunpack.i.h.bf16 %v15019_v12  ;;  %v1318_v14 = vsel %vm1241_vm0, %v24475_v15, %v11269_v36 }
  0xd6   :  { %835 = vmatmul.mubr.bf16.gmra.mrb[88].mxu1 %v14616_v5  ;;  %11652 = vrot.lane.b32.xlu1 %v14807_v33, %s13991_s8  ;;  %v1302_v5 = vsel %vm1241_vm0, %v11269_v36, %v24480_v44  ;;  %v1303_v33 = vsel %vm1241_vm0, %v11270_v58, %v24479_v26  ;;  %v1481_v47 = vpack.c.bf16 %v1317_v28, %v1316_v37  ;;  %v24476_v37 = vunpack.i.h.bf16 %v14985_v48 }
  0xd7   :  { %844 = vmatprep.mubr.bf16.mxu1 %v25022_v46  ;;  %v1319_v12 = vsel %vm1241_vm0, %v24474_v53, %v11270_v58  ;;  %v1305_v36 = vsel %vm1241_vm0, %v11275_v25, %v24477_v31  ;;  %v11324_v53 = vunpack.i.l.bf16 %v15164_v8  ;;  %v11320_v15 = vunpack.i.h.bf16 %v15166_v50 }
  0xd8   :  { %1556 = vmatpush1.bf16.msra.mxu1 %v1475_v2  ;;  %v24473_v2 = vunpack.i.l.bf16 %v14985_v48  ;;  %v25053_v44 = vunpack.i.h.bf16 %v15040_v41 }
  0xd9   :  { %v15228_v56 = vpop.permute.xlu1 %11342  ;;  %v15230_v16 = vpop.permute.xlu0 %11337  ;;  %1557 = vmatprep.subr.bf16.mxu1 %v1482_v42  ;;  %11647 = vrot.lane.b32.xlu0 %v14811_v49, %s13991_s8  ;;  %v1488_v42 = vpack.c.bf16 %v1303_v33, %v1302_v5  ;;  %v1304_v49 = vsel %vm1241_vm0, %v11274_v38, %v24478_v9  ;;  %v13573_v5 = vld [vmem:[%s24434_s0 + $0x60] sm:$0xff]  ;;  %v25052_v9 = vunpack.i.l.bf16 %v15040_v41 }
  0xda   :  { %11662 = vrot.lane.b32.xlu1 %v14824_v0, %s13991_s8  ;;  %v1320_v0 = vsel %vm1241_vm0, %v24473_v2, %v11274_v38  ;;  %v1321_v38 = vsel %vm1241_vm0, %v24476_v37, %v11275_v25  ;;  %v1494_v2 = vpack.c.bf16 %v1305_v36, %v1304_v49  ;;  %v13580_v49 = vld [vmem:[%s24434_s0 + $0xf0] sm:$0xff] }
  0xdb   :  { %v1276_v26 = vsel %vm1241_vm0, %v25052_v9, %v11324_v53 }
  0xdc   :  { %1558 = vmatpush1.bf16.msra.mxu1 %v1481_v47  ;;  %v13574_v47 = vld [vmem:[%s24434_s0 + $0x90] sm:$0xff] }
  0xdd   :  { %v15258_v58 = vpop.permute.xlu1 %11352  ;;  %v15260_v28 = vpop.permute.xlu0 %11347  ;;  %1559 = vmatprep.subr.bf16.mxu1 %v1488_v42  ;;  %11657 = vrot.lane.b32.xlu0 %v14829_v17, %s13991_s8  ;;  %v11681_v33 = vpack.i.bf16 %v13574_v47, %v13573_v5  ;;  %v1487_v42 = vpack.c.bf16 %v1319_v12, %v1318_v14  ;;  %v11325_v17 = vunpack.i.h.bf16 %v15164_v8  ;;  %v11319_v5 = vunpack.i.l.bf16 %v15166_v50  ;;  %v13576_v14 = vld [vmem:[%s24434_s0 + $0x30] sm:$0xff]  ;;  %v13577_v8 = vld [vmem:[%s24434_s0 + $0x120] sm:$0xff] }
  0xde   :  { %845 = vmatmul.mubr.bf16.gmra.mrb[92].mxu1 %v14647_v23  ;;  %11672 = vrot.lane.b32.xlu1 %v14847_v59, %s13991_s8  ;;  %v13575_v23 = vld [vmem:[%s24434_s0] sm:$0xff]  ;;  %v13578_v50 = vld [vmem:[%s24434_s0 + $0x150] sm:$0xff] }
  0xdf   :  { %1579 = vmatprep.mubr.bf16.mxu1 %v25022_v46  ;;  %v15288_v59 = vpack.i.bf16 %v13576_v14, %v13575_v23  ;;  %v11691_v25 = vpack.i.bf16 %v13578_v50, %v13577_v8  ;;  %v15299_v12 = vld [vmem:[%s24434_s0 + $0xc0] sm:$0xff]  ;;  %v1493_v50 = vpack.c.bf16 %v1321_v38, %v1320_v0  ;;  %v1277_v0 = vsel %vm1241_vm0, %v25053_v44, %v11325_v17 }
  0xe0   :  { %1560 = vmatpush1.bf16.msra.mxu1 %v1487_v42  ;;  %v11686_v36 = vpack.i.bf16 %v13580_v49, %v15299_v12  ;;  %v15308_v47 = vld [vmem:[%s24434_s0 + $0x1e0] sm:$0xff]  ;;  %v15313_v42 = vld [vmem:[%s24434_s0 + $0x210] sm:$0xff]  ;;  %v1274_v34 = vsel %vm1241_vm0, %v25054_v35, %v11319_v5 }
  0xe1   :  { %25051 = vst [vmem:[#allocation3_spill] sm:$0xff] %v15288_v59  ;;  %v11701_v23 = vpack.i.bf16 %v15313_v42, %v15308_v47  ;;  %v15317_v14 = vpop.permute.xlu1 %11362  ;;  %v15319_v8 = vpop.permute.xlu0 %11357  ;;  %1561 = vmatprep.subr.bf16.mxu1 %v1494_v2  ;;  %11667 = vrot.lane.b32.xlu0 %v14851_v24, %s13991_s8  ;;  %v15326_v12 = vld [vmem:[%s24434_s0 + $0x180] sm:$0xff]  ;;  %v15331_v49 = vld [vmem:[%s24434_s0 + $0x1b0] sm:$0xff]  ;;  %v25055_v47 = vunpack.i.h.bf16 %v15042_v43 }
  0xe2   :  { %v15338_v2 = vld [vmem:[%s24434_s0 + $0x2a0] sm:$0xff]  ;;  %v15343_v24 = vld [vmem:[%s24434_s0 + $0x2d0] sm:$0xff]  ;;  %v24486_v42 = vunpack.i.l.bf16 %v15317_v14  ;;  %v24485_v37 = vunpack.i.h.bf16 %v15319_v8  ;;  %v24483_v31 = vunpack.i.l.bf16 %v15319_v8  ;;  %11682 = vrot.lane.b32.xlu1 %v11681_v33, %s13992_s21  ;;  %v25056_v9 = vunpack.i.h.bf16 %v15317_v14 }
  0xe3   :  { %v1275_v33 = vsel %vm1241_vm0, %v25055_v47, %v11320_v15  ;;  %v15371_v38 = vld [vmem:[%s24435_s1 + $0x40] sm:$0xff]   ;;  %v11329_v47 = vunpack.i.l.bf16 %v15196_v39 }
  0xe4   :  { %1562 = vmatpush1.bf16.msra.mxu1 %v1493_v50  ;;  %v1258_v41 = vsel %vm1241_vm0, %v11319_v5, %v24483_v31  ;;  %v1259_v35 = vsel %vm1241_vm0, %v11320_v15, %v24485_v37  ;;  %v1260_v43 = vsel %vm1241_vm0, %v11324_v53, %v24486_v42  ;;  %v1261_v44 = vsel %vm1241_vm0, %v11325_v17, %v25056_v9  ;;  %v15400_v15 = vld [vmem:[%s24434_s0 + $0x240] sm:$0xff]  ;;  %v15405_v53 = vld [vmem:[%s24434_s0 + $0x270] sm:$0xff] }
  0xe5   :  { %v11330_v50 = vunpack.i.h.bf16 %v15196_v39  ;;  %v15391_v5 = vpop.permute.xlu1 %11372  ;;  %v15393_v31 = vpop.permute.xlu0 %11367  ;;  %v1454_v61 = vpack.c.bf16 %v1259_v35, %v1258_v41  ;;  %11677 = vrot.lane.b32.xlu0 %v15288_v59, %s13992_s21  ;;  %v1453_v35 = vpack.c.bf16 %v1275_v33, %v1274_v34  ;;  %v1460_v9 = vpack.c.bf16 %v1261_v44, %v1260_v43  ;;  %v16064_v59 = vld [vmem:[%s24434_s0 + $0xe8] sm:$0xff] }
  0xe6   :  { %v24488_v17 = vunpack.i.h.bf16 %v15393_v31  ;;  %v24489_v41 = vunpack.i.l.bf16 %v15393_v31  ;;  %11692 = vrot.lane.b32.xlu1 %v11691_v25, %s13992_s21  ;;  %v1459_v37 = vpack.c.bf16 %v1277_v0, %v1276_v26  ;;  %v24493_v42 = vunpack.i.h.bf16 %v15391_v5  ;;  %25153 = vst [vmem:[#allocation63_spill] sm:$0xff] %v16064_v59 }
  0xe7   :  { %1580 = vmatmul.mubr.bf16.vlgmr.msra.gmra.mrb[0].mxu1 %v15371_v38  ;;  %1660 = vmatprep.subr.bf16.mxu1 %v1454_v61  ;;  %v24491_v20 = vunpack.i.l.bf16 %v15391_v5  ;;  %v11335_v61 = vunpack.i.h.bf16 %v15194_v7  ;;  %v11334_v26 = vunpack.i.l.bf16 %v15194_v7  ;;  %v25057_v25 = vunpack.i.l.bf16 %v15072_v18 }
  0xe8   :  { %1661 = vmatpush1.bf16.msra.mxu1 %v1453_v35  ;;  %v1262_v39 = vsel %vm1241_vm0, %v11329_v47, %v24489_v41  ;;  %v1263_v34 = vsel %vm1241_vm0, %v11330_v50, %v24488_v17  ;;  %1589 = vmatprep.mubr.bf16.mxu1 %v25022_v46  ;;  %v25058_v33 = vunpack.i.h.bf16 %v15072_v18  ;;  %v11344_v7 = vunpack.i.l.bf16 %v15228_v56 }
  0xe9   :  { %v1278_v0 = vsel %vm1241_vm0, %v25057_v25, %v11329_v47  ;;  %v15434_v44 = vpop.permute.xlu1 %11382  ;;  %v15436_v35 = vpop.permute.xlu0 %11377  ;;  %1662 = vmatprep.subr.bf16.mxu1 %v1460_v9  ;;  %11687 = vrot.lane.b32.xlu0 %v11686_v36, %s13992_s21  ;;  %v11340_v41 = vunpack.i.h.bf16 %v15230_v16  ;;  %v11339_v47 = vunpack.i.l.bf16 %v15230_v16  ;;  %v1466_v18 = vpack.c.bf16 %v1263_v34, %v1262_v39  ;;  %v13589_v36 = vld [vmem:[%s24434_s0 + $0x128] sm:$0xff]  ;;  %v13590_v9 = vld [vmem:[%s24434_s0 + $0x158] sm:$0xff] }
  0xea   :  { %v1279_v43 = vsel %vm1241_vm0, %v25058_v33, %v11330_v50  ;;  %11702 = vrot.lane.b32.xlu1 %v11701_v23, %s13992_s21  ;;  %v15447_v50 = vld [vmem:[%s24435_s1 + $0x48] sm:$0xff]   ;;  %v15455_v25 = vpack.i.bf16 %v13590_v9, %v13589_v36  ;;  %v15465_v23 = vld [vmem:[%s24434_s0 + $0x10] sm:$0xff]  ;;  %v1264_v36 = vsel %vm1241_vm0, %v11334_v26, %v24491_v20  ;;  %v1265_v9 = vsel %vm1241_vm0, %v11335_v61, %v24493_v42 }
  0xeb   :  { %25059 = vst [vmem:[#allocation4_spill] sm:$0xff] %v15447_v50  ;;  %v15460_v16 = vld [vmem:[%s24434_s0 + $0x1e8] sm:$0xff]  ;;  %25061 = vst [vmem:[#allocation6_spill] sm:$0xff] %v15465_v23  ;;  %v25062_v17 = vunpack.i.l.bf16 %v15070_v11  ;;  %v25063_v34 = vunpack.i.h.bf16 %v15070_v11  ;;  %v1465_v52 = vpack.c.bf16 %v1279_v43, %v1278_v0  ;;  %v25064_v42 = vpack.i.bf16 %v15331_v49, %v15326_v12 }
  0xec   :  { %25060 = vst [vmem:[#allocation5_spill] sm:$0xff] %v15455_v25  ;;  %1663 = vmatpush1.bf16.msra.mxu1 %v1459_v37  ;;  %v25068_v0 = vunpack.i.l.bf16 %v15104_v1  ;;  %v25069_v49 = vunpack.i.h.bf16 %v15104_v1  ;;  %v25070_v43 = vpack.i.bf16 %v15343_v24, %v15338_v2  ;;  %v15532_v1 = vld [vmem:[%s24434_s0 + $0x1b8] sm:$0xff]  ;;  %v15539_v2 = vld [vmem:[%s24434_s0 + $0xa0] sm:$0xff]  ;;  %v15544_v24 = vld [vmem:[%s24434_s0 + $0xd0] sm:$0xff]  ;;  %v25105_v3 = vunpack.i.h.bf16 %v15436_v35 }
  0xed   :  { %v1280_v39 = vsel %vm1241_vm0, %v25062_v17, %v11334_v26  ;;  %v1281_v37 = vsel %vm1241_vm0, %v25063_v34, %v11335_v61  ;;  %v15488_v6 = vpop.permute.xlu1 %11392  ;;  %v15490_v20 = vpop.permute.xlu0 %11387  ;;  %1664 = vmatprep.subr.bf16.mxu1 %v1466_v18  ;;  %11697 = vrot.lane.b32.xlu0 %v25064_v42, %s13992_s21  ;;  %v25065_v17 = vunpack.i.l.bf16 %v15102_v19  ;;  %v25066_v61 = vunpack.i.h.bf16 %v15228_v56  ;;  %25071 = vst [vmem:[#allocation7_spill] sm:$0xff] %v15539_v2 }
  0xee   :  { %v25067_v26 = vunpack.i.h.bf16 %v15102_v19  ;;  %v1282_v12 = vsel %vm1241_vm0, %v25068_v0, %v11339_v47  ;;  %v1283_v42 = vsel %vm1241_vm0, %v25069_v49, %v11340_v41  ;;  %11712 = vrot.lane.b32.xlu1 %v25070_v43, %s13992_s21  ;;  %v1472_v18 = vpack.c.bf16 %v1265_v9, %v1264_v36  ;;  %25072 = vst [vmem:[#allocation8_spill] sm:$0xff] %v15544_v24 }
  0xef   :  { %v15500_v11 = vsel %vm1241_vm0, %v25065_v17, %v11344_v7  ;;  %1590 = vmatmul.mubr.bf16.gmra.mrb[4].mxu1 %v15447_v50  ;;  %v15527_v17 = vld [vmem:[%s24434_s0 + $0x188] sm:$0xff]  ;;  %v1471_v9 = vpack.c.bf16 %v1281_v37, %v1280_v39  ;;  %v25074_v49 = vunpack.i.h.bf16 %v15436_v35  ;;  %v25075_v39 = vunpack.i.l.bf16 %v15434_v44 }
  0xf0   :  { %v15508_v34 = vsel %vm1241_vm0, %v25067_v26, %v25066_v61  ;;  %1665 = vmatpush1.bf16.msra.mxu1 %v1465_v52  ;;  %v25073_v26 = vunpack.i.l.bf16 %v15436_v35  ;;  %1599 = vmatprep.mubr.bf16.mxu1 %v25022_v46  ;;  %v11349_v61 = vunpack.i.l.bf16 %v15260_v28  ;;  %v1477_v52 = vpack.c.bf16 %v1283_v42, %v1282_v12 }
  0xf1   :  { %v1267_v43 = vsel %vm1241_vm0, %v11340_v41, %v25074_v49  ;;  %v15558_v19 = vpop.permute.xlu1 %11402  ;;  %v15560_v33 = vpop.permute.xlu0 %11397  ;;  %1666 = vmatprep.subr.bf16.mxu1 %v1472_v18  ;;  %v25076_v37 = vpack.i.bf16 %v15405_v53, %v15400_v15  ;;  %v24501_v42 = vunpack.i.l.bf16 %v15490_v20  ;;  %v15583_v53 = vld [vmem:[%s24435_s1 + $0x50] sm:$0xff]   ;;  %v25107_v40 = vpack.c.bf16 %v15508_v34, %v15500_v11 }
  0xf2   :  { %v1266_v0 = vsel %vm1241_vm0, %v11339_v47, %v25073_v26  ;;  %v1268_v47 = vsel %vm1241_vm0, %v11344_v7, %v25075_v39  ;;  %v24494_v26 = vunpack.i.h.bf16 %v15558_v19  ;;  %v24495_v49 = vunpack.i.l.bf16 %v15558_v19  ;;  %11722 = vrot.lane.b32.xlu1 %v14902_v22, %s13992_s21  ;;  %25077 = vst [vmem:[#allocation9_spill] sm:$0xff] %v15583_v53 }
  0xf3   :  { %11707 = vrot.lane.b32.xlu0 %v25076_v37, %s13992_s21  ;;  %v24497_v18 = vunpack.i.h.bf16 %v15560_v33  ;;  %v24496_v12 = vunpack.i.l.bf16 %v15560_v33  ;;  %v24500_v7 = vunpack.i.h.bf16 %v15490_v20  ;;  %v1478_v15 = vpack.c.bf16 %v1267_v43, %v1266_v0 }
  0xf4   :  { %v25078_v39 = vunpack.i.h.bf16 %v15434_v44  ;;  %v25079_v37 = vunpack.i.h.bf16 %v15228_v56  ;;  %v25080_v22 = vunpack.i.l.bf16 %v15317_v14  ;;  %v25081_v0 = vunpack.i.h.bf16 %v15317_v14  ;;  %1667 = vmatpush1.bf16.msra.mxu1 %v1471_v9 }
  0xf5   :  { %v25082_v56 = vunpack.i.l.bf16 %v15319_v8  ;;  %1668 = vmatprep.subr.bf16.mxu1 %v1478_v15  ;;  %v11394_v15 = vunpack.i.l.bf16 %v15488_v6  ;;  %v25085_v14 = vunpack.i.l.bf16 %v15393_v31  ;;  %v25108_v4 = vunpack.i.h.bf16 %v15488_v6 }
  0xf6   :  { %v1269_v36 = vsel %vm1241_vm0, %v25079_v37, %v25078_v39  ;;  %v15597_v41 = vsel %vm1241_vm0, %v25080_v22, %v24495_v49  ;;  %v15605_v43 = vsel %vm1241_vm0, %v25081_v0, %v24494_v26  ;;  %v25083_v37 = vunpack.i.h.bf16 %v15319_v8  ;;  %11732 = vrot.lane.b32.xlu1 %v15455_v25, %s13992_s21  ;;  %v13623_v25 = vld [vmem:[%s24434_s0 + $0x1f8] sm:$0xff] }
  0xf7   :  { %v15613_v39 = vsel %vm1241_vm0, %v25082_v56, %v24496_v12  ;;  %v11350_v0 = vunpack.i.h.bf16 %v15260_v28  ;;  %v25084_v26 = vunpack.i.l.bf16 %v15134_v29  ;;  %v15631_v56 = vpop.permute.xlu1 %11412  ;;  %v15633_v12 = vpop.permute.xlu0 %11407  ;;  %11717 = vrot.lane.b32.xlu0 %v14913_v60, %s13992_s21  ;;  %1600 = vmatmul.mubr.bf16.gmra.mrb[8].mxu1 %v15583_v53  ;;  %v1484_v60 = vpack.c.bf16 %v1269_v36, %v1268_v47 }
  0xf8   :  { %v15621_v22 = vsel %vm1241_vm0, %v25083_v37, %v24497_v18  ;;  %v24498_v37 = vunpack.i.h.bf16 %v15633_v12  ;;  %v25087_v18 = vunpack.i.h.bf16 %v15393_v31  ;;  %1669 = vmatpush1.bf16.msra.mxu1 %v1477_v52  ;;  %v1270_v36 = vsel %vm1241_vm0, %v11349_v61, %v24501_v42  ;;  %1609 = vmatprep.mubr.bf16.mxu1 %v25022_v46 }
  0xf9   :  { %v15629_v49 = vsel %vm1241_vm0, %v25084_v26, %v11349_v61  ;;  %v24499_v26 = vunpack.i.l.bf16 %v15633_v12  ;;  %v1271_v47 = vsel %vm1241_vm0, %v11350_v0, %v24500_v7  ;;  %v25089_v8 = vunpack.i.h.bf16 %v15134_v29  ;;  %1670 = vmatprep.subr.bf16.mxu1 %v1484_v60  ;;  %v15713_v60 = vld [vmem:[%s24435_s1 + $0x58] sm:$0xff]  }
  0xfa   :  { %v15664_v28 = vsel %vm1241_vm0, %v25087_v18, %v24498_v37  ;;  %v25090_v18 = vunpack.i.l.bf16 %v15631_v56  ;;  %v25091_v52 = vunpack.i.l.bf16 %v15391_v5  ;;  %v25093_v61 = vunpack.i.h.bf16 %v15631_v56  ;;  %25097 = vst [vmem:[#allocation30_spill] sm:$0xff] %v15713_v60 }
  0xfb   :  { %v15656_v9 = vsel %vm1241_vm0, %v25085_v14, %v24499_v26  ;;  %25088 = vst [vmem:[#allocation27_spill] sm:$0xff] %v15664_v28  ;;  %v11354_v14 = vunpack.i.l.bf16 %v15258_v58  ;;  %v1287_v31 = vsel %vm1241_vm0, %v25089_v8, %v11350_v0  ;;  %v25094_v26 = vunpack.i.h.bf16 %v15391_v5  ;;  %v15695_v29 = vpop.permute.xlu1 %11422  ;;  %v15697_v42 = vpop.permute.xlu0 %11417  ;;  %11727 = vrot.lane.b32.xlu0 %v14929_v32, %s13992_s21  ;;  %v15723_v32 = vld [vmem:[%s24434_s0 + $0x70] sm:$0xff] }
  0xfc   :  { %25086 = vst [vmem:[#allocation10_spill] sm:$0xff] %v15656_v9  ;;  %v15685_v37 = vsel %vm1241_vm0, %v25091_v52, %v25090_v18  ;;  %v24507_v52 = vunpack.i.l.bf16 %v15697_v42  ;;  %v25096_v5 = vpack.i.bf16 %v15465_v23, %v15460_v16  ;;  %25099 = vst [vmem:[#allocation32_spill] sm:$0xff] %v15723_v32  ;;  %v25102_v8 = vunpack.i.l.bf16 %v15436_v35  ;;  %1671 = vmatpush1.bf16.msra.mxu1 %v25107_v40 }
  0xfd   :  { %25092 = vst [vmem:[#allocation28_spill] sm:$0xff] %v15685_v37  ;;  %v15693_v7 = vsel %vm1241_vm0, %v25094_v26, %v25093_v61  ;;  %v1490_v26 = vpack.c.bf16 %v1271_v47, %v1270_v36  ;;  %v15718_v61 = vld [vmem:[%s24434_s0 + $0x40] sm:$0xff]  ;;  %v15735_v47 = vld [vmem:[%s24434_s0 + $0x190] sm:$0xff]  ;;  %v25104_v27 = vunpack.i.h.bf16 %v15697_v42  ;;  %v1272_v0 = vsel %vm1241_vm0, %v11354_v14, %v11394_v15 }
  0xfe   :  { %25095 = vst [vmem:[#allocation29_spill] sm:$0xff] %v15693_v7  ;;  %11742 = vrot.lane.b32.xlu1 %v25096_v5, %s13992_s21  ;;  %25098 = vst [vmem:[#allocation31_spill] sm:$0xff] %v15718_v61  ;;  %v11746_v16 = vpack.i.bf16 %v15723_v32, %v15718_v61  ;;  %v15730_v36 = vld [vmem:[%s24434_s0 + $0x160] sm:$0xff]  ;;  %v15747_v18 = vsel %vm1241_vm0, %v25102_v8, %v24507_v52  ;;  %v25109_v8 = vunpack.i.h.bf16 %v15258_v58  ;;  %v25110_v35 = vunpack.i.l.bf16 %v15695_v29  ;;  %v16196_v7 = vld [vmem:[%s24434_s0 + $0x2c8] sm:$0xff] }
  0xff   :  { %25100 = vst [vmem:[#allocation33_spill] sm:$0xff] %v15730_v36  ;;  %25101 = vst [vmem:[#allocation34_spill] sm:$0xff] %v15735_v47  ;;  %v11761_v5 = vpack.i.bf16 %v15735_v47, %v15730_v36  ;;  %v15755_v51 = vsel %vm1241_vm0, %v25105_v3, %v25104_v27  ;;  %v25111_v57 = vunpack.i.l.bf16 %v15434_v44  ;;  %v25113_v40 = vunpack.i.h.bf16 %v15695_v29  ;;  %v15784_v34 = vpop.permute.xlu1 %11432  ;;  %v15786_v47 = vpop.permute.xlu0 %11427  ;;  %1672 = vmatprep.subr.bf16.mxu1 %v1490_v26  ;;  %v16073_v32 = vld [vmem:[%s24434_s0 + $0x80] sm:$0xff] }
 0x100   :  { %25103 = vst [vmem:[#allocation35_spill] sm:$0xff] %v15747_v18  ;;  %25106 = vst [vmem:[#allocation36_spill] sm:$0xff] %v15755_v51  ;;  %v1273_v52 = vsel %vm1241_vm0, %v25109_v8, %v25108_v4  ;;  %v25114_v3 = vunpack.i.h.bf16 %v15434_v44  ;;  %v1489_v4 = vpack.c.bf16 %v1287_v31, %v15629_v49  ;;  %v24512_v44 = vunpack.i.h.bf16 %v15786_v47  ;;  %1610 = vmatmul.mubr.bf16.gmra.mrb[12].mxu1 %v15713_v60  ;;  %v16122_v18 = vld [vmem:[%s24434_s0 + $0x140] sm:$0xff]  ;;  %v16127_v60 = vld [vmem:[%s24434_s0 + $0x178] sm:$0xff] }
 0x101   :  { %v15774_v27 = vsel %vm1241_vm0, %v25111_v57, %v25110_v35  ;;  %v24511_v35 = vunpack.i.l.bf16 %v15784_v34  ;;  %v24513_v36 = vunpack.i.l.bf16 %v15786_v47  ;;  %v25117_v49 = vpack.i.bf16 %v15544_v24, %v15539_v2  ;;  %1619 = vmatprep.mubr.bf16.mxu1 %v25022_v46  ;;  %v16023_v24 = vld [vmem:[%s24434_s0 + $0x198] sm:$0xff]  ;;  %25159 = vst [vmem:[#allocation69_spill] sm:$0xff] %v16122_v18  ;;  %25160 = vst [vmem:[#allocation70_spill] sm:$0xff] %v16127_v60  ;;  %v16134_v51 = vld [vmem:[%s24434_s0 + $0x1d0] sm:$0xff] }
 0x102   :  { %25112 = vst [vmem:[#allocation37_spill] sm:$0xff] %v15774_v27  ;;  %v15782_v11 = vsel %vm1241_vm0, %v25114_v3, %v25113_v40  ;;  %v25116_v40 = vpack.i.bf16 %v15532_v1, %v15527_v17  ;;  %v25118_v31 = vunpack.i.l.bf16 %v15132_v54  ;;  %v25119_v3 = vmov %v25109_v8  ;;  %1673 = vmatpush1.bf16.msra.mxu1 %v1489_v4  ;;  %v13611_v1 = vld [vmem:[%s24434_s0 + $0x2b0] sm:$0xff]  ;;  %v16047_v2 = vld [vmem:[%s24434_s0 + $0x58] sm:$0xff]  ;;  %25161 = vst [vmem:[#allocation71_spill] sm:$0xff] %v16134_v51 }
 0x103   :  { %25115 = vst [vmem:[#allocation38_spill] sm:$0xff] %v15782_v11  ;;  %11752 = vrot.lane.b32.xlu1 %v25117_v49, %s13992_s21  ;;  %v25120_v8 = vunpack.i.h.bf16 %v15132_v54  ;;  %v1496_v17 = vpack.c.bf16 %v1273_v52, %v1272_v0  ;;  %v25123_v54 = vunpack.i.h.bf16 %v15490_v20  ;;  %v25125_v0 = vunpack.i.l.bf16 %v14961_v62  ;;  %25150 = vst [vmem:[#allocation60_spill] sm:$0xff] %v16047_v2  ;;  %v16110_v27 = vld [vmem:[%s24434_s0 + $0x170] sm:$0xff]  ;;  %v16139_v11 = vld [vmem:[%s24434_s0 + $0x208] sm:$0xff] }
 0x104   :  { %11737 = vrot.lane.b32.xlu0 %v25116_v40, %s13992_s21  ;;  %v1288_v26 = vsel %vm1241_vm0, %v25118_v31, %v11354_v14  ;;  %v25121_v40 = vunpack.i.l.bf16 %v15490_v20  ;;  %v25126_v52 = vunpack.i.l.bf16 %v15560_v33  ;;  %v25127_v49 = vunpack.i.h.bf16 %v14961_v62  ;;  %v15858_v62 = vpop.permute.xlu1 %11442  ;;  %25158 = vst [vmem:[#allocation68_spill] sm:$0xff] %v16110_v27  ;;  %25162 = vst [vmem:[#allocation72_spill] sm:$0xff] %v16139_v11  ;;  %v16146_v37 = vld [vmem:[%s24434_s0 + $0x1a0] sm:$0xff]  ;;  %v16167_v51 = vld [vmem:[%s24434_s0 + $0x230] sm:$0xff] }
 0x105   :  { %v1289_v57 = vsel %vm1241_vm0, %v25120_v8, %v25119_v3  ;;  %v15830_v58 = vsel %vm1241_vm0, %v25123_v54, %v24512_v44  ;;  %v25128_v31 = vunpack.i.h.bf16 %v15560_v33  ;;  %v15848_v20 = vsel %vm1241_vm0, %v11394_v15, %v24511_v35  ;;  %v15860_v33 = vpop.permute.xlu0 %11437  ;;  %1674 = vmatprep.subr.bf16.mxu1 %v1496_v17  ;;  %v15951_v44 = vld [vmem:[%s24435_s1 + $0x68] sm:$0xff]   ;;  %25163 = vst [vmem:[#allocation73_spill] sm:$0xff] %v16146_v37  ;;  %v16191_v37 = vld [vmem:[%s24434_s0 + $0x290] sm:$0xff] }
 0x106   :  { %v15822_v14 = vsel %vm1241_vm0, %v25121_v40, %v24513_v36  ;;  %25124 = vst [vmem:[#allocation40_spill] sm:$0xff] %v15830_v58  ;;  %v1322_v8 = vsel %vm1241_vm0, %v25126_v52, %v25125_v0  ;;  %25129 = vst [vmem:[#allocation41_spill] sm:$0xff] %v15848_v20  ;;  %v25130_v4 = vunpack.i.h.bf16 %v15784_v34  ;;  %v25131_v40 = vunpack.i.h.bf16 %v15488_v6  ;;  %v15870_v6 = vld [vmem:[%s24434_s0 + $0x100] sm:$0xff]  ;;  %v15875_v52 = vld [vmem:[%s24434_s0 + $0x130] sm:$0xff] }
 0x107   :  { %25122 = vst [vmem:[#allocation39_spill] sm:$0xff] %v15822_v14  ;;  %v1323_v3 = vsel %vm1241_vm0, %v25128_v31, %v25127_v49  ;;  %25133 = vst [vmem:[#allocation43_spill] sm:$0xff] %v15860_v33  ;;  %v1495_v15 = vpack.c.bf16 %v1289_v57, %v1288_v26  ;;  %11762 = vrot.lane.b32.xlu1 %v11761_v5, %s13992_s21  ;;  %v11756_v17 = vpack.i.bf16 %v15875_v52, %v15870_v6  ;;  %v13603_v57 = vld [vmem:[%s24434_s0 + $0x1f0] sm:$0xff]  ;;  %v15890_v49 = vld [vmem:[%s24435_s1 + $0x60] sm:$0xff]  }
 0x108   :  { %v15856_v54 = vsel %vm1241_vm0, %v25131_v40, %v25130_v4  ;;  %11747 = vrot.lane.b32.xlu0 %v11746_v16, %s13992_s21  ;;  %25134 = vst [vmem:[#allocation44_spill] sm:$0xff] %v15870_v6  ;;  %25135 = vst [vmem:[#allocation45_spill] sm:$0xff] %v15875_v52  ;;  %v13604_v16 = vld [vmem:[%s24434_s0 + $0x220] sm:$0xff]  ;;  %v1456_v26 = vpack.c.bf16 %v1323_v3, %v1322_v8  ;;  %v15896_v40 = vpop.permute.xlu1 %11452  ;;  %v15906_v8 = vld [vmem:[%s24434_s0 + $0x218] sm:$0xff]  ;;  %1620 = vmatmul.mubr.bf16.gmra.mrb[16].mxu1 %v15890_v49  ;;  %v25165_v9 = vunpack.i.l.bf16 %v14959_v55 }
 0x109   :  { %25132 = vst [vmem:[#allocation42_spill] sm:$0xff] %v15856_v54  ;;  %v15885_v5 = vpack.i.bf16 %v13604_v16, %v13603_v57  ;;  %25137 = vst [vmem:[#allocation47_spill] sm:$0xff] %v15890_v49  ;;  %1675 = vmatpush1.bf16.msra.mxu1 %v1495_v15  ;;  %v15898_v0 = vpop.permute.xlu0 %11447  ;;  %v15911_v3 = vld [vmem:[%s24434_s0 + $0x1c0] sm:$0xff]  ;;  %1629 = vmatprep.mubr.bf16.mxu1 %v25022_v46  ;;  %v13609_v31 = vld [vmem:[%s24434_s0 + $0x248] sm:$0xff]  ;;  %v25166_v28 = vunpack.i.l.bf16 %v15558_v19  ;;  %v25172_v60 = vunpack.i.h.bf16 %v14959_v55  ;;  %v25175_v18 = vunpack.i.l.bf16 %v15633_v12 }
 0x10a   :  { %1773 = vmatprep.subr.bf16.mxu1 %v1456_v26  ;;  %25138 = vst [vmem:[#allocation48_spill] sm:$0xff] %v15906_v8  ;;  %25139 = vst [vmem:[#allocation49_spill] sm:$0xff] %v15911_v3  ;;  %v11766_v15 = vpack.i.bf16 %v15906_v8, %v15911_v3  ;;  %v13608_v57 = vld [vmem:[%s24434_s0 + $0x280] sm:$0xff]  ;;  %v13620_v3 = vld [vmem:[%s24434_s0 + $0x168] sm:$0xff]  ;;  %v25199_v61 = vunpack.i.l.bf16 %v15786_v47 }
 0x10b   :  { %25136 = vst [vmem:[#allocation46_spill] sm:$0xff] %v15885_v5  ;;  %11772 = vrot.lane.b32.xlu1 %v15885_v5, %s13992_s21  ;;  %25143 = vst [vmem:[#allocation53_spill] sm:$0xff] %v15951_v44  ;;  %v13621_v52 = vld [vmem:[%s24434_s0 + $0xd8] sm:$0xff]  ;;  %v16059_v49 = vld [vmem:[%s24434_s0 + $0xb0] sm:$0xff]  ;;  %v16162_v53 = vsel %vm1241_vm0, %v25166_v28, %v25165_v9  ;;  %v25173_v28 = vunpack.i.h.bf16 %v15558_v19  ;;  %v25178_v19 = vunpack.i.l.bf16 %v14967_v63 }
 0x10c   :  { %11757 = vrot.lane.b32.xlu0 %v11756_v17, %s13992_s21  ;;  %v13607_v17 = vld [vmem:[%s24434_s0 + $0x250] sm:$0xff]  ;;  %v15925_v26 = vpop.permute.xlu1 %11462  ;;  %25152 = vst [vmem:[#allocation62_spill] sm:$0xff] %v16059_v49  ;;  %v16078_v54 = vld [vmem:[%s24434_s0 + $0xb8] sm:$0xff]  ;;  %v16097_v58 = vld [vmem:[%s24434_s0 + $0xe0] sm:$0xff] }
 0x10d   :  { %v15921_v16 = vpack.i.bf16 %v13608_v57, %v13607_v17  ;;  %v15927_v4 = vpop.permute.xlu0 %11457  ;;  %v13610_v17 = vld [vmem:[%s24434_s0 + $0x278] sm:$0xff]  ;;  %v16085_v20 = vld [vmem:[%s24434_s0 + $0x110] sm:$0xff]  ;;  %25156 = vst [vmem:[#allocation66_spill] sm:$0xff] %v16097_v58  ;;  %25167 = vst [vmem:[#allocation75_spill] sm:$0xff] %v16167_v51  ;;  %v25176_v51 = vunpack.i.h.bf16 %v14969_v13 }
 0x10e   :  { %v15938_v57 = vpack.i.bf16 %v13610_v17, %v13609_v31  ;;  %v13614_v31 = vld [vmem:[%s24434_s0 + $0x2d8] sm:$0xff]  ;;  %25154 = vst [vmem:[#allocation64_spill] sm:$0xff] %v16085_v20  ;;  %v16172_v11 = vld [vmem:[%s24434_s0 + $0x268] sm:$0xff]  ;;  %25171 = vst [vmem:[#allocation79_spill] sm:$0xff] %v16191_v37  ;;  %v25177_v37 = vunpack.i.h.bf16 %v15633_v12  ;;  %v25181_v12 = vunpack.i.h.bf16 %v15631_v56 }
 0x10f   :  { %25140 = vst [vmem:[#allocation50_spill] sm:$0xff] %v15921_v16  ;;  %11782 = vrot.lane.b32.xlu1 %v15921_v16, %s13992_s21  ;;  %v16102_v14 = vld [vmem:[%s24434_s0 + $0x118] sm:$0xff]  ;;  %25168 = vst [vmem:[#allocation76_spill] sm:$0xff] %v16172_v11 }
 0x110   :  { %11767 = vrot.lane.b32.xlu0 %v11766_v15, %s13992_s21  ;;  %25141 = vst [vmem:[#allocation51_spill] sm:$0xff] %v15938_v57  ;;  %v13612_v15 = vld [vmem:[%s24434_s0 + $0x2e0] sm:$0xff]  ;;  %v15953_v36 = vpop.permute.xlu1 %11472  ;;  %1630 = vmatmul.mubr.bf16.gmra.mrb[20].mxu1 %v15951_v44  ;;  %25157 = vst [vmem:[#allocation67_spill] sm:$0xff] %v16102_v14  ;;  %v16184_v9 = vld [vmem:[%s24434_s0 + $0x238] sm:$0xff]  ;;  %v16226_v55 = vsel %vm1241_vm0, %v25177_v37, %v25176_v51  ;;  %v25182_v37 = vunpack.i.l.bf16 %v14979_v30 }
 0x111   :  { %v15946_v35 = vpack.i.bf16 %v13612_v15, %v13611_v1  ;;  %v15955_v16 = vpop.permute.xlu0 %11467  ;;  %v13613_v1 = vld [vmem:[%s24434_s0 + $0x2a8] sm:$0xff]  ;;  %v13615_v15 = vld [vmem:[%s24434_s0 + $0x78] sm:$0xff]  ;;  %1639 = vmatprep.mubr.bf16.mxu1 %v25022_v46  ;;  %25170 = vst [vmem:[#allocation78_spill] sm:$0xff] %v16184_v9  ;;  %v16210_v9 = vsel %vm1241_vm0, %v25173_v28, %v25172_v60  ;;  %v25179_v60 = vunpack.i.l.bf16 %v15631_v56 }
 0x112   :  { %25144 = vst [vmem:[#allocation54_spill] sm:$0xff] %v15955_v16  ;;  %v15967_v17 = vpack.i.bf16 %v13614_v31, %v13613_v1  ;;  %v13617_v1 = vld [vmem:[%s24434_s0 + $0x18] sm:$0xff] }
 0x113   :  { %25142 = vst [vmem:[#allocation52_spill] sm:$0xff] %v15946_v35  ;;  %11792 = vrot.lane.b32.xlu1 %v15946_v35, %s13992_s21  ;;  %v16234_v28 = vsel %vm1241_vm0, %v25179_v60, %v25178_v19  ;;  %v16266_v56 = vld [vmem:[%s24435_s1 + $0x78] sm:$0xff]   ;;  %v25187_v19 = vunpack.i.l.bf16 %v14977_v21  ;;  %v25188_v60 = vunpack.i.l.bf16 %v15695_v29 }
 0x114   :  { %11777 = vrot.lane.b32.xlu0 %v15938_v57, %s13992_s21  ;;  %25145 = vst [vmem:[#allocation55_spill] sm:$0xff] %v15967_v17  ;;  %v13616_v57 = vld [vmem:[%s24434_s0 + $0xa8] sm:$0xff]  ;;  %v15977_v35 = vpop.permute.xlu1 %11482  ;;  %25186 = vst [vmem:[#allocation80_spill] sm:$0xff] %v16266_v56 }
 0x115   :  { %v11801_v5 = vpack.i.bf16 %v13616_v57, %v13615_v15  ;;  %v15979_v8 = vpop.permute.xlu0 %11477  ;;  %v13618_v57 = vld [vmem:[%s24434_s0 + $0x48] sm:$0xff]  ;;  %v13619_v15 = vld [vmem:[%s24434_s0 + $0x138] sm:$0xff] }
 0x116   :  { %v11796_v31 = vpack.i.bf16 %v13618_v57, %v13617_v1  ;;  %v13622_v1 = vld [vmem:[%s24434_s0 + $0x108] sm:$0xff] }
 0x117   :  { %11802 = vrot.lane.b32.xlu1 %v11801_v5, %s13992_s21  ;;  %v15999_v5 = vld [vmem:[%s24435_s1 + $0x70] sm:$0xff]   ;;  %v11806_v57 = vpack.i.bf16 %v13622_v1, %v13621_v52  ;;  %v16028_v52 = vld [vmem:[%s24434_s0 + $0x1c8] sm:$0xff]  ;;  %v16052_v1 = vld [vmem:[%s24434_s0 + $0x20] sm:$0xff] }
 0x118   :  { %11787 = vrot.lane.b32.xlu0 %v15967_v17, %s13992_s21  ;;  %v11811_v17 = vpack.i.bf16 %v13620_v3, %v13619_v15  ;;  %25146 = vst [vmem:[#allocation56_spill] sm:$0xff] %v15999_v5  ;;  %v16013_v3 = vld [vmem:[%s24434_s0 + $0x28] sm:$0xff]  ;;  %v16016_v44 = vpop.permute.xlu1 %11492  ;;  %25151 = vst [vmem:[#allocation61_spill] sm:$0xff] %v16052_v1  ;;  %1640 = vmatmul.mubr.bf16.gmra.mrb[24].mxu1 %v15999_v5  ;;  %v16151_v5 = vld [vmem:[%s24434_s0 + $0x1d8] sm:$0xff] }
 0x119   :  { %25147 = vst [vmem:[#allocation57_spill] sm:$0xff] %v16013_v3  ;;  %v11821_v15 = vpack.i.bf16 %v16013_v3, %v13623_v25  ;;  %v16018_v6 = vpop.permute.xlu0 %11487  ;;  %v16035_v25 = vld [vmem:[%s24434_s0 + $0x50] sm:$0xff]  ;;  %v16040_v3 = vld [vmem:[%s24434_s0 + $0x88] sm:$0xff]  ;;  %25164 = vst [vmem:[#allocation74_spill] sm:$0xff] %v16151_v5  ;;  %1649 = vmatprep.mubr.bf16.mxu1 %v25022_v46 }
 0x11a   :  { %25148 = vst [vmem:[#allocation58_spill] sm:$0xff] %v16035_v25  ;;  %25149 = vst [vmem:[#allocation59_spill] sm:$0xff] %v16040_v3  ;;  %v16179_v5 = vld [vmem:[%s24434_s0 + $0x200] sm:$0xff] }
 0x11b   :  { %11812 = vrot.lane.b32.xlu1 %v11811_v17, %s13992_s21  ;;  %v16090_v17 = vld [vmem:[%s24434_s0 + $0x148] sm:$0xff]  ;;  %25169 = vst [vmem:[#allocation77_spill] sm:$0xff] %v16179_v5  ;;  %v25174_v5 = vunpack.i.l.bf16 %v14969_v13  ;;  %v25180_v13 = vunpack.i.h.bf16 %v14967_v63 }
 0x11c   :  { %11797 = vrot.lane.b32.xlu0 %v11796_v31, %s13992_s21  ;;  %25155 = vst [vmem:[#allocation65_spill] sm:$0xff] %v16090_v17  ;;  %v16115_v31 = vld [vmem:[%s24434_s0 + $0x1a8] sm:$0xff]  ;;  %v16200_v11 = vpop.permute.xlu1 %11502 }
 0x11d   :  { %v16202_v50 = vpop.permute.xlu0 %11497  ;;  %v16218_v16 = vsel %vm1241_vm0, %v25175_v18, %v25174_v5  ;;  %v16245_v51 = vsel %vm1241_vm0, %v25181_v12, %v25180_v13  ;;  %v25183_v18 = vunpack.i.l.bf16 %v15697_v42  ;;  %v16274_v13 = vsel %vm1241_vm0, %v25188_v60, %v25187_v19 }
 0x11e   :  { %v11480_v19 = vunpack.i.h.bf16 %v15979_v8  ;;  %v11479_v60 = vunpack.i.l.bf16 %v15979_v8  ;;  %v25197_v8 = vpack.i.bf16 %v16040_v3, %v16035_v25  ;;  %v11485_v3 = vunpack.i.h.bf16 %v15977_v35 }
 0x11f   :  { %11822 = vrot.lane.b32.xlu1 %v11821_v15, %s13992_s21  ;;  %v16253_v5 = vsel %vm1241_vm0, %v25183_v18, %v25182_v37  ;;  %v25185_v15 = vunpack.i.h.bf16 %v15697_v42  ;;  %v25190_v42 = vunpack.i.h.bf16 %v15695_v29  ;;  %v16287_v37 = vld [vmem:[%s24434_s0 + $0x260] sm:$0xff]  ;;  %v16292_v18 = vld [vmem:[%s24434_s0 + $0x298] sm:$0xff] }
 0x120   :  { %11807 = vrot.lane.b32.xlu0 %v11806_v57, %s13992_s21  ;;  %v25184_v57 = vunpack.i.h.bf16 %v14979_v30  ;;  %v25189_v30 = vunpack.i.h.bf16 %v14977_v21  ;;  %25191 = vst [vmem:[#allocation81_spill] sm:$0xff] %v16292_v18  ;;  %v16299_v21 = vld [vmem:[%s24434_s0 + $0x2c0] sm:$0xff]  ;;  %v16304_v29 = vld [vmem:[%s24434_s0 + $0x2f8] sm:$0xff]  ;;  %1650 = vmatmul.mubr.bf16.gmra.mrb[28].mxu1 %v16266_v56  ;;  %v25203_v18 = vunpack.i.l.bf16 %v15784_v34  ;;  %v25206_v56 = vunpack.i.l.bf16 %v15860_v33 }
 0x121   :  { %25192 = vst [vmem:[#allocation82_spill] sm:$0xff] %v16299_v21  ;;  %25193 = vst [vmem:[#allocation83_spill] sm:$0xff] %v16304_v29  ;;  %v16328_v29 = vpop.permute.xlu1 %11512  ;;  %1692 = vmatprep.mubr.bf16.mxu1 %v25022_v46 }
 0x122   :  { %v16261_v63 = vsel %vm1241_vm0, %v25185_v15, %v25184_v57  ;;  %v16282_v12 = vsel %vm1241_vm0, %v25190_v42, %v25189_v30  ;;  %v16317_v42 = vld [vmem:[%s24434_s0 + $0x8] sm:$0xff]  ;;  %v16322_v57 = vld [vmem:[%s24434_s0 + $0x38] sm:$0xff]  ;;  %v16330_v30 = vpop.permute.xlu0 %11507  ;;  %v25196_v15 = vpack.i.bf16 %v16028_v52, %v16023_v24  ;;  %v11484_v52 = vunpack.i.l.bf16 %v15977_v35 }
 0x123   :  { %25194 = vst [vmem:[#allocation84_spill] sm:$0xff] %v16317_v42  ;;  %25195 = vst [vmem:[#allocation85_spill] sm:$0xff] %v16322_v57  ;;  %11832 = vrot.lane.b32.xlu1 %v25197_v8, %s13992_s21  ;;  %v25198_v42 = vunpack.i.l.bf16 %v14987_v10  ;;  %v25201_v8 = vunpack.i.h.bf16 %v15786_v47  ;;  %v25205_v47 = vunpack.i.h.bf16 %v15784_v34  ;;  %v25210_v35 = vunpack.i.l.bf16 %v15858_v62 }
 0x124   :  { %11817 = vrot.lane.b32.xlu0 %v25196_v15, %s13992_s21  ;;  %v25200_v15 = vunpack.i.h.bf16 %v14987_v10  ;;  %v25204_v10 = vunpack.i.h.bf16 %v14985_v48 }
 0x125   :  { %v16354_v21 = vsel %vm1241_vm0, %v25199_v61, %v25198_v42  ;;  %v25202_v42 = vunpack.i.l.bf16 %v14985_v48  ;;  %v16389_v61 = vpop.permute.xlu1 %11522  ;;  %v25207_v48 = vunpack.i.h.bf16 %v15860_v33 }
 0x126   :  { %v16366_v23 = vsel %vm1241_vm0, %v25201_v8, %v25200_v15  ;;  %v16385_v15 = vsel %vm1241_vm0, %v25205_v47, %v25204_v10  ;;  %v16391_v25 = vpop.permute.xlu0 %11517  ;;  %v25208_v8 = vpack.i.bf16 %v16052_v1, %v16047_v2  ;;  %v2337_v47 = vsel %vm2270_vm1, %v25210_v35, %v11484_v52 }
 0x127   :  { %v16377_v24 = vsel %vm1241_vm0, %v25203_v18, %v25202_v42  ;;  %v2335_v18 = vsel %vm2270_vm1, %v25206_v56, %v11479_v60  ;;  %v2336_v34 = vsel %vm2270_vm1, %v25207_v48, %v11480_v19  ;;  %v25209_v56 = vpack.i.bf16 %v16064_v59, %v16059_v49 }
 0x128   :  { %11827 = vrot.lane.b32.xlu0 %v25208_v8, %s13992_s21  ;;  %v25211_v33 = vunpack.i.l.bf16 %v16391_v25  ;;  %v25212_v2 = vunpack.i.h.bf16 %v16391_v25  ;;  %v25213_v48 = vunpack.i.l.bf16 %v16389_v61  ;;  %v25214_v10 = vunpack.i.h.bf16 %v16389_v61  ;;  %1693 = vmatmul.mubr.bf16.vlgmr.msra.gmra.mrb[32].mxu1 %v15371_v38 }
 0x129   :  { %11842 = vrot.lane.b32.xlu1 %v25209_v56, %s13992_s21  ;;  %v11494_v59 = vunpack.i.l.bf16 %v16016_v44  ;;  %v16437_v49 = vpop.permute.xlu1 %11532  ;;  %v16443_v1 = vpack.c.bf16 %v2336_v34, %v2335_v18  ;;  %v25217_v18 = vpack.i.bf16 %v16090_v17, %v16085_v20  ;;  %v11500_v34 = vunpack.i.h.bf16 %v16202_v50  ;;  %1702 = vmatprep.mubr.bf16.mxu1 %v25022_v46  ;;  %v25237_v17 = vld [vmem:[#allocation70_spill] sm:$0xff]  ;;  %v25239_v20 = vld [vmem:[#allocation4_spill] sm:$0xff] }
 0x12a   :  { %v2319_v8 = vsel %vm2270_vm1, %v11479_v60, %v25211_v33  ;;  %v2320_v56 = vsel %vm2270_vm1, %v11480_v19, %v25212_v2  ;;  %v2321_v42 = vsel %vm2270_vm1, %v11484_v52, %v25213_v48  ;;  %v2322_v35 = vsel %vm2270_vm1, %v11485_v3, %v25214_v10  ;;  %v16439_v33 = vpop.permute.xlu0 %11527 }
 0x12b   :  { %v16441_v60 = vpack.c.bf16 %v2320_v56, %v2319_v8  ;;  %v25215_v2 = vunpack.i.h.bf16 %v15858_v62  ;;  %v11490_v52 = vunpack.i.h.bf16 %v16018_v6  ;;  %v11489_v48 = vunpack.i.l.bf16 %v16018_v6 }
 0x12c   :  { %v24579_v57 = vunpack.i.l.bf16 %v16439_v33  ;;  %v25216_v8 = vpack.i.bf16 %v16073_v32, %v16078_v54  ;;  %v11499_v6 = vunpack.i.l.bf16 %v16202_v50  ;;  %v16466_v56 = vpack.c.bf16 %v2322_v35, %v2321_v42 }
 0x12d   :  { %v2338_v19 = vsel %vm2270_vm1, %v25215_v2, %v11485_v3  ;;  %11852 = vrot.lane.b32.xlu1 %v25217_v18, %s13992_s21  ;;  %v11495_v3 = vunpack.i.h.bf16 %v16016_v44  ;;  %2576 = vmatprep.subr.bf16.mxu0 %v16441_v60  ;;  %v25218_v10 = vpack.c.bf16 %v15621_v22, %v15613_v39  ;;  %v25219_v38 = vunpack.i.h.bf16 %v16439_v33  ;;  %v16488_v22 = vpop.permute.xlu1 %11542 }
 0x12e   :  { %11837 = vrot.lane.b32.xlu0 %v25216_v8, %s13992_s21  ;;  %2577 = vmatpush1.bf16.msra.mxu0 %v16443_v1  ;;  %v2323_v50 = vsel %vm2270_vm1, %v11489_v48, %v24579_v57  ;;  %v24580_v42 = vunpack.i.l.bf16 %v15927_v4  ;;  %v11504_v18 = vunpack.i.l.bf16 %v16200_v11  ;;  %v25220_v39 = vpack.c.bf16 %v16210_v9, %v16162_v53 }
 0x12f   :  { %1774 = vmatpush1.bf16.msra.mxu1 %v25218_v10  ;;  %v2324_v44 = vsel %vm2270_vm1, %v11490_v52, %v25219_v38  ;;  %v16490_v10 = vpop.permute.xlu0 %11537  ;;  %2578 = vmatprep.subr.bf16.mxu0 %v16466_v56  ;;  %v16493_v57 = vpack.c.bf16 %v2338_v19, %v2337_v47  ;;  %v25221_v35 = vunpack.i.l.bf16 %v15898_v0  ;;  %v25222_v53 = vunpack.i.h.bf16 %v15898_v0 }
 0x130   :  { %1775 = vmatprep.subr.bf16.mxu1 %v25220_v39  ;;  %v25223_v39 = vpack.i.bf16 %v16097_v58, %v16102_v14  ;;  %v25224_v47 = vunpack.i.l.bf16 %v15896_v40  ;;  %v16513_v38 = vpack.c.bf16 %v2324_v44, %v2323_v50  ;;  %v25225_v8 = vunpack.i.h.bf16 %v15896_v40  ;;  %1703 = vmatmul.mubr.bf16.gmra.mrb[36].mxu1 %v25239_v20 }
 0x131   :  { %v2339_v2 = vsel %vm2270_vm1, %v25221_v35, %v11489_v48  ;;  %v2340_v9 = vsel %vm2270_vm1, %v25222_v53, %v11490_v52  ;;  %v25226_v52 = vpack.i.bf16 %v16115_v31, %v16110_v27  ;;  %v2343_v35 = vsel %vm2270_vm1, %v24580_v42, %v11499_v6  ;;  %v25243_v42 = vld [vmem:[#allocation27_spill] sm:$0xff]  ;;  %1712 = vmatprep.mubr.bf16.mxu1 %v25022_v46 }
 0x132   :  { %11847 = vrot.lane.b32.xlu0 %v25223_v39, %s13992_s21  ;;  %v2341_v19 = vsel %vm2270_vm1, %v25224_v47, %v11494_v59  ;;  %v2342_v48 = vsel %vm2270_vm1, %v25225_v8, %v11495_v3  ;;  %v25227_v53 = vunpack.i.h.bf16 %v15927_v4  ;;  %v25228_v8 = vpack.c.bf16 %v15605_v43, %v15597_v41  ;;  %2579 = vmatpush1.bf16.msra.mxu0 %v16493_v57  ;;  %v16549_v41 = vpop.permute.xlu1 %11552 }
 0x133   :  { %11862 = vrot.lane.b32.xlu1 %v25226_v52, %s13992_s21  ;;  %v25229_v31 = vunpack.i.l.bf16 %v16437_v49  ;;  %v25230_v52 = vunpack.i.h.bf16 %v16437_v49  ;;  %v25231_v44 = vpack.c.bf16 %v16226_v55, %v16218_v16  ;;  %v16551_v43 = vpop.permute.xlu0 %11547  ;;  %2580 = vmatprep.subr.bf16.mxu0 %v16513_v38  ;;  %v16568_v39 = vpack.c.bf16 %v2340_v9, %v2339_v2  ;;  %v25240_v2 = vld [vmem:[#allocation72_spill] sm:$0xff]  ;;  %v25241_v9 = vld [vmem:[#allocation71_spill] sm:$0xff] }
 0x134   :  { %v2344_v50 = vsel %vm2270_vm1, %v25227_v53, %v11500_v34  ;;  %1776 = vmatpush1.bf16.msra.mxu1 %v25228_v8  ;;  %v25232_v8 = vunpack.i.l.bf16 %v15925_v26  ;;  %v24589_v14 = vunpack.i.h.bf16 %v16488_v22  ;;  %v25242_v55 = vpack.i.bf16 %v25240_v2, %v25241_v9  ;;  %v25251_v2 = vld [vmem:[#allocation74_spill] sm:$0xff] }
 0x135   :  { %v2325_v47 = vsel %vm2270_vm1, %v11494_v59, %v25229_v31  ;;  %v2326_v53 = vsel %vm2270_vm1, %v11495_v3, %v25230_v52  ;;  %1777 = vmatprep.subr.bf16.mxu1 %v25231_v44  ;;  %v25233_v31 = vunpack.i.h.bf16 %v16200_v11  ;;  %v25234_v52 = vunpack.i.h.bf16 %v15925_v26  ;;  %v25235_v44 = vld [vmem:[#allocation54_spill] sm:$0xff]  ;;  %v25236_v59 = vld [vmem:[#allocation69_spill] sm:$0xff] }
 0x136   :  { %v2345_v3 = vsel %vm2270_vm1, %v25232_v8, %v11504_v18  ;;  %v25238_v27 = vpack.i.bf16 %v25236_v59, %v25237_v17  ;;  %v16578_v58 = vpack.c.bf16 %v2326_v53, %v2325_v47  ;;  %v25244_v17 = vld [vmem:[#allocation10_spill] sm:$0xff]  ;;  %2581 = vmatpush1.bf16.msra.mxu0 %v16568_v39  ;;  %v25246_v20 = vunpack.i.l.bf16 %v16490_v10 }
 0x137   :  { %v2346_v16 = vsel %vm2270_vm1, %v25234_v52, %v25233_v31  ;;  %v16580_v31 = vpack.c.bf16 %v2342_v48, %v2341_v19  ;;  %v16582_v52 = vpack.c.bf16 %v2344_v50, %v2343_v35  ;;  %11872 = vrot.lane.b32.xlu1 %v25242_v55, %s13992_s21  ;;  %v25245_v8 = vpack.c.bf16 %v25243_v42, %v25244_v17  ;;  %v16609_v55 = vpop.permute.xlu1 %11562 }
 0x138   :  { %11857 = vrot.lane.b32.xlu0 %v25238_v27, %s13992_s21  ;;  %v2327_v19 = vsel %vm2270_vm1, %v11499_v6, %v25246_v20  ;;  %v25247_v48 = vunpack.i.h.bf16 %v16490_v10  ;;  %v16601_v50 = vpack.c.bf16 %v2346_v16, %v2345_v3  ;;  %v11510_v53 = vunpack.i.h.bf16 %v16330_v30  ;;  %v16611_v6 = vpop.permute.xlu0 %11557  ;;  %2582 = vmatprep.subr.bf16.mxu0 %v16578_v58  ;;  %v25254_v27 = vld [vmem:[#allocation76_spill] sm:$0xff] }
 0x139   :  { %1778 = vmatpush1.bf16.msra.mxu1 %v25245_v8  ;;  %v11509_v17 = vunpack.i.l.bf16 %v16330_v30  ;;  %v25248_v42 = vpack.c.bf16 %v16245_v51, %v16234_v28  ;;  %v24588_v16 = vunpack.i.h.bf16 %v16609_v55  ;;  %v24587_v8 = vunpack.i.l.bf16 %v16609_v55  ;;  %v25250_v51 = vld [vmem:[#allocation73_spill] sm:$0xff]  ;;  %v25255_v30 = vld [vmem:[#allocation75_spill] sm:$0xff] }
 0x13a   :  { %v2328_v35 = vsel %vm2270_vm1, %v11500_v34, %v25247_v48  ;;  %v25249_v34 = vunpack.i.l.bf16 %v16488_v22  ;;  %v25252_v20 = vpack.i.bf16 %v25250_v51, %v25251_v2  ;;  %v25256_v28 = vpack.i.bf16 %v25254_v27, %v25255_v30  ;;  %2583 = vmatpush1.bf16.msra.mxu0 %v16580_v31  ;;  %v25275_v48 = vld [vmem:[#allocation9_spill] sm:$0xff] }
 0x13b   :  { %1779 = vmatprep.subr.bf16.mxu1 %v25248_v42  ;;  %v24591_v42 = vunpack.i.l.bf16 %v16551_v43  ;;  %v25257_v2 = vunpack.i.l.bf16 %v16389_v61  ;;  %v25262_v27 = vunpack.i.l.bf16 %v16391_v25  ;;  %1713 = vmatmul.mubr.bf16.gmra.mrb[40].mxu1 %v25275_v48  ;;  %v25282_v48 = vunpack.i.h.bf16 %v16437_v49 }
 0x13c   :  { %v2329_v3 = vsel %vm2270_vm1, %v11504_v18, %v25249_v34  ;;  %11867 = vrot.lane.b32.xlu0 %v25252_v20, %s13992_s21  ;;  %v16629_v18 = vpack.c.bf16 %v2328_v35, %v2327_v19  ;;  %v25253_v34 = vunpack.i.h.bf16 %v16200_v11  ;;  %11882 = vrot.lane.b32.xlu1 %v25256_v28, %s13992_s21  ;;  %v25259_v11 = vunpack.i.h.bf16 %v16389_v61  ;;  %v25267_v61 = vld [vmem:[#allocation29_spill] sm:$0xff] }
 0x13d   :  { %v16647_v19 = vsel %vm2270_vm1, %v25257_v2, %v24587_v8  ;;  %v25261_v20 = vunpack.i.l.bf16 %v16611_v6  ;;  %v25264_v28 = vunpack.i.h.bf16 %v16611_v6  ;;  %v25268_v8 = vld [vmem:[#allocation28_spill] sm:$0xff]  ;;  %1722 = vmatprep.mubr.bf16.mxu1 %v25022_v46 }
 0x13e   :  { %v2330_v47 = vsel %vm2270_vm1, %v25253_v34, %v24589_v14  ;;  %25258 = vst [vmem:[#allocation54_spill] sm:$0xff] %v16647_v19  ;;  %v16655_v35 = vsel %vm2270_vm1, %v25259_v11, %v24588_v16  ;;  %v25265_v34 = vunpack.i.h.bf16 %v16391_v25  ;;  %v25269_v11 = vpack.c.bf16 %v25267_v61, %v25268_v8  ;;  %2584 = vmatprep.subr.bf16.mxu0 %v16629_v18  ;;  %v25273_v16 = vld [vmem:[#allocation78_spill] sm:$0xff] }
 0x13f   :  { %25260 = vst [vmem:[#allocation69_spill] sm:$0xff] %v16655_v35  ;;  %v16663_v30 = vsel %vm2270_vm1, %v25262_v27, %v25261_v20  ;;  %v25270_v14 = vpack.c.bf16 %v16261_v63, %v16253_v5  ;;  %v16681_v20 = vpop.permute.xlu1 %11572  ;;  %v16683_v27 = vpop.permute.xlu0 %11567  ;;  %v25271_v25 = vunpack.i.l.bf16 %v25235_v44  ;;  %v11554_v8 = vunpack.i.l.bf16 %v16549_v41  ;;  %2585 = vmatpush1.bf16.msra.mxu0 %v16582_v52 }
 0x140   :  { %25263 = vst [vmem:[#allocation4_spill] sm:$0xff] %v16663_v30  ;;  %v16671_v2 = vsel %vm2270_vm1, %v25265_v34, %v25264_v28  ;;  %1780 = vmatpush1.bf16.msra.mxu1 %v25269_v11  ;;  %v25272_v11 = vld [vmem:[#allocation77_spill] sm:$0xff]  ;;  %v16704_v34 = vpack.c.bf16 %v2330_v47, %v2329_v3  ;;  %v2331_v63 = vsel %vm2270_vm1, %v11509_v17, %v24591_v42  ;;  %v25276_v61 = vunpack.i.h.bf16 %v16551_v43  ;;  %v25291_v42 = vld [vmem:[#allocation35_spill] sm:$0xff] }
 0x141   :  { %25266 = vst [vmem:[#allocation72_spill] sm:$0xff] %v16671_v2  ;;  %1781 = vmatprep.subr.bf16.mxu1 %v25270_v14  ;;  %v2347_v28 = vsel %vm2270_vm1, %v25271_v25, %v11509_v17  ;;  %v24590_v14 = vunpack.i.l.bf16 %v16681_v20  ;;  %v25274_v25 = vpack.i.bf16 %v25272_v11, %v25273_v16  ;;  %v25277_v16 = vld [vmem:[#allocation79_spill] sm:$0xff]  ;;  %v25279_v47 = vunpack.i.l.bf16 %v16437_v49  ;;  %v25290_v49 = vld [vmem:[#allocation36_spill] sm:$0xff] }
 0x142   :  { %v2332_v5 = vsel %vm2270_vm1, %v11510_v53, %v25276_v61  ;;  %v25278_v11 = vpack.i.bf16 %v16196_v7, %v25277_v16  ;;  %v25281_v17 = vunpack.i.h.bf16 %v16681_v20  ;;  %v25285_v7 = vunpack.i.l.bf16 %v16439_v33  ;;  %2586 = vmatprep.subr.bf16.mxu0 %v16704_v34 }
 0x143   :  { %11877 = vrot.lane.b32.xlu0 %v25274_v25, %s13992_s21  ;;  %v16724_v3 = vsel %vm2270_vm1, %v25279_v47, %v24590_v14  ;;  %v25284_v25 = vunpack.i.l.bf16 %v16683_v27  ;;  %v25288_v47 = vunpack.i.h.bf16 %v16439_v33  ;;  %v25293_v19 = vpack.c.bf16 %v16282_v12, %v16274_v13  ;;  %2587 = vmatpush1.bf16.msra.mxu0 %v16601_v50 }
 0x144   :  { %11892 = vrot.lane.b32.xlu1 %v25278_v11, %s13992_s21  ;;  %25280 = vst [vmem:[#allocation71_spill] sm:$0xff] %v16724_v3  ;;  %v16732_v61 = vsel %vm2270_vm1, %v25282_v48, %v25281_v17  ;;  %v25287_v11 = vunpack.i.h.bf16 %v16683_v27  ;;  %v25292_v17 = vpack.c.bf16 %v25290_v49, %v25291_v42  ;;  %v11514_v48 = vunpack.i.l.bf16 %v16328_v29  ;;  %v25297_v49 = vld [vmem:[#allocation81_spill] sm:$0xff] }
 0x145   :  { %25283 = vst [vmem:[#allocation27_spill] sm:$0xff] %v16732_v61  ;;  %v16740_v16 = vsel %vm2270_vm1, %v25285_v7, %v25284_v25  ;;  %v16758_v25 = vpop.permute.xlu1 %11582  ;;  %v16760_v7 = vpop.permute.xlu0 %11577  ;;  %v25294_v33 = vunpack.i.h.bf16 %v25235_v44  ;;  %v25296_v42 = vunpack.i.h.bf16 %v16328_v29  ;;  %v25298_v13 = vpack.i.bf16 %v16287_v37, %v25297_v49 }
 0x146   :  { %25286 = vst [vmem:[#allocation10_spill] sm:$0xff] %v16740_v16  ;;  %v16748_v14 = vsel %vm2270_vm1, %v25288_v47, %v25287_v11  ;;  %1782 = vmatpush1.bf16.msra.mxu1 %v25292_v17  ;;  %v24595_v12 = vunpack.i.l.bf16 %v16758_v25  ;;  %v16777_v17 = vpack.c.bf16 %v2332_v5, %v2331_v63  ;;  %v25295_v47 = vunpack.i.h.bf16 %v16549_v41  ;;  %v16794_v5 = vld [vmem:[%s24434_s0 + $0x2f0] sm:$0xff] }
 0x147   :  { %25289 = vst [vmem:[#allocation73_spill] sm:$0xff] %v16748_v14  ;;  %1783 = vmatprep.subr.bf16.mxu1 %v25293_v19  ;;  %v2348_v11 = vsel %vm2270_vm1, %v25294_v33, %v11510_v53  ;;  %v2333_v33 = vsel %vm2270_vm1, %v11514_v48, %v11554_v8  ;;  %11887 = vrot.lane.b32.xlu0 %v25298_v13, %s13992_s21  ;;  %25299 = vst [vmem:[#allocation74_spill] sm:$0xff] %v16794_v5  ;;  %v25300_v63 = vunpack.i.l.bf16 %v16488_v22  ;;  %v25312_v16 = vld [vmem:[#allocation37_spill] sm:$0xff] }
 0x148   :  { %v2334_v19 = vsel %vm2270_vm1, %v25296_v42, %v25295_v47  ;;  %3265 = vrot.lane.b32.xlu1 %v16794_v5, %s13992_s21  ;;  %v25302_v47 = vunpack.i.h.bf16 %v16758_v25  ;;  %v25303_v37 = vunpack.i.h.bf16 %v16488_v22  ;;  %v25305_v49 = vunpack.i.l.bf16 %v16760_v7  ;;  %v25311_v22 = vld [vmem:[#allocation38_spill] sm:$0xff]  ;;  %2588 = vmatprep.subr.bf16.mxu0 %v16777_v17 }
 0x149   :  { %v16804_v42 = vsel %vm2270_vm1, %v25300_v63, %v24595_v12  ;;  %v25306_v53 = vunpack.i.l.bf16 %v16490_v10  ;;  %v25308_v61 = vunpack.i.h.bf16 %v16760_v7  ;;  %v25309_v63 = vunpack.i.h.bf16 %v16490_v10 }
 0x14a   :  { %25301 = vst [vmem:[#allocation76_spill] sm:$0xff] %v16804_v42  ;;  %v16812_v13 = vsel %vm2270_vm1, %v25303_v37, %v25302_v47  ;;  %v25313_v47 = vpack.c.bf16 %v25311_v22, %v25312_v16  ;;  %v25314_v37 = vpack.c.bf16 %v16366_v23, %v16354_v21  ;;  %v25315_v10 = vunpack.i.l.bf16 %v15953_v36 }
 0x14b   :  { %25304 = vst [vmem:[#allocation75_spill] sm:$0xff] %v16812_v13  ;;  %v16820_v3 = vsel %vm2270_vm1, %v25306_v53, %v25305_v49  ;;  %v16828_v12 = vsel %vm2270_vm1, %v25309_v63, %v25308_v61  ;;  %v16837_v53 = vpop.permute.xlu1 %11592  ;;  %v16839_v49 = vpop.permute.xlu0 %11587  ;;  %v25316_v63 = vunpack.i.h.bf16 %v16328_v29  ;;  %v25317_v16 = vunpack.i.h.bf16 %v15953_v36 }
 0x14c   :  { %25307 = vst [vmem:[#allocation29_spill] sm:$0xff] %v16820_v3  ;;  %25310 = vst [vmem:[#allocation28_spill] sm:$0xff] %v16828_v12  ;;  %1784 = vmatpush1.bf16.msra.mxu1 %v25313_v47  ;;  %v2349_v61 = vsel %vm2270_vm1, %v25315_v10, %v11514_v48  ;;  %v24598_v47 = vunpack.i.l.bf16 %v16837_v53  ;;  %v24599_v14 = vunpack.i.l.bf16 %v16839_v49  ;;  %v25318_v48 = vld [vmem:[#allocation30_spill] sm:$0xff]  ;;  %v16859_v29 = vpack.c.bf16 %v2348_v11, %v2347_v28  ;;  %v25368_v3 = vld [vmem:[#allocation44_spill] sm:$0xff] }
 0x14d   :  { %1785 = vmatprep.subr.bf16.mxu1 %v25314_v37  ;;  %v2350_v22 = vsel %vm2270_vm1, %v25317_v16, %v25316_v63  ;;  %1723 = vmatmul.mubr.bf16.gmra.mrb[44].mxu1 %v25318_v48  ;;  %v16861_v10 = vpack.c.bf16 %v2334_v19, %v2333_v33  ;;  %v25319_v63 = vld [vmem:[#allocation82_spill] sm:$0xff]  ;;  %v25320_v16 = vld [vmem:[#allocation83_spill] sm:$0xff]  ;;  %v25323_v48 = vunpack.i.h.bf16 %v16837_v53  ;;  %v25324_v28 = vunpack.i.h.bf16 %v16549_v41  ;;  %v25331_v41 = vld [vmem:[#allocation40_spill] sm:$0xff] }
 0x14e   :  { %v25321_v23 = vpack.i.bf16 %v25319_v63, %v25320_v16  ;;  %v16873_v37 = vsel %vm2270_vm1, %v11554_v8, %v24598_v47  ;;  %v25326_v19 = vunpack.i.l.bf16 %v16551_v43  ;;  %v25329_v8 = vunpack.i.h.bf16 %v16551_v43  ;;  %v25332_v16 = vld [vmem:[#allocation39_spill] sm:$0xff]  ;;  %2589 = vmatpush1.bf16.msra.mxu0 %v16859_v29  ;;  %1732 = vmatprep.mubr.bf16.mxu1 %v25022_v46  ;;  %v25339_v43 = vld [vmem:[#allocation84_spill] sm:$0xff] }
 0x14f   :  { %25322 = vst [vmem:[#allocation77_spill] sm:$0xff] %v16873_v37  ;;  %v16881_v11 = vsel %vm2270_vm1, %v25324_v28, %v25323_v48  ;;  %v25333_v48 = vpack.c.bf16 %v25331_v41, %v25332_v16  ;;  %v25334_v28 = vpack.c.bf16 %v16385_v15, %v16377_v24  ;;  %v16908_v21 = vpop.permute.xlu0 %11597  ;;  %2590 = vmatprep.subr.bf16.mxu0 %v16861_v10  ;;  %v25335_v15 = vld [vmem:[#allocation31_spill] sm:$0xff]  ;;  %v25336_v16 = vld [vmem:[#allocation6_spill] sm:$0xff]  ;;  %v13660_v47 = vld [vmem:[%s24434_s0 + $0x68] sm:$0xff]  ;;  %v25356_v37 = vunpack.i.l.bf16 %v16683_v27 }
 0x150   :  { %11897 = vrot.lane.b32.xlu0 %v25321_v23, %s13992_s21  ;;  %25325 = vst [vmem:[#allocation78_spill] sm:$0xff] %v16881_v11  ;;  %v16889_v33 = vsel %vm2270_vm1, %v25326_v19, %v24599_v14  ;;  %v25328_v23 = vunpack.i.h.bf16 %v16839_v49  ;;  %v16906_v19 = vpop.permute.xlu1 %11602  ;;  %v16918_v24 = vpack.c.bf16 %v2350_v22, %v2349_v61  ;;  %v13661_v61 = vld [vmem:[%s24434_s0 + $0x98] sm:$0xff]  ;;  %v25370_v42 = vunpack.i.l.bf16 %v16760_v7 }
 0x151   :  { %25327 = vst [vmem:[#allocation9_spill] sm:$0xff] %v16889_v33  ;;  %1786 = vmatpush1.bf16.msra.mxu1 %v25333_v48  ;;  %v25337_v48 = vpack.i.bf16 %v25335_v15, %v25336_v16  ;;  %v16934_v22 = vpack.i.bf16 %v13661_v61, %v13660_v47  ;;  %v25342_v14 = vld [vmem:[#allocation42_spill] sm:$0xff]  ;;  %v25345_v15 = vunpack.i.l.bf16 %v16906_v19  ;;  %v25346_v16 = vunpack.i.l.bf16 %v16609_v55  ;;  %v25354_v61 = vld [vmem:[#allocation7_spill] sm:$0xff] }
 0x152   :  { %v16897_v63 = vsel %vm2270_vm1, %v25329_v8, %v25328_v23  ;;  %1787 = vmatprep.subr.bf16.mxu1 %v25334_v28  ;;  %v25338_v28 = vld [vmem:[#allocation85_spill] sm:$0xff]  ;;  %2591 = vmatpush1.bf16.msra.mxu0 %v16918_v24  ;;  %v25373_v12 = vunpack.i.h.bf16 %v16760_v7 }
 0x153   :  { %25330 = vst [vmem:[#allocation79_spill] sm:$0xff] %v16897_v63  ;;  %11907 = vrot.lane.b32.xlu1 %v25337_v48, %s13993_s10  ;;  %v25340_v23 = vpack.i.bf16 %v25338_v28, %v25339_v43  ;;  %25341 = vst [vmem:[#allocation36_spill] sm:$0xff] %v16934_v22  ;;  %v25343_v8 = vld [vmem:[#allocation41_spill] sm:$0xff]  ;;  %v16945_v43 = vsel %vm2270_vm1, %v25346_v16, %v25345_v15  ;;  %v25349_v48 = vunpack.i.h.bf16 %v16609_v55  ;;  %v25351_v16 = vld [vmem:[#allocation47_spill] sm:$0xff] }
 0x154   :  { %v25344_v41 = vpack.c.bf16 %v25342_v14, %v25343_v8  ;;  %25347 = vst [vmem:[#allocation35_spill] sm:$0xff] %v16945_v43  ;;  %v16957_v14 = vpop.permute.xlu1 %11612  ;;  %v16959_v8 = vpop.permute.xlu0 %11607  ;;  %v25353_v28 = vld [vmem:[#allocation32_spill] sm:$0xff]  ;;  %v25392_v43 = vld [vmem:[#allocation5_spill] sm:$0xff] }
 0x155   :  { %11902 = vrot.lane.b32.xlu0 %v25340_v23, %s13993_s10  ;;  %v25348_v23 = vunpack.i.h.bf16 %v16906_v19  ;;  %v24604_v15 = vunpack.i.l.bf16 %v16959_v8  ;;  %1733 = vmatmul.mubr.bf16.gmra.mrb[48].mxu1 %v25351_v16  ;;  %v25355_v16 = vld [vmem:[#allocation3_spill] sm:$0xff]  ;;  %v25358_v33 = vunpack.i.h.bf16 %v16959_v8 }
 0x156   :  { %1788 = vmatpush1.bf16.msra.mxu1 %v25344_v41  ;;  %v16964_v41 = vld [vmem:[%s24435_s1 + $0x80] sm:$0xff]   ;;  %1742 = vmatprep.mubr.bf16.mxu1 %v25022_v46 }
 0x157   :  { %v16953_v47 = vsel %vm2270_vm1, %v25349_v48, %v25348_v23  ;;  %10305 = vmatprep.subr.bf16.mxu1 %v16441_v60  ;;  %11917 = vrot.lane.b32.xlu1 %v16934_v22, %s13993_s10  ;;  %v13662_v23 = vld [vmem:[%s24434_s0 + $0x60] sm:$0xff]  ;;  %v13663_v48 = vld [vmem:[%s24434_s0 + $0x90] sm:$0xff]  ;;  %v11921_v60 = vpack.i.bf16 %v25354_v61, %v25353_v28  ;;  %v16994_v11 = vsel %vm2270_vm1, %v25356_v37, %v24604_v15  ;;  %v25361_v61 = vunpack.i.l.bf16 %v16957_v14  ;;  %v25400_v22 = vld [vmem:[#allocation56_spill] sm:$0xff] }
 0x158   :  { %25350 = vst [vmem:[#allocation81_spill] sm:$0xff] %v16953_v47  ;;  %v16981_v55 = vpack.i.bf16 %v13663_v48, %v13662_v23  ;;  %25357 = vst [vmem:[#allocation37_spill] sm:$0xff] %v16994_v11  ;;  %v25359_v23 = vunpack.i.h.bf16 %v16683_v27  ;;  %v25362_v48 = vunpack.i.l.bf16 %v16681_v20  ;;  %v17012_v63 = vpop.permute.xlu1 %11622  ;;  %v17014_v37 = vpop.permute.xlu0 %11617  ;;  %2609 = vmatmul.mubr.bf16.vlgmr.msra.gmra.mrb[0].mxu0 %v16964_v41  ;;  %v25367_v27 = vld [vmem:[#allocation8_spill] sm:$0xff]  ;;  %v25381_v11 = vld [vmem:[#allocation53_spill] sm:$0xff] }
 0x159   :  { %11912 = vrot.lane.b32.xlu0 %v25355_v16, %s13993_s10  ;;  %v24610_v13 = vunpack.i.l.bf16 %v17014_v37  ;;  %2618 = vmatprep.mubr.bf16.mxu0 %v25022_v46  ;;  %v25398_v47 = vld [vmem:[#allocation33_spill] sm:$0xff] }
 0x15a   :  { %25352 = vst [vmem:[#allocation38_spill] sm:$0xff] %v16981_v55  ;;  %v17002_v28 = vsel %vm2270_vm1, %v25359_v23, %v25358_v33  ;;  %v17010_v16 = vsel %vm2270_vm1, %v25362_v48, %v25361_v61  ;;  %v25364_v33 = vunpack.i.h.bf16 %v16957_v14  ;;  %v25365_v23 = vunpack.i.h.bf16 %v16681_v20 }
 0x15b   :  { %25360 = vst [vmem:[#allocation30_spill] sm:$0xff] %v17002_v28  ;;  %25363 = vst [vmem:[#allocation82_spill] sm:$0xff] %v17010_v16  ;;  %11927 = vrot.lane.b32.xlu1 %v16981_v55, %s13993_s10  ;;  %v11936_v20 = vpack.i.bf16 %v25368_v3, %v25367_v27  ;;  %v17053_v3 = vsel %vm2270_vm1, %v25370_v42, %v24610_v13  ;;  %v25372_v27 = vunpack.i.h.bf16 %v17014_v37  ;;  %v25378_v16 = vunpack.i.h.bf16 %v17012_v63  ;;  %v13666_v28 = vld [vmem:[%s24434_s0 + $0xc0] sm:$0xff] }
 0x15c   :  { %v17025_v15 = vsel %vm2270_vm1, %v25365_v23, %v25364_v33  ;;  %v13664_v33 = vld [vmem:[%s24434_s0 + $0xc8] sm:$0xff]  ;;  %v13665_v23 = vld [vmem:[%s24434_s0 + $0xf8] sm:$0xff]  ;;  %25371 = vst [vmem:[#allocation39_spill] sm:$0xff] %v17053_v3  ;;  %v25379_v42 = vunpack.i.h.bf16 %v16758_v25  ;;  %v17079_v7 = vpop.permute.xlu1 %11632 }
 0x15d   :  { %25366 = vst [vmem:[#allocation83_spill] sm:$0xff] %v17025_v15  ;;  %v17042_v61 = vpack.i.bf16 %v13665_v23, %v13664_v33  ;;  %11922 = vrot.lane.b32.xlu0 %v11921_v60, %s13993_s10  ;;  %v17061_v33 = vsel %vm2270_vm1, %v25373_v12, %v25372_v27  ;;  %v25375_v23 = vunpack.i.l.bf16 %v17012_v63  ;;  %v25376_v60 = vunpack.i.l.bf16 %v16758_v25  ;;  %v17081_v12 = vpop.permute.xlu0 %11627  ;;  %v17086_v27 = vld [vmem:[%s24435_s1 + $0x88] sm:$0xff]   ;;  %1743 = vmatmul.mubr.bf16.gmra.mrb[52].mxu1 %v25381_v11 }
 0x15e   :  { %25374 = vst [vmem:[#allocation31_spill] sm:$0xff] %v17061_v33  ;;  %v17077_v13 = vsel %vm2270_vm1, %v25379_v42, %v25378_v16  ;;  %v24619_v16 = vunpack.i.l.bf16 %v17079_v7  ;;  %v24617_v42 = vunpack.i.h.bf16 %v17081_v12  ;;  %v24616_v15 = vunpack.i.l.bf16 %v17081_v12  ;;  %1752 = vmatprep.mubr.bf16.mxu1 %v25022_v46 }
 0x15f   :  { %25369 = vst [vmem:[#allocation40_spill] sm:$0xff] %v17042_v61  ;;  %v17069_v48 = vsel %vm2270_vm1, %v25376_v60, %v25375_v23  ;;  %25380 = vst [vmem:[#allocation85_spill] sm:$0xff] %v17077_v13  ;;  %11937 = vrot.lane.b32.xlu1 %v11936_v20, %s13993_s10  ;;  %v13667_v60 = vld [vmem:[%s24434_s0 + $0xf0] sm:$0xff]  ;;  %v25383_v11 = vunpack.i.l.bf16 %v16839_v49  ;;  %v25385_v25 = vunpack.i.h.bf16 %v16839_v49  ;;  %v13668_v49 = vld [vmem:[%s24434_s0 + $0x120] sm:$0xff] }
 0x160   :  { %25377 = vst [vmem:[#allocation6_spill] sm:$0xff] %v17069_v48  ;;  %v17104_v23 = vpack.i.bf16 %v13667_v60, %v13666_v28  ;;  %v25387_v60 = vunpack.i.l.bf16 %v16837_v53  ;;  %2619 = vmatmul.mubr.bf16.gmra.mrb[4].mxu0 %v17086_v27 }
 0x161   :  { %11932 = vrot.lane.b32.xlu0 %v17042_v61, %s13993_s10  ;;  %v17115_v20 = vsel %vm2270_vm1, %v25383_v11, %v24616_v15  ;;  %v17123_v28 = vsel %vm2270_vm1, %v25385_v25, %v24617_v42  ;;  %v11643_v11 = vpop.permute.xlu1 %11642  ;;  %v11638_v15 = vpop.permute.xlu0 %11637  ;;  %v25389_v25 = vunpack.i.h.bf16 %v17079_v7  ;;  %v25390_v42 = vunpack.i.h.bf16 %v16837_v53  ;;  %2628 = vmatprep.mubr.bf16.mxu0 %v25022_v46  ;;  %v13669_v53 = vld [vmem:[%s24434_s0 + $0x150] sm:$0xff] }
 0x162   :  { %25382 = vst [vmem:[#allocation84_spill] sm:$0xff] %v17104_v23  ;;  %25384 = vst [vmem:[#allocation42_spill] sm:$0xff] %v17115_v20  ;;  %v17131_v48 = vsel %vm2270_vm1, %v25387_v60, %v24619_v16  ;;  %v24626_v60 = vunpack.i.l.bf16 %v16908_v21  ;;  %v11644_v16 = vunpack.i.l.bf16 %v11643_v11  ;;  %v11640_v33 = vunpack.i.h.bf16 %v11638_v15 }
 0x163   :  { %25386 = vst [vmem:[#allocation41_spill] sm:$0xff] %v17123_v28  ;;  %25388 = vst [vmem:[#allocation47_spill] sm:$0xff] %v17131_v48  ;;  %v17143_v3 = vsel %vm2270_vm1, %v25390_v42, %v25389_v25  ;;  %v11639_v13 = vunpack.i.l.bf16 %v11638_v15  ;;  %v11645_v35 = vunpack.i.h.bf16 %v11643_v11  ;;  %11947 = vrot.lane.b32.xlu1 %v25392_v43, %s13993_s10  ;;  %v17155_v42 = vpack.i.bf16 %v13669_v53, %v13668_v49  ;;  %v25394_v49 = vld [vmem:[#allocation43_spill] sm:$0xff] }
 0x164   :  { %25391 = vst [vmem:[#allocation32_spill] sm:$0xff] %v17143_v3  ;;  %v25393_v43 = vunpack.i.h.bf16 %v16908_v21  ;;  %v25395_v53 = vunpack.i.l.bf16 %v25394_v49  ;;  %v25396_v48 = vunpack.i.h.bf16 %v25394_v49  ;;  %v25397_v3 = vld [vmem:[#allocation45_spill] sm:$0xff] }
 0x165   :  { %v2271_v15 = vsel %vm2270_vm1, %v24626_v60, %v11639_v13  ;;  %11942 = vrot.lane.b32.xlu0 %v17104_v23, %s13993_s10  ;;  %v11653_v20 = vpop.permute.xlu1 %11652  ;;  %v11648_v28 = vpop.permute.xlu0 %11647  ;;  %v11951_v30 = vpack.i.bf16 %v25398_v47, %v25397_v3  ;;  %v25399_v23 = vunpack.i.l.bf16 %v15858_v62  ;;  %1753 = vmatmul.mubr.bf16.gmra.mrb[56].mxu1 %v25400_v22  ;;  %v25402_v47 = vld [vmem:[#allocation34_spill] sm:$0xff] }
 0x166   :  { %v2272_v11 = vsel %vm2270_vm1, %v25393_v43, %v11640_v33  ;;  %v2351_v25 = vsel %vm2270_vm1, %v11639_v13, %v25395_v53  ;;  %v2352_v60 = vsel %vm2270_vm1, %v11640_v33, %v25396_v48  ;;  %v11650_v2 = vunpack.i.h.bf16 %v11648_v28  ;;  %1762 = vmatprep.mubr.bf16.mxu1 %v25022_v46  ;;  %v25403_v48 = vld [vmem:[#allocation49_spill] sm:$0xff]  ;;  %v13670_v33 = vld [vmem:[%s24434_s0 + $0x188] sm:$0xff]  ;;  %v13671_v22 = vld [vmem:[%s24434_s0 + $0x1b8] sm:$0xff] }
 0x167   :  { %v11649_v43 = vunpack.i.l.bf16 %v11648_v28  ;;  %v2484_v61 = vpack.c.bf16 %v2272_v11, %v2271_v15  ;;  %v2353_v55 = vsel %vm2270_vm1, %v11644_v16, %v25399_v23  ;;  %v2485_v5 = vpack.c.bf16 %v2352_v60, %v2351_v25  ;;  %11957 = vrot.lane.b32.xlu1 %v17155_v42, %s13993_s10 }
 0x168   :  { %v25401_v13 = vunpack.i.h.bf16 %v15858_v62  ;;  %v11966_v3 = vpack.i.bf16 %v25403_v48, %v25402_v47  ;;  %v17199_v62 = vpack.i.bf16 %v13671_v22, %v13670_v33  ;;  %v25404_v23 = vunpack.i.l.bf16 %v16906_v19 }
 0x169   :  { %v25405_v60 = vunpack.i.h.bf16 %v16906_v19  ;;  %2802 = vmatprep.subr.bf16.mxu0 %v2485_v5  ;;  %v17209_v15 = vpop.permute.xlu1 %11662  ;;  %v11658_v11 = vpop.permute.xlu0 %11657  ;;  %11952 = vrot.lane.b32.xlu0 %v11951_v30, %s13993_s10  ;;  %v11654_v47 = vunpack.i.l.bf16 %v11653_v20  ;;  %v25406_v48 = vunpack.i.l.bf16 %v15898_v0  ;;  %v25407_v19 = vunpack.i.h.bf16 %v15898_v0  ;;  %v17224_v30 = vld [vmem:[%s24434_s0 + $0x1e8] sm:$0xff] }
 0x16a   :  { %v2354_v49 = vsel %vm2270_vm1, %v11645_v35, %v25401_v13  ;;  %v2273_v28 = vsel %vm2270_vm1, %v25404_v23, %v11644_v16  ;;  %v11655_v13 = vunpack.i.h.bf16 %v11653_v20  ;;  %2803 = vmatpush1.bf16.msra.mxu0 %v2484_v61  ;;  %v25409_v20 = vunpack.i.l.bf16 %v16959_v8 }
 0x16b   :  { %v2274_v25 = vsel %vm2270_vm1, %v25405_v60, %v11645_v35  ;;  %v2491_v53 = vpack.c.bf16 %v2354_v49, %v2353_v55  ;;  %v2355_v16 = vsel %vm2270_vm1, %v11649_v43, %v25406_v48  ;;  %v2356_v35 = vsel %vm2270_vm1, %v11650_v2, %v25407_v19  ;;  %11967 = vrot.lane.b32.xlu1 %v11966_v3, %s13993_s10  ;;  %v25408_v55 = vld [vmem:[#allocation48_spill] sm:$0xff] }
 0x16c   :  { %v2490_v5 = vpack.c.bf16 %v2274_v25, %v2273_v28  ;;  %v11976_v61 = vpack.i.bf16 %v25408_v55, %v17224_v30  ;;  %v2275_v0 = vsel %vm2270_vm1, %v25409_v20, %v11649_v43  ;;  %v25410_v49 = vunpack.i.h.bf16 %v16959_v8  ;;  %v13673_v28 = vld [vmem:[%s24434_s0 + $0x180] sm:$0xff]  ;;  %v13674_v43 = vld [vmem:[%s24434_s0 + $0x1b0] sm:$0xff]  ;;  %v25413_v19 = vld [vmem:[#allocation80_spill] sm:$0xff] }
 0x16d   :  { %2804 = vmatprep.subr.bf16.mxu0 %v2491_v53  ;;  %v17236_v22 = vpop.permute.xlu1 %11672  ;;  %v17238_v3 = vpop.permute.xlu0 %11667  ;;  %v2497_v23 = vpack.c.bf16 %v2356_v35, %v2355_v16  ;;  %11962 = vrot.lane.b32.xlu0 %v17199_v62, %s13993_s10  ;;  %v17248_v8 = vpack.i.bf16 %v13674_v43, %v13673_v28  ;;  %v11660_v60 = vunpack.i.h.bf16 %v11658_v11  ;;  %v25411_v25 = vunpack.i.l.bf16 %v15896_v40  ;;  %v17262_v35 = vld [vmem:[%s24435_s1 + $0x90] sm:$0xff]  }
 0x16e   :  { %v2276_v33 = vsel %vm2270_vm1, %v25410_v49, %v11650_v2  ;;  %v11659_v2 = vunpack.i.l.bf16 %v11658_v11  ;;  %2805 = vmatpush1.bf16.msra.mxu0 %v2490_v5  ;;  %v25412_v48 = vunpack.i.h.bf16 %v15896_v40  ;;  %1763 = vmatmul.mubr.bf16.gmra.mrb[60].mxu1 %v25413_v19  ;;  %v13675_v5 = vld [vmem:[%s24434_s0 + $0x1e0] sm:$0xff]  ;;  %v13676_v40 = vld [vmem:[%s24434_s0 + $0x210] sm:$0xff]  ;;  %v25414_v20 = vunpack.i.l.bf16 %v16957_v14 }
 0x16f   :  { %v2357_v53 = vsel %vm2270_vm1, %v11654_v47, %v25411_v25  ;;  %2806 = vmatprep.subr.bf16.mxu0 %v2497_v23  ;;  %v2496_v11 = vpack.c.bf16 %v2276_v33, %v2275_v0  ;;  %1805 = vmatprep.mubr.bf16.mxu1 %v25022_v46  ;;  %v17271_v55 = vpack.i.bf16 %v13676_v40, %v13675_v5  ;;  %v25415_v23 = vunpack.i.h.bf16 %v16957_v14 }
 0x170   :  { %v2358_v16 = vsel %vm2270_vm1, %v11655_v13, %v25412_v48  ;;  %v2277_v49 = vsel %vm2270_vm1, %v25414_v20, %v11654_v47  ;;  %11977 = vrot.lane.b32.xlu1 %v11976_v61, %s13993_s10  ;;  %v11665_v25 = vunpack.i.h.bf16 %v17209_v15  ;;  %v11664_v48 = vunpack.i.l.bf16 %v17209_v15  ;;  %2629 = vmatmul.mubr.bf16.gmra.mrb[8].mxu0 %v17262_v35  ;;  %v25420_v20 = vld [vmem:[#allocation46_spill] sm:$0xff] }
 0x171   :  { %v2278_v0 = vsel %vm2270_vm1, %v25415_v23, %v11655_v13  ;;  %v17281_v33 = vpop.permute.xlu1 %11682  ;;  %v17283_v28 = vpop.permute.xlu0 %11677  ;;  %v2503_v43 = vpack.c.bf16 %v2358_v16, %v2357_v53  ;;  %11972 = vrot.lane.b32.xlu0 %v17248_v8, %s13993_s10  ;;  %v25416_v14 = vunpack.i.l.bf16 %v15927_v4  ;;  %v25417_v47 = vunpack.i.h.bf16 %v15927_v4  ;;  %2638 = vmatprep.mubr.bf16.mxu0 %v25022_v46 }
 0x172   :  { %2807 = vmatpush1.bf16.msra.mxu0 %v2496_v11  ;;  %v2502_v61 = vpack.c.bf16 %v2278_v0, %v2277_v49  ;;  %v25418_v16 = vunpack.i.l.bf16 %v17014_v37  ;;  %v25419_v19 = vunpack.i.h.bf16 %v17014_v37  ;;  %v11670_v49 = vunpack.i.h.bf16 %v17238_v3 }
 0x173   :  { %v2359_v13 = vsel %vm2270_vm1, %v11659_v2, %v25416_v14  ;;  %v2360_v53 = vsel %vm2270_vm1, %v11660_v60, %v25417_v47  ;;  %2808 = vmatprep.subr.bf16.mxu0 %v2503_v43  ;;  %v25421_v37 = vunpack.i.l.bf16 %v15925_v26  ;;  %v25422_v23 = vunpack.i.h.bf16 %v15925_v26  ;;  %v13677_v43 = vld [vmem:[%s24435_s1 + $0x40] sm:$0xff]  }
 0x174   :  { %v2279_v15 = vsel %vm2270_vm1, %v25418_v16, %v11659_v2  ;;  %v2280_v11 = vsel %vm2270_vm1, %v25419_v19, %v11660_v60  ;;  %v2509_v40 = vpack.c.bf16 %v2360_v53, %v2359_v13  ;;  %11987 = vrot.lane.b32.xlu1 %v17271_v55, %s13993_s10  ;;  %v11669_v2 = vunpack.i.l.bf16 %v17238_v3  ;;  %v17332_v3 = vld [vmem:[%s24435_s1 + $0x98] sm:$0xff]   ;;  %v13678_v26 = vld [vmem:[%s24434_s0 + $0x240] sm:$0xff]  ;;  %v13679_v13 = vld [vmem:[%s24434_s0 + $0x270] sm:$0xff] }
 0x175   :  { %v17308_v4 = vpop.permute.xlu1 %11692  ;;  %v17310_v5 = vpop.permute.xlu0 %11687  ;;  %11982 = vrot.lane.b32.xlu0 %v25420_v20, %s13993_s10  ;;  %v2361_v60 = vsel %vm2270_vm1, %v11664_v48, %v25421_v37  ;;  %v2362_v0 = vsel %vm2270_vm1, %v11665_v25, %v25422_v23  ;;  %v2508_v14 = vpack.c.bf16 %v2280_v11, %v2279_v15  ;;  %v17342_v47 = vpack.i.bf16 %v13679_v13, %v13678_v26  ;;  %v13680_v23 = vld [vmem:[%s24434_s0 + $0x2a0] sm:$0xff] }
 0x176   :  { %2809 = vmatpush1.bf16.msra.mxu0 %v2502_v61  ;;  %1806 = vmatmul.mubr.bf16.vlgmr.msra.gmra.mrb[64].mxu1 %v13677_v43  ;;  %v25423_v53 = vunpack.i.l.bf16 %v17012_v63  ;;  %v2515_v11 = vpack.c.bf16 %v2362_v0, %v2361_v60  ;;  %v11675_v20 = vunpack.i.h.bf16 %v17236_v22  ;;  %v11674_v37 = vunpack.i.l.bf16 %v17236_v22  ;;  %v25428_v60 = vld [vmem:[#allocation51_spill] sm:$0xff] }
 0x177   :  { %2810 = vmatprep.subr.bf16.mxu0 %v2509_v40  ;;  %10313 = vmatpush1.bf16.msra.mxu1 %v16443_v1  ;;  %v25424_v1 = vunpack.i.h.bf16 %v17012_v63  ;;  %v25425_v40 = vld [vmem:[#allocation50_spill] sm:$0xff]  ;;  %v25426_v63 = vunpack.i.l.bf16 %v25235_v44  ;;  %v25429_v43 = vunpack.i.l.bf16 %v17081_v12 }
 0x178   :  { %1815 = vmatprep.mubr.bf16.mxu1 %v25022_v46  ;;  %v2281_v61 = vsel %vm2270_vm1, %v25423_v53, %v11664_v48  ;;  %10306 = vmatprep.subr.bf16.mxu1 %v16466_v56  ;;  %v25427_v56 = vunpack.i.h.bf16 %v25235_v44  ;;  %v13681_v44 = vld [vmem:[%s24434_s0 + $0x2d0] sm:$0xff] }
 0x179   :  { %v2282_v16 = vsel %vm2270_vm1, %v25424_v1, %v11665_v25  ;;  %v17353_v15 = vpop.permute.xlu1 %11702  ;;  %v17355_v19 = vpop.permute.xlu0 %11697  ;;  %11997 = vrot.lane.b32.xlu1 %v25425_v40, %s13993_s10  ;;  %v2363_v25 = vsel %vm2270_vm1, %v11669_v2, %v25426_v63  ;;  %11992 = vrot.lane.b32.xlu0 %v25428_v60, %s13993_s10  ;;  %v17380_v0 = vpack.i.bf16 %v13681_v44, %v13680_v23  ;;  %v25431_v1 = vld [vmem:[#allocation55_spill] sm:$0xff]  ;;  %v25434_v40 = vld [vmem:[#allocation61_spill] sm:$0xff]  ;;  %v25435_v63 = vld [vmem:[#allocation58_spill] sm:$0xff] }
 0x17a   :  { %2811 = vmatpush1.bf16.msra.mxu0 %v2508_v14  ;;  %v2364_v48 = vsel %vm2270_vm1, %v11670_v49, %v25427_v56  ;;  %v2514_v22 = vpack.c.bf16 %v2282_v16, %v2281_v61  ;;  %v2283_v14 = vsel %vm2270_vm1, %v25429_v43, %v11669_v2  ;;  %v25432_v16 = vunpack.i.l.bf16 %v15953_v36  ;;  %v25438_v44 = vld [vmem:[#allocation52_spill] sm:$0xff] }
 0x17b   :  { %2812 = vmatprep.subr.bf16.mxu0 %v2515_v11  ;;  %2639 = vmatmul.mubr.bf16.gmra.mrb[12].mxu0 %v17332_v3  ;;  %v2521_v61 = vpack.c.bf16 %v2364_v48, %v2363_v25  ;;  %v25436_v25 = vunpack.i.l.bf16 %v17079_v7  ;;  %v25437_v48 = vunpack.i.h.bf16 %v17079_v7  ;;  %v25440_v43 = vld [vmem:[#allocation60_spill] sm:$0xff] }
 0x17c   :  { %10314 = vmatpush1.bf16.msra.mxu1 %v16493_v57  ;;  %2834 = vmatprep.mubr.bf16.mxu0 %v25022_v46  ;;  %v25430_v57 = vunpack.i.h.bf16 %v17081_v12  ;;  %v2365_v2 = vsel %vm2270_vm1, %v11674_v37, %v25432_v16  ;;  %v25433_v12 = vunpack.i.h.bf16 %v15953_v36  ;;  %v12026_v36 = vpack.i.bf16 %v25435_v63, %v25434_v40  ;;  %v25445_v40 = vld [vmem:[#allocation63_spill] sm:$0xff] }
 0x17d   :  { %10307 = vmatprep.subr.bf16.mxu1 %v16513_v38  ;;  %v17391_v13 = vpop.permute.xlu1 %11712  ;;  %v17393_v53 = vpop.permute.xlu0 %11707  ;;  %12007 = vrot.lane.b32.xlu1 %v25431_v1, %s13993_s10  ;;  %v13682_v38 = vld [vmem:[%s24435_s1 + $0x48] sm:$0xff]   ;;  %v2285_v56 = vsel %vm2270_vm1, %v25436_v25, %v11674_v37  ;;  %v2286_v60 = vsel %vm2270_vm1, %v25437_v48, %v11675_v20  ;;  %v25439_v37 = vld [vmem:[#allocation57_spill] sm:$0xff]  ;;  %v24638_v1 = vunpack.i.h.bf16 %v17283_v28  ;;  %v24643_v16 = vunpack.i.l.bf16 %v17283_v28  ;;  %v25446_v63 = vld [vmem:[#allocation67_spill] sm:$0xff] }
 0x17e   :  { %v2284_v26 = vsel %vm2270_vm1, %v25430_v57, %v11670_v49  ;;  %2813 = vmatpush1.bf16.msra.mxu0 %v2514_v22  ;;  %v2366_v49 = vsel %vm2270_vm1, %v11675_v20, %v25433_v12  ;;  %12002 = vrot.lane.b32.xlu0 %v17342_v47, %s13993_s10  ;;  %v12021_v7 = vpack.i.bf16 %v25440_v43, %v25439_v37  ;;  %v13683_v57 = vld [vmem:[%s24435_s1 + $0x50] sm:$0xff]   ;;  %v25447_v48 = vunpack.i.l.bf16 %v16908_v21  ;;  %v25451_v43 = vld [vmem:[#allocation70_spill] sm:$0xff] }
 0x17f   :  { %2814 = vmatprep.subr.bf16.mxu0 %v2521_v61  ;;  %1816 = vmatmul.mubr.bf16.gmra.mrb[68].mxu1 %v13682_v38  ;;  %v2520_v11 = vpack.c.bf16 %v2284_v26, %v2283_v14  ;;  %v2527_v23 = vpack.c.bf16 %v2366_v49, %v2365_v2  ;;  %v2526_v20 = vpack.c.bf16 %v2286_v60, %v2285_v56  ;;  %v25441_v26 = vld [vmem:[#allocation62_spill] sm:$0xff]  ;;  %v25442_v61 = vld [vmem:[#allocation59_spill] sm:$0xff]  ;;  %v25444_v38 = vld [vmem:[#allocation64_spill] sm:$0xff]  ;;  %v25448_v60 = vunpack.i.l.bf16 %v16611_v6 }
 0x180   :  { %10315 = vmatpush1.bf16.msra.mxu1 %v16568_v39  ;;  %1825 = vmatprep.mubr.bf16.mxu1 %v25022_v46  ;;  %v25450_v37 = vld [vmem:[#allocation65_spill] sm:$0xff] }
 0x181   :  { %10308 = vmatprep.subr.bf16.mxu1 %v16578_v58  ;;  %v17423_v22 = vpop.permute.xlu1 %11722  ;;  %v17425_v39 = vpop.permute.xlu0 %11717  ;;  %12017 = vrot.lane.b32.xlu1 %v17380_v0, %s13993_s10 }
 0x182   :  { %2815 = vmatpush1.bf16.msra.mxu0 %v2520_v11  ;;  %12012 = vrot.lane.b32.xlu0 %v25438_v44, %s13993_s10  ;;  %v11720_v2 = vunpack.i.h.bf16 %v17425_v39  ;;  %v11719_v12 = vunpack.i.l.bf16 %v17425_v39  ;;  %v11725_v25 = vunpack.i.h.bf16 %v17423_v22  ;;  %v11724_v56 = vunpack.i.l.bf16 %v17423_v22 }
 0x183   :  { %2816 = vmatprep.subr.bf16.mxu0 %v2527_v23  ;;  %v2287_v39 = vsel %vm2270_vm1, %v25448_v60, %v25447_v48  ;;  %v25449_v23 = vld [vmem:[#allocation68_spill] sm:$0xff]  ;;  %v12066_v22 = vpack.i.bf16 %v25241_v9, %v25250_v51  ;;  %v24641_v48 = vunpack.i.l.bf16 %v17310_v5 }
 0x184   :  { %10316 = vmatpush1.bf16.msra.mxu1 %v16580_v31  ;;  %v12036_v31 = vpack.i.bf16 %v25441_v26, %v16073_v32  ;;  %v12056_v44 = vpack.i.bf16 %v25449_v23, %v25236_v59  ;;  %v13694_v51 = vld [vmem:[%s24434_s0 + $0x268] sm:$0xff] }
 0x185   :  { %10309 = vmatprep.subr.bf16.mxu1 %v16629_v18  ;;  %v17435_v58 = vpop.permute.xlu1 %11732  ;;  %v17437_v14 = vpop.permute.xlu0 %11727  ;;  %12027 = vrot.lane.b32.xlu1 %v12026_v36, %s13993_s10  ;;  %v12031_v18 = vpack.i.bf16 %v16078_v54, %v25442_v61  ;;  %v24636_v36 = vunpack.i.l.bf16 %v17281_v33  ;;  %v25453_v61 = vunpack.i.h.bf16 %v16611_v6 }
 0x186   :  { %2817 = vmatpush1.bf16.msra.mxu0 %v2526_v20  ;;  %12022 = vrot.lane.b32.xlu0 %v12021_v7, %s13993_s10  ;;  %v12051_v7 = vpack.i.bf16 %v25451_v43, %v25450_v37  ;;  %v3365_v20 = vsel %vm3299_vm2, %v24638_v1, %v11720_v2  ;;  %v11729_v60 = vunpack.i.l.bf16 %v17437_v14  ;;  %v13690_v37 = vld [vmem:[%s24434_s0 + $0x208] sm:$0xff]  ;;  %v13691_v43 = vld [vmem:[%s24434_s0 + $0x238] sm:$0xff] }
 0x187   :  { %1826 = vmatmul.mubr.bf16.gmra.mrb[72].mxu1 %v13683_v57  ;;  %v17519_v6 = vsel %vm3299_vm2, %v24636_v36, %v11724_v56 }
 0x188   :  { %10317 = vmatpush1.bf16.msra.mxu1 %v16582_v52  ;;  %1835 = vmatprep.mubr.bf16.mxu1 %v25022_v46  ;;  %v25443_v52 = vld [vmem:[#allocation66_spill] sm:$0xff] }
 0x189   :  { %2835 = vmatmul.mubr.bf16.vlgmr.msra.gmra.mrb[16].mxu0 %v16964_v41  ;;  %10310 = vmatprep.subr.bf16.mxu1 %v16704_v34  ;;  %v17455_v49 = vpop.permute.xlu1 %11742  ;;  %v17457_v32 = vpop.permute.xlu0 %11737  ;;  %v12046_v11 = vpack.i.bf16 %v25444_v38, %v25443_v52  ;;  %v12041_v41 = vpack.i.bf16 %v25446_v63, %v25445_v40  ;;  %v24637_v34 = vunpack.i.h.bf16 %v17281_v33  ;;  %v24642_v63 = vunpack.i.h.bf16 %v17310_v5 }
 0x18a   :  { %v11745_v54 = vunpack.i.h.bf16 %v17455_v49  ;;  %2844 = vmatprep.mubr.bf16.mxu0 %v25022_v46  ;;  %12037 = vrot.lane.b32.xlu1 %v12036_v31, %s13993_s10  ;;  %v25452_v31 = vunpack.i.h.bf16 %v16908_v21 }
 0x18b   :  { %12032 = vrot.lane.b32.xlu0 %v12031_v18, %s13993_s10  ;;  %v17525_v21 = vsel %vm3299_vm2, %v24637_v34, %v11725_v25 }
 0x18c   :  { %10318 = vmatpush1.bf16.msra.mxu1 %v16601_v50  ;;  %v3364_v50 = vsel %vm3299_vm2, %v24643_v16, %v11719_v12  ;;  %v3348_v26 = vsel %vm3299_vm2, %v11719_v12, %v11745_v54  ;;  %v2288_v18 = vsel %vm2270_vm1, %v25453_v61, %v25452_v31  ;;  %v13684_v12 = vld [vmem:[%s24435_s1 + $0x58] sm:$0xff]   ;;  %v11730_v61 = vunpack.i.h.bf16 %v17437_v14 }
 0x18d   :  { %10311 = vmatprep.subr.bf16.mxu1 %v16777_v17  ;;  %v17495_v57 = vpop.permute.xlu1 %11752  ;;  %v17497_v59 = vpop.permute.xlu0 %11747  ;;  %v2483_v14 = vpack.c.bf16 %v2288_v18, %v2287_v39  ;;  %v13688_v39 = vld [vmem:[%s24434_s0 + $0x230] sm:$0xff] }
 0x18e   :  { %v24647_v52 = vunpack.i.h.bf16 %v17495_v57  ;;  %v11754_v17 = vunpack.i.l.bf16 %v17495_v57  ;;  %v11750_v38 = vunpack.i.h.bf16 %v17497_v59  ;;  %v11749_v40 = vunpack.i.l.bf16 %v17497_v59  ;;  %12047 = vrot.lane.b32.xlu1 %v12046_v11, %s13993_s10 }
 0x18f   :  { %1836 = vmatmul.mubr.bf16.gmra.mrb[76].mxu1 %v13684_v12  ;;  %12042 = vrot.lane.b32.xlu0 %v12041_v41, %s13993_s10  ;;  %v3509_v12 = vpack.c.bf16 %v3365_v20, %v3364_v50  ;;  %v13686_v50 = vld [vmem:[%s24434_s0 + $0x1d8] sm:$0xff] }
 0x190   :  { %10319 = vmatpush1.bf16.msra.mxu1 %v16859_v29  ;;  %v3349_v23 = vsel %vm3299_vm2, %v11720_v2, %v11749_v40  ;;  %v3350_v31 = vsel %vm3299_vm2, %v11724_v56, %v11750_v38  ;;  %v3351_v11 = vsel %vm3299_vm2, %v11725_v25, %v11754_v17  ;;  %1845 = vmatprep.mubr.bf16.mxu1 %v25022_v46  ;;  %v13685_v25 = vld [vmem:[%s24434_s0 + $0x1a8] sm:$0xff] }
 0x191   :  { %2845 = vmatmul.mubr.bf16.gmra.mrb[20].mxu0 %v17086_v27  ;;  %10312 = vmatprep.subr.bf16.mxu1 %v16861_v10  ;;  %v17549_v29 = vpop.permute.xlu1 %11762  ;;  %v17551_v41 = vpop.permute.xlu0 %11757  ;;  %v3510_v2 = vpack.c.bf16 %v3349_v23, %v3348_v26  ;;  %v3516_v36 = vpack.c.bf16 %v3351_v11, %v3350_v31  ;;  %v3352_v10 = vsel %vm3299_vm2, %v11729_v60, %v24647_v52  ;;  %v24639_v27 = vunpack.i.l.bf16 %v17308_v4  ;;  %v13687_v26 = vld [vmem:[%s24434_s0 + $0x200] sm:$0xff] }
 0x192   :  { %v24648_v56 = vunpack.i.l.bf16 %v17549_v29  ;;  %v24649_v34 = vunpack.i.h.bf16 %v17551_v41  ;;  %v24646_v1 = vunpack.i.l.bf16 %v17551_v41  ;;  %2854 = vmatprep.mubr.bf16.mxu0 %v25022_v46  ;;  %12057 = vrot.lane.b32.xlu1 %v12056_v44, %s13993_s10  ;;  %v17570_v20 = vpack.i.bf16 %v13686_v50, %v13685_v25 }
 0x193   :  { %3605 = vmatprep.subr.bf16.mxu0 %v3510_v2  ;;  %v17578_v18 = vpack.i.bf16 %v13688_v39, %v13687_v26  ;;  %v11735_v44 = vunpack.i.h.bf16 %v17435_v58  ;;  %v11734_v23 = vunpack.i.l.bf16 %v17435_v58  ;;  %v3515_v31 = vpack.c.bf16 %v17525_v21, %v17519_v6  ;;  %12052 = vrot.lane.b32.xlu0 %v12051_v7, %s13993_s10 }
 0x194   :  { %10320 = vmatpush1.bf16.msra.mxu1 %v16918_v24  ;;  %3606 = vmatpush1.bf16.msra.mxu0 %v3509_v12  ;;  %v3353_v11 = vsel %vm3299_vm2, %v11730_v61, %v24646_v1  ;;  %v24640_v2 = vunpack.i.h.bf16 %v17308_v4  ;;  %v3368_v25 = vsel %vm3299_vm2, %v24641_v48, %v11729_v60  ;;  %v3369_v24 = vsel %vm3299_vm2, %v24642_v63, %v11730_v61  ;;  %v13689_v61 = vld [vmem:[%s24435_s1 + $0x60] sm:$0xff]  }
 0x195   :  { %2689 = vmatprep.subr.bf16.mxu1 %v2483_v14  ;;  %v17598_v58 = vpop.permute.xlu1 %11772  ;;  %v17600_v6 = vpop.permute.xlu0 %11767  ;;  %3607 = vmatprep.subr.bf16.mxu0 %v3516_v36  ;;  %v3522_v21 = vpack.c.bf16 %v3353_v11, %v3352_v10  ;;  %v24645_v12 = vunpack.i.h.bf16 %v17549_v29  ;;  %v3354_v60 = vsel %vm3299_vm2, %v11734_v23, %v24649_v34  ;;  %v3355_v36 = vsel %vm3299_vm2, %v11735_v44, %v24648_v56  ;;  %v13692_v10 = vld [vmem:[%s24434_s0 + $0x260] sm:$0xff]  ;;  %v13693_v14 = vld [vmem:[%s24434_s0 + $0x290] sm:$0xff] }
 0x196   :  { %25454 = vst [vmem:[#allocation7_spill] sm:$0xff] %v17598_v58  ;;  %v24644_v50 = vunpack.i.l.bf16 %v17600_v6  ;;  %12067 = vrot.lane.b32.xlu1 %v12066_v22, %s13993_s10  ;;  %v17629_v7 = vpack.i.bf16 %v13691_v43, %v13690_v37  ;;  %v17637_v9 = vpack.i.bf16 %v13693_v14, %v13692_v10  ;;  %v13695_v22 = vld [vmem:[%s24434_s0 + $0x298] sm:$0xff]  ;;  %v24656_v39 = vunpack.i.h.bf16 %v17355_v19 }
 0x197   :  { %1846 = vmatmul.mubr.bf16.gmra.mrb[80].mxu1 %v13689_v61  ;;  %v17645_v26 = vpack.i.bf16 %v13695_v22, %v13694_v51  ;;  %v3370_v11 = vsel %vm3299_vm2, %v24639_v27, %v11734_v23  ;;  %v11740_v61 = vunpack.i.h.bf16 %v17457_v32  ;;  %v11739_v37 = vunpack.i.l.bf16 %v17457_v32  ;;  %12062 = vrot.lane.b32.xlu0 %v17570_v20, %s13993_s10  ;;  %v13697_v27 = vld [vmem:[%s24434_s0 + $0x2c8] sm:$0xff] }
 0x198   :  { %25455 = vst [vmem:[#allocation3_spill] sm:$0xff] %v17629_v7  ;;  %25456 = vst [vmem:[#allocation8_spill] sm:$0xff] %v17637_v9  ;;  %3608 = vmatpush1.bf16.msra.mxu0 %v3515_v31  ;;  %1855 = vmatprep.mubr.bf16.mxu1 %v25022_v46  ;;  %v24654_v43 = vunpack.i.l.bf16 %v17355_v19  ;;  %v3371_v10 = vsel %vm3299_vm2, %v24640_v2, %v11735_v44  ;;  %v3521_v23 = vpack.c.bf16 %v3369_v24, %v3368_v25  ;;  %v13698_v2 = vld [vmem:[%s24434_s0 + $0x2f8] sm:$0xff] }
 0x199   :  { %25457 = vst [vmem:[#allocation44_spill] sm:$0xff] %v17645_v26  ;;  %2855 = vmatmul.mubr.bf16.gmra.mrb[24].mxu0 %v17262_v35  ;;  %v17661_v14 = vpop.permute.xlu1 %11782  ;;  %v17663_v51 = vpop.permute.xlu0 %11777  ;;  %3609 = vmatprep.subr.bf16.mxu0 %v3522_v21  ;;  %v3528_v22 = vpack.c.bf16 %v3355_v36, %v3354_v60  ;;  %v24650_v32 = vunpack.i.h.bf16 %v17598_v58  ;;  %v24651_v31 = vunpack.i.l.bf16 %v17598_v58  ;;  %v3356_v35 = vsel %vm3299_vm2, %v11739_v37, %v24645_v12  ;;  %v17685_v21 = vld [vmem:[%s24434_s0 + $0x2c0] sm:$0xff]  ;;  %v25460_v60 = vld [vmem:[#allocation74_spill] sm:$0xff] }
 0x19a   :  { %25458 = vst [vmem:[#allocation53_spill] sm:$0xff] %v17661_v14  ;;  %2864 = vmatprep.mubr.bf16.mxu0 %v25022_v46  ;;  %v3357_v44 = vsel %vm3299_vm2, %v11740_v61, %v24644_v50  ;;  %v24652_v25 = vunpack.i.l.bf16 %v17353_v15  ;;  %v11744_v24 = vunpack.i.l.bf16 %v17455_v49  ;;  %12077 = vrot.lane.b32.xlu1 %v17578_v18, %s13993_s10  ;;  %25459 = vst [vmem:[#allocation5_spill] sm:$0xff] %v17685_v21  ;;  %v24653_v63 = vunpack.i.h.bf16 %v17353_v15  ;;  %v17824_v49 = vld [vmem:[%s24435_s1 + $0xa0] sm:$0xff]   ;;  %v25496_v58 = vld [vmem:[#allocation54_spill] sm:$0xff] }
 0x19b   :  { %v12096_v36 = vpack.i.bf16 %v25460_v60, %v17685_v21  ;;  %v17695_v48 = vpack.i.bf16 %v13698_v2, %v13697_v27  ;;  %v11770_v16 = vunpack.i.h.bf16 %v17600_v6  ;;  %v24657_v50 = vunpack.i.h.bf16 %v17661_v14  ;;  %12072 = vrot.lane.b32.xlu0 %v17629_v7, %s13993_s10  ;;  %25465 = vst [vmem:[#allocation34_spill] sm:$0xff] %v17824_v49 }
 0x19c   :  { %v24655_v12 = vunpack.i.l.bf16 %v17661_v14  ;;  %3610 = vmatpush1.bf16.msra.mxu0 %v3521_v23  ;;  %v3372_v60 = vsel %vm3299_vm2, %v24654_v43, %v11739_v37  ;;  %v3373_v27 = vsel %vm3299_vm2, %v24656_v39, %v11740_v61  ;;  %v3527_v52 = vpack.c.bf16 %v3371_v10, %v3370_v11  ;;  %v25492_v14 = vld [vmem:[#allocation84_spill] sm:$0xff] }
 0x19d   :  { %25461 = vst [vmem:[#allocation43_spill] sm:$0xff] %v17695_v48  ;;  %v17709_v2 = vpop.permute.xlu1 %11792  ;;  %v17711_v1 = vpop.permute.xlu0 %11787  ;;  %3611 = vmatprep.subr.bf16.mxu0 %v3528_v22  ;;  %v3534_v56 = vpack.c.bf16 %v3357_v44, %v3356_v35  ;;  %v11780_v34 = vunpack.i.h.bf16 %v17663_v51  ;;  %v11779_v23 = vunpack.i.l.bf16 %v17663_v51  ;;  %v3358_v37 = vsel %vm3299_vm2, %v11744_v24, %v24651_v31  ;;  %v13699_v51 = vld [vmem:[%s24435_s1 + $0x68] sm:$0xff]   ;;  %v13700_v22 = vld [vmem:[%s24434_s0 + $0x10] sm:$0xff]  ;;  %v13701_v35 = vld [vmem:[%s24434_s0 + $0x40] sm:$0xff] }
 0x19e   :  { %25462 = vst [vmem:[#allocation45_spill] sm:$0xff] %v17709_v2  ;;  %v3359_v61 = vsel %vm3299_vm2, %v11770_v16, %v24650_v32  ;;  %v17730_v10 = vsel %vm3299_vm2, %v24652_v25, %v11744_v24  ;;  %12087 = vrot.lane.b32.xlu1 %v17637_v9, %s13993_s10  ;;  %v17743_v44 = vpack.i.bf16 %v13701_v35, %v13700_v22  ;;  %v13702_v24 = vld [vmem:[%s24434_s0 + $0x8] sm:$0xff]  ;;  %v11789_v31 = vunpack.i.l.bf16 %v17711_v1 }
 0x19f   :  { %1856 = vmatmul.mubr.bf16.gmra.mrb[84].mxu1 %v13699_v51  ;;  %v13703_v51 = vld [vmem:[%s24434_s0 + $0x38] sm:$0xff]  ;;  %v3375_v25 = vsel %vm3299_vm2, %v24653_v63, %v11770_v16  ;;  %v3360_v22 = vsel %vm3299_vm2, %v11779_v23, %v24655_v12  ;;  %v3361_v35 = vsel %vm3299_vm2, %v11780_v34, %v24657_v50  ;;  %v3533_v63 = vpack.c.bf16 %v3373_v27, %v3372_v60 }
 0x1a0   :  { %25463 = vst [vmem:[#allocation33_spill] sm:$0xff] %v17743_v44  ;;  %v17751_v32 = vpack.i.bf16 %v13703_v51, %v13702_v24  ;;  %3612 = vmatpush1.bf16.msra.mxu0 %v3527_v52  ;;  %1865 = vmatprep.mubr.bf16.mxu1 %v25022_v46  ;;  %v24658_v24 = vunpack.i.h.bf16 %v17709_v2  ;;  %v24659_v51 = vunpack.i.l.bf16 %v17709_v2  ;;  %v3540_v43 = vpack.c.bf16 %v3359_v61, %v3358_v37 }
 0x1a1   :  { %2865 = vmatmul.mubr.bf16.gmra.mrb[28].mxu0 %v17332_v3  ;;  %v17770_v16 = vpop.permute.xlu1 %11802  ;;  %v17772_v52 = vpop.permute.xlu0 %11797  ;;  %3613 = vmatprep.subr.bf16.mxu0 %v3534_v56  ;;  %v11790_v3 = vunpack.i.h.bf16 %v17711_v1  ;;  %v3539_v56 = vpack.c.bf16 %v3375_v25, %v17730_v10  ;;  %v3546_v60 = vpack.c.bf16 %v3361_v35, %v3360_v22  ;;  %v24667_v22 = vunpack.i.h.bf16 %v17391_v13 }
 0x1a2   :  { %25464 = vst [vmem:[#allocation56_spill] sm:$0xff] %v17751_v32  ;;  %v24660_v12 = vunpack.i.h.bf16 %v17770_v16  ;;  %v24669_v39 = vunpack.i.l.bf16 %v17770_v16  ;;  %v24670_v11 = vunpack.i.h.bf16 %v17772_v52  ;;  %v24671_v50 = vunpack.i.l.bf16 %v17772_v52  ;;  %12082 = vrot.lane.b32.xlu0 %v17645_v26, %s13993_s10  ;;  %2874 = vmatprep.mubr.bf16.mxu0 %v25022_v46 }
 0x1a3   :  { %12097 = vrot.lane.b32.xlu1 %v12096_v36, %s13993_s10  ;;  %v3363_v59 = vsel %vm3299_vm2, %v11790_v3, %v24658_v24  ;;  %v25466_v35 = vunpack.i.l.bf16 %v17393_v53  ;;  %v25544_v7 = vunpack.i.l.bf16 %v17310_v5 }
 0x1a4   :  { %v17791_v27 = vsel %vm3299_vm2, %v11750_v38, %v24669_v39  ;;  %v17799_v1 = vsel %vm3299_vm2, %v11754_v17, %v24660_v12  ;;  %v17807_v25 = vsel %vm3299_vm2, %v11745_v54, %v24671_v50  ;;  %v17815_v38 = vsel %vm3299_vm2, %v11749_v40, %v24670_v11  ;;  %3614 = vmatpush1.bf16.msra.mxu0 %v3533_v63  ;;  %v13704_v40 = vld [vmem:[%s24435_s1 + $0x70] sm:$0xff]   ;;  %v25485_v39 = vld [vmem:[#allocation40_spill] sm:$0xff] }
 0x1a5   :  { %v17817_v36 = vpop.permute.xlu1 %11812  ;;  %v17819_v17 = vpop.permute.xlu0 %11807  ;;  %3615 = vmatprep.subr.bf16.mxu0 %v3540_v43  ;;  %v3362_v54 = vsel %vm3299_vm2, %v11789_v31, %v24659_v51  ;;  %v3376_v24 = vsel %vm3299_vm2, %v25466_v35, %v11779_v23  ;;  %v25467_v51 = vunpack.i.h.bf16 %v17393_v53  ;;  %v25468_v12 = vunpack.i.h.bf16 %v17551_v41  ;;  %v25486_v11 = vld [vmem:[#allocation72_spill] sm:$0xff]  ;;  %v25489_v50 = vld [vmem:[#allocation81_spill] sm:$0xff] }
 0x1a6   :  { %v24662_v43 = vunpack.i.h.bf16 %v17817_v36  ;;  %v24661_v37 = vunpack.i.l.bf16 %v17817_v36  ;;  %v24664_v61 = vunpack.i.h.bf16 %v17819_v17  ;;  %v24663_v10 = vunpack.i.l.bf16 %v17819_v17  ;;  %12092 = vrot.lane.b32.xlu0 %v17695_v48, %s13993_s10 }
 0x1a7   :  { %v3377_v63 = vsel %vm3299_vm2, %v25467_v51, %v11780_v34  ;;  %1866 = vmatmul.mubr.bf16.gmra.mrb[88].mxu1 %v13704_v40  ;;  %12107 = vrot.lane.b32.xlu1 %v17743_v44, %s13994_s15  ;;  %v25469_v34 = vunpack.i.l.bf16 %v17549_v29  ;;  %v25470_v40 = vunpack.i.h.bf16 %v17495_v57 }
 0x1a8   :  { %v17864_v23 = vsel %vm3299_vm2, %v25468_v12, %v24661_v37  ;;  %v25471_v12 = vunpack.i.l.bf16 %v17551_v41  ;;  %3616 = vmatpush1.bf16.msra.mxu0 %v3539_v56  ;;  %1875 = vmatprep.mubr.bf16.mxu1 %v25022_v46  ;;  %v3379_v41 = vsel %vm3299_vm2, %v24667_v22, %v11790_v3  ;;  %v25476_v3 = vunpack.i.l.bf16 %v17600_v6 }
 0x1a9   :  { %v17872_v51 = vsel %vm3299_vm2, %v25469_v34, %v24662_v43  ;;  %v17880_v35 = vsel %vm3299_vm2, %v25470_v40, %v24663_v10  ;;  %v24665_v34 = vunpack.i.l.bf16 %v17391_v13  ;;  %2875 = vmatmul.mubr.bf16.gmra.mrb[32].mxu0 %v17824_v49  ;;  %v17892_v43 = vpop.permute.xlu1 %11822  ;;  %v17894_v57 = vpop.permute.xlu0 %11817  ;;  %3617 = vmatprep.subr.bf16.mxu0 %v3546_v60  ;;  %v3552_v40 = vpack.c.bf16 %v3363_v59, %v3362_v54  ;;  %v13705_v60 = vld [vmem:[%s24434_s0] sm:$0xff]  ;;  %v13706_v54 = vld [vmem:[%s24434_s0 + $0x30] sm:$0xff] }
 0x1aa   :  { %v17888_v37 = vsel %vm3299_vm2, %v25471_v12, %v24664_v61  ;;  %25472 = vst [vmem:[#allocation49_spill] sm:$0xff] %v17892_v43  ;;  %v24666_v12 = vunpack.i.h.bf16 %v17894_v57  ;;  %v24668_v56 = vunpack.i.l.bf16 %v17894_v57  ;;  %12102 = vrot.lane.b32.xlu0 %v17751_v32, %s13994_s15  ;;  %v3545_v61 = vpack.c.bf16 %v3377_v63, %v3376_v24  ;;  %2884 = vmatprep.mubr.bf16.mxu0 %v25022_v46  ;;  %v25474_v63 = vld [vmem:[#allocation36_spill] sm:$0xff] }
 0x1ab   :  { %v17911_v59 = vpack.i.bf16 %v13706_v54, %v13705_v60  ;;  %v3378_v24 = vsel %vm3299_vm2, %v24665_v34, %v11789_v31  ;;  %12117 = vrot.lane.b32.xlu1 %v25474_v63, %s13994_s15  ;;  %v24673_v10 = vunpack.i.h.bf16 %v17892_v43  ;;  %v25475_v60 = vunpack.i.h.bf16 %v17549_v29  ;;  %v17948_v29 = vld [vmem:[%s24435_s1 + $0xa8] sm:$0xff]  }
 0x1ac   :  { %v17939_v31 = vsel %vm3299_vm2, %v25476_v3, %v24666_v12  ;;  %3618 = vmatpush1.bf16.msra.mxu0 %v3545_v61  ;;  %25477 = vst [vmem:[#allocation80_spill] sm:$0xff] %v17948_v29  ;;  %v3551_v3 = vpack.c.bf16 %v3379_v41, %v3378_v24  ;;  %v13707_v61 = vld [vmem:[%s24434_s0 + $0x70] sm:$0xff]  ;;  %v13708_v12 = vld [vmem:[%s24434_s0 + $0xa0] sm:$0xff] }
 0x1ad   :  { %25473 = vst [vmem:[#allocation48_spill] sm:$0xff] %v17911_v59  ;;  %v17931_v54 = vsel %vm3299_vm2, %v25475_v60, %v24668_v56  ;;  %v17941_v63 = vpop.permute.xlu1 %11832  ;;  %v17943_v34 = vpop.permute.xlu0 %11827  ;;  %3619 = vmatprep.subr.bf16.mxu0 %v3552_v40  ;;  %v17961_v22 = vpack.i.bf16 %v13708_v12, %v13707_v61  ;;  %v13709_v40 = vld [vmem:[%s24435_s1 + $0x78] sm:$0xff]   ;;  %v13710_v41 = vld [vmem:[%s24434_s0 + $0xd0] sm:$0xff]  ;;  %v13711_v24 = vld [vmem:[%s24434_s0 + $0x100] sm:$0xff]  ;;  %v25481_v12 = vunpack.i.l.bf16 %v17283_v28 }
 0x1ae   :  { %v24672_v6 = vunpack.i.l.bf16 %v17943_v34  ;;  %12112 = vrot.lane.b32.xlu0 %v17911_v59, %s13994_s15  ;;  %v25479_v60 = vld [vmem:[#allocation38_spill] sm:$0xff]  ;;  %v17974_v56 = vpack.i.bf16 %v13711_v24, %v13710_v41  ;;  %v25515_v59 = vld [vmem:[#allocation71_spill] sm:$0xff] }
 0x1af   :  { %25478 = vst [vmem:[#allocation46_spill] sm:$0xff] %v17961_v22  ;;  %1876 = vmatmul.mubr.bf16.gmra.mrb[92].mxu1 %v13709_v40  ;;  %12127 = vrot.lane.b32.xlu1 %v25479_v60, %s13994_s15  ;;  %v3380_v61 = vsel %vm3299_vm2, %v24673_v10, %v25481_v12  ;;  %v25482_v60 = vunpack.i.h.bf16 %v17283_v28  ;;  %v13712_v28 = vld [vmem:[%s24434_s0 + $0x128] sm:$0xff]  ;;  %v13713_v12 = vld [vmem:[%s24434_s0 + $0x158] sm:$0xff] }
 0x1b0   :  { %25480 = vst [vmem:[#allocation50_spill] sm:$0xff] %v17974_v56  ;;  %3620 = vmatpush1.bf16.msra.mxu0 %v3551_v3  ;;  %2648 = vmatprep.mubr.bf16.mxu1 %v25022_v46 }
 0x1b1   :  { %v3381_v40 = vsel %vm3299_vm2, %v24672_v6, %v25482_v60  ;;  %2885 = vmatmul.mubr.bf16.gmra.mrb[36].mxu0 %v17948_v29  ;;  %v17990_v41 = vpop.permute.xlu1 %11842  ;;  %v17992_v3 = vpop.permute.xlu0 %11837  ;;  %v18005_v60 = vpack.i.bf16 %v13713_v12, %v13712_v28  ;;  %v25487_v28 = vld [vmem:[#allocation4_spill] sm:$0xff]  ;;  %v25490_v6 = vld [vmem:[#allocation35_spill] sm:$0xff] }
 0x1b2   :  { %v3514_v24 = vpack.c.bf16 %v3381_v40, %v3380_v61  ;;  %12122 = vrot.lane.b32.xlu0 %v17961_v22, %s13994_s15  ;;  %2894 = vmatprep.mubr.bf16.mxu0 %v25022_v46  ;;  %v25488_v12 = vpack.c.bf16 %v25486_v11, %v25487_v28  ;;  %v25491_v10 = vpack.c.bf16 %v25489_v50, %v25490_v6  ;;  %v13714_v11 = vld [vmem:[%s24434_s0 + $0x130] sm:$0xff]  ;;  %v13715_v28 = vld [vmem:[%s24434_s0 + $0x160] sm:$0xff]  ;;  %v18067_v22 = vld [vmem:[%s24435_s1 + $0xb8] sm:$0xff]  }
 0x1b3   :  { %12137 = vrot.lane.b32.xlu1 %v17974_v56, %s13994_s15  ;;  %25483 = vst [vmem:[#allocation51_spill] sm:$0xff] %v18005_v60  ;;  %v13716_v50 = vld [vmem:[%s24434_s0 + $0x190] sm:$0xff]  ;;  %v25498_v56 = vld [vmem:[#allocation30_spill] sm:$0xff] }
 0x1b4   :  { %3831 = vmatprep.subr.bf16.mxu0 %v3514_v24  ;;  %v18014_v24 = vld [vmem:[%s24435_s1 + $0xb0] sm:$0xff]  }
 0x1b5   :  { %v18007_v61 = vpop.permute.xlu1 %11852  ;;  %v18009_v40 = vpop.permute.xlu0 %11847  ;;  %25484 = vst [vmem:[#allocation55_spill] sm:$0xff] %v18014_v24  ;;  %v25495_v6 = vld [vmem:[#allocation69_spill] sm:$0xff] }
 0x1b6   :  { %12132 = vrot.lane.b32.xlu0 %v25485_v39, %s13994_s15 }
 0x1b7   :  { %2649 = vmatmul.mubr.bf16.vlgmr.msra.gmra.mrb[16].mxu1 %v17824_v49  ;;  %12147 = vrot.lane.b32.xlu1 %v18005_v60, %s13994_s15  ;;  %v25497_v60 = vpack.c.bf16 %v25495_v6, %v25496_v58  ;;  %v25503_v6 = vld [vmem:[#allocation10_spill] sm:$0xff] }
 0x1b8   :  { %2690 = vmatpush1.bf16.msra.mxu1 %v25488_v12  ;;  %2658 = vmatprep.mubr.bf16.mxu1 %v25022_v46  ;;  %v18042_v12 = vpack.i.bf16 %v13715_v28, %v13714_v11  ;;  %v25499_v11 = vld [vmem:[#allocation37_spill] sm:$0xff] }
 0x1b9   :  { %2895 = vmatmul.mubr.bf16.gmra.mrb[40].mxu0 %v18014_v24  ;;  %2691 = vmatprep.subr.bf16.mxu1 %v25491_v10  ;;  %v18029_v2 = vpop.permute.xlu1 %11862  ;;  %v18031_v39 = vpop.permute.xlu0 %11857  ;;  %v25500_v28 = vpack.c.bf16 %v25498_v56, %v25499_v11  ;;  %v18079_v56 = vld [vmem:[%s24434_s0 + $0x218] sm:$0xff] }
 0x1ba   :  { %12142 = vrot.lane.b32.xlu0 %v25492_v14, %s13994_s15  ;;  %2904 = vmatprep.mubr.bf16.mxu0 %v25022_v46  ;;  %25493 = vst [vmem:[#allocation61_spill] sm:$0xff] %v18042_v12  ;;  %v13717_v14 = vld [vmem:[%s24434_s0 + $0x1c0] sm:$0xff]  ;;  %25501 = vst [vmem:[#allocation52_spill] sm:$0xff] %v18079_v56 }
 0x1bb   :  { %12157 = vrot.lane.b32.xlu1 %v17155_v42, %s13994_s15  ;;  %v18052_v10 = vpack.i.bf16 %v13717_v14, %v13716_v50  ;;  %v25502_v14 = vld [vmem:[#allocation73_spill] sm:$0xff]  ;;  %v25506_v50 = vld [vmem:[#allocation82_spill] sm:$0xff] }
 0x1bc   :  { %2692 = vmatpush1.bf16.msra.mxu1 %v25497_v60  ;;  %v12176_v60 = vpack.i.bf16 %v18079_v56, %v17224_v30  ;;  %v25504_v11 = vpack.c.bf16 %v25502_v14, %v25503_v6  ;;  %v25510_v30 = vunpack.i.h.bf16 %v17892_v43  ;;  %v25511_v14 = vunpack.i.h.bf16 %v17943_v34  ;;  %v25514_v56 = vld [vmem:[#allocation27_spill] sm:$0xff] }
 0x1bd   :  { %25494 = vst [vmem:[#allocation58_spill] sm:$0xff] %v18052_v10  ;;  %2693 = vmatprep.subr.bf16.mxu1 %v25500_v28  ;;  %v18060_v49 = vpop.permute.xlu1 %11872  ;;  %v18062_v42 = vpop.permute.xlu0 %11867  ;;  %v25505_v28 = vld [vmem:[#allocation83_spill] sm:$0xff]  ;;  %v11835_v43 = vunpack.i.h.bf16 %v17941_v63  ;;  %v25516_v32 = vpack.c.bf16 %v25514_v56, %v25515_v59  ;;  %v13719_v56 = vld [vmem:[%s24434_s0 + $0x1f0] sm:$0xff] }
 0x1be   :  { %12152 = vrot.lane.b32.xlu0 %v18042_v12, %s13994_s15  ;;  %v25507_v58 = vpack.c.bf16 %v25505_v28, %v25506_v50  ;;  %v3300_v6 = vsel %vm3299_vm2, %v25511_v14, %v25510_v30  ;;  %v25512_v50 = vunpack.i.l.bf16 %v17943_v34  ;;  %v24696_v28 = vunpack.i.l.bf16 %v17990_v41  ;;  %v25517_v30 = vld [vmem:[#allocation31_spill] sm:$0xff] }
 0x1bf   :  { %2659 = vmatmul.mubr.bf16.gmra.mrb[20].mxu1 %v17948_v29  ;;  %12167 = vrot.lane.b32.xlu1 %v18052_v10, %s13994_s15  ;;  %v11839_v29 = vunpack.i.l.bf16 %v17992_v3  ;;  %v25518_v14 = vld [vmem:[#allocation39_spill] sm:$0xff] }
 0x1c0   :  { %2694 = vmatpush1.bf16.msra.mxu1 %v25504_v11  ;;  %2668 = vmatprep.mubr.bf16.mxu1 %v25022_v46  ;;  %v25519_v44 = vpack.c.bf16 %v25517_v30, %v25518_v14  ;;  %v11859_v14 = vunpack.i.l.bf16 %v18031_v39 }
 0x1c1   :  { %2905 = vmatmul.mubr.bf16.gmra.mrb[44].mxu0 %v18067_v22  ;;  %2695 = vmatprep.subr.bf16.mxu1 %v25507_v58  ;;  %v18091_v10 = vpop.permute.xlu1 %11882  ;;  %v18093_v12 = vpop.permute.xlu0 %11877  ;;  %v25513_v58 = vunpack.i.l.bf16 %v17941_v63 }
 0x1c2   :  { %25508 = vst [vmem:[#allocation57_spill] sm:$0xff] %v18091_v10  ;;  %25509 = vst [vmem:[#allocation60_spill] sm:$0xff] %v18093_v12  ;;  %12162 = vrot.lane.b32.xlu0 %v17199_v62, %s13994_s15  ;;  %3637 = vmatprep.mubr.bf16.mxu0 %v25022_v46  ;;  %v24695_v62 = vunpack.i.h.bf16 %v17992_v3 }
 0x1c3   :  { %v3301_v11 = vsel %vm3299_vm2, %v25513_v58, %v25512_v50  ;;  %12177 = vrot.lane.b32.xlu1 %v12176_v60, %s13994_s15  ;;  %v18128_v50 = vld [vmem:[%s24435_s1 + $0xc0] sm:$0xff]   ;;  %v11849_v60 = vunpack.i.l.bf16 %v18009_v40 }
 0x1c4   :  { %2696 = vmatpush1.bf16.msra.mxu1 %v25516_v32  ;;  %25522 = vst [vmem:[#allocation66_spill] sm:$0xff] %v18128_v50  ;;  %v3513_v59 = vpack.c.bf16 %v3301_v11, %v3300_v6  ;;  %v25523_v32 = vunpack.i.h.bf16 %v17281_v33  ;;  %v13720_v58 = vld [vmem:[%s24434_s0 + $0x220] sm:$0xff]  ;;  %v3303_v6 = vsel %vm3299_vm2, %v24696_v28, %v11839_v29  ;;  %v13721_v28 = vld [vmem:[%s24434_s0 + $0x250] sm:$0xff] }
 0x1c5   :  { %2697 = vmatprep.subr.bf16.mxu1 %v25519_v44  ;;  %v18121_v48 = vpop.permute.xlu1 %11892  ;;  %v18123_v26 = vpop.permute.xlu0 %11887  ;;  %v18143_v30 = vpack.i.bf16 %v13720_v58, %v13719_v56  ;;  %v25525_v56 = vld [vmem:[#allocation28_spill] sm:$0xff]  ;;  %v25526_v58 = vld [vmem:[#allocation29_spill] sm:$0xff] }
 0x1c6   :  { %25520 = vst [vmem:[#allocation62_spill] sm:$0xff] %v18121_v48  ;;  %25521 = vst [vmem:[#allocation59_spill] sm:$0xff] %v18123_v26  ;;  %12172 = vrot.lane.b32.xlu0 %v17248_v8, %s13994_s15  ;;  %v3383_v44 = vsel %vm3299_vm2, %v11839_v29, %v25523_v32  ;;  %v3302_v8 = vsel %vm3299_vm2, %v24695_v62, %v11835_v43  ;;  %v11845_v32 = vunpack.i.h.bf16 %v17990_v41  ;;  %v25528_v62 = vunpack.i.l.bf16 %v17281_v33 }
 0x1c7   :  { %25524 = vst [vmem:[#allocation64_spill] sm:$0xff] %v18143_v30  ;;  %2669 = vmatmul.mubr.bf16.gmra.mrb[24].mxu1 %v18014_v24  ;;  %12187 = vrot.lane.b32.xlu1 %v17271_v55, %s13994_s15  ;;  %v25527_v21 = vpack.c.bf16 %v25525_v56, %v25526_v58  ;;  %v13722_v55 = vld [vmem:[%s24434_s0 + $0x280] sm:$0xff]  ;;  %v25530_v56 = vld [vmem:[#allocation6_spill] sm:$0xff]  ;;  %v18184_v24 = vpop.f32.mrb[0].mxu1 }
 0x1c8   :  { %v3382_v29 = vsel %vm3299_vm2, %v11835_v43, %v25528_v62  ;;  %2678 = vmatprep.mubr.bf16.mxu1 %v25022_v46  ;;  %v18173_v11 = vpack.i.bf16 %v13722_v55, %v13721_v28  ;;  %25534 = vst [vmem:[#allocation68_spill] sm:$0xff] %v18184_v24  ;;  %v3519_v28 = vpack.c.bf16 %v3303_v6, %v3302_v8  ;;  %v25535_v55 = vunpack.i.h.bf16 %v17310_v5 }
 0x1c9   :  { %2698 = vmatpush1.bf16.msra.mxu1 %v25527_v21  ;;  %3638 = vmatmul.mubr.bf16.vlgmr.msra.gmra.mrb[0].mxu0 %v18128_v50  ;;  %v25529_v21 = vld [vmem:[#allocation85_spill] sm:$0xff]  ;;  %v3520_v58 = vpack.c.bf16 %v3383_v44, %v3382_v29  ;;  %v18179_v43 = vpop.permute.xlu1 %3265  ;;  %v18181_v62 = vpop.permute.xlu0 %11897  ;;  %v13723_v44 = vld [vmem:[%s24434_s0 + $0x248] sm:$0xff]  ;;  %v13724_v29 = vld [vmem:[%s24434_s0 + $0x278] sm:$0xff]  ;;  %v25538_v6 = vunpack.i.l.bf16 %v18007_v61 }
 0x1ca   :  { %v25531_v33 = vpack.c.bf16 %v25529_v21, %v25530_v56  ;;  %25532 = vst [vmem:[#allocation63_spill] sm:$0xff] %v18179_v43  ;;  %25533 = vst [vmem:[#allocation67_spill] sm:$0xff] %v18181_v62  ;;  %3832 = vmatpush1.bf16.msra.mxu0 %v3513_v59  ;;  %12182 = vrot.lane.b32.xlu0 %v18143_v30, %s13994_s15  ;;  %v3385_v21 = vsel %vm3299_vm2, %v11849_v60, %v25535_v55  ;;  %v25537_v56 = vunpack.i.h.bf16 %v18009_v40  ;;  %v18210_v30 = vpop.f32.mrb[1].mxu1  ;;  %v25541_v50 = vld [vmem:[#allocation76_spill] sm:$0xff] }
 0x1cb   :  { %v18198_v59 = vpack.i.bf16 %v13724_v29, %v13723_v44  ;;  %3833 = vmatprep.subr.bf16.mxu0 %v3520_v58  ;;  %25539 = vst [vmem:[#allocation70_spill] sm:$0xff] %v18210_v30  ;;  %3647 = vmatprep.mubr.bf16.mxu0 %v25022_v46  ;;  %v11855_v44 = vunpack.i.h.bf16 %v18007_v61  ;;  %v25540_v29 = vld [vmem:[#allocation75_spill] sm:$0xff]  ;;  %v13725_v58 = vld [vmem:[%s24434_s0 + $0x2a8] sm:$0xff]  ;;  %v25551_v30 = vunpack.i.l.bf16 %v17772_v52 }
 0x1cc   :  { %2699 = vmatprep.subr.bf16.mxu1 %v25531_v33  ;;  %v3304_v8 = vsel %vm3299_vm2, %v25537_v56, %v11845_v32  ;;  %v3305_v33 = vsel %vm3299_vm2, %v25538_v6, %v11849_v60  ;;  %v25542_v9 = vpack.c.bf16 %v25540_v29, %v25541_v50  ;;  %v18217_v56 = vpop.f32.mrb[2].mxu1  ;;  %v3384_v60 = vsel %vm3299_vm2, %v11845_v32, %v25544_v7  ;;  %v13726_v6 = vld [vmem:[%s24434_s0 + $0x2d8] sm:$0xff]  ;;  %v18243_v32 = vld [vmem:[%s24435_s1 + $0xc8] sm:$0xff]  }
 0x1cd   :  { %25536 = vst [vmem:[#allocation65_spill] sm:$0xff] %v18198_v59  ;;  %25543 = vst [vmem:[#allocation74_spill] sm:$0xff] %v18217_v56  ;;  %12197 = vrot.lane.b32.xlu1 %v18173_v11, %s13994_s15  ;;  %v18231_v50 = vpack.i.bf16 %v13726_v6, %v13725_v58  ;;  %v25547_v29 = vld [vmem:[#allocation42_spill] sm:$0xff]  ;;  %v3526_v5 = vpack.c.bf16 %v3385_v21, %v3384_v60  ;;  %v18236_v24 = vpop.permute.xlu1 %11907  ;;  %v18238_v7 = vpop.permute.xlu0 %11902  ;;  %v25550_v56 = vunpack.i.h.bf16 %v17943_v34  ;;  %v25552_v6 = vunpack.i.l.bf16 %v17941_v63 }
 0x1ce   :  { %2700 = vmatpush1.bf16.msra.mxu1 %v25542_v9  ;;  %v25546_v9 = vld [vmem:[#allocation41_spill] sm:$0xff]  ;;  %25549 = vst [vmem:[#allocation38_spill] sm:$0xff] %v18236_v24  ;;  %v25553_v21 = vunpack.i.h.bf16 %v17772_v52  ;;  %v11869_v60 = vunpack.i.l.bf16 %v18062_v42  ;;  %3834 = vmatpush1.bf16.msra.mxu0 %v3519_v28  ;;  %v3525_v34 = vpack.c.bf16 %v3305_v33, %v3304_v8  ;;  %v25556_v63 = vunpack.i.h.bf16 %v18031_v39  ;;  %v25558_v33 = vld [vmem:[#allocation79_spill] sm:$0xff] }
 0x1cf   :  { %25545 = vst [vmem:[#allocation36_spill] sm:$0xff] %v18231_v50  ;;  %v25548_v55 = vpack.c.bf16 %v25546_v9, %v25547_v29  ;;  %v3316_v58 = vsel %vm3299_vm2, %v25551_v30, %v25550_v56  ;;  %v18258_v9 = vpop.f32.mrb[3].mxu1  ;;  %12192 = vrot.lane.b32.xlu0 %v18198_v59, %s13994_s15  ;;  %v25555_v29 = vunpack.i.h.bf16 %v17308_v4  ;;  %v25557_v56 = vunpack.i.l.bf16 %v18029_v2  ;;  %3835 = vmatprep.subr.bf16.mxu0 %v3526_v5  ;;  %v13727_v5 = vld [vmem:[%s24434_s0 + $0x2b0] sm:$0xff] }
 0x1d0   :  { %25554 = vst [vmem:[#allocation40_spill] sm:$0xff] %v18258_v9  ;;  %v3306_v52 = vsel %vm3299_vm2, %v25556_v63, %v11855_v44  ;;  %2679 = vmatmul.mubr.bf16.gmra.mrb[28].mxu1 %v18067_v22  ;;  %v11865_v8 = vunpack.i.h.bf16 %v18029_v2  ;;  %v25561_v63 = vunpack.i.l.bf16 %v17308_v4  ;;  %v25562_v4 = vld [vmem:[#allocation32_spill] sm:$0xff] }
 0x1d1   :  { %2701 = vmatprep.subr.bf16.mxu1 %v25548_v55  ;;  %v3317_v55 = vsel %vm3299_vm2, %v25553_v21, %v25552_v6  ;;  %v3387_v30 = vsel %vm3299_vm2, %v11859_v14, %v25555_v29  ;;  %v3307_v28 = vsel %vm3299_vm2, %v25557_v56, %v11859_v14  ;;  %v25559_v29 = vld [vmem:[#allocation9_spill] sm:$0xff]  ;;  %12207 = vrot.lane.b32.xlu1 %v18231_v50, %s13994_s15  ;;  %v13728_v56 = vld [vmem:[%s24434_s0 + $0x2e0] sm:$0xff]  ;;  %v25578_v50 = vunpack.i.l.bf16 %v17355_v19 }
 0x1d2   :  { %v25560_v9 = vpack.c.bf16 %v25558_v33, %v25559_v29  ;;  %v3386_v59 = vsel %vm3299_vm2, %v11855_v44, %v25561_v63  ;;  %v3512_v14 = vpack.c.bf16 %v3317_v55, %v3316_v58  ;;  %v18293_v6 = vpack.i.bf16 %v13728_v56, %v13727_v5  ;;  %3648 = vmatmul.mubr.bf16.gmra.mrb[4].mxu0 %v18243_v32  ;;  %v18299_v29 = vpop.permute.xlu1 %11917  ;;  %v18301_v58 = vpop.permute.xlu0 %11912 }
 0x1d3   :  { %v3532_v44 = vpack.c.bf16 %v3387_v30, %v3386_v59  ;;  %v25565_v55 = vunpack.i.h.bf16 %v17992_v3  ;;  %v25566_v63 = vunpack.i.l.bf16 %v17770_v16  ;;  %v25567_v5 = vunpack.i.l.bf16 %v17990_v41  ;;  %3836 = vmatpush1.bf16.msra.mxu0 %v3525_v34  ;;  %v18316_v30 = vpop.f32.mrb[4].mxu1  ;;  %12202 = vrot.lane.b32.xlu0 %v17342_v47, %s13994_s15  ;;  %v13730_v41 = vld [vmem:[%s24434_s0 + $0x50] sm:$0xff] }
 0x1d4   :  { %2702 = vmatpush1.bf16.msra.mxu1 %v25560_v9  ;;  %v25563_v9 = vld [vmem:[#allocation47_spill] sm:$0xff]  ;;  %v25568_v56 = vunpack.i.h.bf16 %v17770_v16  ;;  %v11879_v59 = vunpack.i.l.bf16 %v18093_v12  ;;  %25569 = vst [vmem:[#allocation72_spill] sm:$0xff] %v18316_v30  ;;  %v3531_v3 = vpack.c.bf16 %v3307_v28, %v3306_v52  ;;  %v25572_v52 = vunpack.i.l.bf16 %v18060_v49  ;;  %2721 = vmatprep.mubr.bf16.mxu1 %v25022_v46 }
 0x1d5   :  { %v25564_v33 = vpack.c.bf16 %v25562_v4, %v25563_v9  ;;  %v3318_v21 = vsel %vm3299_vm2, %v25566_v63, %v25565_v55  ;;  %v25570_v9 = vunpack.i.h.bf16 %v17355_v19  ;;  %v13729_v16 = vld [vmem:[%s24434_s0 + $0x20] sm:$0xff]  ;;  %v25571_v55 = vunpack.i.h.bf16 %v18062_v42  ;;  %3837 = vmatprep.subr.bf16.mxu0 %v3532_v44  ;;  %3657 = vmatprep.mubr.bf16.mxu0 %v25022_v46  ;;  %v13732_v63 = vld [vmem:[%s24434_s0 + $0x58] sm:$0xff] }
 0x1d6   :  { %v3319_v4 = vsel %vm3299_vm2, %v25568_v56, %v25567_v5  ;;  %v18330_v34 = vpack.i.bf16 %v13730_v41, %v13729_v16  ;;  %v3309_v28 = vsel %vm3299_vm2, %v25572_v52, %v11869_v60  ;;  %v24704_v5 = vunpack.i.h.bf16 %v18093_v12  ;;  %v18342_v56 = vpop.f32.mrb[5].mxu1  ;;  %v25574_v16 = vld [vmem:[#allocation78_spill] sm:$0xff]  ;;  %v25575_v41 = vld [vmem:[#allocation77_spill] sm:$0xff]  ;;  %v13731_v52 = vld [vmem:[%s24434_s0 + $0x28] sm:$0xff]  ;;  %v18366_v19 = vpop.permute.xlu0 %11922  ;;  %12217 = vrot.lane.b32.xlu1 %v17380_v0, %s13994_s15 }
 0x1d7   :  { %2703 = vmatprep.subr.bf16.mxu1 %v25564_v33  ;;  %v3389_v33 = vsel %vm3299_vm2, %v11869_v60, %v25570_v9  ;;  %v3308_v47 = vsel %vm3299_vm2, %v25571_v55, %v11865_v8  ;;  %25573 = vst [vmem:[#allocation4_spill] sm:$0xff] %v18342_v56  ;;  %v11875_v9 = vunpack.i.h.bf16 %v18060_v49  ;;  %v25576_v30 = vpack.c.bf16 %v25574_v16, %v25575_v41  ;;  %v18349_v55 = vpop.f32.mrb[6].mxu1  ;;  %v18364_v41 = vpop.permute.xlu1 %11927  ;;  %v13756_v56 = vld [vmem:[%s24434_s0 + $0xc8] sm:$0xff] }
 0x1d8   :  { %25577 = vst [vmem:[#allocation81_spill] sm:$0xff] %v18349_v55  ;;  %v3388_v60 = vsel %vm3299_vm2, %v11865_v8, %v25578_v50  ;;  %v3518_v44 = vpack.c.bf16 %v3319_v4, %v3318_v21  ;;  %v18362_v16 = vpack.i.bf16 %v13732_v63, %v13731_v52  ;;  %25579 = vst [vmem:[#allocation35_spill] sm:$0xff] %v18366_v19  ;;  %v18373_v50 = vld [vmem:[%s24435_s1 + $0xd0] sm:$0xff]   ;;  %v25580_v21 = vunpack.i.h.bf16 %v18009_v40  ;;  %v18389_v52 = vpop.f32.mrb[7].mxu1  ;;  %v25638_v55 = vld [vmem:[#allocation48_spill] sm:$0xff] }
 0x1d9   :  { %2704 = vmatpush1.bf16.msra.mxu1 %v25576_v30  ;;  %v3538_v30 = vpack.c.bf16 %v3389_v33, %v3388_v60  ;;  %v25581_v8 = vunpack.i.l.bf16 %v17819_v17  ;;  %v25582_v4 = vunpack.i.l.bf16 %v18007_v61  ;;  %v25583_v33 = vunpack.i.h.bf16 %v17819_v17  ;;  %3838 = vmatpush1.bf16.msra.mxu0 %v3531_v3  ;;  %25584 = vst [vmem:[#allocation84_spill] sm:$0xff] %v18389_v52 }
 0x1da   :  { %3718 = vmatprep.subr.bf16.mxu1 %v3512_v14  ;;  %v11885_v0 = vunpack.i.h.bf16 %v18091_v10  ;;  %v11889_v60 = vunpack.i.l.bf16 %v18123_v26  ;;  %12212 = vrot.lane.b32.xlu0 %v18293_v6, %s13994_s15  ;;  %v3537_v40 = vpack.c.bf16 %v3309_v28, %v3308_v47  ;;  %v3310_v17 = vsel %vm3299_vm2, %v24704_v5, %v11875_v9  ;;  %v13733_v47 = vld [vmem:[%s24435_s1 + $0x80] sm:$0xff]  }
 0x1db   :  { %v3320_v14 = vsel %vm3299_vm2, %v25581_v8, %v25580_v21  ;;  %v3321_v63 = vsel %vm3299_vm2, %v25583_v33, %v25582_v4  ;;  %v25585_v21 = vunpack.i.h.bf16 %v17353_v15  ;;  %v25586_v8 = vunpack.i.l.bf16 %v18091_v10  ;;  %3839 = vmatprep.subr.bf16.mxu0 %v3538_v30  ;;  %v13735_v30 = vld [vmem:[%s24434_s0 + $0xb0] sm:$0xff]  ;;  %3658 = vmatmul.mubr.bf16.gmra.mrb[8].mxu0 %v18373_v50  ;;  %v25648_v10 = vld [vmem:[#allocation34_spill] sm:$0xff] }
 0x1dc   :  { %v24705_v33 = vunpack.i.h.bf16 %v18123_v26  ;;  %2722 = vmatmul.mubr.bf16.vlgmr.msra.gmra.mrb[32].mxu1 %v13733_v47  ;;  %v25587_v28 = vpack.c.bf16 %v17815_v38, %v17807_v25  ;;  %v13736_v25 = vld [vmem:[%s24434_s0 + $0x88] sm:$0xff]  ;;  %v25590_v47 = vunpack.i.h.bf16 %v18031_v39  ;;  %12227 = vrot.lane.b32.xlu1 %v18330_v34, %s13994_s15  ;;  %v25642_v52 = vunpack.i.h.bf16 %v18238_v7 }
 0x1dd   :  { %v3391_v61 = vsel %vm3299_vm2, %v11879_v59, %v25585_v21  ;;  %v3311_v3 = vsel %vm3299_vm2, %v25586_v8, %v11879_v59  ;;  %v25588_v21 = vunpack.i.l.bf16 %v17353_v15  ;;  %v3524_v59 = vpack.c.bf16 %v3321_v63, %v3320_v14  ;;  %v13734_v8 = vld [vmem:[%s24434_s0 + $0x80] sm:$0xff]  ;;  %v13737_v15 = vld [vmem:[%s24434_s0 + $0xb8] sm:$0xff]  ;;  %v18435_v14 = vpop.permute.xlu1 %11937  ;;  %v18437_v63 = vpop.permute.xlu0 %11932  ;;  %3840 = vmatpush1.bf16.msra.mxu0 %v3537_v40  ;;  %3667 = vmatprep.mubr.bf16.mxu0 %v25022_v46 }
 0x1de   :  { %3719 = vmatpush1.bf16.msra.mxu1 %v25587_v28  ;;  %v18423_v4 = vpack.i.bf16 %v13735_v30, %v13734_v8  ;;  %v18431_v38 = vpack.i.bf16 %v13737_v15, %v13736_v25  ;;  %25589 = vst [vmem:[#allocation69_spill] sm:$0xff] %v18435_v14  ;;  %v25591_v28 = vunpack.i.l.bf16 %v17817_v36  ;;  %v25592_v8 = vunpack.i.l.bf16 %v18029_v2  ;;  %12222 = vrot.lane.b32.xlu0 %v18362_v16, %s13994_s15 }
 0x1df   :  { %v3390_v5 = vsel %vm3299_vm2, %v11875_v9, %v25588_v21  ;;  %3720 = vmatprep.subr.bf16.mxu1 %v3518_v44  ;;  %v25593_v30 = vunpack.i.h.bf16 %v17817_v36  ;;  %v18452_v44 = vpop.f32.mrb[8].mxu1  ;;  %v3543_v39 = vpack.c.bf16 %v3311_v3, %v3310_v17  ;;  %v25596_v2 = vunpack.i.h.bf16 %v17393_v53  ;;  %2731 = vmatprep.mubr.bf16.mxu1 %v25022_v46 }
 0x1e0   :  { %v3544_v9 = vpack.c.bf16 %v3391_v61, %v3390_v5  ;;  %v3322_v21 = vsel %vm3299_vm2, %v25591_v28, %v25590_v47  ;;  %v11899_v5 = vunpack.i.l.bf16 %v18181_v62  ;;  %25594 = vst [vmem:[#allocation54_spill] sm:$0xff] %v18452_v44  ;;  %v25595_v61 = vunpack.i.l.bf16 %v17393_v53  ;;  %v18476_v53 = vpop.f32.mrb[9].mxu1  ;;  %12237 = vrot.lane.b32.xlu1 %v18423_v4, %s13994_s15 }
 0x1e1   :  { %v3323_v25 = vsel %vm3299_vm2, %v25593_v30, %v25592_v8  ;;  %v3393_v36 = vsel %vm3299_vm2, %v11889_v60, %v25596_v2  ;;  %v11895_v47 = vunpack.i.h.bf16 %v18121_v48  ;;  %v3312_v40 = vsel %vm3299_vm2, %v24705_v33, %v11885_v0  ;;  %25598 = vst [vmem:[#allocation30_spill] sm:$0xff] %v18476_v53  ;;  %v18490_v33 = vpop.permute.xlu0 %11942 }
 0x1e2   :  { %v3392_v15 = vsel %vm3299_vm2, %v11885_v0, %v25595_v61  ;;  %v25597_v28 = vunpack.i.l.bf16 %v18121_v48  ;;  %v24706_v3 = vunpack.i.h.bf16 %v18181_v62  ;;  %3841 = vmatprep.subr.bf16.mxu0 %v3544_v9  ;;  %v25599_v2 = vpack.c.bf16 %v17799_v1, %v17791_v27  ;;  %25601 = vst [vmem:[#allocation73_spill] sm:$0xff] %v18490_v33  ;;  %v18495_v61 = vld [vmem:[%s24435_s1 + $0xd8] sm:$0xff]   ;;  %v13738_v27 = vld [vmem:[%s24434_s0 + $0xe0] sm:$0xff]  ;;  %v13739_v1 = vld [vmem:[%s24434_s0 + $0x110] sm:$0xff]  ;;  %12232 = vrot.lane.b32.xlu0 %v18431_v38, %s13994_s15 }
 0x1e3   :  { %v3550_v9 = vpack.c.bf16 %v3393_v36, %v3392_v15  ;;  %v3530_v8 = vpack.c.bf16 %v3323_v25, %v3322_v21  ;;  %v25602_v15 = vunpack.i.h.bf16 %v18062_v42  ;;  %v25603_v36 = vunpack.i.l.bf16 %v17894_v57  ;;  %3842 = vmatpush1.bf16.msra.mxu0 %v3543_v39 }
 0x1e4   :  { %v3313_v17 = vsel %vm3299_vm2, %v25597_v28, %v11889_v60  ;;  %3721 = vmatpush1.bf16.msra.mxu1 %v25599_v2  ;;  %v18485_v60 = vpop.f32.mrb[10].mxu1  ;;  %v18488_v28 = vpop.permute.xlu1 %11947  ;;  %v25605_v25 = vunpack.i.h.bf16 %v17391_v13  ;;  %v25607_v42 = vunpack.i.h.bf16 %v17894_v57  ;;  %v3314_v39 = vsel %vm3299_vm2, %v24706_v3, %v11895_v47  ;;  %v13741_v57 = vld [vmem:[%s24434_s0 + $0x118] sm:$0xff]  ;;  %3668 = vmatmul.mubr.bf16.gmra.mrb[12].mxu0 %v18495_v61  ;;  %v18678_v3 = vld [vmem:[%s24435_s1 + $0xf0] sm:$0xff]  }
 0x1e5   :  { %25600 = vst [vmem:[#allocation37_spill] sm:$0xff] %v18485_v60  ;;  %3722 = vmatprep.subr.bf16.mxu1 %v3524_v59  ;;  %v18503_v59 = vpack.i.bf16 %v13739_v1, %v13738_v27  ;;  %v3324_v2 = vsel %vm3299_vm2, %v25603_v36, %v25602_v15  ;;  %v18511_v0 = vpop.f32.mrb[11].mxu1  ;;  %v3549_v21 = vpack.c.bf16 %v3313_v17, %v3312_v40  ;;  %v25606_v1 = vunpack.i.l.bf16 %v18060_v49  ;;  %v13740_v49 = vld [vmem:[%s24434_s0 + $0xe8] sm:$0xff] }
 0x1e6   :  { %25604 = vst [vmem:[#allocation10_spill] sm:$0xff] %v18511_v0  ;;  %v3395_v27 = vsel %vm3299_vm2, %v11899_v5, %v25605_v25  ;;  %v3315_v40 = vsel %vm3299_vm2, %v18179_v43, %v11899_v5  ;;  %3843 = vmatprep.subr.bf16.mxu0 %v3550_v9  ;;  %v18540_v17 = vpack.i.bf16 %v13741_v57, %v13740_v49  ;;  %v25609_v5 = vunpack.i.l.bf16 %v17391_v13  ;;  %v25645_v43 = vld [vmem:[#allocation46_spill] sm:$0xff] }
 0x1e7   :  { %v3325_v30 = vsel %vm3299_vm2, %v25607_v42, %v25606_v1  ;;  %v25608_v15 = vpack.c.bf16 %v17888_v37, %v17880_v35  ;;  %v25610_v36 = vunpack.i.l.bf16 %v18236_v24  ;;  %v25611_v25 = vunpack.i.l.bf16 %v18238_v7  ;;  %3844 = vmatpush1.bf16.msra.mxu0 %v3549_v21  ;;  %12247 = vrot.lane.b32.xlu1 %v18503_v59, %s13994_s15  ;;  %v13745_v21 = vld [vmem:[%s24434_s0 + $0x178] sm:$0xff] }
 0x1e8   :  { %v3394_v9 = vsel %vm3299_vm2, %v11895_v47, %v25609_v5  ;;  %v25612_v42 = vunpack.i.h.bf16 %v18236_v24  ;;  %v25613_v49 = vunpack.i.h.bf16 %v18238_v7  ;;  %v18562_v35 = vpop.permute.xlu1 %11957  ;;  %v18564_v47 = vpop.permute.xlu0 %11952  ;;  %v3536_v57 = vpack.c.bf16 %v3325_v30, %v3324_v2  ;;  %v13742_v5 = vld [vmem:[%s24434_s0 + $0x140] sm:$0xff]  ;;  %12242 = vrot.lane.b32.xlu0 %v18540_v17, %s13994_s15  ;;  %v13744_v2 = vld [vmem:[%s24434_s0 + $0x148] sm:$0xff]  ;;  %3677 = vmatprep.mubr.bf16.mxu0 %v25022_v46 }
 0x1e9   :  { %3723 = vmatpush1.bf16.msra.mxu1 %v25608_v15  ;;  %v4377_v1 = vsel %vm4328_vm3, %v25611_v25, %v25610_v36  ;;  %v3556_v13 = vpack.c.bf16 %v3395_v27, %v3394_v9  ;;  %25614 = vst [vmem:[#allocation83_spill] sm:$0xff] %v18562_v35  ;;  %25615 = vst [vmem:[#allocation82_spill] sm:$0xff] %v18564_v47  ;;  %v18566_v15 = vpop.f32.mrb[12].mxu1  ;;  %v3555_v9 = vpack.c.bf16 %v3315_v40, %v3314_v39 }
 0x1ea   :  { %v4378_v37 = vsel %vm4328_vm3, %v25613_v49, %v25612_v42  ;;  %3724 = vmatprep.subr.bf16.mxu1 %v3530_v8  ;;  %25616 = vst [vmem:[#allocation27_spill] sm:$0xff] %v18566_v15  ;;  %v13743_v8 = vld [vmem:[%s24434_s0 + $0x170] sm:$0xff]  ;;  %v18580_v30 = vpop.f32.mrb[13].mxu1  ;;  %v18588_v36 = vpack.i.bf16 %v13745_v21, %v13744_v2  ;;  %v25618_v39 = vpack.c.bf16 %v17872_v51, %v17864_v23  ;;  %v13746_v23 = vld [vmem:[%s24434_s0 + $0x1a0] sm:$0xff]  ;;  %v18644_v2 = vld [vmem:[%s24435_s1 + $0xe8] sm:$0xff]   ;;  %v11919_v0 = vunpack.i.l.bf16 %v18299_v29 }
 0x1eb   :  { %v18576_v27 = vpack.i.bf16 %v13743_v8, %v13742_v5  ;;  %3845 = vmatprep.subr.bf16.mxu0 %v3556_v13  ;;  %25617 = vst [vmem:[#allocation71_spill] sm:$0xff] %v18580_v30  ;;  %v4539_v25 = vpack.c.bf16 %v4378_v37, %v4377_v1  ;;  %v18593_v40 = vpop.f32.mrb[14].mxu1  ;;  %v18603_v13 = vld [vmem:[%s24435_s1 + $0xe0] sm:$0xff]   ;;  %v13747_v51 = vld [vmem:[%s24434_s0 + $0x1d0] sm:$0xff]  ;;  %v25623_v37 = vpack.c.bf16 %v17939_v31, %v17931_v54  ;;  %v13748_v54 = vld [vmem:[%s24435_s1 + $0x88] sm:$0xff]   ;;  %v25640_v24 = vunpack.i.l.bf16 %v18238_v7 }
 0x1ec   :  { %25619 = vst [vmem:[#allocation31_spill] sm:$0xff] %v18593_v40  ;;  %v18596_v42 = vpop.permute.xlu1 %11967  ;;  %v18598_v49 = vpop.permute.xlu0 %11962  ;;  %v18615_v1 = vpack.i.bf16 %v13747_v51, %v13746_v23  ;;  %3846 = vmatpush1.bf16.msra.mxu0 %v3555_v9  ;;  %12252 = vrot.lane.b32.xlu0 %v18588_v36, %s13994_s15  ;;  %v18661_v23 = vld [vmem:[%s24434_s0 + $0x2f0] sm:$0xff]  ;;  %v13751_v40 = vld [vmem:[%s24434_s0 + $0x68] sm:$0xff]  ;;  %v13753_v15 = vld [vmem:[%s24435_s1 + $0x98] sm:$0xff]   ;;  %v11935_v7 = vunpack.i.h.bf16 %v18437_v63  ;;  %v25646_v48 = vunpack.i.l.bf16 %v18366_v19  ;;  %v25647_v26 = vunpack.i.h.bf16 %v18366_v19 }
 0x1ed   :  { %3725 = vmatpush1.bf16.msra.mxu1 %v25618_v39  ;;  %25620 = vst [vmem:[#allocation39_spill] sm:$0xff] %v18596_v42  ;;  %v18605_v5 = vpop.f32.mrb[15].mxu1  ;;  %12257 = vrot.lane.b32.xlu1 %v18576_v27, %s13994_s15  ;;  %v25627_v39 = vld [vmem:[#allocation8_spill] sm:$0xff]  ;;  %25628 = vst [vmem:[#allocation75_spill] sm:$0xff] %v18661_v23  ;;  %v25652_v19 = vunpack.i.h.bf16 %v18364_v41 }
 0x1ee   :  { %3726 = vmatprep.subr.bf16.mxu1 %v3536_v57  ;;  %25621 = vst [vmem:[#allocation28_spill] sm:$0xff] %v18605_v5  ;;  %25622 = vst [vmem:[#allocation29_spill] sm:$0xff] %v18615_v1  ;;  %4634 = vmatprep.subr.bf16.mxu0 %v4539_v25  ;;  %v25633_v5 = vld [vmem:[#allocation33_spill] sm:$0xff]  ;;  %v25635_v30 = vld [vmem:[#allocation56_spill] sm:$0xff] }
 0x1ef   :  { %3678 = vmatmul.mubr.bf16.gmra.mrb[48].mxu0 %v18603_v13  ;;  %2732 = vmatmul.mubr.bf16.gmra.mrb[36].mxu1 %v13748_v54  ;;  %v13750_v54 = vld [vmem:[%s24435_s1 + $0x90] sm:$0xff]  }
 0x1f0   :  { %v18623_v57 = vpop.permute.xlu1 %11977  ;;  %v18625_v8 = vpop.permute.xlu0 %11972  ;;  %3687 = vmatprep.mubr.bf16.mxu0 %v25022_v46  ;;  %12262 = vrot.lane.b32.xlu0 %v17570_v20, %s13994_s15  ;;  %v25625_v20 = vld [vmem:[#allocation3_spill] sm:$0xff] }
 0x1f1   :  { %3727 = vmatpush1.bf16.msra.mxu1 %v25623_v37  ;;  %12267 = vrot.lane.b32.xlu1 %v18615_v1, %s13994_s15  ;;  %v25630_v37 = vld [vmem:[#allocation44_spill] sm:$0xff]  ;;  %v11949_v1 = vunpack.i.l.bf16 %v18488_v28 }
 0x1f2   :  { %2741 = vmatprep.mubr.bf16.mxu1 %v25022_v46 }
 0x1f4   :  { %v18637_v31 = vpop.permute.xlu1 %11987  ;;  %v18639_v9 = vpop.permute.xlu0 %11982  ;;  %12272 = vrot.lane.b32.xlu0 %v25625_v20, %s13994_s15 }
 0x1f5   :  { %25624 = vst [vmem:[#allocation85_spill] sm:$0xff] %v18639_v9  ;;  %12277 = vrot.lane.b32.xlu1 %v17578_v18, %s13994_s15  ;;  %v25629_v18 = vld [vmem:[#allocation5_spill] sm:$0xff] }
 0x1f6   :  { %v12296_v51 = vpack.i.bf16 %v18661_v23, %v25629_v18  ;;  %v25631_v18 = vld [vmem:[#allocation43_spill] sm:$0xff]  ;;  %v25655_v23 = vunpack.i.h.bf16 %v18435_v14 }
 0x1f7   :  { %3688 = vmatmul.mubr.bf16.gmra.mrb[52].mxu0 %v18644_v2  ;;  %2742 = vmatmul.mubr.bf16.gmra.mrb[40].mxu1 %v13750_v54 }
 0x1f8   :  { %v18651_v21 = vpop.permute.xlu1 %11997  ;;  %v18653_v25 = vpop.permute.xlu0 %11992  ;;  %3697 = vmatprep.mubr.bf16.mxu0 %v25022_v46  ;;  %12282 = vrot.lane.b32.xlu0 %v25630_v37, %s13994_s15 }
 0x1f9   :  { %25626 = vst [vmem:[#allocation6_spill] sm:$0xff] %v18651_v21  ;;  %12287 = vrot.lane.b32.xlu1 %v25627_v39, %s13994_s15  ;;  %2751 = vmatprep.mubr.bf16.mxu1 %v25022_v46 }
 0x1fc   :  { %v18671_v20 = vpop.permute.xlu1 %12007  ;;  %v18673_v39 = vpop.permute.xlu0 %12002  ;;  %12292 = vrot.lane.b32.xlu0 %v25631_v18, %s13994_s15 }
 0x1fd   :  { %12297 = vrot.lane.b32.xlu1 %v12296_v51, %s13994_s15  ;;  %v13752_v51 = vld [vmem:[%s24434_s0 + $0x98] sm:$0xff] }
 0x1fe   :  { %v18697_v18 = vpack.i.bf16 %v13752_v51, %v13751_v40  ;;  %v18714_v40 = vld [vmem:[%s24435_s1 + $0xf8] sm:$0xff]  }
 0x1ff   :  { %3698 = vmatmul.mubr.bf16.gmra.mrb[56].mxu0 %v18678_v3  ;;  %2752 = vmatmul.mubr.bf16.gmra.mrb[44].mxu1 %v13753_v15  ;;  %v13754_v15 = vld [vmem:[%s24434_s0 + $0x60] sm:$0xff] }
 0x200   :  { %v18684_v37 = vpop.permute.xlu1 %12017  ;;  %v18686_v54 = vpop.permute.xlu0 %12012  ;;  %3707 = vmatprep.mubr.bf16.mxu0 %v25022_v46  ;;  %25634 = vst [vmem:[#allocation41_spill] sm:$0xff] %v18697_v18  ;;  %12302 = vrot.lane.b32.xlu0 %v25635_v30, %s13995_s12  ;;  %v13755_v30 = vld [vmem:[%s24434_s0 + $0x90] sm:$0xff] }
 0x201   :  { %25632 = vst [vmem:[#allocation76_spill] sm:$0xff] %v18686_v54  ;;  %12307 = vrot.lane.b32.xlu1 %v25633_v5, %s13995_s12  ;;  %2761 = vmatprep.mubr.bf16.mxu1 %v25022_v46  ;;  %v18724_v51 = vpack.i.bf16 %v13755_v30, %v13754_v15  ;;  %v11920_v5 = vunpack.i.h.bf16 %v18299_v29  ;;  %v13757_v15 = vld [vmem:[%s24434_s0 + $0xf8] sm:$0xff]  ;;  %v25641_v29 = vunpack.i.l.bf16 %v18301_v58 }
 0x202   :  { %v18738_v30 = vpack.i.bf16 %v13757_v15, %v13756_v56 }
 0x203   :  { %25637 = vst [vmem:[#allocation79_spill] sm:$0xff] %v18724_v51  ;;  %v4393_v44 = vsel %vm4328_vm3, %v25641_v29, %v25640_v24  ;;  %v11934_v29 = vunpack.i.l.bf16 %v18437_v63  ;;  %v4379_v24 = vsel %vm4328_vm3, %v11919_v0, %v25646_v48  ;;  %v4380_v63 = vsel %vm4328_vm3, %v11920_v5, %v25647_v26  ;;  %v13758_v48 = vld [vmem:[%s24434_s0 + $0xc0] sm:$0xff]  ;;  %v13759_v26 = vld [vmem:[%s24434_s0 + $0xf0] sm:$0xff] }
 0x204   :  { %v18707_v60 = vpop.permute.xlu1 %12027  ;;  %v18709_v53 = vpop.permute.xlu0 %12022  ;;  %12312 = vrot.lane.b32.xlu0 %v25638_v55, %s13995_s12  ;;  %25639 = vst [vmem:[#allocation9_spill] sm:$0xff] %v18738_v30  ;;  %v25643_v55 = vunpack.i.h.bf16 %v18301_v58 }
 0x205   :  { %25636 = vst [vmem:[#allocation42_spill] sm:$0xff] %v18707_v60  ;;  %12317 = vrot.lane.b32.xlu1 %v18697_v18, %s13995_s12  ;;  %v4545_v18 = vpack.c.bf16 %v4380_v63, %v4379_v24  ;;  %v25657_v24 = vunpack.i.h.bf16 %v18490_v33 }
 0x206   :  { %v4394_v62 = vsel %vm4328_vm3, %v25643_v55, %v25642_v52  ;;  %v25649_v52 = vunpack.i.l.bf16 %v18364_v41 }
 0x207   :  { %3708 = vmatmul.mubr.bf16.gmra.mrb[60].mxu0 %v18714_v40  ;;  %2762 = vmatmul.mubr.bf16.gmra.mrb[48].mxu1 %v25648_v10  ;;  %v18794_v10 = vpack.i.bf16 %v13759_v26, %v13758_v48  ;;  %v4382_v48 = vsel %vm4328_vm3, %v11935_v7, %v25655_v23  ;;  %v11950_v26 = vunpack.i.h.bf16 %v18488_v28  ;;  %v18822_v63 = vsel %vm4328_vm3, %v25657_v24, %v11935_v7  ;;  %v25658_v24 = vld [vmem:[#allocation66_spill] sm:$0xff]  ;;  %v25660_v23 = vld [vmem:[#allocation51_spill] sm:$0xff] }
 0x208   :  { %v18755_v56 = vpop.permute.xlu1 %12037  ;;  %v18757_v15 = vpop.permute.xlu0 %12032  ;;  %3863 = vmatprep.mubr.bf16.mxu0 %v25022_v46  ;;  %12322 = vrot.lane.b32.xlu0 %v25645_v43, %s13995_s12  ;;  %v4395_v55 = vsel %vm4328_vm3, %v25649_v52, %v11919_v0  ;;  %v4396_v0 = vsel %vm4328_vm3, %v25652_v19, %v11920_v5  ;;  %v25653_v52 = vld [vmem:[#allocation50_spill] sm:$0xff]  ;;  %v25656_v19 = vunpack.i.l.bf16 %v18490_v33  ;;  %v11964_v7 = vunpack.i.l.bf16 %v18598_v49 }
 0x209   :  { %25644 = vst [vmem:[#allocation32_spill] sm:$0xff] %v18755_v56  ;;  %12327 = vrot.lane.b32.xlu1 %v18724_v51, %s13995_s12  ;;  %2771 = vmatprep.mubr.bf16.mxu1 %v25022_v46  ;;  %v4538_v51 = vpack.c.bf16 %v4394_v62, %v4393_v44  ;;  %25651 = vst [vmem:[#allocation78_spill] sm:$0xff] %v18794_v10  ;;  %v25654_v62 = vunpack.i.l.bf16 %v18435_v14  ;;  %v11965_v14 = vunpack.i.h.bf16 %v18598_v49 }
 0x20a   :  { %v18816_v5 = vsel %vm4328_vm3, %v25656_v19, %v11934_v29  ;;  %v4544_v28 = vpack.c.bf16 %v4396_v0, %v4395_v55  ;;  %v13761_v19 = vld [vmem:[%s24434_s0 + $0x150] sm:$0xff]  ;;  %v25662_v0 = vunpack.i.h.bf16 %v18562_v35 }
 0x20b   :  { %v4381_v44 = vsel %vm4328_vm3, %v11934_v29, %v25654_v62  ;;  %v24727_v62 = vunpack.i.l.bf16 %v18564_v47  ;;  %v13760_v29 = vld [vmem:[%s24434_s0 + $0x120] sm:$0xff] }
 0x20c   :  { %v18784_v43 = vpop.permute.xlu1 %12047  ;;  %v18786_v12 = vpop.permute.xlu0 %12042  ;;  %12332 = vrot.lane.b32.xlu0 %v18738_v30, %s13995_s12  ;;  %v18847_v49 = vpack.i.bf16 %v13761_v19, %v13760_v29 }
 0x20d   :  { %25650 = vst [vmem:[#allocation47_spill] sm:$0xff] %v18784_v43  ;;  %12337 = vrot.lane.b32.xlu1 %v25653_v52, %s13995_s12  ;;  %v24726_v52 = vunpack.i.l.bf16 %v18562_v35  ;;  %v24740_v35 = vunpack.i.l.bf16 %v18637_v31 }
 0x20e   :  { %25661 = vst [vmem:[#allocation3_spill] sm:$0xff] %v18847_v49 }
 0x20f   :  { %3864 = vmatmul.mubr.bf16.vlgmr.msra.gmra.mrb[16].mxu0 %v25658_v24  ;;  %v4551_v24 = vpack.c.bf16 %v4382_v48, %v4381_v44  ;;  %v4399_v55 = vsel %vm4328_vm3, %v24726_v52, %v11949_v1  ;;  %v25663_v44 = vunpack.i.h.bf16 %v18564_v47  ;;  %v25667_v47 = vld [vmem:[#allocation80_spill] sm:$0xff] }
 0x210   :  { %v18835_v33 = vpop.permute.xlu1 %12057  ;;  %v18837_v30 = vpop.permute.xlu0 %12052  ;;  %4635 = vmatpush1.bf16.msra.mxu0 %v4538_v51  ;;  %12342 = vrot.lane.b32.xlu0 %v18794_v10, %s13995_s12  ;;  %v4550_v51 = vpack.c.bf16 %v18822_v63, %v18816_v5  ;;  %v25672_v63 = vunpack.i.h.bf16 %v18625_v8 }
 0x211   :  { %25659 = vst [vmem:[#allocation77_spill] sm:$0xff] %v18835_v33  ;;  %12347 = vrot.lane.b32.xlu1 %v25660_v23, %s13995_s12  ;;  %4636 = vmatprep.subr.bf16.mxu0 %v4545_v18  ;;  %v4400_v23 = vsel %vm4328_vm3, %v25662_v0, %v11950_v26  ;;  %v4383_v18 = vsel %vm4328_vm3, %v11949_v1, %v24727_v62  ;;  %v25665_v0 = vunpack.i.l.bf16 %v18596_v42  ;;  %v25666_v1 = vunpack.i.h.bf16 %v18596_v42 }
 0x212   :  { %3873 = vmatprep.mubr.bf16.mxu0 %v25022_v46  ;;  %v4384_v48 = vsel %vm4328_vm3, %v11950_v26, %v25663_v44  ;;  %2772 = vmatmul.mubr.bf16.gmra.mrb[52].mxu1 %v25667_v47  ;;  %v11980_v26 = vunpack.i.h.bf16 %v18623_v57  ;;  %v11979_v44 = vunpack.i.l.bf16 %v18623_v57  ;;  %v13762_v47 = vld [vmem:[%s24434_s0 + $0x188] sm:$0xff]  ;;  %v13763_v57 = vld [vmem:[%s24434_s0 + $0x1b8] sm:$0xff] }
 0x213   :  { %v4385_v52 = vsel %vm4328_vm3, %v11964_v7, %v25665_v0  ;;  %v4386_v62 = vsel %vm4328_vm3, %v11965_v14, %v25666_v1  ;;  %v25668_v0 = vld [vmem:[#allocation61_spill] sm:$0xff]  ;;  %v4557_v42 = vpack.c.bf16 %v4384_v48, %v4383_v18  ;;  %v18899_v1 = vpack.i.bf16 %v13763_v57, %v13762_v47  ;;  %v13766_v48 = vld [vmem:[%s24434_s0 + $0x180] sm:$0xff]  ;;  %2781 = vmatprep.mubr.bf16.mxu1 %v25022_v46 }
 0x214   :  { %v18872_v29 = vpop.permute.xlu1 %12067  ;;  %v18874_v19 = vpop.permute.xlu0 %12062  ;;  %4637 = vmatpush1.bf16.msra.mxu0 %v4544_v28  ;;  %12352 = vrot.lane.b32.xlu0 %v25668_v0, %s13995_s12  ;;  %v18904_v28 = vld [vmem:[%s24434_s0 + $0x228] sm:$0xff]  ;;  %v13767_v0 = vld [vmem:[%s24434_s0 + $0x1b0] sm:$0xff]  ;;  %v25671_v57 = vunpack.i.l.bf16 %v18625_v8 }
 0x215   :  { %25664 = vst [vmem:[#allocation8_spill] sm:$0xff] %v18874_v19  ;;  %12357 = vrot.lane.b32.xlu1 %v18847_v49, %s13995_s12  ;;  %4638 = vmatprep.subr.bf16.mxu0 %v4551_v24  ;;  %v18909_v24 = vld [vmem:[%s24434_s0 + $0x258] sm:$0xff]  ;;  %v18919_v47 = vpack.i.bf16 %v13767_v0, %v13766_v48  ;;  %v4402_v49 = vsel %vm4328_vm3, %v25672_v63, %v11965_v14  ;;  %v24741_v19 = vunpack.i.h.bf16 %v18637_v31 }
 0x216   :  { %25669 = vst [vmem:[#allocation5_spill] sm:$0xff] %v18909_v24  ;;  %v12376_v18 = vpack.i.bf16 %v18909_v24, %v18904_v28  ;;  %v4401_v5 = vsel %vm4328_vm3, %v25671_v57, %v11964_v7  ;;  %v4556_v48 = vpack.c.bf16 %v4400_v23, %v4399_v55  ;;  %v4563_v0 = vpack.c.bf16 %v4386_v62, %v4385_v52  ;;  %v25674_v7 = vld [vmem:[#allocation58_spill] sm:$0xff]  ;;  %v25678_v52 = vld [vmem:[#allocation52_spill] sm:$0xff] }
 0x217   :  { %25670 = vst [vmem:[#allocation44_spill] sm:$0xff] %v18919_v47  ;;  %3874 = vmatmul.mubr.bf16.gmra.mrb[20].mxu0 %v18243_v32  ;;  %v25675_v57 = vunpack.i.l.bf16 %v18639_v9  ;;  %v25676_v32 = vunpack.i.h.bf16 %v18639_v9  ;;  %v11995_v55 = vunpack.i.h.bf16 %v18653_v25  ;;  %v13771_v9 = vld [vmem:[%s24434_s0 + $0x1e0] sm:$0xff] }
 0x218   :  { %v18931_v10 = vpop.permute.xlu1 %12077  ;;  %v18933_v24 = vpop.permute.xlu0 %12072  ;;  %4639 = vmatpush1.bf16.msra.mxu0 %v4550_v51  ;;  %v11994_v51 = vunpack.i.l.bf16 %v18653_v25  ;;  %12362 = vrot.lane.b32.xlu0 %v18899_v1, %s13995_s12  ;;  %v25679_v25 = vld [vmem:[#allocation55_spill] sm:$0xff] }
 0x219   :  { %25673 = vst [vmem:[#allocation43_spill] sm:$0xff] %v18931_v10  ;;  %12367 = vrot.lane.b32.xlu1 %v25674_v7, %s13995_s12  ;;  %v4387_v14 = vsel %vm4328_vm3, %v11979_v44, %v25675_v57  ;;  %v4388_v63 = vsel %vm4328_vm3, %v11980_v26, %v25676_v32  ;;  %4640 = vmatprep.subr.bf16.mxu0 %v4557_v42  ;;  %v18961_v32 = vld [vmem:[%s24434_s0 + $0x1e8] sm:$0xff] }
 0x21a   :  { %3883 = vmatprep.mubr.bf16.mxu0 %v25022_v46  ;;  %v4562_v57 = vpack.c.bf16 %v4402_v49, %v4401_v5  ;;  %25677 = vst [vmem:[#allocation33_spill] sm:$0xff] %v18961_v32  ;;  %v12381_v62 = vpack.i.bf16 %v25678_v52, %v18961_v32  ;;  %2782 = vmatmul.mubr.bf16.gmra.mrb[56].mxu1 %v25679_v25  ;;  %v25680_v25 = vunpack.i.l.bf16 %v18651_v21  ;;  %v13772_v52 = vld [vmem:[%s24434_s0 + $0x210] sm:$0xff]  ;;  %v25686_v32 = vunpack.i.h.bf16 %v18673_v39 }
 0x21b   :  { %v4403_v42 = vsel %vm4328_vm3, %v24740_v35, %v11979_v44  ;;  %v4404_v49 = vsel %vm4328_vm3, %v24741_v19, %v11980_v26  ;;  %v4569_v5 = vpack.c.bf16 %v4388_v63, %v4387_v14  ;;  %v25681_v35 = vunpack.i.h.bf16 %v18651_v21  ;;  %2791 = vmatprep.mubr.bf16.mxu1 %v25022_v46 }
 0x21c   :  { %v18954_v23 = vpop.permute.xlu1 %12087  ;;  %v18956_v7 = vpop.permute.xlu0 %12082  ;;  %4641 = vmatpush1.bf16.msra.mxu0 %v4556_v48  ;;  %12372 = vrot.lane.b32.xlu0 %v18919_v47, %s13995_s12  ;;  %v4389_v44 = vsel %vm4328_vm3, %v11994_v51, %v25680_v25  ;;  %v12009_v48 = vunpack.i.l.bf16 %v18671_v20  ;;  %v4568_v14 = vpack.c.bf16 %v4404_v49, %v4403_v42  ;;  %v19017_v21 = vpack.i.bf16 %v13772_v52, %v13771_v9 }
 0x21d   :  { %12377 = vrot.lane.b32.xlu1 %v12376_v18, %s13992_s21  ;;  %4642 = vmatprep.subr.bf16.mxu0 %v4563_v0  ;;  %v4390_v26 = vsel %vm4328_vm3, %v11995_v55, %v25681_v35  ;;  %v12010_v18 = vunpack.i.h.bf16 %v18671_v20  ;;  %v19000_v35 = vld [vmem:[%s24434_s0 + $0x288] sm:$0xff]  ;;  %v19005_v20 = vld [vmem:[%s24434_s0 + $0x2b8] sm:$0xff]  ;;  %v25685_v47 = vunpack.i.l.bf16 %v18673_v39  ;;  %v4406_v42 = vsel %vm4328_vm3, %v25686_v32, %v11995_v55 }
 0x21e   :  { %v12396_v19 = vpack.i.bf16 %v19005_v20, %v19000_v35  ;;  %v4575_v0 = vpack.c.bf16 %v4390_v26, %v4389_v44  ;;  %25684 = vst [vmem:[#allocation48_spill] sm:$0xff] %v19017_v21  ;;  %v24746_v49 = vunpack.i.h.bf16 %v18684_v37  ;;  %v24747_v44 = vunpack.i.l.bf16 %v18684_v37 }
 0x21f   :  { %3884 = vmatmul.mubr.bf16.gmra.mrb[24].mxu0 %v18373_v50  ;;  %v25683_v50 = vld [vmem:[#allocation64_spill] sm:$0xff]  ;;  %v25687_v9 = vunpack.i.l.bf16 %v18686_v54 }
 0x220   :  { %v18993_v63 = vpop.permute.xlu1 %12097  ;;  %v18995_v25 = vpop.permute.xlu0 %12092  ;;  %4643 = vmatpush1.bf16.msra.mxu0 %v4562_v57  ;;  %v4405_v57 = vsel %vm4328_vm3, %v25685_v47, %v11994_v51  ;;  %12382 = vrot.lane.b32.xlu0 %v12381_v62, %s13995_s12  ;;  %v25688_v47 = vunpack.i.h.bf16 %v18686_v54  ;;  %v12025_v62 = vunpack.i.h.bf16 %v18709_v53  ;;  %v25705_v54 = vunpack.i.l.bf16 %v18707_v60 }
 0x221   :  { %25682 = vst [vmem:[#allocation56_spill] sm:$0xff] %v18993_v63  ;;  %12387 = vrot.lane.b32.xlu1 %v25683_v50, %s13995_s12  ;;  %4644 = vmatprep.subr.bf16.mxu0 %v4569_v5  ;;  %v4391_v52 = vsel %vm4328_vm3, %v12009_v48, %v25687_v9  ;;  %v24748_v5 = vunpack.i.l.bf16 %v18709_v53  ;;  %v4574_v26 = vpack.c.bf16 %v4406_v42, %v4405_v57  ;;  %v25691_v57 = vunpack.i.h.bf16 %v18301_v58  ;;  %v25692_v42 = vld [vmem:[#allocation65_spill] sm:$0xff] }
 0x222   :  { %3893 = vmatprep.mubr.bf16.mxu0 %v25022_v46  ;;  %v4392_v51 = vsel %vm4328_vm3, %v12010_v18, %v25688_v47  ;;  %2792 = vmatmul.mubr.bf16.gmra.mrb[60].mxu1 %v18067_v22  ;;  %v4407_v50 = vsel %vm4328_vm3, %v24747_v44, %v12009_v48  ;;  %v4408_v9 = vsel %vm4328_vm3, %v24746_v49, %v12010_v18  ;;  %v25690_v18 = vunpack.i.l.bf16 %v18301_v58  ;;  %v13784_v49 = vld [vmem:[%s24434_s0 + $0x138] sm:$0xff] }
 0x223   :  { %v4581_v22 = vpack.c.bf16 %v4392_v51, %v4391_v52  ;;  %3750 = vmatprep.mubr.bf16.mxu1 %v25022_v46  ;;  %v4580_v48 = vpack.c.bf16 %v4408_v9, %v4407_v50  ;;  %v13774_v52 = vld [vmem:[%s24434_s0 + $0x270] sm:$0xff]  ;;  %v19095_v50 = vld [vmem:[%s24434_s0 + $0x2e8] sm:$0xff] }
 0x224   :  { %v19039_v55 = vpop.permute.xlu1 %12107  ;;  %v19041_v32 = vpop.permute.xlu0 %12102  ;;  %4645 = vmatpush1.bf16.msra.mxu0 %v4568_v14  ;;  %12392 = vrot.lane.b32.xlu0 %v19017_v21, %s13995_s12 }
 0x225   :  { %25689 = vst [vmem:[#allocation46_spill] sm:$0xff] %v19039_v55  ;;  %12397 = vrot.lane.b32.xlu1 %v12396_v19, %s13992_s21  ;;  %4646 = vmatprep.subr.bf16.mxu0 %v4575_v0  ;;  %v4409_v0 = vsel %vm4328_vm3, %v24748_v5, %v25690_v18  ;;  %v13777_v18 = vld [vmem:[%s24434_s0 + $0x48] sm:$0xff]  ;;  %v12035_v5 = vunpack.i.h.bf16 %v18757_v15 }
 0x227   :  { %3894 = vmatmul.mubr.bf16.gmra.mrb[28].mxu0 %v18495_v61  ;;  %v4410_v61 = vsel %vm4328_vm3, %v12025_v62, %v25691_v57  ;;  %v13778_v57 = vld [vmem:[%s24434_s0 + $0x2a0] sm:$0xff] }
 0x228   :  { %v19059_v19 = vpop.permute.xlu1 %12117  ;;  %v19061_v14 = vpop.permute.xlu0 %12112  ;;  %4647 = vmatpush1.bf16.msra.mxu0 %v4574_v26  ;;  %12402 = vrot.lane.b32.xlu0 %v25692_v42, %s13995_s12  ;;  %v4543_v58 = vpack.c.bf16 %v4410_v61, %v4409_v0 }
 0x229   :  { %12407 = vrot.lane.b32.xlu1 %v18173_v11, %s13995_s12  ;;  %4648 = vmatprep.subr.bf16.mxu0 %v4581_v22  ;;  %v13773_v11 = vld [vmem:[%s24434_s0 + $0x240] sm:$0xff] }
 0x22a   :  { %v19085_v47 = vpack.i.bf16 %v13774_v52, %v13773_v11  ;;  %3903 = vmatprep.mubr.bf16.mxu0 %v25022_v46 }
 0x22c   :  { %25693 = vst [vmem:[#allocation34_spill] sm:$0xff] %v19085_v47  ;;  %v19088_v51 = vpop.permute.xlu1 %12127  ;;  %v19090_v26 = vpop.permute.xlu0 %12122  ;;  %4649 = vmatpush1.bf16.msra.mxu0 %v4580_v48  ;;  %12412 = vrot.lane.b32.xlu0 %v19085_v47, %s13995_s12  ;;  %v13776_v48 = vld [vmem:[%s24434_s0 + $0x18] sm:$0xff]  ;;  %v13788_v47 = vld [vmem:[%s24434_s0 + $0x1a8] sm:$0xff] }
 0x22d   :  { %25694 = vst [vmem:[#allocation50_spill] sm:$0xff] %v19090_v26  ;;  %3233 = vrot.lane.b32.xlu1 %v19095_v50, %s13992_s21  ;;  %4860 = vmatprep.subr.bf16.mxu0 %v4543_v58  ;;  %v19115_v0 = vpack.i.bf16 %v13777_v18, %v13776_v48  ;;  %v13780_v48 = vld [vmem:[%s24434_s0 + $0x78] sm:$0xff] }
 0x22f   :  { %3904 = vmatmul.mubr.bf16.gmra.mrb[32].mxu0 %v18603_v13  ;;  %v25696_v13 = vld [vmem:[#allocation36_spill] sm:$0xff] }
 0x230   :  { %v19102_v9 = vpop.permute.xlu1 %12137  ;;  %v19104_v22 = vpop.permute.xlu0 %12132  ;;  %3913 = vmatprep.mubr.bf16.mxu0 %v25022_v46  ;;  %12417 = vrot.lane.b32.xlu0 %v25696_v13, %s13995_s12 }
 0x231   :  { %25695 = vst [vmem:[#allocation66_spill] sm:$0xff] %v19102_v9  ;;  %12422 = vrot.lane.b32.xlu1 %v18293_v6, %s13995_s12  ;;  %v13779_v6 = vld [vmem:[%s24434_s0 + $0x2d0] sm:$0xff] }
 0x232   :  { %v19125_v61 = vpack.i.bf16 %v13779_v6, %v13778_v57 }
 0x234   :  { %25697 = vst [vmem:[#allocation51_spill] sm:$0xff] %v19125_v61  ;;  %v19127_v42 = vpop.permute.xlu1 %12147  ;;  %v19129_v11 = vpop.permute.xlu0 %12142  ;;  %12427 = vrot.lane.b32.xlu0 %v19125_v61, %s13995_s12 }
 0x235   :  { %12432 = vrot.lane.b32.xlu1 %v19115_v0, %s13993_s10 }
 0x237   :  { %3914 = vmatmul.mubr.bf16.gmra.mrb[36].mxu0 %v18644_v2  ;;  %v13781_v2 = vld [vmem:[%s24434_s0 + $0xa8] sm:$0xff] }
 0x238   :  { %v19136_v52 = vpop.permute.xlu1 %12157  ;;  %v19138_v58 = vpop.permute.xlu0 %12152  ;;  %3923 = vmatprep.mubr.bf16.mxu0 %v25022_v46  ;;  %12437 = vrot.lane.b32.xlu0 %v18362_v16, %s13995_s12  ;;  %v19151_v18 = vpack.i.bf16 %v13781_v2, %v13780_v48  ;;  %v13783_v16 = vld [vmem:[%s24434_s0 + $0x108] sm:$0xff] }
 0x239   :  { %25698 = vst [vmem:[#allocation80_spill] sm:$0xff] %v19138_v58  ;;  %12442 = vrot.lane.b32.xlu1 %v18330_v34, %s13995_s12  ;;  %v13782_v34 = vld [vmem:[%s24434_s0 + $0xd8] sm:$0xff] }
 0x23a   :  { %v19165_v6 = vpack.i.bf16 %v13783_v16, %v13782_v34 }
 0x23c   :  { %v19153_v13 = vpop.permute.xlu1 %12167  ;;  %v19155_v57 = vpop.permute.xlu0 %12162  ;;  %12447 = vrot.lane.b32.xlu0 %v19151_v18, %s13993_s10 }
 0x23d   :  { %25699 = vst [vmem:[#allocation61_spill] sm:$0xff] %v19153_v13  ;;  %12452 = vrot.lane.b32.xlu1 %v18431_v38, %s13995_s12 }
 0x23f   :  { %3924 = vmatmul.mubr.bf16.gmra.mrb[40].mxu0 %v18678_v3 }
 0x240   :  { %v19170_v48 = vpop.permute.xlu1 %12177  ;;  %v19172_v2 = vpop.permute.xlu0 %12172  ;;  %3933 = vmatprep.mubr.bf16.mxu0 %v25022_v46  ;;  %12457 = vrot.lane.b32.xlu0 %v18423_v4, %s13995_s12  ;;  %v13785_v4 = vld [vmem:[%s24434_s0 + $0x168] sm:$0xff] }
 0x241   :  { %12462 = vrot.lane.b32.xlu1 %v19165_v6, %s13993_s10  ;;  %v19195_v44 = vpack.i.bf16 %v13785_v4, %v13784_v49  ;;  %v13787_v49 = vld [vmem:[%s24434_s0 + $0x1c8] sm:$0xff] }
 0x244   :  { %v19179_v38 = vpop.permute.xlu1 %12187  ;;  %v19181_v34 = vpop.permute.xlu0 %12182  ;;  %12467 = vrot.lane.b32.xlu0 %v18540_v17, %s13995_s12  ;;  %v13786_v17 = vld [vmem:[%s24434_s0 + $0x198] sm:$0xff] }
 0x245   :  { %25700 = vst [vmem:[#allocation58_spill] sm:$0xff] %v19181_v34  ;;  %12472 = vrot.lane.b32.xlu1 %v18503_v59, %s13995_s12  ;;  %v12034_v59 = vunpack.i.l.bf16 %v18757_v15  ;;  %v19213_v15 = vpack.i.bf16 %v13787_v49, %v13786_v17  ;;  %v12045_v17 = vunpack.i.h.bf16 %v18786_v12  ;;  %v12044_v49 = vunpack.i.l.bf16 %v18786_v12 }
 0x246   :  { %v12055_v34 = vunpack.i.h.bf16 %v18837_v30 }
 0x247   :  { %3934 = vmatmul.mubr.bf16.gmra.mrb[44].mxu0 %v18714_v40  ;;  %v25703_v40 = vunpack.i.h.bf16 %v18707_v60  ;;  %v13789_v60 = vld [vmem:[%s24434_s0 + $0x1d8] sm:$0xff] }
 0x248   :  { %v19200_v16 = vpop.permute.xlu1 %12197  ;;  %v19202_v3 = vpop.permute.xlu0 %12192  ;;  %4666 = vmatprep.mubr.bf16.mxu0 %v25022_v46  ;;  %12477 = vrot.lane.b32.xlu0 %v19195_v44, %s13993_s10 }
 0x249   :  { %25701 = vst [vmem:[#allocation52_spill] sm:$0xff] %v19200_v16  ;;  %25702 = vst [vmem:[#allocation55_spill] sm:$0xff] %v19202_v3  ;;  %12482 = vrot.lane.b32.xlu1 %v18588_v36, %s13995_s12  ;;  %v4330_v4 = vsel %vm4328_vm3, %v25703_v40, %v12025_v62  ;;  %v25704_v36 = vunpack.i.l.bf16 %v18709_v53  ;;  %v19240_v53 = vld [vmem:[%s24435_s1 + $0x100] sm:$0xff]  }
 0x24b   :  { %v4329_v61 = vsel %vm4328_vm3, %v25705_v54, %v25704_v36  ;;  %v25708_v54 = vunpack.i.l.bf16 %v18364_v41  ;;  %v25709_v36 = vunpack.i.h.bf16 %v18364_v41 }
 0x24c   :  { %v19233_v16 = vpop.permute.xlu1 %12207  ;;  %v19235_v62 = vpop.permute.xlu0 %12202  ;;  %v4542_v12 = vpack.c.bf16 %v4330_v4, %v4329_v61  ;;  %12487 = vrot.lane.b32.xlu0 %v18576_v27, %s13995_s12  ;;  %v13790_v61 = vld [vmem:[%s24434_s0 + $0x208] sm:$0xff] }
 0x24d   :  { %25706 = vst [vmem:[#allocation64_spill] sm:$0xff] %v19233_v16  ;;  %25707 = vst [vmem:[#allocation65_spill] sm:$0xff] %v19235_v62  ;;  %v4411_v40 = vsel %vm4328_vm3, %v12034_v59, %v25708_v54  ;;  %v4412_v3 = vsel %vm4328_vm3, %v12035_v5, %v25709_v36  ;;  %12492 = vrot.lane.b32.xlu1 %v19213_v15, %s13993_s10  ;;  %v12496_v16 = vpack.i.bf16 %v13789_v60, %v13788_v47 }
 0x24e   :  { %v25710_v54 = vunpack.i.h.bf16 %v18755_v56  ;;  %v25711_v36 = vunpack.i.l.bf16 %v18755_v56  ;;  %v4549_v47 = vpack.c.bf16 %v4412_v3, %v4411_v40  ;;  %v19287_v40 = vpop.f32.mrb[64].mxu1 }
 0x24f   :  { %4667 = vmatmul.mubr.bf16.vlgmr.msra.gmra.mrb[0].mxu0 %v19240_v53 }
 0x250   :  { %v4332_v41 = vsel %vm4328_vm3, %v25710_v54, %v12035_v5  ;;  %v4331_v62 = vsel %vm4328_vm3, %v25711_v36, %v12034_v59  ;;  %v12054_v5 = vunpack.i.l.bf16 %v18837_v30  ;;  %v19275_v54 = vpop.permute.xlu1 %12217  ;;  %v19277_v59 = vpop.permute.xlu0 %12212  ;;  %v25713_v36 = vld [vmem:[#allocation73_spill] sm:$0xff]  ;;  %4861 = vmatpush1.bf16.msra.mxu0 %v4542_v12  ;;  %v25719_v12 = vunpack.i.l.bf16 %v18784_v43  ;;  %12497 = vrot.lane.b32.xlu0 %v12496_v16, %s13995_s12 }
 0x251   :  { %25712 = vst [vmem:[#allocation36_spill] sm:$0xff] %v19275_v54  ;;  %v25714_v4 = vunpack.i.l.bf16 %v25713_v36  ;;  %v25715_v21 = vunpack.i.h.bf16 %v25713_v36  ;;  %25716 = vst [vmem:[#allocation73_spill] sm:$0xff] %v19287_v40  ;;  %v25717_v30 = vld [vmem:[#allocation29_spill] sm:$0xff]  ;;  %v4548_v60 = vpack.c.bf16 %v4332_v41, %v4331_v62  ;;  %v25718_v36 = vunpack.i.h.bf16 %v18784_v43  ;;  %4862 = vmatprep.subr.bf16.mxu0 %v4549_v47  ;;  %v19306_v62 = vpop.f32.mrb[65].mxu1  ;;  %v13792_v41 = vld [vmem:[%s24434_s0 + $0x1f8] sm:$0xff]  ;;  %4676 = vmatprep.mubr.bf16.mxu0 %v25022_v46 }
 0x252   :  { %12502 = vrot.lane.b32.xlu1 %v25717_v30, %s13995_s12  ;;  %v4333_v30 = vsel %vm4328_vm3, %v25719_v12, %v12044_v49  ;;  %25720 = vst [vmem:[#allocation29_spill] sm:$0xff] %v19306_v62  ;;  %v19324_v47 = vpop.f32.mrb[66].mxu1  ;;  %v25726_v40 = vld [vmem:[#allocation83_spill] sm:$0xff] }
 0x253   :  { %v4413_v27 = vsel %vm4328_vm3, %v12044_v49, %v25714_v4  ;;  %v4414_v3 = vsel %vm4328_vm3, %v12045_v17, %v25715_v21  ;;  %v13791_v4 = vld [vmem:[%s24434_s0 + $0x238] sm:$0xff]  ;;  %v4334_v21 = vsel %vm4328_vm3, %v25718_v36, %v12045_v17  ;;  %v25722_v49 = vunpack.i.l.bf16 %v18835_v33  ;;  %25723 = vst [vmem:[#allocation86_spill] sm:$0xff] %v19324_v47 }
 0x254   :  { %v12511_v56 = vpack.i.bf16 %v13791_v4, %v13790_v61  ;;  %v19312_v61 = vpack.i.bf16 %v18904_v28, %v13792_v41  ;;  %v25721_v4 = vunpack.i.h.bf16 %v18835_v33  ;;  %v4555_v36 = vpack.c.bf16 %v4414_v3, %v4413_v27  ;;  %v19329_v41 = vpop.permute.xlu1 %12227  ;;  %v19331_v62 = vpop.permute.xlu0 %12222  ;;  %v25729_v28 = vld [vmem:[#allocation8_spill] sm:$0xff]  ;;  %4863 = vmatpush1.bf16.msra.mxu0 %v4548_v60  ;;  %v13794_v60 = vld [vmem:[%s24434_s0 + $0x230] sm:$0xff] }
 0x255   :  { %v4335_v16 = vsel %vm4328_vm3, %v25722_v49, %v12054_v5  ;;  %25724 = vst [vmem:[#allocation87_spill] sm:$0xff] %v19329_v41  ;;  %25725 = vst [vmem:[#allocation88_spill] sm:$0xff] %v19331_v62  ;;  %v25727_v49 = vunpack.i.l.bf16 %v25726_v40  ;;  %v25728_v3 = vunpack.i.h.bf16 %v25726_v40  ;;  %v12065_v47 = vunpack.i.h.bf16 %v25729_v28  ;;  %v19348_v33 = vpop.f32.mrb[67].mxu1  ;;  %v25731_v62 = vld [vmem:[#allocation5_spill] sm:$0xff] }
 0x256   :  { %v19318_v17 = vsel %vm4328_vm3, %v25721_v4, %v12055_v34  ;;  %v19336_v4 = vld [vmem:[%s24435_s1 + $0x108] sm:$0xff]   ;;  %v12064_v41 = vunpack.i.l.bf16 %v25729_v28  ;;  %25730 = vst [vmem:[#allocation83_spill] sm:$0xff] %v19348_v33  ;;  %12512 = vrot.lane.b32.xlu1 %v12511_v56, %s13995_s12  ;;  %v4554_v43 = vpack.c.bf16 %v4334_v21, %v4333_v30  ;;  %v19353_v54 = vpack.i.bf16 %v19000_v35, %v25731_v62  ;;  %v13795_v35 = vld [vmem:[%s24434_s0 + $0x260] sm:$0xff]  ;;  %v13796_v21 = vld [vmem:[%s24434_s0 + $0x290] sm:$0xff] }
 0x257   :  { %v4415_v27 = vsel %vm4328_vm3, %v12054_v5, %v25727_v49  ;;  %v4416_v12 = vsel %vm4328_vm3, %v12055_v34, %v25728_v3  ;;  %4864 = vmatprep.subr.bf16.mxu0 %v4555_v36  ;;  %12507 = vrot.lane.b32.xlu0 %v19312_v61, %s13993_s10  ;;  %v13793_v34 = vld [vmem:[%s24434_s0 + $0x200] sm:$0xff]  ;;  %v4560_v40 = vpack.c.bf16 %v19318_v17, %v4335_v16  ;;  %v25733_v62 = vunpack.i.h.bf16 %v18872_v29  ;;  %v13798_v16 = vld [vmem:[%s24434_s0 + $0x298] sm:$0xff]  ;;  %v19437_v33 = vld [vmem:[%s24435_s1 + $0x110] sm:$0xff]  }
 0x258   :  { %v19363_v5 = vpack.i.bf16 %v13794_v60, %v13793_v34  ;;  %v4561_v56 = vpack.c.bf16 %v4416_v12, %v4415_v27  ;;  %v12531_v30 = vpack.i.bf16 %v13796_v21, %v13795_v35  ;;  %v25734_v28 = vunpack.i.l.bf16 %v18872_v29  ;;  %4677 = vmatmul.mubr.bf16.gmra.mrb[4].mxu0 %v19336_v4  ;;  %v19383_v49 = vpop.permute.xlu1 %12237  ;;  %v19385_v27 = vpop.permute.xlu0 %12232 }
 0x259   :  { %v4338_v36 = vsel %vm4328_vm3, %v25733_v62, %v12065_v47  ;;  %v24770_v17 = vunpack.i.h.bf16 %v18931_v10  ;;  %v12075_v3 = vunpack.i.h.bf16 %v18933_v24  ;;  %v12074_v34 = vunpack.i.l.bf16 %v18933_v24  ;;  %4865 = vmatpush1.bf16.msra.mxu0 %v4554_v43  ;;  %v19389_v60 = vpop.f32.mrb[68].mxu1  ;;  %v13797_v24 = vld [vmem:[%s24434_s0 + $0x268] sm:$0xff]  ;;  %4686 = vmatprep.mubr.bf16.mxu0 %v25022_v46 }
 0x25a   :  { %25732 = vst [vmem:[#allocation8_spill] sm:$0xff] %v19363_v5  ;;  %v4337_v12 = vsel %vm4328_vm3, %v25734_v28, %v12064_v41  ;;  %25735 = vst [vmem:[#allocation5_spill] sm:$0xff] %v19389_v60  ;;  %12522 = vrot.lane.b32.xlu1 %v19353_v54, %s13993_s10  ;;  %v25736_v35 = vunpack.i.l.bf16 %v18625_v8  ;;  %v25737_v62 = vunpack.i.h.bf16 %v18625_v8  ;;  %4866 = vmatprep.subr.bf16.mxu0 %v4561_v56  ;;  %v19403_v43 = vpop.f32.mrb[69].mxu1  ;;  %v13800_v56 = vld [vmem:[%s24434_s0 + $0x2f8] sm:$0xff] }
 0x25b   :  { %12517 = vrot.lane.b32.xlu0 %v19363_v5, %s13995_s12  ;;  %25738 = vst [vmem:[#allocation89_spill] sm:$0xff] %v19403_v43  ;;  %v19413_v8 = vpop.f32.mrb[70].mxu1 }
 0x25c   :  { %v4417_v21 = vsel %vm4328_vm3, %v12064_v41, %v25736_v35  ;;  %v4418_v28 = vsel %vm4328_vm3, %v12065_v47, %v25737_v62  ;;  %v19411_v41 = vpack.i.bf16 %v13798_v16, %v13797_v24  ;;  %25739 = vst [vmem:[#allocation90_spill] sm:$0xff] %v19413_v8  ;;  %v13799_v47 = vld [vmem:[%s24434_s0 + $0x2c8] sm:$0xff]  ;;  %v4340_v62 = vsel %vm4328_vm3, %v24770_v17, %v12075_v3  ;;  %v19430_v43 = vpop.permute.xlu1 %12247  ;;  %v19432_v60 = vpop.permute.xlu0 %12242 }
 0x25d   :  { %v12541_v35 = vpack.i.bf16 %v13800_v56, %v13799_v47  ;;  %v25740_v16 = vunpack.i.l.bf16 %v18931_v10  ;;  %v4567_v8 = vpack.c.bf16 %v4418_v28, %v4417_v21  ;;  %v4566_v47 = vpack.c.bf16 %v4338_v36, %v4337_v12  ;;  %4867 = vmatpush1.bf16.msra.mxu0 %v4560_v40  ;;  %v19441_v5 = vpop.f32.mrb[71].mxu1 }
 0x25e   :  { %v12085_v56 = vunpack.i.h.bf16 %v18956_v7  ;;  %v12084_v17 = vunpack.i.l.bf16 %v18956_v7  ;;  %25741 = vst [vmem:[#allocation91_spill] sm:$0xff] %v19441_v5  ;;  %12532 = vrot.lane.b32.xlu1 %v12531_v30, %s13995_s12  ;;  %v25742_v21 = vunpack.i.l.bf16 %v18637_v31  ;;  %v24774_v36 = vunpack.i.h.bf16 %v18954_v23 }
 0x25f   :  { %v4339_v24 = vsel %vm4328_vm3, %v25740_v16, %v12074_v34  ;;  %v25743_v16 = vunpack.i.h.bf16 %v18637_v31  ;;  %4868 = vmatprep.subr.bf16.mxu0 %v4567_v8  ;;  %12527 = vrot.lane.b32.xlu0 %v19411_v41, %s13995_s12  ;;  %v19458_v7 = vpack.i.bf16 %v19095_v50, %v19005_v20  ;;  %v25744_v8 = vld [vmem:[#allocation75_spill] sm:$0xff]  ;;  %v12094_v12 = vunpack.i.l.bf16 %v18995_v25  ;;  %v19471_v20 = vpop.f32.mrb[72].mxu1 }
 0x260   :  { %v4419_v28 = vsel %vm4328_vm3, %v12074_v34, %v25742_v21  ;;  %4687 = vmatmul.mubr.bf16.gmra.mrb[8].mxu0 %v19437_v33  ;;  %v19461_v30 = vpop.permute.xlu1 %12257  ;;  %v19463_v31 = vpop.permute.xlu0 %12252  ;;  %v13801_v34 = vld [vmem:[%s24434_s0 + $0x2c0] sm:$0xff]  ;;  %25745 = vst [vmem:[#allocation75_spill] sm:$0xff] %v19471_v20  ;;  %v25756_v20 = vunpack.i.h.bf16 %v18993_v63 }
 0x261   :  { %v4420_v10 = vsel %vm4328_vm3, %v12075_v3, %v25743_v16  ;;  %v4572_v3 = vpack.c.bf16 %v4340_v62, %v4339_v24  ;;  %v12546_v21 = vpack.i.bf16 %v25744_v8, %v13801_v34  ;;  %v12095_v16 = vunpack.i.h.bf16 %v18995_v25  ;;  %4869 = vmatpush1.bf16.msra.mxu0 %v4566_v47  ;;  %4696 = vmatprep.mubr.bf16.mxu0 %v25022_v46  ;;  %v19511_v8 = vld [vmem:[%s24435_s1 + $0x118] sm:$0xff]  }
 0x262   :  { %v4573_v40 = vpack.c.bf16 %v4420_v10, %v4419_v28  ;;  %12542 = vrot.lane.b32.xlu1 %v12541_v35, %s13995_s12  ;;  %v25746_v10 = vunpack.i.l.bf16 %v18673_v39  ;;  %v25747_v62 = vunpack.i.h.bf16 %v18673_v39  ;;  %v4342_v25 = vsel %vm4328_vm3, %v24774_v36, %v12085_v56  ;;  %v19494_v39 = vpop.f32.mrb[73].mxu1 }
 0x263   :  { %v25748_v47 = vunpack.i.l.bf16 %v18954_v23  ;;  %12537 = vrot.lane.b32.xlu0 %v19458_v7, %s13993_s10  ;;  %25749 = vst [vmem:[#allocation92_spill] sm:$0xff] %v19494_v39  ;;  %v19500_v36 = vpop.f32.mrb[74].mxu1  ;;  %v25754_v34 = vunpack.i.l.bf16 %v18684_v37 }
 0x264   :  { %v4421_v50 = vsel %vm4328_vm3, %v12084_v17, %v25746_v10  ;;  %v4422_v24 = vsel %vm4328_vm3, %v12085_v56, %v25747_v62  ;;  %4870 = vmatprep.subr.bf16.mxu0 %v4573_v40  ;;  %25750 = vst [vmem:[#allocation93_spill] sm:$0xff] %v19500_v36  ;;  %v19504_v40 = vpop.permute.xlu1 %12267  ;;  %v13802_v56 = vld [vmem:[%s24434_s0 + $0x10] sm:$0xff]  ;;  %v13803_v62 = vld [vmem:[%s24434_s0 + $0x40] sm:$0xff]  ;;  %v25755_v36 = vunpack.i.h.bf16 %v18684_v37  ;;  %v13804_v37 = vld [vmem:[%s24434_s0 + $0x8] sm:$0xff] }
 0x265   :  { %v4341_v35 = vsel %vm4328_vm3, %v25748_v47, %v12084_v17  ;;  %v4579_v17 = vpack.c.bf16 %v4422_v24, %v4421_v50  ;;  %25751 = vst [vmem:[#allocation94_spill] sm:$0xff] %v19504_v40  ;;  %v19506_v47 = vpop.permute.xlu0 %12262  ;;  %v12561_v10 = vpack.i.bf16 %v13803_v62, %v13802_v56  ;;  %4871 = vmatpush1.bf16.msra.mxu0 %v4572_v3  ;;  %v19519_v50 = vpop.f32.mrb[75].mxu1  ;;  %v25757_v56 = vunpack.i.l.bf16 %v18993_v63  ;;  %v19954_v40 = vld [vmem:[%s24434_s0 + $0x2b0] sm:$0xff] }
 0x266   :  { %25752 = vst [vmem:[#allocation95_spill] sm:$0xff] %v19506_v47  ;;  %25753 = vst [vmem:[#allocation96_spill] sm:$0xff] %v19519_v50  ;;  %12552 = vrot.lane.b32.xlu1 %v19115_v0, %s13994_s15  ;;  %v4578_v24 = vpack.c.bf16 %v4342_v25, %v4341_v35  ;;  %v4423_v28 = vsel %vm4328_vm3, %v12094_v12, %v25754_v34  ;;  %v4424_v39 = vsel %vm4328_vm3, %v12095_v16, %v25755_v36  ;;  %v13805_v36 = vld [vmem:[%s24434_s0 + $0x38] sm:$0xff]  ;;  %v25783_v50 = vld [vmem:[#allocation9_spill] sm:$0xff] }
 0x267   :  { %v4344_v3 = vsel %vm4328_vm3, %v25756_v20, %v12095_v16  ;;  %v4343_v25 = vsel %vm4328_vm3, %v25757_v56, %v12094_v12  ;;  %4872 = vmatprep.subr.bf16.mxu0 %v4579_v17  ;;  %12547 = vrot.lane.b32.xlu0 %v12546_v21, %s13995_s12  ;;  %v12556_v35 = vpack.i.bf16 %v13805_v36, %v13804_v37  ;;  %v25758_v34 = vunpack.i.l.bf16 %v19039_v55  ;;  %v19563_v36 = vpop.f32.mrb[76].mxu1  ;;  %v25840_v47 = vld [vmem:[#allocation58_spill] sm:$0xff] }
 0x268   :  { %v25759_v16 = vunpack.i.l.bf16 %v19041_v32  ;;  %v25760_v12 = vunpack.i.h.bf16 %v19039_v55  ;;  %v25761_v21 = vunpack.i.h.bf16 %v19041_v32  ;;  %4697 = vmatmul.mubr.bf16.gmra.mrb[12].mxu0 %v19511_v8  ;;  %v4585_v17 = vpack.c.bf16 %v4424_v39, %v4423_v28  ;;  %v19559_v56 = vpop.permute.xlu1 %12277  ;;  %25764 = vst [vmem:[#allocation99_spill] sm:$0xff] %v19563_v36  ;;  %v13806_v28 = vld [vmem:[%s24434_s0] sm:$0xff]  ;;  %v13807_v39 = vld [vmem:[%s24434_s0 + $0x30] sm:$0xff] }
 0x269   :  { %25762 = vst [vmem:[#allocation97_spill] sm:$0xff] %v19559_v56  ;;  %v19561_v37 = vpop.permute.xlu0 %12272  ;;  %4873 = vmatpush1.bf16.msra.mxu0 %v4578_v24  ;;  %v12566_v24 = vpack.i.bf16 %v13807_v39, %v13806_v28  ;;  %4706 = vmatprep.mubr.bf16.mxu0 %v25022_v46 }
 0x26a   :  { %v5406_v20 = vsel %vm5357_vm4, %v25759_v16, %v25758_v34  ;;  %v5407_v62 = vsel %vm5357_vm4, %v25761_v21, %v25760_v12  ;;  %25763 = vst [vmem:[#allocation98_spill] sm:$0xff] %v19561_v37  ;;  %12562 = vrot.lane.b32.xlu1 %v12561_v10, %s13996_s19  ;;  %v4584_v34 = vpack.c.bf16 %v4344_v3, %v4343_v25  ;;  %v19567_v16 = vpop.f32.mrb[77].mxu1  ;;  %v19585_v25 = vld [vmem:[%s24435_s1 + $0x120] sm:$0xff]  }
 0x26b   :  { %4874 = vmatprep.subr.bf16.mxu0 %v4585_v17  ;;  %12557 = vrot.lane.b32.xlu0 %v12556_v35, %s13996_s19  ;;  %25765 = vst [vmem:[#allocation100_spill] sm:$0xff] %v19567_v16  ;;  %v5568_v12 = vpack.c.bf16 %v5407_v62, %v5406_v20  ;;  %v19575_v21 = vpop.f32.mrb[78].mxu1  ;;  %v13808_v20 = vld [vmem:[%s24434_s0 + $0x70] sm:$0xff]  ;;  %v13809_v62 = vld [vmem:[%s24434_s0 + $0xa0] sm:$0xff] }
 0x26c   :  { %25766 = vst [vmem:[#allocation101_spill] sm:$0xff] %v19575_v21  ;;  %v19578_v10 = vpop.permute.xlu1 %12287  ;;  %v19587_v35 = vpop.f32.mrb[79].mxu1  ;;  %v12581_v17 = vpack.i.bf16 %v13809_v62, %v13808_v20  ;;  %v25773_v21 = vld [vmem:[#allocation41_spill] sm:$0xff]  ;;  %v19620_v62 = vld [vmem:[%s24435_s1 + $0x128] sm:$0xff]  }
 0x26d   :  { %25767 = vst [vmem:[#allocation102_spill] sm:$0xff] %v19578_v10  ;;  %v19580_v3 = vpop.permute.xlu0 %12282  ;;  %25769 = vst [vmem:[#allocation104_spill] sm:$0xff] %v19587_v35  ;;  %4875 = vmatpush1.bf16.msra.mxu0 %v4584_v34  ;;  %v19603_v35 = vpop.f32.mrb[80].mxu1  ;;  %v25806_v10 = vunpack.i.l.bf16 %v19090_v26 }
 0x26e   :  { %25768 = vst [vmem:[#allocation103_spill] sm:$0xff] %v19580_v3  ;;  %12572 = vrot.lane.b32.xlu1 %v19151_v18, %s13994_s15  ;;  %5663 = vmatprep.subr.bf16.mxu0 %v5568_v12  ;;  %25772 = vst [vmem:[#allocation107_spill] sm:$0xff] %v19603_v35  ;;  %v19609_v20 = vpop.f32.mrb[81].mxu1 }
 0x26f   :  { %12567 = vrot.lane.b32.xlu0 %v12566_v24, %s13996_s19  ;;  %25774 = vst [vmem:[#allocation41_spill] sm:$0xff] %v19609_v20  ;;  %v19611_v34 = vpop.f32.mrb[82].mxu1  ;;  %v25779_v20 = vld [vmem:[#allocation79_spill] sm:$0xff] }
 0x270   :  { %4707 = vmatmul.mubr.bf16.gmra.mrb[48].mxu0 %v19585_v25  ;;  %v19599_v28 = vpop.permute.xlu1 %12297  ;;  %25775 = vst [vmem:[#allocation108_spill] sm:$0xff] %v19611_v34  ;;  %v19622_v35 = vpop.f32.mrb[83].mxu1 }
 0x271   :  { %25770 = vst [vmem:[#allocation105_spill] sm:$0xff] %v19599_v28  ;;  %v19601_v39 = vpop.permute.xlu0 %12292  ;;  %4716 = vmatprep.mubr.bf16.mxu0 %v25022_v46  ;;  %25778 = vst [vmem:[#allocation111_spill] sm:$0xff] %v19622_v35  ;;  %v25804_v28 = vunpack.i.h.bf16 %v19061_v14 }
 0x272   :  { %25771 = vst [vmem:[#allocation106_spill] sm:$0xff] %v19601_v39  ;;  %12582 = vrot.lane.b32.xlu1 %v12581_v17, %s13996_s19  ;;  %v13811_v17 = vld [vmem:[%s24434_s0 + $0x100] sm:$0xff]  ;;  %v19639_v36 = vpop.f32.mrb[84].mxu1 }
 0x273   :  { %12577 = vrot.lane.b32.xlu0 %v25773_v21, %s13996_s19  ;;  %v13810_v21 = vld [vmem:[%s24434_s0 + $0xd0] sm:$0xff]  ;;  %25782 = vst [vmem:[#allocation113_spill] sm:$0xff] %v19639_v36  ;;  %v19645_v5 = vpop.f32.mrb[85].mxu1 }
 0x274   :  { %v19613_v24 = vpop.permute.xlu1 %12307  ;;  %v12601_v34 = vpack.i.bf16 %v13811_v17, %v13810_v21  ;;  %25784 = vst [vmem:[#allocation9_spill] sm:$0xff] %v19645_v5  ;;  %v19647_v21 = vpop.f32.mrb[86].mxu1  ;;  %v25789_v5 = vld [vmem:[#allocation78_spill] sm:$0xff] }
 0x275   :  { %25776 = vst [vmem:[#allocation109_spill] sm:$0xff] %v19613_v24  ;;  %v19615_v12 = vpop.permute.xlu0 %12302  ;;  %25785 = vst [vmem:[#allocation114_spill] sm:$0xff] %v19647_v21  ;;  %v19658_v36 = vpop.f32.mrb[87].mxu1 }
 0x276   :  { %25777 = vst [vmem:[#allocation110_spill] sm:$0xff] %v19615_v12  ;;  %12592 = vrot.lane.b32.xlu1 %v19165_v6, %s13994_s15  ;;  %25788 = vst [vmem:[#allocation117_spill] sm:$0xff] %v19658_v36  ;;  %v25799_v12 = vld [vmem:[#allocation7_spill] sm:$0xff] }
 0x277   :  { %12587 = vrot.lane.b32.xlu0 %v25779_v20, %s13996_s19 }
 0x278   :  { %4717 = vmatmul.mubr.bf16.gmra.mrb[52].mxu0 %v19620_v62  ;;  %v19635_v16 = vpop.permute.xlu1 %12317 }
 0x279   :  { %25780 = vst [vmem:[#allocation79_spill] sm:$0xff] %v19635_v16  ;;  %v19637_v35 = vpop.permute.xlu0 %12312  ;;  %4726 = vmatprep.mubr.bf16.mxu0 %v25022_v46 }
 0x27a   :  { %25781 = vst [vmem:[#allocation112_spill] sm:$0xff] %v19637_v35  ;;  %12602 = vrot.lane.b32.xlu1 %v12601_v34, %s13996_s19  ;;  %v19656_v35 = vld [vmem:[%s24435_s1 + $0x130] sm:$0xff]   ;;  %v13813_v34 = vld [vmem:[%s24434_s0 + $0x160] sm:$0xff]  ;;  %v19681_v55 = vpop.f32.mrb[88].mxu1 }
 0x27b   :  { %12597 = vrot.lane.b32.xlu0 %v25783_v50, %s13996_s19  ;;  %v13812_v50 = vld [vmem:[%s24434_s0 + $0x130] sm:$0xff]  ;;  %25792 = vst [vmem:[#allocation119_spill] sm:$0xff] %v19681_v55  ;;  %v13817_v55 = vld [vmem:[%s24434_s0 + $0x1c0] sm:$0xff] }
 0x27c   :  { %v19649_v20 = vpop.permute.xlu1 %12327  ;;  %v12621_v21 = vpack.i.bf16 %v13813_v34, %v13812_v50 }
 0x27d   :  { %25786 = vst [vmem:[#allocation115_spill] sm:$0xff] %v19649_v20  ;;  %v19651_v17 = vpop.permute.xlu0 %12322 }
 0x27e   :  { %25787 = vst [vmem:[#allocation116_spill] sm:$0xff] %v19651_v17  ;;  %12612 = vrot.lane.b32.xlu1 %v19195_v44, %s13994_s15  ;;  %v13814_v17 = vld [vmem:[%s24434_s0 + $0x128] sm:$0xff]  ;;  %v13815_v44 = vld [vmem:[%s24434_s0 + $0x158] sm:$0xff] }
 0x27f   :  { %12607 = vrot.lane.b32.xlu0 %v25789_v5, %s13996_s19  ;;  %v12616_v36 = vpack.i.bf16 %v13815_v44, %v13814_v17  ;;  %v25793_v5 = vld [vmem:[#allocation49_spill] sm:$0xff]  ;;  %v19689_v17 = vpop.f32.mrb[89].mxu1  ;;  %v12120_v44 = vunpack.i.h.bf16 %v19059_v19 }
 0x280   :  { %4727 = vmatmul.mubr.bf16.gmra.mrb[56].mxu0 %v19656_v35  ;;  %v19677_v20 = vpop.permute.xlu1 %12337  ;;  %v11824_v50 = vunpack.i.l.bf16 %v25793_v5  ;;  %25794 = vst [vmem:[#allocation49_spill] sm:$0xff] %v19689_v17 }
 0x281   :  { %25790 = vst [vmem:[#allocation78_spill] sm:$0xff] %v19677_v20  ;;  %v19679_v16 = vpop.permute.xlu0 %12332  ;;  %4736 = vmatprep.mubr.bf16.mxu0 %v25022_v46  ;;  %v12119_v20 = vunpack.i.l.bf16 %v19059_v19  ;;  %v13816_v19 = vld [vmem:[%s24434_s0 + $0x190] sm:$0xff] }
 0x282   :  { %25791 = vst [vmem:[#allocation118_spill] sm:$0xff] %v19679_v16  ;;  %12622 = vrot.lane.b32.xlu1 %v12621_v21, %s13996_s19  ;;  %v19695_v16 = vpop.f32.mrb[90].mxu1  ;;  %v12641_v21 = vpack.i.bf16 %v13817_v55, %v13816_v19  ;;  %v25805_v19 = vld [vmem:[#allocation3_spill] sm:$0xff] }
 0x283   :  { %12617 = vrot.lane.b32.xlu0 %v12616_v36, %s13996_s19  ;;  %25795 = vst [vmem:[#allocation120_spill] sm:$0xff] %v19695_v16  ;;  %v19704_v36 = vld [vmem:[%s24435_s1 + $0x138] sm:$0xff]   ;;  %v19706_v34 = vpop.f32.mrb[91].mxu1  ;;  %v25800_v16 = vunpack.i.l.bf16 %v25799_v12 }
 0x284   :  { %v19697_v24 = vpop.permute.xlu1 %12347  ;;  %25798 = vst [vmem:[#allocation123_spill] sm:$0xff] %v19706_v34  ;;  %v25801_v34 = vunpack.i.l.bf16 %v19041_v32 }
 0x285   :  { %25796 = vst [vmem:[#allocation121_spill] sm:$0xff] %v19697_v24  ;;  %v19699_v5 = vpop.permute.xlu0 %12342  ;;  %v19720_v17 = vsel %vm3299_vm2, %v25800_v16, %v11824_v50  ;;  %v25802_v24 = vunpack.i.l.bf16 %v19061_v14  ;;  %v12134_v16 = vunpack.i.l.bf16 %v19104_v22 }
 0x286   :  { %25797 = vst [vmem:[#allocation122_spill] sm:$0xff] %v19699_v5  ;;  %12632 = vrot.lane.b32.xlu1 %v19213_v15, %s13994_s15  ;;  %v25803_v5 = vunpack.i.h.bf16 %v19041_v32  ;;  %v25807_v32 = vunpack.i.h.bf16 %v19090_v26  ;;  %v13818_v26 = vld [vmem:[%s24434_s0 + $0x1f0] sm:$0xff] }
 0x287   :  { %v19728_v15 = vsel %vm5357_vm4, %v25802_v24, %v25801_v34  ;;  %12627 = vrot.lane.b32.xlu0 %v25805_v19, %s13996_s19  ;;  %v19746_v24 = vsel %vm5357_vm4, %v12119_v20, %v25806_v10  ;;  %v12135_v19 = vunpack.i.h.bf16 %v19104_v22 }
 0x288   :  { %v19736_v55 = vsel %vm5357_vm4, %v25804_v28, %v25803_v5  ;;  %v19752_v34 = vsel %vm5357_vm4, %v12120_v44, %v25807_v32  ;;  %4737 = vmatmul.mubr.bf16.gmra.mrb[60].mxu0 %v19704_v36  ;;  %v19759_v39 = vpop.permute.xlu1 %12357  ;;  %v19765_v32 = vpop.f32.mrb[92].mxu1  ;;  %v25811_v28 = vld [vmem:[#allocation60_spill] sm:$0xff] }
 0x289   :  { %25808 = vst [vmem:[#allocation7_spill] sm:$0xff] %v19759_v39  ;;  %v19761_v10 = vpop.permute.xlu0 %12352  ;;  %25810 = vst [vmem:[#allocation124_spill] sm:$0xff] %v19765_v32  ;;  %4892 = vmatprep.mubr.bf16.mxu0 %v25022_v46  ;;  %v25812_v5 = vunpack.i.h.bf16 %v25811_v28  ;;  %v13820_v28 = vld [vmem:[%s24434_s0 + $0x218] sm:$0xff]  ;;  %v25815_v32 = vunpack.i.l.bf16 %v19088_v51 }
 0x28a   :  { %25809 = vst [vmem:[#allocation3_spill] sm:$0xff] %v19761_v10  ;;  %12642 = vrot.lane.b32.xlu1 %v12641_v21, %s13996_s19  ;;  %v19777_v10 = vpop.f32.mrb[93].mxu1  ;;  %v13819_v21 = vld [vmem:[%s24434_s0 + $0x220] sm:$0xff] }
 0x28b   :  { %v19773_v22 = vsel %vm3299_vm2, %v11824_v50, %v25812_v5  ;;  %12637 = vrot.lane.b32.xlu0 %v18899_v1, %s13996_s19  ;;  %25813 = vst [vmem:[#allocation60_spill] sm:$0xff] %v19777_v10  ;;  %v12661_v3 = vpack.i.bf16 %v13819_v21, %v13818_v26  ;;  %v25814_v50 = vld [vmem:[#allocation33_spill] sm:$0xff]  ;;  %v19793_v1 = vsel %vm5357_vm4, %v25815_v32, %v12119_v20  ;;  %v25816_v10 = vunpack.i.h.bf16 %v19088_v51  ;;  %v19799_v37 = vpop.f32.mrb[94].mxu1 }
 0x28c   :  { %v12656_v5 = vpack.i.bf16 %v13820_v28, %v25814_v50  ;;  %25817 = vst [vmem:[#allocation33_spill] sm:$0xff] %v19799_v37  ;;  %v5567_v26 = vpack.c.bf16 %v19736_v55, %v19728_v15  ;;  %v5574_v21 = vpack.c.bf16 %v19752_v34, %v19746_v24  ;;  %v12150_v28 = vunpack.i.h.bf16 %v19127_v42  ;;  %v19807_v56 = vpop.permute.xlu1 %12367 }
 0x28d   :  { %v5425_v39 = vsel %vm5357_vm4, %v25816_v10, %v12120_v44  ;;  %v12149_v50 = vunpack.i.l.bf16 %v19127_v42  ;;  %25818 = vst [vmem:[#allocation125_spill] sm:$0xff] %v19807_v56  ;;  %v19809_v20 = vpop.permute.xlu0 %12362  ;;  %v25820_v32 = vunpack.i.l.bf16 %v19102_v9  ;;  %v25821_v10 = vunpack.i.h.bf16 %v19102_v9  ;;  %v19833_v56 = vpop.f32.mrb[95].mxu1 }
 0x28e   :  { %25819 = vst [vmem:[#allocation126_spill] sm:$0xff] %v19809_v20  ;;  %v25822_v55 = vunpack.i.l.bf16 %v19129_v11  ;;  %v25823_v42 = vunpack.i.h.bf16 %v19129_v11  ;;  %25824 = vst [vmem:[#allocation127_spill] sm:$0xff] %v19833_v56  ;;  %12652 = vrot.lane.b32.xlu1 %v19312_v61, %s13994_s15  ;;  %v12164_v20 = vunpack.i.l.bf16 %v19155_v57  ;;  %v12165_v37 = vunpack.i.h.bf16 %v19155_v57  ;;  %v19853_v61 = vld [vmem:[%s24434_s0 + $0x280] sm:$0xff]  ;;  %v19871_v56 = vld [vmem:[%s24434_s0 + $0x278] sm:$0xff] }
 0x28f   :  { %v5410_v44 = vsel %vm5357_vm4, %v12134_v16, %v25820_v32  ;;  %v5411_v15 = vsel %vm5357_vm4, %v12135_v19, %v25821_v10  ;;  %v19848_v32 = vld [vmem:[%s24434_s0 + $0x250] sm:$0xff]  ;;  %v5573_v57 = vpack.c.bf16 %v5425_v39, %v19793_v1  ;;  %v25828_v39 = vunpack.i.h.bf16 %v19136_v52 }
 0x290   :  { %v19823_v24 = vsel %vm5357_vm4, %v25822_v55, %v12134_v16  ;;  %v19829_v34 = vsel %vm5357_vm4, %v25823_v42, %v12135_v19  ;;  %v25825_v19 = vld [vmem:[#allocation44_spill] sm:$0xff]  ;;  %4893 = vmatmul.mubr.bf16.vlgmr.msra.gmra.mrb[16].mxu0 %v19240_v53  ;;  %v5580_v10 = vpack.c.bf16 %v5411_v15, %v5410_v44  ;;  %v25827_v55 = vunpack.i.l.bf16 %v19136_v52  ;;  %v19888_v15 = vpop.f32.mrb[16].mxu1 }
 0x291   :  { %12647 = vrot.lane.b32.xlu0 %v25825_v19, %s13996_s19  ;;  %v19858_v19 = vpop.permute.xlu1 %12377  ;;  %v19860_v42 = vpop.permute.xlu0 %12372  ;;  %v19866_v16 = vld [vmem:[%s24434_s0 + $0x248] sm:$0xff]  ;;  %v19885_v1 = vsel %vm5357_vm4, %v25828_v39, %v12150_v28  ;;  %5664 = vmatpush1.bf16.msra.mxu0 %v5567_v26  ;;  %25829 = vst [vmem:[#allocation128_spill] sm:$0xff] %v19888_v15  ;;  %v5579_v53 = vpack.c.bf16 %v19829_v34, %v19823_v24  ;;  %v25831_v9 = vunpack.i.l.bf16 %v19138_v58  ;;  %v25832_v26 = vunpack.i.h.bf16 %v19138_v58 }
 0x292   :  { %25826 = vst [vmem:[#allocation44_spill] sm:$0xff] %v19860_v42  ;;  %v19879_v42 = vsel %vm5357_vm4, %v25827_v55, %v12149_v50  ;;  %v12379_v44 = vunpack.i.l.bf16 %v19858_v19  ;;  %12662 = vrot.lane.b32.xlu1 %v12661_v3, %s13996_s19  ;;  %5665 = vmatprep.subr.bf16.mxu0 %v5574_v21  ;;  %v19894_v55 = vpop.f32.mrb[17].mxu1  ;;  %v25833_v3 = vunpack.i.l.bf16 %v19153_v13  ;;  %v12179_v21 = vunpack.i.l.bf16 %v19170_v48 }
 0x293   :  { %25830 = vst [vmem:[#allocation129_spill] sm:$0xff] %v19894_v55  ;;  %v5412_v39 = vsel %vm5357_vm4, %v12149_v50, %v25831_v9  ;;  %v5413_v15 = vsel %vm5357_vm4, %v12150_v28, %v25832_v26  ;;  %v25834_v34 = vunpack.i.h.bf16 %v25799_v12  ;;  %v19916_v50 = vpop.f32.mrb[18].mxu1  ;;  %4902 = vmatprep.mubr.bf16.mxu0 %v25022_v46  ;;  %v25836_v28 = vunpack.i.h.bf16 %v19153_v13 }
 0x294   :  { %v19908_v24 = vsel %vm5357_vm4, %v12164_v20, %v25833_v3  ;;  %25835 = vst [vmem:[#allocation130_spill] sm:$0xff] %v19916_v50  ;;  %v24810_v55 = vunpack.i.l.bf16 %v19172_v2  ;;  %v24811_v13 = vunpack.i.h.bf16 %v19179_v38  ;;  %v19939_v3 = vpop.f32.mrb[19].mxu1 }
 0x295   :  { %12657 = vrot.lane.b32.xlu0 %v12656_v5, %s13996_s19  ;;  %v12180_v5 = vunpack.i.h.bf16 %v19170_v48  ;;  %v3343_v9 = vsel %vm3299_vm2, %v25834_v34, %v12379_v44  ;;  %v19923_v26 = vsel %vm5357_vm4, %v12165_v37, %v25836_v28  ;;  %v19928_v12 = vpop.permute.xlu1 %12387  ;;  %v19930_v58 = vpop.permute.xlu0 %12382  ;;  %v25838_v34 = vld [vmem:[#allocation57_spill] sm:$0xff]  ;;  %5666 = vmatpush1.bf16.msra.mxu0 %v5573_v57  ;;  %v5585_v28 = vpack.c.bf16 %v19885_v1, %v19879_v42 }
 0x296   :  { %25837 = vst [vmem:[#allocation131_spill] sm:$0xff] %v19928_v12  ;;  %v25839_v50 = vunpack.i.l.bf16 %v25838_v34  ;;  %25841 = vst [vmem:[#allocation57_spill] sm:$0xff] %v19939_v3  ;;  %12672 = vrot.lane.b32.xlu1 %v19353_v54, %s13994_s15  ;;  %v3541_v48 = vpack.c.bf16 %v3343_v9, %v19720_v17  ;;  %5667 = vmatprep.subr.bf16.mxu0 %v5580_v10  ;;  %v25842_v34 = vld [vmem:[#allocation48_spill] sm:$0xff]  ;;  %v5592_v57 = vpack.c.bf16 %v19923_v26, %v19908_v24  ;;  %v19959_v54 = vld [vmem:[%s24434_s0 + $0x2e0] sm:$0xff] }
 0x297   :  { %v19966_v17 = vld [vmem:[%s24434_s0 + $0x2a8] sm:$0xff]  ;;  %v5430_v42 = vsel %vm5357_vm4, %v24810_v55, %v12164_v20  ;;  %v25843_v1 = vunpack.i.h.bf16 %v19172_v2  ;;  %v12380_v9 = vunpack.i.h.bf16 %v19858_v19  ;;  %v19997_v20 = vsel %vm5357_vm4, %v24811_v13, %v12180_v5 }
 0x298   :  { %v3327_v63 = vsel %vm3299_vm2, %v12379_v44, %v25839_v50  ;;  %v5586_v50 = vpack.c.bf16 %v5413_v15, %v5412_v39  ;;  %v25844_v39 = vunpack.i.l.bf16 %v19179_v38  ;;  %4903 = vmatmul.mubr.bf16.gmra.mrb[20].mxu0 %v19336_v4  ;;  %v25848_v4 = vunpack.i.h.bf16 %v25840_v47  ;;  %v25849_v55 = vld [vmem:[#allocation52_spill] sm:$0xff] }
 0x299   :  { %12667 = vrot.lane.b32.xlu0 %v25842_v34, %s13996_s19  ;;  %v3542_v44 = vpack.c.bf16 %v3327_v63, %v19773_v22  ;;  %v19971_v22 = vld [vmem:[%s24434_s0 + $0x2d8] sm:$0xff]  ;;  %v5431_v15 = vsel %vm5357_vm4, %v25843_v1, %v12165_v37  ;;  %v12398_v26 = vpop.permute.xlu1 %12397  ;;  %v19991_v34 = vpop.permute.xlu0 %12392  ;;  %5668 = vmatpush1.bf16.msra.mxu0 %v5579_v53  ;;  %v25850_v63 = vld [vmem:[#allocation55_spill] sm:$0xff]  ;;  %v25856_v10 = vpack.i.bf16 %v19871_v56, %v19866_v16 }
 0x29a   :  { %v19987_v24 = vsel %vm5357_vm4, %v25844_v39, %v12179_v21  ;;  %25845 = vst [vmem:[#allocation48_spill] sm:$0xff] %v19991_v34  ;;  %v12399_v37 = vunpack.i.l.bf16 %v12398_v26  ;;  %v19999_v1 = vpop.f32.mrb[20].mxu1  ;;  %v25847_v39 = vunpack.i.l.bf16 %v25840_v47  ;;  %v12195_v53 = vunpack.i.h.bf16 %v25850_v63  ;;  %5669 = vmatprep.subr.bf16.mxu0 %v5586_v50  ;;  %v25854_v47 = vld [vmem:[#allocation53_spill] sm:$0xff]  ;;  %4912 = vmatprep.mubr.bf16.mxu0 %v25022_v46 }
 0x29b   :  { %3728 = vmatprep.subr.bf16.mxu1 %v3542_v44  ;;  %25846 = vst [vmem:[#allocation132_spill] sm:$0xff] %v19999_v1  ;;  %v5417_v44 = vsel %vm5357_vm4, %v12180_v5, %v25848_v4  ;;  %v25851_v1 = vpack.i.bf16 %v19853_v61, %v19848_v32  ;;  %v25855_v5 = vunpack.i.h.bf16 %v25854_v47  ;;  %v25858_v61 = vunpack.i.l.bf16 %v25854_v47 }
 0x29c   :  { %3729 = vmatpush1.bf16.msra.mxu1 %v3541_v48  ;;  %v5416_v19 = vsel %vm5357_vm4, %v12179_v21, %v25847_v39  ;;  %v12194_v48 = vunpack.i.l.bf16 %v25850_v63  ;;  %v20017_v21 = vpop.f32.mrb[21].mxu1  ;;  %v25853_v39 = vld [vmem:[#allocation65_spill] sm:$0xff]  ;;  %v5591_v63 = vpack.c.bf16 %v5431_v15, %v5430_v42  ;;  %v12400_v3 = vunpack.i.h.bf16 %v12398_v26  ;;  %v25862_v42 = vld [vmem:[#allocation59_spill] sm:$0xff] }
 0x29d   :  { %12682 = vrot.lane.b32.xlu1 %v25851_v1, %s13996_s19  ;;  %25852 = vst [vmem:[#allocation52_spill] sm:$0xff] %v20017_v21  ;;  %v3345_v4 = vsel %vm3299_vm2, %v25855_v5, %v12399_v37  ;;  %12677 = vrot.lane.b32.xlu0 %v25856_v10, %s13996_s19  ;;  %v20028_v50 = vpop.f32.mrb[22].mxu1  ;;  %v3344_v1 = vsel %vm3299_vm2, %v25858_v61, %v12380_v9  ;;  %v20035_v13 = vpop.permute.xlu1 %12407  ;;  %v25859_v5 = vld [vmem:[#allocation62_spill] sm:$0xff]  ;;  %v25863_v47 = vunpack.i.h.bf16 %v25862_v42 }
 0x29e   :  { %25857 = vst [vmem:[#allocation55_spill] sm:$0xff] %v20028_v50  ;;  %v20037_v21 = vpop.permute.xlu0 %12402  ;;  %v25860_v56 = vunpack.i.l.bf16 %v25859_v5  ;;  %5670 = vmatpush1.bf16.msra.mxu0 %v5585_v28  ;;  %v20044_v10 = vpop.f32.mrb[23].mxu1  ;;  %v3547_v26 = vpack.c.bf16 %v3345_v4, %v3344_v1  ;;  %v5598_v61 = vpack.c.bf16 %v5417_v44, %v5416_v19  ;;  %v5597_v32 = vpack.c.bf16 %v19997_v20, %v19987_v24  ;;  %v25866_v4 = vld [vmem:[#allocation64_spill] sm:$0xff] }
 0x29f   :  { %25861 = vst [vmem:[#allocation65_spill] sm:$0xff] %v20044_v10  ;;  %v3328_v15 = vsel %vm3299_vm2, %v12380_v9, %v25863_v47  ;;  %5671 = vmatprep.subr.bf16.mxu0 %v5592_v57  ;;  %v12210_v19 = vunpack.i.h.bf16 %v25866_v4  ;;  %v12209_v44 = vunpack.i.l.bf16 %v25866_v4  ;;  %v25868_v20 = vunpack.i.l.bf16 %v25853_v39  ;;  %v25870_v47 = vld [vmem:[#allocation36_spill] sm:$0xff] }
 0x2a0   :  { %v3329_v16 = vsel %vm3299_vm2, %v12399_v37, %v25860_v56  ;;  %v25864_v37 = vunpack.i.l.bf16 %v25849_v55  ;;  %v25865_v56 = vunpack.i.h.bf16 %v25849_v55  ;;  %4913 = vmatmul.mubr.bf16.gmra.mrb[24].mxu0 %v19437_v33 }
 0x2a1   :  { %12692 = vrot.lane.b32.xlu1 %v19458_v7, %s13994_s15  ;;  %v3548_v5 = vpack.c.bf16 %v3329_v16, %v3328_v15  ;;  %v25867_v7 = vld [vmem:[#allocation34_spill] sm:$0xff]  ;;  %v5434_v1 = vsel %vm5357_vm4, %v25868_v20, %v12194_v48  ;;  %v25869_v16 = vunpack.i.h.bf16 %v25853_v39  ;;  %v25874_v20 = vld [vmem:[#allocation63_spill] sm:$0xff]  ;;  %4922 = vmatprep.mubr.bf16.mxu0 %v25022_v46 }
 0x2a2   :  { %v5418_v28 = vsel %vm5357_vm4, %v12194_v48, %v25864_v37  ;;  %v5419_v9 = vsel %vm5357_vm4, %v12195_v53, %v25865_v56  ;;  %12687 = vrot.lane.b32.xlu0 %v25867_v7, %s13996_s19  ;;  %v3234_v37 = vpop.permute.xlu1 %3233  ;;  %v25871_v56 = vld [vmem:[#allocation45_spill] sm:$0xff]  ;;  %v20082_v57 = vpop.permute.xlu0 %12412  ;;  %v24813_v48 = vunpack.i.l.bf16 %v25870_v47  ;;  %5672 = vmatpush1.bf16.msra.mxu0 %v5591_v63  ;;  %v25877_v15 = vld [vmem:[#allocation67_spill] sm:$0xff]  ;;  %v25879_v63 = vpack.i.bf16 %v19959_v54, %v19954_v40 }
 0x2a3   :  { %v5435_v42 = vsel %vm5357_vm4, %v25869_v16, %v12195_v53  ;;  %3730 = vmatprep.subr.bf16.mxu1 %v3548_v5  ;;  %v25872_v4 = vunpack.i.l.bf16 %v25871_v56  ;;  %25873 = vst [vmem:[#allocation53_spill] sm:$0xff] %v20082_v57  ;;  %v3331_v53 = vsel %vm3299_vm2, %v3234_v37, %v25874_v20  ;;  %v25875_v5 = vunpack.i.h.bf16 %v25871_v56  ;;  %v20092_v16 = vpop.f32.mrb[24].mxu1  ;;  %5673 = vmatprep.subr.bf16.mxu0 %v5598_v61 }
 0x2a4   :  { %3731 = vmatpush1.bf16.msra.mxu1 %v3547_v26  ;;  %25876 = vst [vmem:[#allocation62_spill] sm:$0xff] %v20092_v16  ;;  %v25878_v24 = vunpack.i.h.bf16 %v25877_v15  ;;  %v20102_v26 = vpop.f32.mrb[25].mxu1  ;;  %v5604_v20 = vpack.c.bf16 %v5419_v9, %v5418_v28  ;;  %v25884_v40 = vunpack.i.h.bf16 %v19277_v59 }
 0x2a5   :  { %v3346_v7 = vsel %vm3299_vm2, %v25872_v4, %v12400_v3  ;;  %v3347_v33 = vsel %vm3299_vm2, %v25875_v5, %v3234_v37  ;;  %12702 = vrot.lane.b32.xlu1 %v25879_v63, %s13996_s19  ;;  %25880 = vst [vmem:[#allocation59_spill] sm:$0xff] %v20102_v26  ;;  %v25881_v37 = vpack.i.bf16 %v19971_v22, %v19966_v17  ;;  %v20108_v15 = vpop.f32.mrb[26].mxu1  ;;  %v25888_v63 = vld [vmem:[#allocation51_spill] sm:$0xff]  ;;  %v25947_v26 = vld [vmem:[#allocation8_spill] sm:$0xff] }
 0x2a6   :  { %v3330_v4 = vsel %vm3299_vm2, %v12400_v3, %v25878_v24  ;;  %v3553_v10 = vpack.c.bf16 %v3347_v33, %v3346_v7  ;;  %25882 = vst [vmem:[#allocation64_spill] sm:$0xff] %v20108_v15  ;;  %v25883_v3 = vunpack.i.l.bf16 %v19277_v59  ;;  %v5421_v54 = vsel %vm5357_vm4, %v12210_v19, %v25884_v40  ;;  %v20119_v28 = vpop.permute.xlu1 %12422  ;;  %v20121_v9 = vpop.permute.xlu0 %12417  ;;  %5674 = vmatpush1.bf16.msra.mxu0 %v5597_v32  ;;  %v13831_v32 = vld [vmem:[%s24434_s0 + $0x28] sm:$0xff] }
 0x2a7   :  { %v3554_v56 = vpack.c.bf16 %v3331_v53, %v3330_v4  ;;  %12697 = vrot.lane.b32.xlu0 %v25881_v37, %s13996_s19  ;;  %v5603_v17 = vpack.c.bf16 %v5435_v42, %v5434_v1  ;;  %v5436_v22 = vsel %vm5357_vm4, %v24813_v48, %v12209_v44  ;;  %v25885_v24 = vunpack.i.h.bf16 %v25870_v47  ;;  %v25886_v53 = vld [vmem:[#allocation88_spill] sm:$0xff]  ;;  %v20133_v4 = vpop.f32.mrb[27].mxu1  ;;  %5675 = vmatprep.subr.bf16.mxu0 %v5604_v20  ;;  %v13833_v37 = vld [vmem:[%s24435_s1 + $0xc0] sm:$0xff]  }
 0x2a8   :  { %v5420_v61 = vsel %vm5357_vm4, %v12209_v44, %v25883_v3  ;;  %v24815_v5 = vunpack.i.h.bf16 %v25886_v53  ;;  %v24814_v33 = vunpack.i.l.bf16 %v25886_v53  ;;  %25887 = vst [vmem:[#allocation34_spill] sm:$0xff] %v20133_v4  ;;  %v13829_v44 = vld [vmem:[%s24434_s0 + $0x20] sm:$0xff]  ;;  %4923 = vmatmul.mubr.bf16.gmra.mrb[28].mxu0 %v19511_v8  ;;  %v25939_v15 = vunpack.i.h.bf16 %v19088_v51 }
 0x2a9   :  { %3732 = vmatprep.subr.bf16.mxu1 %v3554_v56  ;;  %v5437_v7 = vsel %vm5357_vm4, %v25885_v24, %v12210_v19  ;;  %12712 = vrot.lane.b32.xlu1 %v19115_v0, %s13995_s12  ;;  %v5610_v1 = vpack.c.bf16 %v5421_v54, %v5420_v61  ;;  %v13830_v19 = vld [vmem:[%s24434_s0 + $0x50] sm:$0xff]  ;;  %v13832_v0 = vld [vmem:[%s24434_s0 + $0x58] sm:$0xff]  ;;  %v20157_v54 = vpop.f32.mrb[28].mxu1  ;;  %v25890_v24 = vunpack.i.l.bf16 %v19061_v14 }
 0x2aa   :  { %3733 = vmatpush1.bf16.msra.mxu1 %v3553_v10  ;;  %v12721_v42 = vpack.i.bf16 %v13830_v19, %v13829_v44  ;;  %v12716_v10 = vpack.i.bf16 %v13832_v0, %v13831_v32  ;;  %v12433_v56 = vpop.permute.xlu1 %12432  ;;  %v20152_v20 = vpop.permute.xlu0 %12427  ;;  %v5609_v3 = vpack.c.bf16 %v5437_v7, %v5436_v22  ;;  %5676 = vmatpush1.bf16.msra.mxu0 %v5603_v17  ;;  %v25891_v44 = vunpack.i.h.bf16 %v19061_v14  ;;  %v13834_v22 = vld [vmem:[%s24434_s0 + $0x88] sm:$0xff]  ;;  %v13835_v14 = vld [vmem:[%s24434_s0 + $0xb8] sm:$0xff] }
 0x2ab   :  { %12707 = vrot.lane.b32.xlu0 %v25888_v63, %s13996_s19  ;;  %v12435_v61 = vunpack.i.h.bf16 %v12433_v56  ;;  %v12434_v40 = vunpack.i.l.bf16 %v12433_v56  ;;  %25889 = vst [vmem:[#allocation36_spill] sm:$0xff] %v20157_v54  ;;  %v5438_v8 = vsel %vm5357_vm4, %v24814_v33, %v25890_v24  ;;  %4932 = vmatprep.mubr.bf16.mxu0 %v25022_v46  ;;  %v20173_v17 = vpop.f32.mrb[29].mxu1  ;;  %v12731_v7 = vpack.i.bf16 %v13835_v14, %v13834_v22  ;;  %v25893_v63 = vld [vmem:[#allocation38_spill] sm:$0xff] }
 0x2ac   :  { %v5439_v19 = vsel %vm5357_vm4, %v24815_v5, %v25891_v44  ;;  %5677 = vmatprep.subr.bf16.mxu0 %v5610_v1  ;;  %25892 = vst [vmem:[#allocation45_spill] sm:$0xff] %v20173_v17  ;;  %v25894_v32 = vunpack.i.l.bf16 %v25893_v63  ;;  %v25895_v1 = vunpack.i.h.bf16 %v25893_v63  ;;  %v20190_v56 = vpop.f32.mrb[30].mxu1  ;;  %v25897_v22 = vld [vmem:[#allocation42_spill] sm:$0xff] }
 0x2ad   :  { %3751 = vmatmul.mubr.bf16.vlgmr.msra.gmra.mrb[32].mxu1 %v13833_v37  ;;  %12722 = vrot.lane.b32.xlu1 %v12721_v42, %s13996_s19  ;;  %25896 = vst [vmem:[#allocation63_spill] sm:$0xff] %v20190_v56  ;;  %v5572_v37 = vpack.c.bf16 %v5439_v19, %v5438_v8  ;;  %v25898_v14 = vunpack.i.l.bf16 %v25897_v22  ;;  %v25923_v56 = vld [vmem:[#allocation39_spill] sm:$0xff] }
 0x2ae   :  { %v4361_v0 = vsel %vm4328_vm3, %v25894_v32, %v12434_v40  ;;  %v4362_v42 = vsel %vm4328_vm3, %v25895_v1, %v12435_v61  ;;  %v20192_v24 = vpop.permute.xlu1 %12442  ;;  %v20194_v44 = vpop.permute.xlu0 %12437  ;;  %v25899_v32 = vunpack.i.h.bf16 %v25897_v22  ;;  %3760 = vmatprep.mubr.bf16.mxu1 %v25022_v46  ;;  %5678 = vmatpush1.bf16.msra.mxu0 %v5609_v3  ;;  %v13841_v22 = vld [vmem:[%s24434_s0 + $0xe0] sm:$0xff] }
 0x2af   :  { %12717 = vrot.lane.b32.xlu0 %v12716_v10, %s13996_s19  ;;  %v4345_v48 = vsel %vm4328_vm3, %v12434_v40, %v25898_v14  ;;  %v20205_v10 = vpop.f32.mrb[31].mxu1  ;;  %5889 = vmatprep.subr.bf16.mxu0 %v5572_v37  ;;  %v4540_v19 = vpack.c.bf16 %v4362_v42, %v4361_v0  ;;  %v13836_v40 = vld [vmem:[%s24434_s0 + $0x80] sm:$0xff]  ;;  %v13840_v42 = vld [vmem:[%s24434_s0 + $0x118] sm:$0xff]  ;;  %v13842_v14 = vld [vmem:[%s24434_s0 + $0x110] sm:$0xff] }
 0x2b0   :  { %v4346_v63 = vsel %vm4328_vm3, %v12435_v61, %v25899_v32  ;;  %25900 = vst [vmem:[#allocation67_spill] sm:$0xff] %v20205_v10  ;;  %v13837_v61 = vld [vmem:[%s24434_s0 + $0xb0] sm:$0xff]  ;;  %4933 = vmatmul.mubr.bf16.gmra.mrb[32].mxu0 %v19585_v25  ;;  %v13839_v25 = vld [vmem:[%s24434_s0 + $0xe8] sm:$0xff]  ;;  %v12751_v32 = vpack.i.bf16 %v13842_v14, %v13841_v22 }
 0x2b1   :  { %12732 = vrot.lane.b32.xlu1 %v12731_v7, %s13996_s19  ;;  %v4541_v8 = vpack.c.bf16 %v4346_v63, %v4345_v48  ;;  %v12736_v1 = vpack.i.bf16 %v13837_v61, %v13836_v40  ;;  %4942 = vmatprep.mubr.bf16.mxu0 %v25022_v46  ;;  %v12746_v37 = vpack.i.bf16 %v13840_v42, %v13839_v25  ;;  %v25902_v63 = vld [vmem:[#allocation35_spill] sm:$0xff]  ;;  %v25905_v61 = vld [vmem:[#allocation32_spill] sm:$0xff] }
 0x2b2   :  { %v20217_v3 = vpop.permute.xlu1 %12452  ;;  %v12448_v7 = vpop.permute.xlu0 %12447  ;;  %v25907_v25 = vunpack.i.h.bf16 %v25905_v61 }
 0x2b3   :  { %12727 = vrot.lane.b32.xlu0 %v19151_v18, %s13995_s12  ;;  %4747 = vmatprep.subr.bf16.mxu1 %v4541_v8  ;;  %25901 = vst [vmem:[#allocation88_spill] sm:$0xff] %v20217_v3  ;;  %v12450_v48 = vunpack.i.h.bf16 %v12448_v7  ;;  %v12449_v0 = vunpack.i.l.bf16 %v12448_v7  ;;  %v13838_v18 = vld [vmem:[%s24435_s1 + $0xc8] sm:$0xff]   ;;  %v25906_v7 = vunpack.i.l.bf16 %v25905_v61  ;;  %v25908_v61 = vld [vmem:[#allocation69_spill] sm:$0xff] }
 0x2b4   :  { %4748 = vmatpush1.bf16.msra.mxu1 %v4540_v19  ;;  %v25904_v19 = vunpack.i.h.bf16 %v25902_v63 }
 0x2b5   :  { %3761 = vmatmul.mubr.bf16.gmra.mrb[36].mxu1 %v13838_v18  ;;  %12742 = vrot.lane.b32.xlu1 %v19165_v6, %s13995_s12  ;;  %v25903_v6 = vunpack.i.l.bf16 %v25902_v63  ;;  %v4347_v18 = vsel %vm4328_vm3, %v12449_v0, %v25906_v7  ;;  %v4348_v42 = vsel %vm4328_vm3, %v12450_v48, %v25907_v25  ;;  %v25909_v7 = vunpack.i.l.bf16 %v25908_v61  ;;  %v13846_v25 = vld [vmem:[%s24434_s0 + $0x168] sm:$0xff] }
 0x2b6   :  { %v4364_v40 = vsel %vm4328_vm3, %v25904_v19, %v12450_v48  ;;  %v12463_v22 = vpop.permute.xlu1 %12462  ;;  %v20254_v14 = vpop.permute.xlu0 %12457  ;;  %3770 = vmatprep.mubr.bf16.mxu1 %v25022_v46  ;;  %v13844_v48 = vld [vmem:[%s24434_s0 + $0x178] sm:$0xff] }
 0x2b7   :  { %v4363_v8 = vsel %vm4328_vm3, %v25903_v6, %v12449_v0  ;;  %12737 = vrot.lane.b32.xlu0 %v12736_v1, %s13996_s19  ;;  %v4547_v6 = vpack.c.bf16 %v4348_v42, %v4347_v18  ;;  %v12465_v19 = vunpack.i.h.bf16 %v12463_v22  ;;  %v12464_v33 = vunpack.i.l.bf16 %v12463_v22  ;;  %v13843_v1 = vld [vmem:[%s24434_s0 + $0x148] sm:$0xff] }
 0x2b8   :  { %v4546_v63 = vpack.c.bf16 %v4364_v40, %v4363_v8  ;;  %v12761_v0 = vpack.i.bf16 %v13844_v48, %v13843_v1  ;;  %v25910_v8 = vunpack.i.h.bf16 %v25908_v61  ;;  %4943 = vmatmul.mubr.bf16.gmra.mrb[36].mxu0 %v19620_v62  ;;  %v25912_v1 = vld [vmem:[#allocation47_spill] sm:$0xff]  ;;  %v13847_v62 = vld [vmem:[%s24435_s1 + $0xd0] sm:$0xff]  }
 0x2b9   :  { %4749 = vmatprep.subr.bf16.mxu1 %v4547_v6  ;;  %12752 = vrot.lane.b32.xlu1 %v12751_v32, %s13996_s19  ;;  %v4365_v18 = vsel %vm4328_vm3, %v25909_v7, %v12464_v33  ;;  %v13845_v32 = vld [vmem:[%s24434_s0 + $0x138] sm:$0xff]  ;;  %v25913_v48 = vunpack.i.l.bf16 %v25912_v1  ;;  %v25914_v61 = vunpack.i.h.bf16 %v25912_v1 }
 0x2ba   :  { %v4366_v40 = vsel %vm4328_vm3, %v25910_v8, %v12465_v19  ;;  %v20279_v42 = vpack.i.bf16 %v13846_v25, %v13845_v32  ;;  %4750 = vmatpush1.bf16.msra.mxu1 %v4546_v63  ;;  %v20282_v22 = vpop.permute.xlu1 %12472  ;;  %v20284_v6 = vpop.permute.xlu0 %12467  ;;  %4952 = vmatprep.mubr.bf16.mxu0 %v25022_v46  ;;  %v13849_v32 = vld [vmem:[%s24434_s0 + $0x1c8] sm:$0xff] }
 0x2bb   :  { %12747 = vrot.lane.b32.xlu0 %v12746_v37, %s13996_s19  ;;  %25911 = vst [vmem:[#allocation51_spill] sm:$0xff] %v20284_v6  ;;  %v4349_v37 = vsel %vm4328_vm3, %v12464_v33, %v25913_v48  ;;  %v4350_v7 = vsel %vm4328_vm3, %v12465_v19, %v25914_v61  ;;  %v4552_v8 = vpack.c.bf16 %v4366_v40, %v4365_v18  ;;  %v13848_v33 = vld [vmem:[%s24434_s0 + $0x198] sm:$0xff]  ;;  %v13850_v18 = vld [vmem:[%s24434_s0 + $0x140] sm:$0xff] }
 0x2bc   :  { %v4553_v63 = vpack.c.bf16 %v4350_v7, %v4349_v37  ;;  %v20305_v19 = vpack.i.bf16 %v13849_v32, %v13848_v33  ;;  %v25916_v61 = vld [vmem:[#allocation82_spill] sm:$0xff] }
 0x2bd   :  { %3771 = vmatmul.mubr.bf16.gmra.mrb[40].mxu1 %v13847_v62  ;;  %12762 = vrot.lane.b32.xlu1 %v12761_v0, %s13996_s19  ;;  %v13851_v0 = vld [vmem:[%s24434_s0 + $0x170] sm:$0xff]  ;;  %v25917_v7 = vunpack.i.l.bf16 %v25916_v61  ;;  %v25918_v33 = vunpack.i.h.bf16 %v25916_v61 }
 0x2be   :  { %3780 = vmatprep.mubr.bf16.mxu1 %v25022_v46  ;;  %v12766_v40 = vpack.i.bf16 %v13851_v0, %v13850_v18  ;;  %4751 = vmatprep.subr.bf16.mxu1 %v4553_v63  ;;  %v20316_v25 = vpop.permute.xlu1 %12482  ;;  %v12478_v1 = vpop.permute.xlu0 %12477  ;;  %v25919_v63 = vld [vmem:[#allocation77_spill] sm:$0xff] }
 0x2bf   :  { %12757 = vrot.lane.b32.xlu0 %v20279_v42, %s13995_s12  ;;  %25915 = vst [vmem:[#allocation38_spill] sm:$0xff] %v20316_v25  ;;  %4752 = vmatpush1.bf16.msra.mxu1 %v4552_v8  ;;  %v12480_v48 = vunpack.i.h.bf16 %v12478_v1  ;;  %v12479_v37 = vunpack.i.l.bf16 %v12478_v1  ;;  %v25920_v18 = vunpack.i.l.bf16 %v25919_v63  ;;  %v25921_v0 = vunpack.i.h.bf16 %v25919_v63 }
 0x2c0   :  { %4953 = vmatmul.mubr.bf16.gmra.mrb[40].mxu0 %v19656_v35  ;;  %v13855_v35 = vld [vmem:[%s24434_s0 + $0x1d0] sm:$0xff] }
 0x2c1   :  { %12772 = vrot.lane.b32.xlu1 %v20305_v19, %s13995_s12  ;;  %v4367_v62 = vsel %vm4328_vm3, %v25917_v7, %v12479_v37  ;;  %v4368_v32 = vsel %vm4328_vm3, %v25918_v33, %v12480_v48  ;;  %v4351_v8 = vsel %vm4328_vm3, %v12479_v37, %v25920_v18  ;;  %v4352_v1 = vsel %vm4328_vm3, %v12480_v48, %v25921_v0  ;;  %v13853_v37 = vld [vmem:[%s24434_s0 + $0x1d8] sm:$0xff]  ;;  %v13854_v48 = vld [vmem:[%s24434_s0 + $0x1a0] sm:$0xff] }
 0x2c2   :  { %v12493_v7 = vpop.permute.xlu1 %12492  ;;  %v20338_v5 = vpop.permute.xlu0 %12487  ;;  %v4559_v61 = vpack.c.bf16 %v4352_v1, %v4351_v8  ;;  %v4558_v10 = vpack.c.bf16 %v4368_v32, %v4367_v62  ;;  %v12781_v63 = vpack.i.bf16 %v13855_v35, %v13854_v48  ;;  %v25922_v18 = vld [vmem:[#allocation87_spill] sm:$0xff]  ;;  %4962 = vmatprep.mubr.bf16.mxu0 %v25022_v46  ;;  %v25924_v48 = vunpack.i.l.bf16 %v25923_v56 }
 0x2c3   :  { %12767 = vrot.lane.b32.xlu0 %v12766_v40, %s13996_s19  ;;  %v13852_v40 = vld [vmem:[%s24434_s0 + $0x1a8] sm:$0xff]  ;;  %v12495_v8 = vunpack.i.h.bf16 %v12493_v7  ;;  %v12494_v0 = vunpack.i.l.bf16 %v12493_v7  ;;  %v25925_v32 = vunpack.i.h.bf16 %v25923_v56  ;;  %v12235_v1 = vunpack.i.h.bf16 %v19385_v27 }
 0x2c4   :  { %v12776_v33 = vpack.i.bf16 %v13853_v37, %v13852_v40  ;;  %v13856_v37 = vld [vmem:[%s24435_s1 + $0xd8] sm:$0xff]   ;;  %4753 = vmatprep.subr.bf16.mxu1 %v4559_v61  ;;  %v12234_v40 = vunpack.i.l.bf16 %v19385_v27  ;;  %v25928_v61 = vunpack.i.l.bf16 %v18872_v29  ;;  %v25929_v56 = vunpack.i.h.bf16 %v18872_v29 }
 0x2c5   :  { %3781 = vmatmul.mubr.bf16.gmra.mrb[44].mxu1 %v13856_v37  ;;  %v4369_v35 = vsel %vm4328_vm3, %v25924_v48, %v12494_v0  ;;  %v4370_v7 = vsel %vm4328_vm3, %v25925_v32, %v12495_v8  ;;  %v25930_v27 = vunpack.i.h.bf16 %v25886_v53  ;;  %v25931_v32 = vunpack.i.h.bf16 %v25922_v18  ;;  %12782 = vrot.lane.b32.xlu1 %v12781_v63, %s13996_s19 }
 0x2c6   :  { %4754 = vmatpush1.bf16.msra.mxu1 %v4558_v10  ;;  %v20370_v62 = vpop.permute.xlu1 %12502  ;;  %v20372_v17 = vpop.permute.xlu0 %12497  ;;  %v4353_v37 = vsel %vm4328_vm3, %v12494_v0, %v25928_v61  ;;  %v4354_v10 = vsel %vm4328_vm3, %v12495_v8, %v25929_v56  ;;  %3790 = vmatprep.mubr.bf16.mxu1 %v25022_v46  ;;  %v25933_v54 = vunpack.i.l.bf16 %v25922_v18  ;;  %v4564_v0 = vpack.c.bf16 %v4370_v7, %v4369_v35  ;;  %v13857_v8 = vld [vmem:[%s24434_s0 + $0x1f8] sm:$0xff]  ;;  %v13858_v61 = vld [vmem:[%s24434_s0 + $0x228] sm:$0xff] }
 0x2c7   :  { %25926 = vst [vmem:[#allocation42_spill] sm:$0xff] %v20370_v62  ;;  %25927 = vst [vmem:[#allocation35_spill] sm:$0xff] %v20372_v17  ;;  %12777 = vrot.lane.b32.xlu0 %v12776_v33, %s13996_s19  ;;  %v20390_v48 = vsel %vm5357_vm4, %v25931_v32, %v25930_v27  ;;  %v25932_v33 = vunpack.i.l.bf16 %v25886_v53  ;;  %v20407_v56 = vpack.i.bf16 %v13858_v61, %v13857_v8  ;;  %v25934_v53 = vunpack.i.h.bf16 %v19383_v49  ;;  %v13859_v7 = vld [vmem:[%s24434_s0 + $0x208] sm:$0xff]  ;;  %v13860_v32 = vld [vmem:[%s24434_s0 + $0x238] sm:$0xff] }
 0x2c8   :  { %v4565_v35 = vpack.c.bf16 %v4354_v10, %v4353_v37  ;;  %v13861_v8 = vld [vmem:[%s24434_s0 + $0x258] sm:$0xff]  ;;  %v13862_v61 = vld [vmem:[%s24434_s0 + $0x288] sm:$0xff]  ;;  %4963 = vmatmul.mubr.bf16.gmra.mrb[44].mxu0 %v19704_v36  ;;  %v25955_v17 = vunpack.i.h.bf16 %v19129_v11 }
 0x2c9   :  { %v20398_v29 = vsel %vm5357_vm4, %v25933_v54, %v25932_v33  ;;  %v20413_v27 = vsel %vm5357_vm4, %v25934_v53, %v12235_v1  ;;  %v25935_v54 = vunpack.i.l.bf16 %v19383_v49  ;;  %v12791_v33 = vpack.i.bf16 %v13860_v32, %v13859_v7  ;;  %v13863_v37 = vld [vmem:[%s24434_s0 + $0x2b8] sm:$0xff]  ;;  %v13864_v10 = vld [vmem:[%s24434_s0 + $0x2e8] sm:$0xff]  ;;  %5695 = vmatprep.mubr.bf16.mxu0 %v25022_v46 }
 0x2ca   :  { %v20433_v53 = vpack.i.bf16 %v13862_v61, %v13861_v8  ;;  %4755 = vmatprep.subr.bf16.mxu1 %v4565_v35  ;;  %v20444_v7 = vpop.permute.xlu1 %12512  ;;  %v12508_v32 = vpop.permute.xlu0 %12507  ;;  %v5571_v8 = vpack.c.bf16 %v20390_v48, %v20398_v29  ;;  %v25938_v61 = vunpack.i.l.bf16 %v19088_v51  ;;  %v12244_v51 = vunpack.i.l.bf16 %v19432_v60 }
 0x2cb   :  { %v20419_v63 = vsel %vm5357_vm4, %v25935_v54, %v12234_v40  ;;  %v20441_v54 = vpack.i.bf16 %v13864_v10, %v13863_v37  ;;  %25937 = vst [vmem:[#allocation69_spill] sm:$0xff] %v20444_v7  ;;  %v5441_v37 = vsel %vm5357_vm4, %v12235_v1, %v25939_v15  ;;  %4756 = vmatpush1.bf16.msra.mxu1 %v4564_v0  ;;  %v12510_v36 = vunpack.i.h.bf16 %v12508_v32  ;;  %v13865_v15 = vld [vmem:[%s24435_s1 + $0xe0] sm:$0xff]   ;;  %v25940_v1 = vld [vmem:[#allocation85_spill] sm:$0xff] }
 0x2cc   :  { %v5440_v4 = vsel %vm5357_vm4, %v12234_v40, %v25938_v61  ;;  %v12509_v10 = vunpack.i.l.bf16 %v12508_v32  ;;  %12787 = vrot.lane.b32.xlu0 %v20407_v56, %s13995_s12  ;;  %v12245_v40 = vunpack.i.h.bf16 %v19432_v60  ;;  %12792 = vrot.lane.b32.xlu1 %v12791_v33, %s13996_s19  ;;  %v25941_v0 = vunpack.i.l.bf16 %v25940_v1  ;;  %v25943_v60 = vld [vmem:[#allocation43_spill] sm:$0xff] }
 0x2cd   :  { %25936 = vst [vmem:[#allocation32_spill] sm:$0xff] %v20441_v54  ;;  %3791 = vmatmul.mubr.bf16.gmra.mrb[48].mxu1 %v13865_v15  ;;  %v25942_v48 = vunpack.i.h.bf16 %v25940_v1  ;;  %v25944_v61 = vunpack.i.l.bf16 %v25943_v60  ;;  %v25945_v15 = vunpack.i.h.bf16 %v25943_v60  ;;  %v12254_v60 = vunpack.i.l.bf16 %v19463_v31 }
 0x2ce   :  { %v4371_v32 = vsel %vm4328_vm3, %v25941_v0, %v12509_v10  ;;  %v12523_v0 = vpop.permute.xlu1 %12522  ;;  %v20487_v16 = vpop.permute.xlu0 %12517  ;;  %3800 = vmatprep.mubr.bf16.mxu1 %v25022_v46  ;;  %v25949_v7 = vunpack.i.l.bf16 %v19430_v43 }
 0x2cf   :  { %v4372_v29 = vsel %vm4328_vm3, %v25942_v48, %v12510_v36  ;;  %v4355_v35 = vsel %vm4328_vm3, %v12509_v10, %v25944_v61  ;;  %v4356_v33 = vsel %vm4328_vm3, %v12510_v36, %v25945_v15  ;;  %25946 = vst [vmem:[#allocation47_spill] sm:$0xff] %v20487_v16  ;;  %v20492_v48 = vld [vmem:[%s24435_s1 + $0x140] sm:$0xff]   ;;  %v5578_v10 = vpack.c.bf16 %v5441_v37, %v5440_v4 }
 0x2d0   :  { %v4571_v1 = vpack.c.bf16 %v4356_v33, %v4355_v35  ;;  %v4570_v50 = vpack.c.bf16 %v4372_v29, %v4371_v32  ;;  %v12255_v61 = vunpack.i.h.bf16 %v19463_v31  ;;  %v12525_v36 = vunpack.i.h.bf16 %v12523_v0  ;;  %12797 = vrot.lane.b32.xlu0 %v25947_v26, %s13996_s19  ;;  %12802 = vrot.lane.b32.xlu1 %v20433_v53, %s13995_s12  ;;  %v25952_v32 = vld [vmem:[#allocation6_spill] sm:$0xff] }
 0x2d1   :  { %v12524_v15 = vunpack.i.l.bf16 %v12523_v0  ;;  %v25948_v35 = vunpack.i.h.bf16 %v19430_v43  ;;  %v20509_v4 = vsel %vm5357_vm4, %v25949_v7, %v12244_v51  ;;  %v25950_v31 = vunpack.i.l.bf16 %v19129_v11  ;;  %5696 = vmatmul.mubr.bf16.vlgmr.msra.gmra.mrb[0].mxu0 %v20492_v48 }
 0x2d2   :  { %4757 = vmatprep.subr.bf16.mxu1 %v4571_v1  ;;  %v25951_v37 = vunpack.i.h.bf16 %v19461_v30  ;;  %v25953_v0 = vunpack.i.l.bf16 %v25952_v32  ;;  %v25954_v1 = vunpack.i.h.bf16 %v25952_v32  ;;  %v20544_v32 = vpop.permute.xlu0 %12527  ;;  %5890 = vmatpush1.bf16.msra.mxu0 %v5571_v8 }
 0x2d3   :  { %v20503_v33 = vsel %vm5357_vm4, %v25948_v35, %v12245_v40  ;;  %v5442_v26 = vsel %vm5357_vm4, %v12244_v51, %v25950_v31  ;;  %4758 = vmatpush1.bf16.msra.mxu1 %v4570_v50  ;;  %v5443_v51 = vsel %vm5357_vm4, %v12245_v40, %v25955_v17  ;;  %v25956_v31 = vunpack.i.l.bf16 %v19461_v30  ;;  %25958 = vst [vmem:[#allocation77_spill] sm:$0xff] %v20544_v32  ;;  %v13866_v40 = vld [vmem:[%s24434_s0 + $0x260] sm:$0xff] }
 0x2d4   :  { %v20521_v29 = vsel %vm5357_vm4, %v25951_v37, %v12255_v61  ;;  %v4373_v7 = vsel %vm4328_vm3, %v25953_v0, %v12524_v15  ;;  %v4374_v35 = vsel %vm4328_vm3, %v25954_v1, %v12525_v36  ;;  %v20542_v0 = vpop.permute.xlu1 %12532  ;;  %v25959_v1 = vunpack.i.l.bf16 %v18954_v23  ;;  %12807 = vrot.lane.b32.xlu0 %v19411_v41, %s13996_s19  ;;  %5891 = vmatprep.subr.bf16.mxu0 %v5578_v10  ;;  %v13868_v41 = vld [vmem:[%s24435_s1 + $0xe8] sm:$0xff]  }
 0x2d5   :  { %v20539_v37 = vsel %vm5357_vm4, %v25956_v31, %v12254_v60  ;;  %25957 = vst [vmem:[#allocation82_spill] sm:$0xff] %v20542_v0  ;;  %v25960_v50 = vunpack.i.h.bf16 %v18954_v23  ;;  %v13867_v31 = vld [vmem:[%s24434_s0 + $0x290] sm:$0xff]  ;;  %v4576_v32 = vpack.c.bf16 %v4374_v35, %v4373_v7  ;;  %3801 = vmatmul.mubr.bf16.gmra.mrb[52].mxu1 %v13868_v41  ;;  %5705 = vmatprep.mubr.bf16.mxu0 %v25022_v46  ;;  %v20584_v10 = vld [vmem:[%s24435_s1 + $0x148] sm:$0xff]   ;;  %v26018_v0 = vld [vmem:[#allocation50_spill] sm:$0xff] }
 0x2d6   :  { %v4357_v11 = vsel %vm4328_vm3, %v12524_v15, %v25959_v1  ;;  %v12811_v25 = vpack.i.bf16 %v13867_v31, %v13866_v40  ;;  %v25961_v15 = vunpack.i.l.bf16 %v19136_v52  ;;  %v25964_v40 = vld [vmem:[#allocation95_spill] sm:$0xff]  ;;  %3810 = vmatprep.mubr.bf16.mxu1 %v25022_v46  ;;  %v12538_v35 = vpop.permute.xlu0 %12537  ;;  %v5583_v31 = vpack.c.bf16 %v20503_v33, %v20509_v4  ;;  %v25971_v41 = vld [vmem:[#allocation56_spill] sm:$0xff] }
 0x2d7   :  { %v4358_v17 = vsel %vm4328_vm3, %v12525_v36, %v25960_v50  ;;  %v25962_v36 = vunpack.i.h.bf16 %v19136_v52  ;;  %v25963_v50 = vld [vmem:[#allocation94_spill] sm:$0xff]  ;;  %v12264_v8 = vunpack.i.l.bf16 %v25964_v40  ;;  %v12265_v52 = vunpack.i.h.bf16 %v25964_v40 }
 0x2d8   :  { %v5444_v23 = vsel %vm5357_vm4, %v12254_v60, %v25961_v15  ;;  %v24822_v6 = vunpack.i.h.bf16 %v25963_v50  ;;  %v24823_v3 = vunpack.i.l.bf16 %v25963_v50  ;;  %v4577_v7 = vpack.c.bf16 %v4358_v17, %v4357_v11  ;;  %v20579_v60 = vpop.permute.xlu1 %12542  ;;  %12812 = vrot.lane.b32.xlu1 %v12811_v25, %s13996_s19  ;;  %v13869_v11 = vld [vmem:[%s24434_s0 + $0x2c8] sm:$0xff]  ;;  %12817 = vrot.lane.b32.xlu0 %v20441_v54, %s13995_s12 }
 0x2d9   :  { %v5445_v1 = vsel %vm5357_vm4, %v12255_v61, %v25962_v36  ;;  %v5584_v61 = vpack.c.bf16 %v5443_v51, %v5442_v26  ;;  %25965 = vst [vmem:[#allocation87_spill] sm:$0xff] %v20579_v60  ;;  %v13870_v26 = vld [vmem:[%s24434_s0 + $0x2f8] sm:$0xff]  ;;  %v25966_v17 = vpack.c.bf16 %v20413_v27, %v20419_v63  ;;  %v12540_v15 = vunpack.i.h.bf16 %v12538_v35  ;;  %5706 = vmatmul.mubr.bf16.gmra.mrb[4].mxu0 %v20584_v10 }
 0x2da   :  { %4759 = vmatprep.subr.bf16.mxu1 %v4577_v7  ;;  %v12821_v51 = vpack.i.bf16 %v13870_v26, %v13869_v11  ;;  %v12539_v36 = vunpack.i.l.bf16 %v12538_v35  ;;  %v5590_v40 = vpack.c.bf16 %v5445_v1, %v5444_v23  ;;  %v5589_v25 = vpack.c.bf16 %v20521_v29, %v20539_v37  ;;  %v25968_v29 = vld [vmem:[#allocation76_spill] sm:$0xff]  ;;  %v20637_v26 = vpop.permute.xlu0 %12547  ;;  %5715 = vmatprep.mubr.bf16.mxu0 %v25022_v46 }
 0x2db   :  { %5892 = vmatpush1.bf16.msra.mxu0 %v25966_v17  ;;  %4760 = vmatpush1.bf16.msra.mxu1 %v4576_v32  ;;  %v20604_v33 = vsel %vm5357_vm4, %v24822_v6, %v12265_v52  ;;  %v20610_v4 = vsel %vm5357_vm4, %v24823_v3, %v12264_v8  ;;  %v25967_v27 = vunpack.i.l.bf16 %v19172_v2  ;;  %v25969_v37 = vunpack.i.l.bf16 %v25968_v29  ;;  %25974 = vst [vmem:[#allocation39_spill] sm:$0xff] %v20637_v26  ;;  %v26014_v26 = vld [vmem:[#allocation112_spill] sm:$0xff] }
 0x2dc   :  { %5893 = vmatprep.subr.bf16.mxu0 %v5584_v61  ;;  %v25970_v23 = vunpack.i.h.bf16 %v25968_v29  ;;  %v25972_v7 = vunpack.i.l.bf16 %v25971_v41  ;;  %v25973_v35 = vunpack.i.h.bf16 %v25971_v41  ;;  %v20635_v11 = vpop.permute.xlu1 %12552  ;;  %v25975_v29 = vunpack.i.h.bf16 %v19172_v2  ;;  %12822 = vrot.lane.b32.xlu1 %v12821_v51, %s13996_s19  ;;  %v25977_v41 = vld [vmem:[#allocation98_spill] sm:$0xff]  ;;  %v13872_v2 = vld [vmem:[%s24434_s0 + $0x48] sm:$0xff] }
 0x2dd   :  { %v5446_v63 = vsel %vm5357_vm4, %v12264_v8, %v25967_v27  ;;  %v4375_v32 = vsel %vm4328_vm3, %v25969_v37, %v12539_v36  ;;  %v25983_v51 = vunpack.i.l.bf16 %v25922_v18 }
 0x2de   :  { %v4376_v1 = vsel %vm4328_vm3, %v25970_v23, %v12540_v15  ;;  %v4359_v61 = vsel %vm4328_vm3, %v12539_v36, %v25972_v7  ;;  %v4360_v8 = vsel %vm4328_vm3, %v12540_v15, %v25973_v35  ;;  %v5447_v37 = vsel %vm5357_vm4, %v12265_v52, %v25975_v29  ;;  %v25976_v36 = vld [vmem:[#allocation97_spill] sm:$0xff]  ;;  %v13874_v35 = vld [vmem:[%s24434_s0 + $0x2c0] sm:$0xff]  ;;  %v20672_v3 = vpop.permute.xlu0 %12557 }
 0x2df   :  { %v4583_v17 = vpack.c.bf16 %v4360_v8, %v4359_v61  ;;  %v4582_v27 = vpack.c.bf16 %v4376_v1, %v4375_v32  ;;  %v12275_v7 = vunpack.i.h.bf16 %v25977_v41  ;;  %v12274_v15 = vunpack.i.l.bf16 %v25977_v41  ;;  %5894 = vmatpush1.bf16.msra.mxu0 %v5583_v31  ;;  %v13871_v32 = vld [vmem:[%s24434_s0 + $0x18] sm:$0xff]  ;;  %v13873_v31 = vld [vmem:[%s24435_s1 + $0xf0] sm:$0xff]   ;;  %v25979_v41 = vld [vmem:[#allocation103_spill] sm:$0xff]  ;;  %25981 = vst [vmem:[#allocation8_spill] sm:$0xff] %v20672_v3 }
 0x2e0   :  { %v20654_v52 = vpack.i.bf16 %v13872_v2, %v13871_v32  ;;  %5895 = vmatprep.subr.bf16.mxu0 %v5590_v40  ;;  %v24824_v1 = vunpack.i.h.bf16 %v20635_v11  ;;  %v24825_v61 = vunpack.i.l.bf16 %v20635_v11  ;;  %3811 = vmatmul.mubr.bf16.gmra.mrb[56].mxu1 %v13873_v31  ;;  %v13875_v8 = vld [vmem:[%s24434_s0 + $0x2f0] sm:$0xff]  ;;  %v12285_v40 = vunpack.i.h.bf16 %v25979_v41  ;;  %v20670_v6 = vpop.permute.xlu1 %12562 }
 0x2e1   :  { %v12826_v29 = vpack.i.bf16 %v13875_v8, %v13874_v35  ;;  %v12284_v32 = vunpack.i.l.bf16 %v25979_v41  ;;  %4761 = vmatprep.subr.bf16.mxu1 %v4583_v17  ;;  %v5596_v2 = vpack.c.bf16 %v5447_v37, %v5446_v63  ;;  %25980 = vst [vmem:[#allocation43_spill] sm:$0xff] %v20670_v6  ;;  %v20677_v31 = vld [vmem:[%s24435_s1 + $0x150] sm:$0xff]   ;;  %v25984_v17 = vunpack.i.h.bf16 %v25922_v18  ;;  %3820 = vmatprep.mubr.bf16.mxu1 %v25022_v46  ;;  %v25985_v37 = vld [vmem:[#allocation102_spill] sm:$0xff] }
 0x2e2   :  { %25978 = vst [vmem:[#allocation85_spill] sm:$0xff] %v20654_v52  ;;  %4762 = vmatpush1.bf16.msra.mxu1 %v4582_v27  ;;  %25982 = vst [vmem:[#allocation6_spill] sm:$0xff] %v20677_v31  ;;  %v5374_v35 = vsel %vm5357_vm4, %v24825_v61, %v25983_v51  ;;  %v5595_v27 = vpack.c.bf16 %v20604_v33, %v20610_v4  ;;  %v25986_v23 = vunpack.i.l.bf16 %v19179_v38  ;;  %v25987_v51 = vunpack.i.h.bf16 %v19179_v38  ;;  %v25990_v61 = vld [vmem:[#allocation106_spill] sm:$0xff] }
 0x2e3   :  { %v5375_v63 = vsel %vm5357_vm4, %v24824_v1, %v25984_v17  ;;  %5896 = vmatpush1.bf16.msra.mxu0 %v5589_v25  ;;  %12832 = vrot.lane.b32.xlu1 %v20654_v52, %s13996_s19  ;;  %v25988_v33 = vunpack.i.h.bf16 %v25976_v36  ;;  %v25989_v25 = vunpack.i.l.bf16 %v25976_v36  ;;  %v25991_v41 = vunpack.i.l.bf16 %v25853_v39 }
 0x2e4   :  { %v5448_v18 = vsel %vm5357_vm4, %v12274_v15, %v25986_v23  ;;  %v5449_v17 = vsel %vm5357_vm4, %v12275_v7, %v25987_v51  ;;  %v12294_v23 = vunpack.i.l.bf16 %v25990_v61  ;;  %5897 = vmatprep.subr.bf16.mxu0 %v5596_v2  ;;  %v5570_v38 = vpack.c.bf16 %v5375_v63, %v5374_v35  ;;  %12827 = vrot.lane.b32.xlu0 %v12826_v29, %s13996_s19  ;;  %v20726_v2 = vpop.permute.xlu1 %12572  ;;  %v20728_v35 = vpop.permute.xlu0 %12567  ;;  %v13877_v29 = vld [vmem:[%s24434_s0 + $0x40] sm:$0xff]  ;;  %v13878_v63 = vld [vmem:[%s24434_s0 + $0x8] sm:$0xff] }
 0x2e5   :  { %v5369_v4 = vsel %vm5357_vm4, %v25988_v33, %v12275_v7  ;;  %v5368_v1 = vsel %vm5357_vm4, %v25989_v25, %v12274_v15  ;;  %v12295_v51 = vunpack.i.h.bf16 %v25990_v61  ;;  %v5450_v8 = vsel %vm5357_vm4, %v12284_v32, %v25991_v41  ;;  %5716 = vmatmul.mubr.bf16.gmra.mrb[8].mxu0 %v20677_v31  ;;  %25993 = vst [vmem:[#allocation94_spill] sm:$0xff] %v20728_v35  ;;  %v13876_v61 = vld [vmem:[%s24434_s0 + $0x10] sm:$0xff]  ;;  %v13879_v41 = vld [vmem:[%s24434_s0 + $0x38] sm:$0xff] }
 0x2e6   :  { %v25992_v7 = vunpack.i.h.bf16 %v25853_v39  ;;  %5776 = vmatprep.subr.bf16.mxu1 %v5570_v38  ;;  %v5602_v15 = vpack.c.bf16 %v5449_v17, %v5448_v18  ;;  %v12841_v39 = vpack.i.bf16 %v13877_v29, %v13876_v61  ;;  %v12836_v18 = vpack.i.bf16 %v13879_v41, %v13878_v63  ;;  %5725 = vmatprep.mubr.bf16.mxu0 %v25022_v46  ;;  %v25996_v29 = vld [vmem:[#allocation105_spill] sm:$0xff]  ;;  %v13880_v63 = vld [vmem:[%s24435_s1 + $0xf8] sm:$0xff]  }
 0x2e7   :  { %v25994_v17 = vunpack.i.h.bf16 %v25985_v37  ;;  %v25995_v38 = vunpack.i.l.bf16 %v25985_v37  ;;  %5898 = vmatpush1.bf16.msra.mxu0 %v5595_v27  ;;  %v5601_v61 = vpack.c.bf16 %v5369_v4, %v5368_v1  ;;  %v25997_v41 = vunpack.i.l.bf16 %v25870_v47  ;;  %v25998_v27 = vld [vmem:[#allocation109_spill] sm:$0xff] }
 0x2e8   :  { %v5451_v33 = vsel %vm5357_vm4, %v12285_v40, %v25992_v7  ;;  %5899 = vmatprep.subr.bf16.mxu0 %v5602_v15  ;;  %3821 = vmatmul.mubr.bf16.gmra.mrb[60].mxu1 %v13880_v63  ;;  %v12575_v4 = vunpack.i.h.bf16 %v20726_v2  ;;  %v25999_v15 = vunpack.i.h.bf16 %v25870_v47  ;;  %v20773_v1 = vpop.permute.xlu0 %12577  ;;  %v13881_v47 = vld [vmem:[%s24434_s0 + $0x78] sm:$0xff]  ;;  %v26004_v35 = vunpack.i.l.bf16 %v19383_v49 }
 0x2e9   :  { %v5371_v25 = vsel %vm5357_vm4, %v25994_v17, %v12285_v40  ;;  %v5370_v7 = vsel %vm5357_vm4, %v25995_v38, %v12284_v32  ;;  %v5608_v40 = vpack.c.bf16 %v5451_v33, %v5450_v8  ;;  %v5452_v32 = vsel %vm5357_vm4, %v12294_v23, %v25997_v41  ;;  %4779 = vmatprep.mubr.bf16.mxu1 %v25022_v46  ;;  %v26000_v33 = vld [vmem:[#allocation110_spill] sm:$0xff]  ;;  %v20771_v41 = vpop.permute.xlu1 %12582 }
 0x2ea   :  { %v12574_v17 = vunpack.i.l.bf16 %v20726_v2  ;;  %v5453_v38 = vsel %vm5357_vm4, %v12295_v51, %v25999_v15  ;;  %v12305_v63 = vunpack.i.h.bf16 %v26000_v33  ;;  %v12304_v3 = vunpack.i.l.bf16 %v26000_v33  ;;  %26001 = vst [vmem:[#allocation95_spill] sm:$0xff] %v20771_v41  ;;  %26002 = vst [vmem:[#allocation76_spill] sm:$0xff] %v20773_v1  ;;  %v20778_v2 = vld [vmem:[%s24435_s1 + $0x158] sm:$0xff]   ;;  %12842 = vrot.lane.b32.xlu1 %v12841_v39, %s13997_s18  ;;  %v13882_v15 = vld [vmem:[%s24434_s0 + $0xa8] sm:$0xff]  ;;  %12837 = vrot.lane.b32.xlu0 %v12836_v18, %s13997_s18 }
 0x2eb   :  { %26003 = vst [vmem:[#allocation56_spill] sm:$0xff] %v20778_v2  ;;  %v12851_v33 = vpack.i.bf16 %v13882_v15, %v13881_v47  ;;  %5900 = vmatpush1.bf16.msra.mxu0 %v5601_v61  ;;  %v5607_v8 = vpack.c.bf16 %v5371_v25, %v5370_v7  ;;  %v26005_v1 = vunpack.i.h.bf16 %v19383_v49  ;;  %v26006_v6 = vunpack.i.h.bf16 %v25996_v29  ;;  %v26009_v61 = vld [vmem:[#allocation46_spill] sm:$0xff] }
 0x2ec   :  { %v5376_v39 = vsel %vm5357_vm4, %v12574_v17, %v26004_v35  ;;  %v26007_v18 = vunpack.i.l.bf16 %v25996_v29  ;;  %v26008_v7 = vunpack.i.l.bf16 %v20635_v11  ;;  %v26010_v15 = vunpack.i.l.bf16 %v26009_v61  ;;  %5901 = vmatprep.subr.bf16.mxu0 %v5608_v40  ;;  %v20827_v40 = vpop.permute.xlu0 %12587 }
 0x2ed   :  { %v5377_v41 = vsel %vm5357_vm4, %v12575_v4, %v26005_v1  ;;  %v5373_v47 = vsel %vm5357_vm4, %v26006_v6, %v12295_v51  ;;  %v26011_v35 = vunpack.i.h.bf16 %v20635_v11  ;;  %v26012_v1 = vunpack.i.h.bf16 %v26009_v61  ;;  %v26013_v6 = vld [vmem:[#allocation79_spill] sm:$0xff]  ;;  %5726 = vmatmul.mubr.bf16.gmra.mrb[12].mxu0 %v20778_v2  ;;  %26015 = vst [vmem:[#allocation97_spill] sm:$0xff] %v20827_v40 }
 0x2ee   :  { %v5372_v25 = vsel %vm5357_vm4, %v26007_v18, %v12294_v23  ;;  %v5390_v49 = vsel %vm5357_vm4, %v26010_v15, %v26008_v7  ;;  %v5614_v23 = vpack.c.bf16 %v5453_v38, %v5452_v32  ;;  %v13883_v18 = vld [vmem:[%s24434_s0 + $0x70] sm:$0xff]  ;;  %v13884_v7 = vld [vmem:[%s24434_s0 + $0xa0] sm:$0xff]  ;;  %v12593_v15 = vpop.permute.xlu1 %12592  ;;  %12852 = vrot.lane.b32.xlu1 %v12851_v33, %s13996_s19  ;;  %v26016_v32 = vunpack.i.l.bf16 %v25998_v27  ;;  %5735 = vmatprep.mubr.bf16.mxu0 %v25022_v46 }
 0x2ef   :  { %v5391_v60 = vsel %vm5357_vm4, %v26012_v1, %v26011_v35  ;;  %v12861_v11 = vpack.i.bf16 %v13884_v7, %v13883_v18  ;;  %v5576_v35 = vpack.c.bf16 %v5377_v41, %v5376_v39  ;;  %v26017_v1 = vunpack.i.h.bf16 %v25998_v27  ;;  %5902 = vmatpush1.bf16.msra.mxu0 %v5607_v8  ;;  %v13885_v41 = vld [vmem:[%s24434_s0] sm:$0xff]  ;;  %v13886_v33 = vld [vmem:[%s24434_s0 + $0x30] sm:$0xff]  ;;  %v13904_v27 = vld [vmem:[%s24435_s1 + $0x118] sm:$0xff]  }
 0x2f0   :  { %v6435_v38 = vsel %vm6386_vm5, %v12304_v3, %v26016_v32  ;;  %v12595_v7 = vunpack.i.h.bf16 %v12593_v15  ;;  %v12594_v51 = vunpack.i.l.bf16 %v12593_v15  ;;  %v5569_v61 = vpack.c.bf16 %v5391_v60, %v5390_v49  ;;  %5903 = vmatprep.subr.bf16.mxu0 %v5614_v23  ;;  %v13887_v15 = vld [vmem:[%s24435_s1 + $0x100] sm:$0xff]  }
 0x2f1   :  { %v6436_v18 = vsel %vm6386_vm5, %v12305_v63, %v26017_v1  ;;  %v12846_v39 = vpack.i.bf16 %v13886_v33, %v13885_v41  ;;  %v26019_v40 = vunpack.i.l.bf16 %v26018_v0  ;;  %v26020_v60 = vunpack.i.h.bf16 %v26018_v0  ;;  %4780 = vmatmul.mubr.bf16.vlgmr.msra.gmra.mrb[32].mxu1 %v13887_v15  ;;  %v26022_v32 = vld [vmem:[#allocation115_spill] sm:$0xff]  ;;  %v13890_v15 = vld [vmem:[%s24434_s0 + $0x68] sm:$0xff] }
 0x2f2   :  { %v5613_v1 = vpack.c.bf16 %v5373_v47, %v5372_v25  ;;  %v26021_v41 = vunpack.i.l.bf16 %v26014_v26  ;;  %v24836_v0 = vunpack.i.l.bf16 %v26022_v32  ;;  %5777 = vmatpush1.bf16.msra.mxu1 %v5569_v61  ;;  %v20871_v47 = vpop.permute.xlu1 %12602  ;;  %v20873_v25 = vpop.permute.xlu0 %12597  ;;  %4789 = vmatprep.mubr.bf16.mxu1 %v25022_v46 }
 0x2f3   :  { %v5392_v8 = vsel %vm5357_vm4, %v26019_v40, %v12574_v17  ;;  %v5393_v49 = vsel %vm5357_vm4, %v26020_v60, %v12575_v4  ;;  %v6597_v40 = vpack.c.bf16 %v6436_v18, %v6435_v38  ;;  %v26023_v4 = vunpack.i.h.bf16 %v26014_v26  ;;  %5778 = vmatprep.subr.bf16.mxu1 %v5576_v35  ;;  %26024 = vst [vmem:[#allocation98_spill] sm:$0xff] %v20871_v47  ;;  %v26029_v35 = vld [vmem:[#allocation116_spill] sm:$0xff] }
 0x2f4   :  { %v20861_v33 = vsel %vm6386_vm5, %v26021_v41, %v12304_v3  ;;  %26025 = vst [vmem:[#allocation103_spill] sm:$0xff] %v20873_v25  ;;  %v20878_v3 = vld [vmem:[%s24435_s1 + $0x160] sm:$0xff]   ;;  %v26027_v60 = vunpack.i.l.bf16 %v19430_v43  ;;  %v26028_v38 = vunpack.i.h.bf16 %v19430_v43  ;;  %v5575_v41 = vpack.c.bf16 %v5393_v49, %v5392_v8  ;;  %12862 = vrot.lane.b32.xlu1 %v12861_v11, %s13997_s18  ;;  %v13889_v43 = vld [vmem:[%s24434_s0 + $0x108] sm:$0xff]  ;;  %12847 = vrot.lane.b32.xlu0 %v12846_v39, %s13997_s18 }
 0x2f5   :  { %v20869_v23 = vsel %vm6386_vm5, %v26023_v4, %v12305_v63  ;;  %26026 = vst [vmem:[#allocation102_spill] sm:$0xff] %v20878_v3  ;;  %v13888_v4 = vld [vmem:[%s24434_s0 + $0xd8] sm:$0xff]  ;;  %5904 = vmatpush1.bf16.msra.mxu0 %v5613_v1  ;;  %v26036_v1 = vunpack.i.h.bf16 %v26022_v32 }
 0x2f6   :  { %v5378_v61 = vsel %vm5357_vm4, %v12594_v51, %v26027_v60  ;;  %v5379_v63 = vsel %vm5357_vm4, %v12595_v7, %v26028_v38  ;;  %v20898_v60 = vpack.i.bf16 %v13889_v43, %v13888_v4  ;;  %v26031_v38 = vld [vmem:[#allocation66_spill] sm:$0xff]  ;;  %v26034_v43 = vunpack.i.l.bf16 %v26013_v6  ;;  %5779 = vmatpush1.bf16.msra.mxu1 %v5575_v41  ;;  %6692 = vmatprep.subr.bf16.mxu0 %v6597_v40  ;;  %v12613_v32 = vpop.permute.xlu1 %12612  ;;  %v13892_v40 = vld [vmem:[%s24434_s0 + $0xd0] sm:$0xff]  ;;  %v13893_v41 = vld [vmem:[%s24434_s0 + $0x100] sm:$0xff] }
 0x2f7   :  { %v26032_v17 = vunpack.i.l.bf16 %v26031_v38  ;;  %v26033_v8 = vunpack.i.h.bf16 %v26031_v38  ;;  %v5582_v49 = vpack.c.bf16 %v5379_v63, %v5378_v61  ;;  %v13891_v39 = vld [vmem:[%s24434_s0 + $0x98] sm:$0xff]  ;;  %5736 = vmatmul.mubr.bf16.gmra.mrb[48].mxu0 %v20878_v3  ;;  %v12614_v63 = vunpack.i.l.bf16 %v12613_v32 }
 0x2f8   :  { %26030 = vst [vmem:[#allocation106_spill] sm:$0xff] %v20898_v60  ;;  %v12856_v4 = vpack.i.bf16 %v13891_v39, %v13890_v15  ;;  %v26037_v61 = vld [vmem:[#allocation118_spill] sm:$0xff]  ;;  %5745 = vmatprep.mubr.bf16.mxu0 %v25022_v46  ;;  %12872 = vrot.lane.b32.xlu1 %v20898_v60, %s13996_s19  ;;  %v26048_v60 = vld [vmem:[#allocation44_spill] sm:$0xff] }
 0x2f9   :  { %v5394_v18 = vsel %vm5357_vm4, %v26032_v17, %v12594_v51  ;;  %v5395_v11 = vsel %vm5357_vm4, %v26033_v8, %v12595_v7  ;;  %v20921_v51 = vsel %vm6386_vm5, %v24836_v0, %v26034_v43  ;;  %v26035_v7 = vunpack.i.h.bf16 %v26013_v6  ;;  %v26038_v38 = vld [vmem:[#allocation122_spill] sm:$0xff]  ;;  %v26040_v43 = vld [vmem:[#allocation121_spill] sm:$0xff]  ;;  %5780 = vmatprep.subr.bf16.mxu1 %v5582_v49  ;;  %v26042_v0 = vld [vmem:[#allocation7_spill] sm:$0xff] }
 0x2fa   :  { %v24845_v15 = vunpack.i.l.bf16 %v26038_v38  ;;  %v26039_v8 = vld [vmem:[#allocation78_spill] sm:$0xff]  ;;  %v5581_v16 = vpack.c.bf16 %v5395_v11, %v5394_v18  ;;  %v12881_v49 = vpack.i.bf16 %v13893_v41, %v13892_v40  ;;  %v13894_v18 = vld [vmem:[%s24435_s1 + $0x108] sm:$0xff]   ;;  %12857 = vrot.lane.b32.xlu0 %v12856_v4, %s13997_s18  ;;  %v13895_v11 = vld [vmem:[%s24434_s0 + $0x60] sm:$0xff]  ;;  %v20981_v62 = vpop.permute.xlu1 %12622  ;;  %v26055_v3 = vunpack.i.h.bf16 %v26038_v38 }
 0x2fb   :  { %v20929_v17 = vsel %vm6386_vm5, %v26036_v1, %v26035_v7  ;;  %v20938_v7 = vpop.permute.xlu0 %12607  ;;  %v12615_v1 = vunpack.i.h.bf16 %v12613_v32  ;;  %4790 = vmatmul.mubr.bf16.gmra.mrb[36].mxu1 %v13894_v18  ;;  %v13896_v40 = vld [vmem:[%s24434_s0 + $0x90] sm:$0xff]  ;;  %v26043_v32 = vunpack.i.l.bf16 %v26037_v61  ;;  %v26044_v4 = vld [vmem:[#allocation80_spill] sm:$0xff]  ;;  %26049 = vst [vmem:[#allocation110_spill] sm:$0xff] %v20981_v62  ;;  %v26063_v38 = vunpack.i.l.bf16 %v26048_v60 }
 0x2fc   :  { %26041 = vst [vmem:[#allocation105_spill] sm:$0xff] %v20938_v7  ;;  %v12866_v41 = vpack.i.bf16 %v13896_v40, %v13895_v11  ;;  %v26045_v39 = vunpack.i.l.bf16 %v26044_v4  ;;  %v26046_v7 = vunpack.i.h.bf16 %v26044_v4  ;;  %5781 = vmatpush1.bf16.msra.mxu1 %v5581_v16  ;;  %v26047_v40 = vld [vmem:[#allocation126_spill] sm:$0xff]  ;;  %v26053_v16 = vunpack.i.h.bf16 %v19461_v30  ;;  %4799 = vmatprep.mubr.bf16.mxu1 %v25022_v46 }
 0x2fd   :  { %v20969_v18 = vsel %vm6386_vm5, %v24845_v15, %v26043_v32  ;;  %v20988_v32 = vld [vmem:[%s24435_s1 + $0x168] sm:$0xff]   ;;  %v26054_v15 = vunpack.i.h.bf16 %v26037_v61  ;;  %12882 = vrot.lane.b32.xlu1 %v12881_v49, %s13997_s18  ;;  %v26077_v54 = vunpack.i.l.bf16 %v26039_v8  ;;  %v26078_v31 = vunpack.i.l.bf16 %v26037_v61 }
 0x2fe   :  { %v5396_v25 = vsel %vm5357_vm4, %v26045_v39, %v12614_v63  ;;  %v5397_v11 = vsel %vm5357_vm4, %v26046_v7, %v12615_v1  ;;  %26051 = vst [vmem:[#allocation79_spill] sm:$0xff] %v20988_v32  ;;  %v26052_v39 = vunpack.i.l.bf16 %v19461_v30  ;;  %v5381_v7 = vsel %vm5357_vm4, %v12615_v1, %v26053_v16  ;;  %12867 = vrot.lane.b32.xlu0 %v12866_v41, %s13997_s18  ;;  %v12633_v41 = vpop.permute.xlu1 %12632 }
 0x2ff   :  { %v20983_v52 = vpop.permute.xlu0 %12617  ;;  %v21005_v47 = vsel %vm6386_vm5, %v26055_v3, %v26054_v15  ;;  %v26057_v30 = vunpack.i.l.bf16 %v26040_v43  ;;  %v26058_v1 = vunpack.i.l.bf16 %v26042_v0  ;;  %v26059_v16 = vunpack.i.h.bf16 %v26040_v43  ;;  %5746 = vmatmul.mubr.bf16.gmra.mrb[52].mxu0 %v20988_v32  ;;  %v13901_v32 = vld [vmem:[%s24435_s1 + $0x110] sm:$0xff]  }
 0x300   :  { %26050 = vst [vmem:[#allocation46_spill] sm:$0xff] %v20983_v52  ;;  %v5380_v4 = vsel %vm5357_vm4, %v12614_v63, %v26052_v39  ;;  %v26056_v52 = vld [vmem:[#allocation3_spill] sm:$0xff]  ;;  %v5587_v63 = vpack.c.bf16 %v5397_v11, %v5396_v25  ;;  %v26060_v3 = vunpack.i.h.bf16 %v26042_v0  ;;  %v26061_v25 = vld [vmem:[#allocation125_spill] sm:$0xff]  ;;  %v26062_v0 = vunpack.i.l.bf16 %v26047_v40  ;;  %5755 = vmatprep.mubr.bf16.mxu0 %v25022_v46 }
 0x301   :  { %v21016_v39 = vsel %vm6386_vm5, %v26058_v1, %v26057_v30  ;;  %v5588_v62 = vpack.c.bf16 %v5381_v7, %v5380_v4  ;;  %v12635_v2 = vunpack.i.h.bf16 %v12633_v41  ;;  %v12634_v11 = vunpack.i.l.bf16 %v12633_v41  ;;  %12892 = vrot.lane.b32.xlu1 %v20279_v42, %s13996_s19 }
 0x302   :  { %v21024_v15 = vsel %vm6386_vm5, %v26060_v3, %v26059_v16  ;;  %v21039_v4 = vsel %vm6386_vm5, %v26063_v38, %v26062_v0  ;;  %v13897_v16 = vld [vmem:[%s24434_s0 + $0x130] sm:$0xff]  ;;  %v13898_v3 = vld [vmem:[%s24434_s0 + $0x160] sm:$0xff]  ;;  %v13899_v0 = vld [vmem:[%s24434_s0 + $0xc8] sm:$0xff]  ;;  %v26066_v41 = vunpack.i.l.bf16 %v26013_v6  ;;  %v26070_v42 = vunpack.i.h.bf16 %v26048_v60  ;;  %v21102_v60 = vpop.permute.xlu1 %12642 }
 0x303   :  { %5782 = vmatprep.subr.bf16.mxu1 %v5588_v62  ;;  %v21042_v7 = vpop.permute.xlu0 %12627  ;;  %v12901_v30 = vpack.i.bf16 %v13898_v3, %v13897_v16  ;;  %v13900_v62 = vld [vmem:[%s24434_s0 + $0xf8] sm:$0xff]  ;;  %4800 = vmatmul.mubr.bf16.gmra.mrb[40].mxu1 %v13901_v32  ;;  %v26068_v16 = vunpack.i.h.bf16 %v26013_v6  ;;  %v26069_v32 = vunpack.i.h.bf16 %v26047_v40 }
 0x304   :  { %26064 = vst [vmem:[#allocation112_spill] sm:$0xff] %v21042_v7  ;;  %v12876_v38 = vpack.i.bf16 %v13900_v62, %v13899_v0  ;;  %5783 = vmatpush1.bf16.msra.mxu1 %v5587_v63  ;;  %v26065_v63 = vunpack.i.l.bf16 %v26029_v35  ;;  %v26067_v62 = vunpack.i.h.bf16 %v26029_v35  ;;  %4809 = vmatprep.mubr.bf16.mxu1 %v25022_v46 }
 0x305   :  { %v21089_v3 = vsel %vm6386_vm5, %v26070_v42, %v26069_v32  ;;  %v21109_v42 = vld [vmem:[%s24435_s1 + $0x170] sm:$0xff]   ;;  %12902 = vrot.lane.b32.xlu1 %v12901_v30, %s13997_s18 }
 0x306   :  { %v21073_v0 = vsel %vm6386_vm5, %v26066_v41, %v26065_v63  ;;  %v21081_v49 = vsel %vm6386_vm5, %v26068_v16, %v26067_v62  ;;  %v26071_v63 = vld [vmem:[#allocation61_spill] sm:$0xff]  ;;  %26074 = vst [vmem:[#allocation50_spill] sm:$0xff] %v21109_v42  ;;  %12877 = vrot.lane.b32.xlu0 %v12876_v38, %s13997_s18  ;;  %v26082_v38 = vunpack.i.h.bf16 %v19991_v34 }
 0x307   :  { %v26072_v41 = vunpack.i.l.bf16 %v26071_v63  ;;  %v26073_v6 = vunpack.i.h.bf16 %v26071_v63  ;;  %v21104_v32 = vpop.permute.xlu0 %12637  ;;  %5756 = vmatmul.mubr.bf16.gmra.mrb[56].mxu0 %v21109_v42 }
 0x308   :  { %5765 = vmatprep.mubr.bf16.mxu0 %v25022_v46 }
 0x309   :  { %v5398_v7 = vsel %vm5357_vm4, %v26072_v41, %v12634_v11  ;;  %v5399_v16 = vsel %vm5357_vm4, %v26073_v6, %v12635_v2  ;;  %v26075_v41 = vunpack.i.l.bf16 %v25963_v50  ;;  %v26076_v6 = vunpack.i.h.bf16 %v25963_v50  ;;  %12912 = vrot.lane.b32.xlu1 %v20305_v19, %s13996_s19 }
 0x30a   :  { %v5593_v35 = vpack.c.bf16 %v5399_v16, %v5398_v7  ;;  %v26079_v50 = vunpack.i.l.bf16 %v19930_v58  ;;  %v26081_v7 = vunpack.i.h.bf16 %v19930_v58  ;;  %v26089_v19 = vunpack.i.h.bf16 %v26040_v43 }
 0x30b   :  { %v5382_v63 = vsel %vm5357_vm4, %v12634_v11, %v26075_v41  ;;  %v5383_v1 = vsel %vm5357_vm4, %v12635_v2, %v26076_v6  ;;  %v21130_v11 = vsel %vm6386_vm5, %v26078_v31, %v26077_v54  ;;  %v26080_v2 = vunpack.i.l.bf16 %v19991_v34  ;;  %4810 = vmatmul.mubr.bf16.gmra.mrb[44].mxu1 %v13904_v27 }
 0x30c   :  { %v21146_v16 = vsel %vm6386_vm5, %v26082_v38, %v26081_v7  ;;  %v5594_v6 = vpack.c.bf16 %v5383_v1, %v5382_v63  ;;  %v26083_v54 = vunpack.i.h.bf16 %v26039_v8  ;;  %v26084_v31 = vunpack.i.h.bf16 %v26037_v61  ;;  %v12653_v61 = vpop.permute.xlu1 %12652  ;;  %v21165_v38 = vpop.permute.xlu0 %12647  ;;  %v26090_v7 = vld [vmem:[#allocation58_spill] sm:$0xff]  ;;  %4819 = vmatprep.mubr.bf16.mxu1 %v25022_v46 }
 0x30d   :  { %v21138_v41 = vsel %vm6386_vm5, %v26080_v2, %v26079_v50  ;;  %26085 = vst [vmem:[#allocation66_spill] sm:$0xff] %v21165_v38  ;;  %v12655_v2 = vunpack.i.h.bf16 %v12653_v61  ;;  %v12654_v1 = vunpack.i.l.bf16 %v12653_v61  ;;  %v13906_v61 = vld [vmem:[%s24434_s0 + $0x1c0] sm:$0xff]  ;;  %v26088_v27 = vunpack.i.h.bf16 %v26056_v52 }
 0x30e   :  { %v21155_v62 = vsel %vm6386_vm5, %v26084_v31, %v26083_v54  ;;  %5784 = vmatprep.subr.bf16.mxu1 %v5594_v6  ;;  %v13902_v54 = vld [vmem:[%s24434_s0 + $0xc0] sm:$0xff]  ;;  %v13903_v31 = vld [vmem:[%s24434_s0 + $0xf0] sm:$0xff]  ;;  %v26087_v6 = vunpack.i.l.bf16 %v26040_v43  ;;  %v26091_v34 = vunpack.i.l.bf16 %v26090_v7 }
 0x30f   :  { %v12886_v50 = vpack.i.bf16 %v13903_v31, %v13902_v54  ;;  %5785 = vmatpush1.bf16.msra.mxu1 %v5593_v35  ;;  %v13905_v35 = vld [vmem:[%s24434_s0 + $0x190] sm:$0xff]  ;;  %v26086_v31 = vunpack.i.l.bf16 %v26056_v52  ;;  %v21202_v30 = vsel %vm6386_vm5, %v26089_v19, %v26088_v27  ;;  %v26096_v27 = vunpack.i.h.bf16 %v21104_v32 }
 0x310   :  { %v12921_v54 = vpack.i.bf16 %v13906_v61, %v13905_v35  ;;  %v5400_v35 = vsel %vm5357_vm4, %v26091_v34, %v12654_v1  ;;  %v26092_v61 = vunpack.i.h.bf16 %v26090_v7  ;;  %v26097_v19 = vunpack.i.h.bf16 %v21165_v38  ;;  %v21233_v52 = vpop.permute.xlu0 %12657 }
 0x311   :  { %v21194_v63 = vsel %vm6386_vm5, %v26087_v6, %v26086_v31  ;;  %v26093_v6 = vunpack.i.l.bf16 %v21104_v32  ;;  %v26094_v31 = vunpack.i.l.bf16 %v21165_v38  ;;  %12887 = vrot.lane.b32.xlu0 %v12886_v50, %s13997_s18 }
 0x312   :  { %v5401_v42 = vsel %vm5357_vm4, %v26092_v61, %v12655_v2  ;;  %v21226_v34 = vsel %vm7415_vm6, %v26097_v19, %v26096_v27  ;;  %v21231_v61 = vpop.permute.xlu1 %12662  ;;  %v26102_v19 = vunpack.i.h.bf16 %v25976_v36  ;;  %12922 = vrot.lane.b32.xlu1 %v12921_v54, %s13997_s18  ;;  %v13910_v54 = vld [vmem:[%s24434_s0 + $0x220] sm:$0xff] }
 0x313   :  { %v21218_v43 = vsel %vm7415_vm6, %v26094_v31, %v26093_v6  ;;  %26098 = vst [vmem:[#allocation121_spill] sm:$0xff] %v21226_v34  ;;  %26099 = vst [vmem:[#allocation80_spill] sm:$0xff] %v21231_v61  ;;  %v21238_v6 = vld [vmem:[%s24435_s1 + $0x178] sm:$0xff]   ;;  %v26101_v31 = vunpack.i.l.bf16 %v25976_v36  ;;  %v26104_v34 = vunpack.i.l.bf16 %v20082_v57  ;;  %v5599_v61 = vpack.c.bf16 %v5401_v42, %v5400_v35 }
 0x314   :  { %26095 = vst [vmem:[#allocation118_spill] sm:$0xff] %v21218_v43  ;;  %26100 = vst [vmem:[#allocation126_spill] sm:$0xff] %v21238_v6  ;;  %v5385_v38 = vsel %vm5357_vm4, %v12655_v2, %v26102_v19  ;;  %v26103_v43 = vunpack.i.l.bf16 %v20037_v21  ;;  %v13907_v2 = vld [vmem:[%s24434_s0 + $0x128] sm:$0xff]  ;;  %5766 = vmatmul.mubr.bf16.gmra.mrb[60].mxu0 %v21238_v6  ;;  %v26108_v42 = vunpack.i.l.bf16 %v26061_v25  ;;  %v26109_v36 = vunpack.i.l.bf16 %v26047_v40 }
 0x315   :  { %v5384_v27 = vsel %vm5357_vm4, %v12654_v1, %v26101_v31  ;;  %v26105_v1 = vunpack.i.h.bf16 %v20037_v21  ;;  %v26106_v31 = vunpack.i.h.bf16 %v20082_v57  ;;  %v26110_v35 = vunpack.i.h.bf16 %v26061_v25  ;;  %5921 = vmatprep.mubr.bf16.mxu0 %v25022_v46  ;;  %v13911_v57 = vld [vmem:[%s24435_s1 + $0x120] sm:$0xff]  }
 0x316   :  { %v21257_v8 = vsel %vm6386_vm5, %v26104_v34, %v26103_v43  ;;  %v5600_v19 = vpack.c.bf16 %v5385_v38, %v5384_v27  ;;  %v12673_v27 = vpop.permute.xlu1 %12672  ;;  %v21293_v7 = vsel %vm6386_vm5, %v26109_v36, %v26108_v42  ;;  %4820 = vmatmul.mubr.bf16.gmra.mrb[48].mxu1 %v13911_v57  ;;  %12932 = vrot.lane.b32.xlu1 %v20407_v56, %s13996_s19  ;;  %v26116_v57 = vunpack.i.l.bf16 %v25849_v55 }
 0x317   :  { %v21269_v50 = vsel %vm6386_vm5, %v26106_v31, %v26105_v1  ;;  %v13908_v1 = vld [vmem:[%s24434_s0 + $0x158] sm:$0xff]  ;;  %v21285_v31 = vpop.permute.xlu0 %12667  ;;  %v12675_v36 = vunpack.i.h.bf16 %v12673_v27  ;;  %v12674_v42 = vunpack.i.l.bf16 %v12673_v27  ;;  %v26117_v34 = vunpack.i.h.bf16 %v25849_v55  ;;  %4829 = vmatprep.mubr.bf16.mxu1 %v25022_v46 }
 0x318   :  { %v12896_v38 = vpack.i.bf16 %v13908_v1, %v13907_v2  ;;  %5786 = vmatprep.subr.bf16.mxu1 %v5600_v19  ;;  %26107 = vst [vmem:[#allocation125_spill] sm:$0xff] %v21285_v31  ;;  %v26111_v2 = vunpack.i.h.bf16 %v26047_v40  ;;  %v13909_v19 = vld [vmem:[%s24434_s0 + $0x1f0] sm:$0xff] }
 0x319   :  { %v12941_v43 = vpack.i.bf16 %v13910_v54, %v13909_v19  ;;  %5787 = vmatpush1.bf16.msra.mxu1 %v5599_v61  ;;  %v26112_v61 = vunpack.i.l.bf16 %v19928_v12  ;;  %v26113_v54 = vunpack.i.l.bf16 %v19930_v58  ;;  %v26114_v19 = vunpack.i.h.bf16 %v19928_v12 }
 0x31a   :  { %v21301_v1 = vsel %vm6386_vm5, %v26111_v2, %v26110_v35  ;;  %v26115_v35 = vunpack.i.h.bf16 %v19930_v58  ;;  %v5402_v56 = vsel %vm5357_vm4, %v26116_v57, %v12674_v42  ;;  %v5403_v40 = vsel %vm5357_vm4, %v26117_v34, %v12675_v36  ;;  %v21362_v6 = vpop.permute.xlu1 %12682  ;;  %12897 = vrot.lane.b32.xlu0 %v12896_v38, %s13997_s18  ;;  %v13913_v38 = vld [vmem:[%s24434_s0 + $0x150] sm:$0xff] }
 0x31b   :  { %v21325_v27 = vsel %vm6386_vm5, %v26113_v54, %v26112_v61  ;;  %v26118_v61 = vunpack.i.l.bf16 %v21233_v52  ;;  %v26119_v54 = vunpack.i.l.bf16 %v21285_v31  ;;  %v5605_v55 = vpack.c.bf16 %v5403_v40, %v5402_v56  ;;  %v21375_v56 = vpop.permute.xlu0 %12677  ;;  %12942 = vrot.lane.b32.xlu1 %v12941_v43, %s13997_s18 }
 0x31c   :  { %v21333_v2 = vsel %vm6386_vm5, %v26115_v35, %v26114_v19  ;;  %v26121_v35 = vunpack.i.h.bf16 %v21233_v52  ;;  %v26122_v19 = vunpack.i.h.bf16 %v21285_v31  ;;  %v26123_v12 = vunpack.i.l.bf16 %v25985_v37  ;;  %5922 = vmatmul.mubr.bf16.vlgmr.msra.gmra.mrb[16].mxu0 %v20492_v48 }
 0x31d   :  { %v21349_v58 = vsel %vm7415_vm6, %v26119_v54, %v26118_v61  ;;  %v26124_v54 = vunpack.i.h.bf16 %v25985_v37  ;;  %v13912_v37 = vld [vmem:[%s24434_s0 + $0x120] sm:$0xff]  ;;  %v26128_v34 = vunpack.i.h.bf16 %v20152_v20  ;;  %5931 = vmatprep.mubr.bf16.mxu0 %v25022_v46  ;;  %v26130_v48 = vunpack.i.l.bf16 %v20035_v13 }
 0x31e   :  { %26120 = vst [vmem:[#allocation61_spill] sm:$0xff] %v21349_v58  ;;  %v21357_v57 = vsel %vm7415_vm6, %v26122_v19, %v26121_v35  ;;  %v5386_v61 = vsel %vm5357_vm4, %v12674_v42, %v26123_v12  ;;  %v26127_v12 = vunpack.i.h.bf16 %v20121_v9  ;;  %v26141_v58 = vunpack.i.h.bf16 %v21375_v56 }
 0x31f   :  { %v5387_v31 = vsel %vm5357_vm4, %v12675_v36, %v26124_v54  ;;  %v12906_v36 = vpack.i.bf16 %v13913_v38, %v13912_v37  ;;  %v26126_v54 = vunpack.i.l.bf16 %v20152_v20  ;;  %v21422_v40 = vpop.permute.xlu0 %12687  ;;  %12952 = vrot.lane.b32.xlu1 %v20433_v53, %s13996_s19  ;;  %v26148_v53 = vpack.c.bf16 %v21155_v62, %v21130_v11 }
 0x320   :  { %v5606_v19 = vpack.c.bf16 %v5387_v31, %v5386_v61  ;;  %v26125_v61 = vunpack.i.l.bf16 %v20121_v9  ;;  %v21406_v37 = vsel %vm6386_vm5, %v26128_v34, %v26127_v12  ;;  %v13915_v34 = vld [vmem:[%s24434_s0 + $0x1b8] sm:$0xff]  ;;  %v24884_v11 = vunpack.i.h.bf16 %v21102_v60 }
 0x321   :  { %12907 = vrot.lane.b32.xlu0 %v12906_v36, %s13997_s18 }
 0x322   :  { %v21398_v43 = vsel %vm6386_vm5, %v26126_v54, %v26125_v61  ;;  %5788 = vmatprep.subr.bf16.mxu1 %v5606_v19  ;;  %v12693_v61 = vpop.permute.xlu1 %12692  ;;  %v13914_v54 = vld [vmem:[%s24434_s0 + $0x188] sm:$0xff]  ;;  %v26129_v19 = vpack.c.bf16 %v20869_v23, %v20861_v33 }
 0x323   :  { %5789 = vmatpush1.bf16.msra.mxu1 %v5605_v55  ;;  %v12916_v12 = vpack.i.bf16 %v13915_v34, %v13914_v54  ;;  %v12695_v38 = vunpack.i.h.bf16 %v12693_v61  ;;  %v12694_v42 = vunpack.i.l.bf16 %v12693_v61  ;;  %v26131_v55 = vunpack.i.l.bf16 %v20037_v21 }
 0x324   :  { %6693 = vmatpush1.bf16.msra.mxu0 %v26129_v19  ;;  %v26132_v54 = vunpack.i.h.bf16 %v20035_v13  ;;  %v26133_v34 = vunpack.i.h.bf16 %v20037_v21  ;;  %v13916_v19 = vld [vmem:[%s24435_s1 + $0x128] sm:$0xff]   ;;  %v26137_v21 = vunpack.i.l.bf16 %v25996_v29  ;;  %v26138_v61 = vunpack.i.h.bf16 %v25996_v29 }
 0x325   :  { %v21431_v31 = vsel %vm6386_vm5, %v26131_v55, %v26130_v48  ;;  %4830 = vmatmul.mubr.bf16.gmra.mrb[52].mxu1 %v13916_v19  ;;  %v26134_v48 = vpack.c.bf16 %v21081_v49, %v21073_v0  ;;  %v21454_v55 = vld [vmem:[%s24434_s0 + $0x250] sm:$0xff]  ;;  %v26135_v19 = vunpack.i.l.bf16 %v19277_v59  ;;  %v26136_v0 = vunpack.i.h.bf16 %v19277_v59  ;;  %5932 = vmatmul.mubr.bf16.gmra.mrb[20].mxu0 %v20584_v10  ;;  %v13923_v10 = vld [vmem:[%s24434_s0 + $0x218] sm:$0xff] }
 0x326   :  { %v21439_v33 = vsel %vm6386_vm5, %v26133_v34, %v26132_v54  ;;  %v21459_v54 = vld [vmem:[%s24434_s0 + $0x280] sm:$0xff]  ;;  %v5388_v23 = vsel %vm5357_vm4, %v12694_v42, %v26137_v21  ;;  %v5389_v34 = vsel %vm5357_vm4, %v12695_v38, %v26138_v61  ;;  %4839 = vmatprep.mubr.bf16.mxu1 %v25022_v46  ;;  %v26140_v59 = vunpack.i.l.bf16 %v21422_v40  ;;  %12917 = vrot.lane.b32.xlu0 %v12916_v12, %s13997_s18 }
 0x327   :  { %6694 = vmatprep.subr.bf16.mxu0 %v26134_v48  ;;  %v5404_v49 = vsel %vm5357_vm4, %v26135_v19, %v12694_v42  ;;  %v5405_v48 = vsel %vm5357_vm4, %v26136_v0, %v12695_v38  ;;  %v26139_v19 = vunpack.i.l.bf16 %v21375_v56  ;;  %v26142_v42 = vunpack.i.h.bf16 %v21422_v40  ;;  %v21496_v38 = vpop.permute.xlu1 %12702  ;;  %5941 = vmatprep.mubr.bf16.mxu0 %v25022_v46 }
 0x328   :  { %v5611_v35 = vpack.c.bf16 %v5405_v48, %v5404_v49  ;;  %v5612_v61 = vpack.c.bf16 %v5389_v34, %v5388_v23  ;;  %v24877_v21 = vunpack.i.h.bf16 %v20192_v24  ;;  %v26143_v48 = vpack.c.bf16 %v20929_v17, %v20921_v51 }
 0x329   :  { %v21486_v0 = vsel %vm7415_vm6, %v26140_v59, %v26139_v19  ;;  %v21494_v29 = vsel %vm7415_vm6, %v26142_v42, %v26141_v58  ;;  %v21505_v19 = vpop.permute.xlu0 %12697  ;;  %v26144_v58 = vunpack.i.l.bf16 %v20119_v28  ;;  %v26145_v23 = vunpack.i.l.bf16 %v20121_v9 }
 0x32a   :  { %6695 = vmatpush1.bf16.msra.mxu0 %v26143_v48  ;;  %v26146_v34 = vunpack.i.h.bf16 %v20119_v28  ;;  %v26147_v59 = vunpack.i.h.bf16 %v20121_v9  ;;  %v24876_v17 = vunpack.i.l.bf16 %v20192_v24  ;;  %5790 = vmatprep.subr.bf16.mxu1 %v5612_v61  ;;  %v26149_v48 = vunpack.i.l.bf16 %v26014_v26 }
 0x32b   :  { %v21515_v36 = vsel %vm6386_vm5, %v26145_v23, %v26144_v58  ;;  %6696 = vmatprep.subr.bf16.mxu0 %v26148_v53  ;;  %v26150_v58 = vunpack.i.l.bf16 %v20194_v44  ;;  %v26151_v23 = vunpack.i.h.bf16 %v26014_v26  ;;  %5791 = vmatpush1.bf16.msra.mxu1 %v5611_v35  ;;  %v13920_v53 = vld [vmem:[%s24434_s0 + $0x1b0] sm:$0xff]  ;;  %v21561_v35 = vpop.permute.xlu1 %12712 }
 0x32c   :  { %v21523_v51 = vsel %vm6386_vm5, %v26147_v59, %v26146_v34  ;;  %v26152_v34 = vunpack.i.h.bf16 %v20194_v44  ;;  %v13919_v59 = vld [vmem:[%s24434_s0 + $0x180] sm:$0xff] }
 0x32d   :  { %v21537_v9 = vsel %vm6386_vm5, %v26150_v58, %v26149_v48  ;;  %v12926_v26 = vpack.i.bf16 %v13920_v53, %v13919_v59  ;;  %v26153_v53 = vpack.c.bf16 %v21005_v47, %v20969_v18  ;;  %v24878_v48 = vunpack.i.h.bf16 %v21561_v35  ;;  %v21572_v42 = vpop.permute.xlu0 %12707  ;;  %v13921_v47 = vld [vmem:[%s24435_s1 + $0x130] sm:$0xff]  }
 0x32e   :  { %v21545_v62 = vsel %vm6386_vm5, %v26152_v34, %v26151_v23  ;;  %v24883_v23 = vunpack.i.h.bf16 %v21505_v19  ;;  %v24880_v34 = vunpack.i.l.bf16 %v21505_v19  ;;  %v24881_v58 = vunpack.i.l.bf16 %v21561_v35  ;;  %4840 = vmatmul.mubr.bf16.gmra.mrb[56].mxu1 %v13921_v47  ;;  %v21616_v47 = vld [vmem:[%s24434_s0 + $0x210] sm:$0xff] }
 0x32f   :  { %6697 = vmatpush1.bf16.msra.mxu0 %v26153_v53  ;;  %v24882_v12 = vunpack.i.h.bf16 %v21572_v42  ;;  %v24879_v49 = vunpack.i.l.bf16 %v21572_v42  ;;  %v26154_v18 = vpack.c.bf16 %v21202_v30, %v21194_v63  ;;  %v21588_v53 = vld [vmem:[%s24434_s0 + $0x1e8] sm:$0xff]  ;;  %4849 = vmatprep.mubr.bf16.mxu1 %v25022_v46  ;;  %v6404_v63 = vsel %vm6386_vm5, %v24878_v48, %v24877_v21  ;;  %v21637_v61 = vpop.permute.xlu1 %12722 }
 0x330   :  { %v12936_v59 = vpack.i.bf16 %v13923_v10, %v21588_v53  ;;  %v6403_v30 = vsel %vm6386_vm5, %v24881_v58, %v24876_v17  ;;  %v21611_v10 = vld [vmem:[%s24434_s0 + $0x1e0] sm:$0xff]  ;;  %v24885_v53 = vunpack.i.l.bf16 %v21102_v60  ;;  %v26157_v48 = vpack.i.bf16 %v21459_v54, %v21454_v55  ;;  %12927 = vrot.lane.b32.xlu0 %v12926_v26, %s13997_s18  ;;  %v21656_v55 = vld [vmem:[%s24434_s0 + $0x248] sm:$0xff]  ;;  %v21661_v54 = vld [vmem:[%s24434_s0 + $0x278] sm:$0xff] }
 0x331   :  { %6698 = vmatprep.subr.bf16.mxu0 %v26154_v18  ;;  %v21627_v17 = vsel %vm7415_vm6, %v24879_v49, %v24880_v34  ;;  %v21635_v21 = vsel %vm7415_vm6, %v24882_v12, %v24883_v23  ;;  %v6599_v18 = vpack.c.bf16 %v6404_v63, %v6403_v30  ;;  %v26158_v34 = vpack.c.bf16 %v21024_v15, %v21016_v39  ;;  %v21650_v23 = vpop.permute.xlu0 %12717 }
 0x332   :  { %26155 = vst [vmem:[#allocation58_spill] sm:$0xff] %v21627_v17  ;;  %26156 = vst [vmem:[#allocation133_spill] sm:$0xff] %v21635_v21  ;;  %12962 = vrot.lane.b32.xlu1 %v26157_v48, %s13997_s18  ;;  %v24887_v58 = vunpack.i.h.bf16 %v21637_v61  ;;  %v24890_v12 = vunpack.i.l.bf16 %v21637_v61  ;;  %v24886_v15 = vunpack.i.h.bf16 %v21650_v23  ;;  %v24889_v48 = vunpack.i.l.bf16 %v21650_v23 }
 0x333   :  { %6699 = vmatpush1.bf16.msra.mxu0 %v26158_v34  ;;  %v26159_v26 = vpack.c.bf16 %v21301_v1, %v21293_v7  ;;  %6805 = vmatprep.subr.bf16.mxu1 %v6599_v18  ;;  %v26160_v34 = vunpack.i.l.bf16 %v21104_v32  ;;  %v26161_v63 = vunpack.i.h.bf16 %v21104_v32  ;;  %v21690_v1 = vld [vmem:[%s24434_s0 + $0x240] sm:$0xff]  ;;  %v21695_v18 = vld [vmem:[%s24434_s0 + $0x270] sm:$0xff]  ;;  %v26167_v7 = vld [vmem:[#allocation32_spill] sm:$0xff]  ;;  %v26168_v17 = vpack.c.bf16 %v21089_v3, %v21039_v4 }
 0x334   :  { %v13930_v32 = vld [vmem:[%s24434_s0 + $0x2b0] sm:$0xff]  ;;  %v26169_v39 = vpack.c.bf16 %v21333_v2, %v21325_v27  ;;  %12937 = vrot.lane.b32.xlu0 %v12936_v59, %s13997_s18  ;;  %v26179_v59 = vunpack.i.l.bf16 %v20254_v14 }
 0x335   :  { %6700 = vmatprep.subr.bf16.mxu0 %v26159_v26  ;;  %v21676_v30 = vsel %vm7415_vm6, %v26160_v34, %v24885_v53  ;;  %v21684_v49 = vsel %vm7415_vm6, %v26161_v63, %v24884_v11  ;;  %v13931_v34 = vld [vmem:[%s24434_s0 + $0x2e0] sm:$0xff]  ;;  %v26162_v53 = vld [vmem:[#allocation80_spill] sm:$0xff]  ;;  %v21715_v26 = vsel %vm7415_vm6, %v24887_v58, %v24886_v15  ;;  %v21726_v11 = vpop.permute.xlu1 %12732  ;;  %v26171_v15 = vunpack.i.l.bf16 %v21233_v52 }
 0x336   :  { %v12981_v63 = vpack.i.bf16 %v13931_v34, %v13930_v32  ;;  %26163 = vst [vmem:[#allocation80_spill] sm:$0xff] %v21715_v26  ;;  %v21723_v32 = vsel %vm7415_vm6, %v24890_v12, %v24889_v48  ;;  %v26165_v34 = vld [vmem:[#allocation6_spill] sm:$0xff]  ;;  %12972 = vrot.lane.b32.xlu1 %v26167_v7, %s13996_s19  ;;  %v12728_v48 = vpop.permute.xlu0 %12727  ;;  %v26170_v58 = vunpack.i.l.bf16 %v26162_v53  ;;  %v26172_v3 = vunpack.i.h.bf16 %v26162_v53 }
 0x337   :  { %26164 = vst [vmem:[#allocation134_spill] sm:$0xff] %v21723_v32  ;;  %5942 = vmatmul.mubr.bf16.gmra.mrb[24].mxu0 %v26165_v34  ;;  %26166 = vst [vmem:[#allocation6_spill] sm:$0xff] %v21726_v11  ;;  %v12730_v34 = vunpack.i.h.bf16 %v12728_v48  ;;  %v12729_v12 = vunpack.i.l.bf16 %v12728_v48  ;;  %v13932_v7 = vld [vmem:[%s24435_s1 + $0x138] sm:$0xff]   ;;  %v26180_v32 = vunpack.i.h.bf16 %v20254_v14 }
 0x338   :  { %6701 = vmatpush1.bf16.msra.mxu0 %v26168_v17  ;;  %5951 = vmatprep.mubr.bf16.mxu0 %v25022_v46  ;;  %v21750_v4 = vsel %vm7415_vm6, %v26171_v15, %v26170_v58  ;;  %v26173_v17 = vunpack.i.h.bf16 %v21233_v52  ;;  %v26175_v52 = vld [vmem:[#allocation109_spill] sm:$0xff] }
 0x339   :  { %4850 = vmatmul.mubr.bf16.gmra.mrb[60].mxu1 %v13932_v7  ;;  %6702 = vmatprep.subr.bf16.mxu0 %v26169_v39  ;;  %v26174_v39 = vunpack.i.l.bf16 %v21561_v35  ;;  %v26176_v15 = vunpack.i.l.bf16 %v26175_v52  ;;  %v26178_v2 = vunpack.i.h.bf16 %v26175_v52  ;;  %v12743_v7 = vpop.permute.xlu1 %12742  ;;  %v6405_v58 = vsel %vm6386_vm5, %v12729_v12, %v26179_v59  ;;  %v26187_v59 = vld [vmem:[#allocation116_spill] sm:$0xff] }
 0x33a   :  { %v21758_v48 = vsel %vm7415_vm6, %v26173_v17, %v26172_v3  ;;  %5808 = vmatprep.mubr.bf16.mxu1 %v25022_v46  ;;  %v26177_v17 = vunpack.i.h.bf16 %v21561_v35  ;;  %v6406_v26 = vsel %vm6386_vm5, %v12730_v34, %v26180_v32  ;;  %12982 = vrot.lane.b32.xlu1 %v12981_v63, %s13997_s18  ;;  %v24894_v35 = vunpack.i.h.bf16 %v21726_v11 }
 0x33b   :  { %v6419_v3 = vsel %vm6386_vm5, %v26176_v15, %v26174_v39  ;;  %v12745_v52 = vunpack.i.h.bf16 %v12743_v7  ;;  %v12744_v15 = vunpack.i.l.bf16 %v12743_v7  ;;  %v26182_v32 = vpack.c.bf16 %v21439_v33, %v21431_v31 }
 0x33c   :  { %v6420_v27 = vsel %vm6386_vm5, %v26178_v2, %v26177_v17  ;;  %v26181_v2 = vpack.c.bf16 %v21146_v16, %v21138_v41  ;;  %v21793_v17 = vpop.permute.xlu0 %12737  ;;  %v26183_v63 = vunpack.i.l.bf16 %v21362_v6  ;;  %v26184_v39 = vunpack.i.l.bf16 %v21375_v56 }
 0x33d   :  { %v26185_v16 = vunpack.i.h.bf16 %v21362_v6  ;;  %v26186_v7 = vunpack.i.h.bf16 %v21375_v56  ;;  %v6598_v21 = vpack.c.bf16 %v6420_v27, %v6419_v3  ;;  %v26188_v31 = vunpack.i.l.bf16 %v26187_v59 }
 0x33e   :  { %6703 = vmatpush1.bf16.msra.mxu0 %v26181_v2  ;;  %v21806_v41 = vsel %vm7415_vm6, %v26184_v39, %v26183_v63  ;;  %v6605_v63 = vpack.c.bf16 %v6406_v26, %v6405_v58  ;;  %v26190_v56 = vpack.i.bf16 %v21616_v47, %v21611_v10  ;;  %v26191_v27 = vunpack.i.h.bf16 %v21793_v17  ;;  %v21845_v10 = vpop.permute.xlu1 %12752 }
 0x33f   :  { %6704 = vmatprep.subr.bf16.mxu0 %v26182_v32  ;;  %v21814_v2 = vsel %vm7415_vm6, %v26186_v7, %v26185_v16  ;;  %v6421_v33 = vsel %vm6386_vm5, %v26188_v31, %v12729_v12  ;;  %v26189_v32 = vunpack.i.h.bf16 %v26187_v59  ;;  %v26193_v12 = vunpack.i.l.bf16 %v21726_v11 }
 0x340   :  { %12947 = vrot.lane.b32.xlu0 %v26190_v56, %s13997_s18  ;;  %v21834_v3 = vsel %vm7415_vm6, %v26191_v27, %v24894_v35  ;;  %v26194_v59 = vunpack.i.l.bf16 %v21793_v17  ;;  %v26197_v47 = vunpack.i.l.bf16 %v20282_v22  ;;  %v26198_v16 = vunpack.i.h.bf16 %v20282_v22  ;;  %v21860_v56 = vpop.permute.xlu0 %12747 }
 0x341   :  { %v6422_v39 = vsel %vm6386_vm5, %v26189_v32, %v12730_v34  ;;  %26192 = vst [vmem:[#allocation32_spill] sm:$0xff] %v21834_v3  ;;  %v26196_v34 = vld [vmem:[#allocation56_spill] sm:$0xff]  ;;  %v26199_v32 = vpack.c.bf16 %v21269_v50, %v21257_v8  ;;  %26200 = vst [vmem:[#allocation116_spill] sm:$0xff] %v21860_v56  ;;  %v13933_v8 = vld [vmem:[%s24435_s1 + $0x140] sm:$0xff]   ;;  %v26201_v50 = vpack.c.bf16 %v21523_v51, %v21515_v36  ;;  %v26205_v35 = vunpack.i.h.bf16 %v21496_v38 }
 0x342   :  { %v21842_v26 = vsel %vm7415_vm6, %v26194_v59, %v26193_v12  ;;  %5952 = vmatmul.mubr.bf16.gmra.mrb[28].mxu0 %v26196_v34  ;;  %v6407_v58 = vsel %vm6386_vm5, %v12744_v15, %v26197_v47  ;;  %v6408_v7 = vsel %vm6386_vm5, %v12745_v52, %v26198_v16  ;;  %v24895_v47 = vunpack.i.l.bf16 %v21860_v56  ;;  %5809 = vmatmul.mubr.bf16.vlgmr.msra.gmra.mrb[32].mxu1 %v13933_v8  ;;  %v26207_v8 = vld [vmem:[#allocation112_spill] sm:$0xff]  ;;  %v26208_v51 = vld [vmem:[#allocation78_spill] sm:$0xff] }
 0x343   :  { %26195 = vst [vmem:[#allocation109_spill] sm:$0xff] %v21842_v26  ;;  %6705 = vmatpush1.bf16.msra.mxu0 %v26199_v32  ;;  %5961 = vmatprep.mubr.bf16.mxu0 %v25022_v46  ;;  %v26202_v16 = vunpack.i.l.bf16 %v21496_v38  ;;  %v26203_v32 = vunpack.i.l.bf16 %v21505_v19  ;;  %v26206_v59 = vunpack.i.h.bf16 %v21505_v19  ;;  %v24897_v34 = vunpack.i.h.bf16 %v26207_v8 }
 0x344   :  { %6706 = vmatprep.subr.bf16.mxu0 %v26201_v50  ;;  %v6604_v36 = vpack.c.bf16 %v6422_v39, %v6421_v33  ;;  %v26209_v50 = vunpack.i.l.bf16 %v26208_v51  ;;  %6806 = vmatpush1.bf16.msra.mxu1 %v6598_v21  ;;  %v24896_v19 = vunpack.i.l.bf16 %v26207_v8  ;;  %v26212_v39 = vunpack.i.h.bf16 %v21860_v56 }
 0x345   :  { %v21881_v31 = vsel %vm7415_vm6, %v26203_v32, %v26202_v16  ;;  %v21889_v27 = vsel %vm7415_vm6, %v26206_v59, %v26205_v35  ;;  %5818 = vmatprep.mubr.bf16.mxu1 %v25022_v46  ;;  %v26210_v35 = vunpack.i.l.bf16 %v21845_v10  ;;  %6807 = vmatprep.subr.bf16.mxu1 %v6605_v63  ;;  %v12763_v59 = vpop.permute.xlu1 %12762  ;;  %v6611_v32 = vpack.c.bf16 %v6408_v7, %v6407_v58  ;;  %v12758_v63 = vpop.permute.xlu0 %12757  ;;  %v26218_v7 = vld [vmem:[#allocation85_spill] sm:$0xff] }
 0x346   :  { %26204 = vst [vmem:[#allocation56_spill] sm:$0xff] %v21881_v31  ;;  %v6423_v12 = vsel %vm6386_vm5, %v26209_v50, %v12744_v15  ;;  %v26213_v15 = vunpack.i.h.bf16 %v21845_v10  ;;  %v26215_v50 = vpack.i.bf16 %v21661_v54, %v21656_v55  ;;  %v26216_v16 = vunpack.i.h.bf16 %v26208_v51  ;;  %12992 = vrot.lane.b32.xlu1 %v26218_v7, %s13997_s18 }
 0x347   :  { %v21906_v33 = vsel %vm7415_vm6, %v26210_v35, %v24895_v47  ;;  %v26217_v47 = vpack.c.bf16 %v21406_v37, %v21398_v43  ;;  %v12764_v58 = vunpack.i.l.bf16 %v12763_v59  ;;  %v26219_v55 = vpack.c.bf16 %v21545_v62, %v21537_v9  ;;  %v13934_v43 = vld [vmem:[%s24434_s0 + $0x2a8] sm:$0xff]  ;;  %v13935_v37 = vld [vmem:[%s24434_s0 + $0x2d8] sm:$0xff] }
 0x348   :  { %26211 = vst [vmem:[#allocation112_spill] sm:$0xff] %v21906_v33  ;;  %v21914_v21 = vsel %vm7415_vm6, %v26213_v15, %v26212_v39  ;;  %12957 = vrot.lane.b32.xlu0 %v26215_v50, %s13997_s18  ;;  %v6424_v35 = vsel %vm6386_vm5, %v26216_v16, %v12745_v52  ;;  %v12765_v15 = vunpack.i.h.bf16 %v12763_v59  ;;  %v12760_v54 = vunpack.i.h.bf16 %v12758_v63  ;;  %v13937_v9 = vld [vmem:[%s24434_s0 + $0x58] sm:$0xff]  ;;  %6808 = vmatpush1.bf16.msra.mxu1 %v6604_v36  ;;  %v13938_v50 = vld [vmem:[%s24434_s0 + $0x80] sm:$0xff] }
 0x349   :  { %26214 = vst [vmem:[#allocation78_spill] sm:$0xff] %v21914_v21  ;;  %6707 = vmatpush1.bf16.msra.mxu0 %v26217_v47  ;;  %v12759_v51 = vunpack.i.l.bf16 %v12758_v63  ;;  %v12976_v52 = vpack.i.bf16 %v13935_v37, %v13934_v43  ;;  %v13936_v47 = vld [vmem:[%s24434_s0 + $0x28] sm:$0xff]  ;;  %v26220_v16 = vld [vmem:[#allocation42_spill] sm:$0xff]  ;;  %v13939_v63 = vld [vmem:[%s24434_s0 + $0xb0] sm:$0xff]  ;;  %v6610_v37 = vpack.c.bf16 %v6424_v35, %v6423_v12  ;;  %6809 = vmatprep.subr.bf16.mxu1 %v6611_v32  ;;  %v12773_v39 = vpop.permute.xlu1 %12772  ;;  %v21979_v33 = vpop.permute.xlu0 %12767 }
 0x34a   :  { %6918 = vmatprep.subr.bf16.mxu0 %v26219_v55  ;;  %v13001_v62 = vpack.i.bf16 %v13937_v9, %v13936_v47  ;;  %v13011_v7 = vpack.i.bf16 %v13939_v63, %v13938_v50  ;;  %v21957_v55 = vsel %vm7415_vm6, %v12764_v58, %v24896_v19  ;;  %v21963_v36 = vsel %vm7415_vm6, %v12765_v15, %v24897_v34  ;;  %v26223_v47 = vld [vmem:[#allocation3_spill] sm:$0xff]  ;;  %v26225_v63 = vld [vmem:[#allocation102_spill] sm:$0xff] }
 0x34b   :  { %26221 = vst [vmem:[#allocation85_spill] sm:$0xff] %v21957_v55  ;;  %26222 = vst [vmem:[#allocation42_spill] sm:$0xff] %v21963_v36  ;;  %v26224_v9 = vunpack.i.l.bf16 %v26223_v47  ;;  %5962 = vmatmul.mubr.bf16.gmra.mrb[32].mxu0 %v26225_v63  ;;  %v26226_v19 = vunpack.i.l.bf16 %v20338_v5  ;;  %v26227_v34 = vunpack.i.h.bf16 %v26223_v47  ;;  %v12775_v12 = vunpack.i.h.bf16 %v12773_v39  ;;  %v26284_v21 = vld [vmem:[#allocation115_spill] sm:$0xff] }
 0x34c   :  { %v12774_v35 = vunpack.i.l.bf16 %v12773_v39  ;;  %5971 = vmatprep.mubr.bf16.mxu0 %v25022_v46  ;;  %v24899_v39 = vunpack.i.h.bf16 %v21979_v33  ;;  %13002 = vrot.lane.b32.xlu1 %v13001_v62, %s13997_s18  ;;  %v26285_v26 = vunpack.i.l.bf16 %v26284_v21 }
 0x34d   :  { %v6425_v50 = vsel %vm6386_vm5, %v26224_v9, %v12759_v51  ;;  %v6409_v59 = vsel %vm6386_vm5, %v12759_v51, %v26226_v19  ;;  %v6426_v43 = vsel %vm6386_vm5, %v26227_v34, %v12760_v54  ;;  %v26228_v9 = vunpack.i.h.bf16 %v20338_v5  ;;  %v13940_v34 = vld [vmem:[%s24435_s1 + $0x148] sm:$0xff]   ;;  %6810 = vmatpush1.bf16.msra.mxu1 %v6610_v37 }
 0x34e   :  { %v26229_v19 = vpack.i.bf16 %v21695_v18, %v21690_v1  ;;  %5819 = vmatmul.mubr.bf16.gmra.mrb[36].mxu1 %v13940_v34  ;;  %v24901_v51 = vunpack.i.l.bf16 %v21979_v33  ;;  %v26230_v1 = vunpack.i.l.bf16 %v26220_v16  ;;  %v22007_v63 = vsel %vm7415_vm6, %v24899_v39, %v12765_v15  ;;  %v13941_v15 = vld [vmem:[%s24434_s0 + $0x2a0] sm:$0xff] }
 0x34f   :  { %v6410_v32 = vsel %vm6386_vm5, %v12760_v54, %v26228_v9  ;;  %5828 = vmatprep.mubr.bf16.mxu1 %v25022_v46  ;;  %26231 = vst [vmem:[#allocation3_spill] sm:$0xff] %v22007_v63  ;;  %v6616_v9 = vpack.c.bf16 %v6426_v43, %v6425_v50  ;;  %v26235_v50 = vunpack.i.h.bf16 %v26061_v25 }
 0x350   :  { %12967 = vrot.lane.b32.xlu0 %v26229_v19, %s13997_s18  ;;  %v6617_v47 = vpack.c.bf16 %v6410_v32, %v6409_v59  ;;  %v6411_v18 = vsel %vm6386_vm5, %v12774_v35, %v26230_v1  ;;  %v22013_v62 = vsel %vm7415_vm6, %v24901_v51, %v12764_v58  ;;  %v26233_v59 = vunpack.i.h.bf16 %v26220_v16  ;;  %v13942_v58 = vld [vmem:[%s24434_s0 + $0x2d0] sm:$0xff]  ;;  %13012 = vrot.lane.b32.xlu1 %v13011_v7, %s13997_s18  ;;  %v26236_v32 = vld [vmem:[#allocation79_spill] sm:$0xff]  ;;  %v26246_v51 = vld [vmem:[#allocation82_spill] sm:$0xff] }
 0x351   :  { %26232 = vst [vmem:[#allocation102_spill] sm:$0xff] %v22013_v62  ;;  %v12986_v34 = vpack.i.bf16 %v13942_v58, %v13941_v15  ;;  %v6428_v1 = vsel %vm6386_vm5, %v26235_v50, %v12775_v12  ;;  %v13944_v7 = vld [vmem:[%s24434_s0 + $0x50] sm:$0xff]  ;;  %v26237_v58 = vld [vmem:[#allocation47_spill] sm:$0xff] }
 0x352   :  { %6811 = vmatprep.subr.bf16.mxu1 %v6617_v47  ;;  %v6412_v37 = vsel %vm6386_vm5, %v12775_v12, %v26233_v59  ;;  %v26234_v47 = vunpack.i.l.bf16 %v26061_v25  ;;  %v13943_v25 = vld [vmem:[%s24434_s0 + $0x20] sm:$0xff] }
 0x353   :  { %v6623_v19 = vpack.c.bf16 %v6412_v37, %v6411_v18  ;;  %6812 = vmatpush1.bf16.msra.mxu1 %v6616_v9  ;;  %v22037_v37 = vpop.permute.xlu1 %12782  ;;  %5972 = vmatmul.mubr.bf16.gmra.mrb[36].mxu0 %v26236_v32  ;;  %v12996_v12 = vpack.i.bf16 %v13944_v7, %v13943_v25  ;;  %v13945_v9 = vld [vmem:[%s24434_s0 + $0xe8] sm:$0xff]  ;;  %v13946_v32 = vld [vmem:[%s24434_s0 + $0x118] sm:$0xff] }
 0x354   :  { %12977 = vrot.lane.b32.xlu0 %v12976_v52, %s13997_s18  ;;  %v6427_v43 = vsel %vm6386_vm5, %v26234_v47, %v12774_v35  ;;  %v12778_v52 = vpop.permute.xlu0 %12777  ;;  %v24902_v15 = vunpack.i.h.bf16 %v22037_v37  ;;  %v24900_v35 = vunpack.i.l.bf16 %v22037_v37  ;;  %5981 = vmatprep.mubr.bf16.mxu0 %v25022_v46 }
 0x355   :  { %v12780_v18 = vunpack.i.h.bf16 %v12778_v52  ;;  %v12779_v59 = vunpack.i.l.bf16 %v12778_v52  ;;  %6813 = vmatprep.subr.bf16.mxu1 %v6623_v19  ;;  %v13031_v19 = vpack.i.bf16 %v13946_v32, %v13945_v9  ;;  %v6622_v50 = vpack.c.bf16 %v6428_v1, %v6427_v43  ;;  %v26238_v52 = vld [vmem:[#allocation66_spill] sm:$0xff]  ;;  %v13947_v43 = vld [vmem:[%s24435_s1 + $0x150] sm:$0xff]   ;;  %v26247_v32 = vld [vmem:[#allocation131_spill] sm:$0xff] }
 0x356   :  { %v26239_v54 = vunpack.i.l.bf16 %v26238_v52  ;;  %v26241_v7 = vunpack.i.h.bf16 %v26238_v52  ;;  %5829 = vmatmul.mubr.bf16.gmra.mrb[40].mxu1 %v13947_v43  ;;  %v26245_v1 = vld [vmem:[#allocation106_spill] sm:$0xff]  ;;  %v26248_v9 = vunpack.i.h.bf16 %v26247_v32  ;;  %v26249_v47 = vunpack.i.l.bf16 %v26247_v32  ;;  %v26252_v32 = vld [vmem:[#allocation125_spill] sm:$0xff] }
 0x357   :  { %13022 = vrot.lane.b32.xlu1 %v26245_v1, %s13997_s18  ;;  %6814 = vmatpush1.bf16.msra.mxu1 %v6622_v50  ;;  %v13948_v1 = vld [vmem:[%s24434_s0 + $0x78] sm:$0xff]  ;;  %v13949_v50 = vld [vmem:[%s24434_s0 + $0xa8] sm:$0xff]  ;;  %v26255_v62 = vunpack.i.h.bf16 %v26252_v32 }
 0x358   :  { %12987 = vrot.lane.b32.xlu0 %v12986_v34, %s13997_s18  ;;  %v22061_v25 = vsel %vm7415_vm6, %v12779_v59, %v26239_v54  ;;  %v22067_v39 = vsel %vm7415_vm6, %v12780_v18, %v26241_v7  ;;  %v22077_v34 = vsel %vm7415_vm6, %v24900_v35, %v12779_v59  ;;  %v22083_v54 = vsel %vm7415_vm6, %v24902_v15, %v12780_v18  ;;  %v12788_v7 = vpop.permute.xlu0 %12787  ;;  %v12793_v35 = vpop.permute.xlu1 %12792 }
 0x359   :  { %26240 = vst [vmem:[#allocation79_spill] sm:$0xff] %v22061_v25  ;;  %26242 = vst [vmem:[#allocation47_spill] sm:$0xff] %v22067_v39  ;;  %5838 = vmatprep.mubr.bf16.mxu1 %v25022_v46  ;;  %v12790_v59 = vunpack.i.h.bf16 %v12788_v7  ;;  %v12789_v43 = vunpack.i.l.bf16 %v12788_v7  ;;  %v12795_v18 = vunpack.i.h.bf16 %v12793_v35  ;;  %v12794_v15 = vunpack.i.l.bf16 %v12793_v35 }
 0x35a   :  { %26243 = vst [vmem:[#allocation66_spill] sm:$0xff] %v22077_v34  ;;  %26244 = vst [vmem:[#allocation135_spill] sm:$0xff] %v22083_v54  ;;  %v13006_v52 = vpack.i.bf16 %v13949_v50, %v13948_v1  ;;  %v26251_v54 = vunpack.i.h.bf16 %v26237_v58  ;;  %v26253_v39 = vunpack.i.l.bf16 %v26252_v32 }
 0x35b   :  { %v6430_v7 = vsel %vm6386_vm5, %v26248_v9, %v12790_v59  ;;  %v6429_v35 = vsel %vm6386_vm5, %v26249_v47, %v12789_v43  ;;  %13032 = vrot.lane.b32.xlu1 %v13031_v19, %s13997_s18 }
 0x35c   :  { %12997 = vrot.lane.b32.xlu0 %v12996_v12, %s13997_s18  ;;  %v26250_v12 = vunpack.i.l.bf16 %v26237_v58  ;;  %v6414_v1 = vsel %vm6386_vm5, %v12790_v59, %v26251_v54  ;;  %v6628_v50 = vpack.c.bf16 %v6430_v7, %v6429_v35  ;;  %v22117_v9 = vpop.permute.xlu0 %12797  ;;  %v22123_v47 = vsel %vm7415_vm6, %v12794_v15, %v26253_v39  ;;  %v12803_v54 = vpop.permute.xlu1 %12802  ;;  %v13950_v59 = vld [vmem:[%s24434_s0 + $0x140] sm:$0xff]  ;;  %v13951_v39 = vld [vmem:[%s24434_s0 + $0x170] sm:$0xff] }
 0x35d   :  { %26254 = vst [vmem:[#allocation106_spill] sm:$0xff] %v22123_v47  ;;  %v24908_v19 = vunpack.i.h.bf16 %v22117_v9  ;;  %v13041_v7 = vpack.i.bf16 %v13951_v39, %v13950_v59  ;;  %v24910_v35 = vunpack.i.h.bf16 %v26246_v51  ;;  %v12804_v32 = vunpack.i.l.bf16 %v12803_v54  ;;  %v13954_v39 = vld [vmem:[%s24434_s0 + $0xb8] sm:$0xff] }
 0x35e   :  { %v6413_v34 = vsel %vm6386_vm5, %v12789_v43, %v26250_v12  ;;  %v22129_v43 = vsel %vm7415_vm6, %v12795_v18, %v26255_v62  ;;  %v26257_v12 = vld [vmem:[#allocation50_spill] sm:$0xff] }
 0x35f   :  { %v6629_v25 = vpack.c.bf16 %v6414_v1, %v6413_v34  ;;  %26256 = vst [vmem:[#allocation82_spill] sm:$0xff] %v22129_v43  ;;  %5982 = vmatmul.mubr.bf16.gmra.mrb[40].mxu0 %v26257_v12  ;;  %v24909_v34 = vunpack.i.l.bf16 %v22117_v9  ;;  %v12805_v1 = vunpack.i.h.bf16 %v12803_v54  ;;  %v13952_v12 = vld [vmem:[%s24435_s1 + $0x158] sm:$0xff]   ;;  %v22151_v59 = vsel %vm7415_vm6, %v24908_v19, %v12795_v18  ;;  %v13953_v54 = vld [vmem:[%s24434_s0 + $0x88] sm:$0xff]  ;;  %13042 = vrot.lane.b32.xlu1 %v13041_v7, %s13997_s18 }
 0x360   :  { %5991 = vmatprep.mubr.bf16.mxu0 %v25022_v46  ;;  %5839 = vmatmul.mubr.bf16.gmra.mrb[44].mxu1 %v13952_v12  ;;  %26258 = vst [vmem:[#allocation131_spill] sm:$0xff] %v22151_v59  ;;  %v13016_v12 = vpack.i.bf16 %v13954_v39, %v13953_v54  ;;  %v26260_v18 = vunpack.i.l.bf16 %v20035_v13  ;;  %v26263_v39 = vunpack.i.l.bf16 %v26246_v51  ;;  %v13955_v54 = vld [vmem:[%s24434_s0 + $0xe0] sm:$0xff]  ;;  %v26264_v7 = vunpack.i.l.bf16 %v21422_v40  ;;  %v26274_v47 = vld [vmem:[#allocation126_spill] sm:$0xff] }
 0x361   :  { %6815 = vmatprep.subr.bf16.mxu1 %v6629_v25  ;;  %v22157_v25 = vsel %vm7415_vm6, %v24909_v34, %v12794_v15  ;;  %13007 = vrot.lane.b32.xlu0 %v13006_v52, %s13997_s18  ;;  %v26261_v15 = vunpack.i.h.bf16 %v20035_v13  ;;  %v22176_v34 = vpop.permute.xlu0 %12807 }
 0x362   :  { %26259 = vst [vmem:[#allocation125_spill] sm:$0xff] %v22157_v25  ;;  %6816 = vmatpush1.bf16.msra.mxu1 %v6628_v50  ;;  %v6431_v62 = vsel %vm6386_vm5, %v26260_v18, %v12804_v32  ;;  %26262 = vst [vmem:[#allocation50_spill] sm:$0xff] %v22176_v34  ;;  %5848 = vmatprep.mubr.bf16.mxu1 %v25022_v46  ;;  %v6415_v18 = vsel %vm6386_vm5, %v12804_v32, %v26263_v39  ;;  %v13956_v50 = vld [vmem:[%s24434_s0 + $0x110] sm:$0xff]  ;;  %v22197_v39 = vpop.permute.xlu1 %12812  ;;  %v26271_v25 = vunpack.i.h.bf16 %v20194_v44 }
 0x363   :  { %v6432_v52 = vsel %vm6386_vm5, %v26261_v15, %v12805_v1  ;;  %v6416_v15 = vsel %vm6386_vm5, %v12805_v1, %v24910_v35  ;;  %v13026_v32 = vpack.i.bf16 %v13956_v50, %v13955_v54  ;;  %v13958_v35 = vld [vmem:[%s24434_s0 + $0x1c8] sm:$0xff]  ;;  %v26275_v50 = vunpack.i.l.bf16 %v20194_v44 }
 0x364   :  { %v6634_v13 = vpack.c.bf16 %v6432_v52, %v6431_v62  ;;  %v6635_v19 = vpack.c.bf16 %v6416_v15, %v6415_v18  ;;  %v26265_v62 = vunpack.i.l.bf16 %v22176_v34  ;;  %v26268_v52 = vunpack.i.h.bf16 %v22176_v34  ;;  %v26270_v15 = vld [vmem:[#allocation39_spill] sm:$0xff] }
 0x365   :  { %13017 = vrot.lane.b32.xlu0 %v13016_v12, %s13997_s18  ;;  %v26267_v12 = vunpack.i.h.bf16 %v21422_v40  ;;  %v26281_v34 = vunpack.i.l.bf16 %v20119_v28 }
 0x366   :  { %v22205_v1 = vsel %vm7415_vm6, %v26265_v62, %v26264_v7  ;;  %v26272_v7 = vunpack.i.h.bf16 %v20192_v24  ;;  %v26273_v62 = vld [vmem:[#allocation88_spill] sm:$0xff]  ;;  %6817 = vmatprep.subr.bf16.mxu1 %v6635_v19 }
 0x367   :  { %26266 = vst [vmem:[#allocation136_spill] sm:$0xff] %v22205_v1  ;;  %v22213_v18 = vsel %vm7415_vm6, %v26268_v52, %v26267_v12  ;;  %v12455_v59 = vunpack.i.h.bf16 %v26273_v62  ;;  %5992 = vmatmul.mubr.bf16.gmra.mrb[44].mxu0 %v26274_v47  ;;  %v12818_v12 = vpop.permute.xlu0 %12817  ;;  %v13957_v52 = vld [vmem:[%s24434_s0 + $0x198] sm:$0xff]  ;;  %v12454_v47 = vunpack.i.l.bf16 %v26273_v62  ;;  %6818 = vmatpush1.bf16.msra.mxu1 %v6634_v13 }
 0x368   :  { %26269 = vst [vmem:[#allocation137_spill] sm:$0xff] %v22213_v18  ;;  %v22225_v40 = vsel %vm6386_vm5, %v26272_v7, %v26271_v25  ;;  %v13051_v54 = vpack.i.bf16 %v13958_v35, %v13957_v52  ;;  %v26276_v25 = vunpack.i.l.bf16 %v20192_v24  ;;  %v12820_v19 = vunpack.i.h.bf16 %v12818_v12  ;;  %6724 = vmatprep.mubr.bf16.mxu0 %v25022_v46  ;;  %v26278_v35 = vld [vmem:[#allocation51_spill] sm:$0xff]  ;;  %v13960_v13 = vld [vmem:[%s24434_s0 + $0x138] sm:$0xff] }
 0x369   :  { %v12819_v1 = vunpack.i.l.bf16 %v12818_v12  ;;  %v26277_v18 = vunpack.i.h.bf16 %v20254_v14  ;;  %v12470_v44 = vunpack.i.h.bf16 %v26278_v35  ;;  %v13959_v24 = vld [vmem:[%s24435_s1 + $0x160] sm:$0xff]   ;;  %13027 = vrot.lane.b32.xlu0 %v13026_v32, %s13997_s18  ;;  %v13963_v12 = vld [vmem:[%s24434_s0 + $0x1d8] sm:$0xff]  ;;  %v26280_v32 = vunpack.i.h.bf16 %v20119_v28 }
 0x36a   :  { %v6387_v7 = vsel %vm6386_vm5, %v26276_v25, %v26275_v50  ;;  %5849 = vmatmul.mubr.bf16.gmra.mrb[48].mxu1 %v13959_v24  ;;  %v13961_v50 = vld [vmem:[%s24434_s0 + $0x168] sm:$0xff]  ;;  %v22266_v25 = vpop.permute.xlu1 %12822  ;;  %v22288_v28 = vld [vmem:[%s24435_s1 + $0x180] sm:$0xff]   ;;  %13052 = vrot.lane.b32.xlu1 %v13051_v54, %s13997_s18  ;;  %v26287_v54 = vunpack.i.l.bf16 %v20254_v14 }
 0x36b   :  { %v22247_v43 = vsel %vm6386_vm5, %v26277_v18, %v12455_v59  ;;  %v13036_v62 = vpack.i.bf16 %v13961_v50, %v13960_v13  ;;  %v13962_v18 = vld [vmem:[%s24434_s0 + $0x1a8] sm:$0xff]  ;;  %26279 = vst [vmem:[#allocation39_spill] sm:$0xff] %v22266_v25  ;;  %v6434_v24 = vsel %vm6386_vm5, %v26280_v32, %v12820_v19  ;;  %v6433_v13 = vsel %vm6386_vm5, %v26281_v34, %v12819_v1 }
 0x36c   :  { %v13061_v52 = vpack.i.bf16 %v13963_v12, %v13962_v18  ;;  %5858 = vmatprep.mubr.bf16.mxu1 %v25022_v46  ;;  %v26282_v50 = vunpack.i.l.bf16 %v26270_v15  ;;  %v26283_v18 = vunpack.i.h.bf16 %v26270_v15  ;;  %v6640_v55 = vpack.c.bf16 %v6434_v24, %v6433_v13 }
 0x36d   :  { %v24925_v34 = vunpack.i.h.bf16 %v22266_v25  ;;  %v24924_v36 = vunpack.i.l.bf16 %v22266_v25  ;;  %v26286_v24 = vunpack.i.h.bf16 %v26284_v21  ;;  %v6389_v13 = vsel %vm6386_vm5, %v26287_v54, %v12454_v47  ;;  %13037 = vrot.lane.b32.xlu0 %v13036_v62, %s13997_s18  ;;  %v13964_v62 = vld [vmem:[%s24434_s0 + $0x148] sm:$0xff]  ;;  %v13967_v54 = vld [vmem:[%s24434_s0 + $0x230] sm:$0xff]  ;;  %v26324_v25 = vld [vmem:[#allocation43_spill] sm:$0xff] }
 0x36e   :  { %v6417_v63 = vsel %vm6386_vm5, %v12819_v1, %v26282_v50  ;;  %v6418_v12 = vsel %vm6386_vm5, %v12820_v19, %v26283_v18  ;;  %v12469_v1 = vunpack.i.l.bf16 %v26278_v35  ;;  %v6600_v50 = vpack.c.bf16 %v22225_v40, %v6387_v7  ;;  %13062 = vrot.lane.b32.xlu1 %v13061_v52, %s13997_s18 }
 0x36f   :  { %v6641_v32 = vpack.c.bf16 %v6418_v12, %v6417_v63  ;;  %v6469_v19 = vsel %vm6386_vm5, %v12454_v47, %v26285_v26  ;;  %v6470_v63 = vsel %vm6386_vm5, %v12455_v59, %v26286_v24  ;;  %v26288_v40 = vunpack.i.l.bf16 %v21572_v42  ;;  %v26293_v47 = vld [vmem:[#allocation38_spill] sm:$0xff]  ;;  %v22337_v12 = vpop.permute.xlu1 %12832  ;;  %6725 = vmatmul.mubr.bf16.vlgmr.msra.gmra.mrb[0].mxu0 %v22288_v28 }
 0x370   :  { %v26290_v21 = vunpack.i.h.bf16 %v21572_v42  ;;  %v26292_v59 = vunpack.i.h.bf16 %v20282_v22  ;;  %v12485_v35 = vunpack.i.h.bf16 %v26293_v47  ;;  %v13965_v42 = vld [vmem:[%s24434_s0 + $0x178] sm:$0xff]  ;;  %v6607_v24 = vpack.c.bf16 %v6470_v63, %v6469_v19  ;;  %6919 = vmatpush1.bf16.msra.mxu0 %v6600_v50  ;;  %6734 = vmatprep.mubr.bf16.mxu0 %v25022_v46  ;;  %v26298_v50 = vld [vmem:[#allocation35_spill] sm:$0xff] }
 0x371   :  { %6819 = vmatprep.subr.bf16.mxu1 %v6641_v32  ;;  %v22314_v26 = vsel %vm7415_vm6, %v24924_v36, %v26288_v40  ;;  %v13046_v18 = vpack.i.bf16 %v13965_v42, %v13964_v62  ;;  %v12484_v62 = vunpack.i.l.bf16 %v26293_v47  ;;  %v6606_v19 = vpack.c.bf16 %v22247_v43, %v6389_v13  ;;  %v26294_v63 = vld [vmem:[#allocation122_spill] sm:$0xff]  ;;  %v13968_v13 = vld [vmem:[%s24435_s1 + $0x168] sm:$0xff]  }
 0x372   :  { %26289 = vst [vmem:[#allocation88_spill] sm:$0xff] %v22314_v26  ;;  %v22322_v14 = vsel %vm7415_vm6, %v24925_v34, %v26290_v21  ;;  %v22328_v7 = vsel %vm6386_vm5, %v26292_v59, %v12470_v44  ;;  %6820 = vmatpush1.bf16.msra.mxu1 %v6640_v55  ;;  %v13966_v55 = vld [vmem:[%s24434_s0 + $0x200] sm:$0xff]  ;;  %v24929_v21 = vunpack.i.h.bf16 %v22337_v12  ;;  %v24926_v59 = vunpack.i.l.bf16 %v22337_v12  ;;  %6920 = vmatprep.subr.bf16.mxu0 %v6607_v24  ;;  %v13970_v24 = vld [vmem:[%s24434_s0 + $0x1d0] sm:$0xff] }
 0x373   :  { %26291 = vst [vmem:[#allocation126_spill] sm:$0xff] %v22322_v14  ;;  %v13071_v40 = vpack.i.bf16 %v13967_v54, %v13966_v55  ;;  %v26295_v52 = vunpack.i.l.bf16 %v26294_v63  ;;  %v26296_v32 = vunpack.i.h.bf16 %v26294_v63  ;;  %v26297_v55 = vunpack.i.l.bf16 %v20282_v22  ;;  %5859 = vmatmul.mubr.bf16.gmra.mrb[52].mxu1 %v13968_v13  ;;  %13047 = vrot.lane.b32.xlu0 %v13046_v18, %s13997_s18  ;;  %v22402_v18 = vld [vmem:[%s24435_s1 + $0x188] sm:$0xff]  }
 0x374   :  { %v12500_v54 = vunpack.i.h.bf16 %v26298_v50  ;;  %v12499_v43 = vunpack.i.l.bf16 %v26298_v50  ;;  %v26299_v63 = vunpack.i.l.bf16 %v21637_v61  ;;  %5868 = vmatprep.mubr.bf16.mxu1 %v25022_v46  ;;  %v26301_v50 = vunpack.i.l.bf16 %v20338_v5  ;;  %6921 = vmatpush1.bf16.msra.mxu0 %v6606_v19 }
 0x375   :  { %v6471_v42 = vsel %vm6386_vm5, %v12469_v1, %v26295_v52  ;;  %v6472_v36 = vsel %vm6386_vm5, %v12470_v44, %v26296_v32  ;;  %v6391_v47 = vsel %vm6386_vm5, %v26297_v55, %v12469_v1  ;;  %v26300_v44 = vunpack.i.h.bf16 %v20338_v5  ;;  %v13969_v32 = vld [vmem:[%s24434_s0 + $0x1a0] sm:$0xff]  ;;  %v22391_v55 = vpop.permute.xlu0 %12827  ;;  %13072 = vrot.lane.b32.xlu1 %v13071_v40, %s13997_s18  ;;  %v13972_v5 = vld [vmem:[%s24434_s0 + $0x288] sm:$0xff] }
 0x376   :  { %v7432_v22 = vsel %vm7415_vm6, %v24926_v59, %v26299_v63  ;;  %v13056_v52 = vpack.i.bf16 %v13970_v24, %v13969_v32  ;;  %v22397_v13 = vsel %vm6386_vm5, %v26301_v50, %v12484_v62  ;;  %v6613_v63 = vpack.c.bf16 %v6472_v36, %v6471_v42  ;;  %v26303_v40 = vld [vmem:[#allocation7_spill] sm:$0xff] }
 0x377   :  { %v22381_v1 = vsel %vm6386_vm5, %v26300_v44, %v12485_v35  ;;  %v13971_v44 = vld [vmem:[%s24434_s0 + $0x258] sm:$0xff]  ;;  %v26302_v24 = vunpack.i.h.bf16 %v21637_v61  ;;  %v6612_v42 = vpack.c.bf16 %v22328_v7, %v6391_v47  ;;  %v26304_v50 = vunpack.i.l.bf16 %v26303_v40  ;;  %v26306_v61 = vld [vmem:[#allocation69_spill] sm:$0xff]  ;;  %6735 = vmatmul.mubr.bf16.gmra.mrb[4].mxu0 %v22402_v18 }
 0x378   :  { %v13081_v32 = vpack.i.bf16 %v13972_v5, %v13971_v44  ;;  %v26305_v59 = vunpack.i.h.bf16 %v26303_v40  ;;  %v12515_v26 = vunpack.i.h.bf16 %v26306_v61  ;;  %v12514_v14 = vunpack.i.l.bf16 %v26306_v61  ;;  %6922 = vmatprep.subr.bf16.mxu0 %v6613_v63  ;;  %v22436_v40 = vpop.permute.xlu1 %12842  ;;  %13057 = vrot.lane.b32.xlu0 %v13056_v52, %s13997_s18  ;;  %v13974_v63 = vld [vmem:[%s24434_s0 + $0x228] sm:$0xff] }
 0x379   :  { %v7433_v36 = vsel %vm7415_vm6, %v24929_v21, %v26302_v24  ;;  %v6473_v34 = vsel %vm6386_vm5, %v12484_v62, %v26304_v50  ;;  %v26307_v24 = vld [vmem:[#allocation44_spill] sm:$0xff]  ;;  %v26310_v50 = vld [vmem:[#allocation77_spill] sm:$0xff]  ;;  %v26311_v61 = vunpack.i.h.bf16 %v26220_v16  ;;  %6923 = vmatpush1.bf16.msra.mxu0 %v6612_v42  ;;  %6744 = vmatprep.mubr.bf16.mxu0 %v25022_v46  ;;  %v12565_v3 = vunpack.i.h.bf16 %v26324_v25 }
 0x37a   :  { %v6474_v44 = vsel %vm6386_vm5, %v12485_v35, %v26305_v59  ;;  %v7628_v5 = vpack.c.bf16 %v7433_v36, %v7432_v22  ;;  %v26308_v19 = vunpack.i.l.bf16 %v26307_v24  ;;  %v26309_v47 = vunpack.i.h.bf16 %v26307_v24  ;;  %v13973_v22 = vld [vmem:[%s24434_s0 + $0x1f8] sm:$0xff]  ;;  %13082 = vrot.lane.b32.xlu1 %v13081_v32, %s13997_s18  ;;  %v13975_v52 = vld [vmem:[%s24434_s0 + $0x268] sm:$0xff]  ;;  %v22466_v32 = vpop.permute.xlu0 %12837 }
 0x37b   :  { %v12530_v35 = vunpack.i.h.bf16 %v26310_v50  ;;  %v12529_v59 = vunpack.i.l.bf16 %v26310_v50  ;;  %v13066_v36 = vpack.i.bf16 %v13974_v63, %v13973_v22  ;;  %v6396_v24 = vsel %vm6386_vm5, %v26311_v61, %v12500_v54  ;;  %v26317_v61 = vld [vmem:[#allocation53_spill] sm:$0xff] }
 0x37c   :  { %v6475_v7 = vsel %vm6386_vm5, %v12499_v43, %v26308_v19  ;;  %v6476_v62 = vsel %vm6386_vm5, %v12500_v54, %v26309_v47  ;;  %7834 = vmatprep.subr.bf16.mxu1 %v7628_v5  ;;  %v6619_v19 = vpack.c.bf16 %v6474_v44, %v6473_v34  ;;  %v13976_v47 = vld [vmem:[%s24434_s0 + $0x298] sm:$0xff]  ;;  %v26312_v5 = vunpack.i.l.bf16 %v26220_v16  ;;  %v13977_v16 = vld [vmem:[%s24435_s1 + $0x170] sm:$0xff]  }
 0x37d   :  { %v13091_v50 = vpack.i.bf16 %v13976_v47, %v13975_v52  ;;  %v6618_v34 = vpack.c.bf16 %v22381_v1, %v22397_v13  ;;  %v6625_v54 = vpack.c.bf16 %v6476_v62, %v6475_v7  ;;  %v26313_v44 = vunpack.i.h.bf16 %v26237_v58  ;;  %5869 = vmatmul.mubr.bf16.gmra.mrb[56].mxu1 %v13977_v16  ;;  %v22485_v62 = vpop.permute.xlu1 %12852  ;;  %13067 = vrot.lane.b32.xlu0 %v13066_v36, %s13997_s18  ;;  %v13979_v36 = vld [vmem:[%s24434_s0 + $0x238] sm:$0xff] }
 0x37e   :  { %v6395_v22 = vsel %vm6386_vm5, %v26312_v5, %v12499_v43  ;;  %6924 = vmatprep.subr.bf16.mxu0 %v6619_v19  ;;  %v26314_v43 = vld [vmem:[#allocation48_spill] sm:$0xff]  ;;  %5878 = vmatprep.mubr.bf16.mxu1 %v25022_v46  ;;  %v26318_v19 = vunpack.i.l.bf16 %v26317_v61  ;;  %v26319_v47 = vunpack.i.h.bf16 %v26317_v61  ;;  %v26320_v16 = vunpack.i.l.bf16 %v26237_v58  ;;  %v13981_v58 = vld [vmem:[%s24434_s0 + $0x2f0] sm:$0xff] }
 0x37f   :  { %v22472_v63 = vsel %vm6386_vm5, %v26313_v44, %v12515_v26  ;;  %v26315_v42 = vunpack.i.l.bf16 %v26314_v43  ;;  %v26316_v13 = vunpack.i.h.bf16 %v26314_v43  ;;  %13092 = vrot.lane.b32.xlu1 %v13091_v50, %s13997_s18  ;;  %6925 = vmatpush1.bf16.msra.mxu0 %v6618_v34  ;;  %v26389_v31 = vunpack.i.l.bf16 %v22436_v40 }
 0x380   :  { %v22493_v52 = vsel %vm6386_vm5, %v12529_v59, %v26318_v19  ;;  %v22499_v5 = vsel %vm6386_vm5, %v12530_v35, %v26319_v47  ;;  %v6397_v43 = vsel %vm6386_vm5, %v26320_v16, %v12514_v14  ;;  %v22516_v19 = vld [vmem:[%s24435_s1 + $0x190] sm:$0xff]   ;;  %v13980_v47 = vld [vmem:[%s24434_s0 + $0x2c0] sm:$0xff]  ;;  %v26323_v16 = vunpack.i.l.bf16 %v26246_v51  ;;  %6926 = vmatprep.subr.bf16.mxu0 %v6625_v54 }
 0x381   :  { %v6477_v1 = vsel %vm6386_vm5, %v12514_v14, %v26315_v42  ;;  %v6478_v7 = vsel %vm6386_vm5, %v12515_v26, %v26316_v13  ;;  %v13978_v26 = vld [vmem:[%s24434_s0 + $0x208] sm:$0xff]  ;;  %v26321_v42 = vld [vmem:[#allocation87_spill] sm:$0xff]  ;;  %v13101_v14 = vpack.i.bf16 %v13981_v58, %v13980_v47  ;;  %v6637_v47 = vpack.c.bf16 %v22499_v5, %v22493_v52  ;;  %v22552_v54 = vpop.permute.xlu1 %12862  ;;  %6745 = vmatmul.mubr.bf16.gmra.mrb[8].mxu0 %v22516_v19 }
 0x382   :  { %v13076_v44 = vpack.i.bf16 %v13979_v36, %v13978_v26  ;;  %v12545_v13 = vunpack.i.h.bf16 %v26321_v42  ;;  %v12544_v61 = vunpack.i.l.bf16 %v26321_v42  ;;  %v26322_v26 = vunpack.i.h.bf16 %v26246_v51  ;;  %v26325_v51 = vld [vmem:[#allocation8_spill] sm:$0xff]  ;;  %6754 = vmatprep.mubr.bf16.mxu0 %v25022_v46 }
 0x383   :  { %v22535_v50 = vsel %vm6386_vm5, %v26323_v16, %v12529_v59  ;;  %v6624_v42 = vpack.c.bf16 %v6396_v24, %v6395_v22  ;;  %v6631_v21 = vpack.c.bf16 %v6478_v7, %v6477_v1  ;;  %v24938_v58 = vunpack.i.h.bf16 %v22466_v32  ;;  %v13982_v24 = vld [vmem:[%s24434_s0 + $0x260] sm:$0xff]  ;;  %v13983_v22 = vld [vmem:[%s24434_s0 + $0x290] sm:$0xff]  ;;  %v22554_v1 = vpop.permute.xlu0 %12847  ;;  %13102 = vrot.lane.b32.xlu1 %v13101_v14, %s13997_s18  ;;  %v13984_v14 = vld [vmem:[%s24435_s1 + $0x178] sm:$0xff]  }
 0x384   :  { %v22529_v36 = vsel %vm6386_vm5, %v26322_v26, %v12530_v35  ;;  %v24936_v35 = vunpack.i.l.bf16 %v22466_v32  ;;  %v12564_v26 = vunpack.i.l.bf16 %v26324_v25  ;;  %13077 = vrot.lane.b32.xlu0 %v13076_v44, %s13997_s18  ;;  %v13086_v34 = vpack.i.bf16 %v13983_v22, %v13982_v24 }
 0x385   :  { %v26326_v25 = vunpack.i.l.bf16 %v20152_v20  ;;  %v26327_v52 = vunpack.i.h.bf16 %v20152_v20  ;;  %v24937_v44 = vunpack.i.h.bf16 %v22554_v1  ;;  %v24935_v16 = vunpack.i.l.bf16 %v22554_v1  ;;  %6927 = vmatpush1.bf16.msra.mxu0 %v6624_v42  ;;  %v26328_v20 = vld [vmem:[#allocation95_spill] sm:$0xff]  ;;  %5879 = vmatmul.mubr.bf16.gmra.mrb[60].mxu1 %v13984_v14 }
 0x386   :  { %v6630_v24 = vpack.c.bf16 %v22472_v63, %v6397_v43  ;;  %v12855_v22 = vunpack.i.h.bf16 %v22485_v62  ;;  %6928 = vmatprep.subr.bf16.mxu0 %v6631_v21  ;;  %v13985_v63 = vld [vmem:[%s24434_s0 + $0x2b8] sm:$0xff]  ;;  %v13986_v43 = vld [vmem:[%s24434_s0 + $0x2e8] sm:$0xff]  ;;  %6837 = vmatprep.mubr.bf16.mxu1 %v25022_v46 }
 0x387   :  { %v22561_v7 = vsel %vm6386_vm5, %v12544_v61, %v26326_v25  ;;  %v22567_v5 = vsel %vm6386_vm5, %v12545_v13, %v26327_v52  ;;  %v12854_v25 = vunpack.i.l.bf16 %v22485_v62  ;;  %v13096_v42 = vpack.i.bf16 %v13986_v43, %v13985_v63  ;;  %v22633_v56 = vpop.permute.xlu0 %12857 }
 0x388   :  { %v22593_v21 = vsel %vm8444_vm7, %v24935_v16, %v24936_v35  ;;  %v22601_v62 = vsel %vm8444_vm7, %v24937_v44, %v24938_v58  ;;  %v26331_v63 = vunpack.i.l.bf16 %v22337_v12  ;;  %v26332_v52 = vunpack.i.h.bf16 %v22337_v12  ;;  %13087 = vrot.lane.b32.xlu0 %v13086_v34, %s13997_s18  ;;  %v12873_v35 = vpop.permute.xlu1 %12872 }
 0x389   :  { %26329 = vst [vmem:[#allocation51_spill] sm:$0xff] %v22593_v21  ;;  %26330 = vst [vmem:[#allocation115_spill] sm:$0xff] %v22601_v62  ;;  %v26333_v58 = vunpack.i.h.bf16 %v26270_v15  ;;  %v6636_v34 = vpack.c.bf16 %v22529_v36, %v22535_v50  ;;  %v6643_v44 = vpack.c.bf16 %v22567_v5, %v22561_v7  ;;  %6929 = vmatpush1.bf16.msra.mxu0 %v6630_v24  ;;  %v26337_v21 = vld [vmem:[#allocation98_spill] sm:$0xff]  ;;  %v26338_v7 = vunpack.i.l.bf16 %v26325_v51 }
 0x38a   :  { %v7448_v43 = vsel %vm7415_vm6, %v12564_v26, %v26331_v63  ;;  %v7449_v16 = vsel %vm7415_vm6, %v12565_v3, %v26332_v52  ;;  %v26334_v63 = vunpack.i.l.bf16 %v26270_v15  ;;  %v22627_v52 = vld [vmem:[%s24435_s1 + $0x198] sm:$0xff]   ;;  %v26335_v15 = vunpack.i.l.bf16 %v21793_v17  ;;  %6930 = vmatprep.subr.bf16.mxu0 %v6637_v47 }
 0x38b   :  { %v6402_v14 = vsel %vm6386_vm5, %v26333_v58, %v12545_v13  ;;  %v12875_v13 = vunpack.i.h.bf16 %v12873_v35  ;;  %v12874_v58 = vunpack.i.l.bf16 %v12873_v35  ;;  %v24942_v36 = vunpack.i.l.bf16 %v26337_v21  ;;  %6755 = vmatmul.mubr.bf16.gmra.mrb[12].mxu0 %v22627_v52 }
 0x38c   :  { %v6401_v12 = vsel %vm6386_vm5, %v26334_v63, %v12544_v61  ;;  %v7434_v61 = vsel %vm7415_vm6, %v12854_v25, %v26335_v15  ;;  %v26336_v63 = vunpack.i.h.bf16 %v21793_v17  ;;  %v7627_v50 = vpack.c.bf16 %v7449_v16, %v7448_v43  ;;  %13097 = vrot.lane.b32.xlu0 %v13096_v42, %s13997_s18  ;;  %v22661_v43 = vpop.permute.xlu1 %12882  ;;  %v22667_v42 = vpop.permute.xlu0 %12867  ;;  %6764 = vmatprep.mubr.bf16.mxu0 %v25022_v46 }
 0x38d   :  { %v7464_v5 = vsel %vm7415_vm6, %v26338_v7, %v12564_v26  ;;  %v26339_v35 = vunpack.i.h.bf16 %v26325_v51  ;;  %v26340_v17 = vunpack.i.l.bf16 %v26328_v20  ;;  %v26341_v47 = vunpack.i.h.bf16 %v26328_v20  ;;  %26342 = vst [vmem:[#allocation38_spill] sm:$0xff] %v22667_v42  ;;  %6931 = vmatpush1.bf16.msra.mxu0 %v6636_v34  ;;  %6838 = vmatmul.mubr.bf16.vlgmr.msra.gmra.mrb[32].mxu1 %v22288_v28 }
 0x38e   :  { %v7435_v59 = vsel %vm7415_vm6, %v12855_v22, %v26336_v63  ;;  %v24941_v63 = vunpack.i.l.bf16 %v22633_v56  ;;  %v6642_v7 = vpack.c.bf16 %v6402_v14, %v6401_v12  ;;  %v26343_v26 = vunpack.i.l.bf16 %v21845_v10  ;;  %6932 = vmatprep.subr.bf16.mxu0 %v6643_v44  ;;  %6847 = vmatprep.mubr.bf16.mxu1 %v25022_v46 }
 0x38f   :  { %v7465_v24 = vsel %vm7415_vm6, %v26339_v35, %v12565_v3  ;;  %v7450_v15 = vsel %vm7415_vm6, %v26340_v17, %v12854_v25  ;;  %v7451_v16 = vsel %vm7415_vm6, %v26341_v47, %v12855_v22  ;;  %v7634_v35 = vpack.c.bf16 %v7435_v59, %v7434_v61  ;;  %v13987_v25 = vld [vmem:[%s24434_s0 + $0x2c8] sm:$0xff]  ;;  %v13988_v22 = vld [vmem:[%s24434_s0 + $0x2f8] sm:$0xff]  ;;  %7835 = vmatpush1.bf16.msra.mxu1 %v7627_v50 }
 0x390   :  { %v13106_v17 = vpack.i.bf16 %v13988_v22, %v13987_v25  ;;  %v24940_v3 = vunpack.i.l.bf16 %v22667_v42  ;;  %v7436_v59 = vsel %vm7415_vm6, %v12874_v58, %v26343_v26  ;;  %v26344_v14 = vunpack.i.h.bf16 %v21845_v10  ;;  %v26345_v25 = vld [vmem:[#allocation110_spill] sm:$0xff] }
 0x391   :  { %v7633_v34 = vpack.c.bf16 %v7451_v16, %v7450_v15  ;;  %v7626_v61 = vpack.c.bf16 %v7465_v24, %v7464_v5  ;;  %v24948_v22 = vunpack.i.l.bf16 %v26345_v25  ;;  %v7452_v47 = vsel %vm7415_vm6, %v24942_v36, %v12874_v58  ;;  %v22713_v58 = vld [vmem:[%s24435_s1 + $0x1a0] sm:$0xff]   ;;  %7836 = vmatprep.subr.bf16.mxu1 %v7634_v35  ;;  %6933 = vmatpush1.bf16.msra.mxu0 %v6642_v7 }
 0x392   :  { %v7437_v12 = vsel %vm7415_vm6, %v12875_v13, %v26344_v14  ;;  %v22699_v10 = vsel %vm8444_vm7, %v24940_v3, %v24941_v63  ;;  %v26347_v44 = vunpack.i.h.bf16 %v22633_v56  ;;  %v26348_v5 = vunpack.i.h.bf16 %v22667_v42  ;;  %26350 = vst [vmem:[#allocation7_spill] sm:$0xff] %v22713_v58  ;;  %v12893_v14 = vpop.permute.xlu1 %12892  ;;  %13107 = vrot.lane.b32.xlu0 %v13106_v17, %s13997_s18  ;;  %v22733_v17 = vpop.permute.xlu0 %12877  ;;  %v26361_v3 = vld [vmem:[#allocation94_spill] sm:$0xff] }
 0x393   :  { %26346 = vst [vmem:[#allocation122_spill] sm:$0xff] %v22699_v10  ;;  %v24947_v15 = vunpack.i.h.bf16 %v26345_v25  ;;  %v26351_v16 = vunpack.i.h.bf16 %v26337_v21  ;;  %v12895_v50 = vunpack.i.h.bf16 %v12893_v14  ;;  %7721 = vmatprep.subr.bf16.mxu0 %v7626_v61  ;;  %7837 = vmatpush1.bf16.msra.mxu1 %v7633_v34  ;;  %v26352_v7 = vunpack.i.l.bf16 %v21979_v33 }
 0x394   :  { %v22707_v24 = vsel %vm8444_vm7, %v26348_v5, %v26347_v44  ;;  %v7640_v44 = vpack.c.bf16 %v7437_v12, %v7436_v59  ;;  %v12894_v5 = vunpack.i.l.bf16 %v12893_v14  ;;  %6765 = vmatmul.mubr.bf16.gmra.mrb[48].mxu0 %v22713_v58  ;;  %v26353_v59 = vunpack.i.h.bf16 %v21979_v33 }
 0x395   :  { %26349 = vst [vmem:[#allocation35_spill] sm:$0xff] %v22707_v24  ;;  %v7453_v26 = vsel %vm7415_vm6, %v26351_v16, %v12875_v13  ;;  %v7455_v13 = vsel %vm7415_vm6, %v24947_v15, %v12895_v50  ;;  %6774 = vmatprep.mubr.bf16.mxu0 %v25022_v46  ;;  %6848 = vmatmul.mubr.bf16.gmra.mrb[36].mxu1 %v22402_v18  ;;  %v22749_v16 = vld [vmem:[%s24435_s1 + $0x1a8] sm:$0xff]   ;;  %v26382_v24 = vunpack.i.l.bf16 %v21362_v6 }
 0x396   :  { %v7639_v63 = vpack.c.bf16 %v7453_v26, %v7452_v47  ;;  %v7454_v36 = vsel %vm7415_vm6, %v24948_v22, %v12894_v5  ;;  %v22731_v35 = vpop.permute.xlu1 %12902  ;;  %7838 = vmatprep.subr.bf16.mxu1 %v7640_v44  ;;  %v7438_v47 = vsel %vm7415_vm6, %v12894_v5, %v26352_v7  ;;  %v7439_v12 = vsel %vm7415_vm6, %v12895_v50, %v26353_v59  ;;  %v22753_v5 = vpop.permute.xlu0 %12887 }
 0x397   :  { %v7646_v34 = vpack.c.bf16 %v7439_v12, %v7438_v47  ;;  %6857 = vmatprep.mubr.bf16.mxu1 %v25022_v46  ;;  %v7645_v61 = vpack.c.bf16 %v7455_v13, %v7454_v36  ;;  %v24945_v44 = vunpack.i.h.bf16 %v22733_v17  ;;  %v24946_v50 = vunpack.i.l.bf16 %v22733_v17  ;;  %26354 = vst [vmem:[#allocation69_spill] sm:$0xff] %v22753_v5 }
 0x398   :  { %7839 = vmatpush1.bf16.msra.mxu1 %v7639_v63  ;;  %v26355_v7 = vunpack.i.l.bf16 %v21102_v60  ;;  %v26356_v63 = vunpack.i.h.bf16 %v21102_v60  ;;  %v24943_v47 = vunpack.i.h.bf16 %v22753_v5  ;;  %v24944_v59 = vunpack.i.l.bf16 %v22753_v5 }
 0x399   :  { %7840 = vmatprep.subr.bf16.mxu1 %v7646_v34  ;;  %v26357_v34 = vunpack.i.l.bf16 %v22037_v37 }
 0x39a   :  { %v12913_v26 = vpop.permute.xlu1 %12912 }
 0x39b   :  { %v12915_v33 = vunpack.i.h.bf16 %v12913_v26  ;;  %v12914_v14 = vunpack.i.l.bf16 %v12913_v26 }
 0x39c   :  { %7841 = vmatpush1.bf16.msra.mxu1 %v7645_v61  ;;  %6775 = vmatmul.mubr.bf16.gmra.mrb[52].mxu0 %v22749_v16  ;;  %v22783_v61 = vsel %vm8444_vm7, %v24944_v59, %v24946_v50  ;;  %v26364_v50 = vld [vmem:[#allocation76_spill] sm:$0xff] }
 0x39d   :  { %v7456_v36 = vsel %vm7415_vm6, %v26355_v7, %v12914_v14  ;;  %v7457_v13 = vsel %vm7415_vm6, %v26356_v63, %v12915_v33  ;;  %v7440_v26 = vsel %vm7415_vm6, %v12914_v14, %v26357_v34  ;;  %v26358_v7 = vunpack.i.h.bf16 %v22037_v37  ;;  %6784 = vmatprep.mubr.bf16.mxu0 %v25022_v46  ;;  %26359 = vst [vmem:[#allocation44_spill] sm:$0xff] %v22783_v61 }
 0x39e   :  { %v22766_v12 = vpop.permute.xlu1 %12922  ;;  %v7651_v63 = vpack.c.bf16 %v7457_v13, %v7456_v36  ;;  %v22791_v37 = vsel %vm8444_vm7, %v24943_v47, %v24945_v44  ;;  %6858 = vmatmul.mubr.bf16.gmra.mrb[40].mxu1 %v22516_v19  ;;  %v22800_v36 = vld [vmem:[%s24435_s1 + $0x1b0] sm:$0xff]   ;;  %v26362_v44 = vunpack.i.l.bf16 %v26162_v53  ;;  %v12580_v15 = vunpack.i.h.bf16 %v26364_v50 }
 0x39f   :  { %v7441_v60 = vsel %vm7415_vm6, %v12915_v33, %v26358_v7  ;;  %26360 = vst [vmem:[#allocation77_spill] sm:$0xff] %v22791_v37  ;;  %6867 = vmatprep.mubr.bf16.mxu1 %v25022_v46  ;;  %v26366_v47 = vunpack.i.h.bf16 %v22117_v9 }
 0x3a0   :  { %v7652_v14 = vpack.c.bf16 %v7441_v60, %v7440_v26  ;;  %v26363_v60 = vunpack.i.h.bf16 %v26162_v53 }
 0x3a2   :  { %v12933_v13 = vpop.permute.xlu1 %12932  ;;  %7842 = vmatprep.subr.bf16.mxu1 %v7652_v14 }
 0x3a3   :  { %v12935_v34 = vunpack.i.h.bf16 %v12933_v13  ;;  %v12934_v7 = vunpack.i.l.bf16 %v12933_v13  ;;  %7843 = vmatpush1.bf16.msra.mxu1 %v7651_v63  ;;  %v22814_v63 = vpop.permute.xlu0 %12897  ;;  %v26365_v13 = vunpack.i.l.bf16 %v22117_v9  ;;  %v26368_v9 = vunpack.i.l.bf16 %v26325_v51 }
 0x3a4   :  { %6785 = vmatmul.mubr.bf16.gmra.mrb[56].mxu0 %v22800_v36  ;;  %v26379_v5 = vunpack.i.h.bf16 %v22814_v63 }
 0x3a5   :  { %v7458_v26 = vsel %vm7415_vm6, %v26362_v44, %v12934_v7  ;;  %v7459_v33 = vsel %vm7415_vm6, %v26363_v60, %v12935_v34  ;;  %v7442_v22 = vsel %vm7415_vm6, %v12934_v7, %v26365_v13  ;;  %v7443_v53 = vsel %vm7415_vm6, %v12935_v34, %v26366_v47  ;;  %v26367_v60 = vld [vmem:[#allocation97_spill] sm:$0xff]  ;;  %6794 = vmatprep.mubr.bf16.mxu0 %v25022_v46  ;;  %v22851_v13 = vld [vmem:[%s24435_s1 + $0x1b8] sm:$0xff]  }
 0x3a6   :  { %v7657_v14 = vpack.c.bf16 %v7459_v33, %v7458_v26  ;;  %v12579_v44 = vunpack.i.l.bf16 %v26364_v50  ;;  %v24955_v59 = vunpack.i.h.bf16 %v26367_v60  ;;  %v24952_v61 = vunpack.i.l.bf16 %v26367_v60  ;;  %v22828_v33 = vpop.permute.xlu1 %12942  ;;  %6868 = vmatmul.mubr.bf16.gmra.mrb[44].mxu1 %v22627_v52 }
 0x3a7   :  { %v7658_v26 = vpack.c.bf16 %v7443_v53, %v7442_v22  ;;  %6877 = vmatprep.mubr.bf16.mxu1 %v25022_v46  ;;  %v26369_v47 = vunpack.i.l.bf16 %v26361_v3  ;;  %v26370_v34 = vunpack.i.h.bf16 %v26325_v51  ;;  %v26371_v7 = vunpack.i.h.bf16 %v26361_v3 }
 0x3a8   :  { %v22857_v53 = vsel %vm7415_vm6, %v24952_v61, %v12579_v44  ;;  %v22863_v51 = vsel %vm7415_vm6, %v24955_v59, %v12580_v15  ;;  %v22871_v61 = vpop.permute.xlu0 %12907  ;;  %v26377_v59 = vunpack.i.l.bf16 %v22814_v63 }
 0x3a9   :  { %7844 = vmatprep.subr.bf16.mxu1 %v7658_v26  ;;  %v22838_v50 = vsel %vm7415_vm6, %v26369_v47, %v26368_v9  ;;  %v22846_v22 = vsel %vm7415_vm6, %v26371_v7, %v26370_v34  ;;  %v26372_v47 = vld [vmem:[#allocation103_spill] sm:$0xff]  ;;  %v26373_v7 = vld [vmem:[#allocation105_spill] sm:$0xff]  ;;  %26374 = vst [vmem:[#allocation48_spill] sm:$0xff] %v22871_v61  ;;  %v24963_v26 = vunpack.i.l.bf16 %v22871_v61  ;;  %v26375_v9 = vld [vmem:[#allocation46_spill] sm:$0xff] }
 0x3aa   :  { %7845 = vmatpush1.bf16.msra.mxu1 %v7657_v14  ;;  %v12600_v34 = vunpack.i.h.bf16 %v26372_v47  ;;  %v12599_v14 = vunpack.i.l.bf16 %v26372_v47  ;;  %v12953_v11 = vpop.permute.xlu1 %12952  ;;  %v26376_v47 = vunpack.i.l.bf16 %v26328_v20 }
 0x3ab   :  { %v12955_v10 = vunpack.i.h.bf16 %v12953_v11  ;;  %v12954_v42 = vunpack.i.l.bf16 %v12953_v11  ;;  %v22892_v60 = vsel %vm8444_vm7, %v24963_v26, %v26377_v59  ;;  %v26383_v59 = vunpack.i.h.bf16 %v21362_v6 }
 0x3ac   :  { %6795 = vmatmul.mubr.bf16.gmra.mrb[60].mxu0 %v22851_v13  ;;  %v7466_v37 = vsel %vm7415_vm6, %v12579_v44, %v26376_v47  ;;  %26378 = vst [vmem:[#allocation53_spill] sm:$0xff] %v22892_v60  ;;  %v26380_v44 = vunpack.i.h.bf16 %v22871_v61  ;;  %v22913_v61 = vpop.permute.xlu0 %12917  ;;  %v26385_v47 = vunpack.i.h.bf16 %v26328_v20 }
 0x3ad   :  { %6950 = vmatprep.mubr.bf16.mxu0 %v25022_v46  ;;  %v7460_v62 = vsel %vm7415_vm6, %v26382_v24, %v12954_v42  ;;  %v7461_v26 = vsel %vm7415_vm6, %v26383_v59, %v12955_v10  ;;  %v26386_v24 = vunpack.i.l.bf16 %v26337_v21 }
 0x3ae   :  { %v22900_v11 = vsel %vm8444_vm7, %v26380_v44, %v26379_v5  ;;  %6878 = vmatmul.mubr.bf16.gmra.mrb[48].mxu1 %v22713_v58  ;;  %v26384_v5 = vunpack.i.l.bf16 %v22197_v39  ;;  %v7467_v60 = vsel %vm7415_vm6, %v12580_v15, %v26385_v47  ;;  %v7663_v59 = vpack.c.bf16 %v7461_v26, %v7460_v62 }
 0x3af   :  { %26381 = vst [vmem:[#allocation87_spill] sm:$0xff] %v22900_v11  ;;  %6887 = vmatprep.mubr.bf16.mxu1 %v25022_v46  ;;  %v7468_v6 = vsel %vm7415_vm6, %v12599_v14, %v26386_v24  ;;  %v26387_v11 = vunpack.i.h.bf16 %v22197_v39  ;;  %v26390_v15 = vunpack.i.l.bf16 %v22466_v32  ;;  %v26391_v62 = vunpack.i.h.bf16 %v22436_v40 }
 0x3b0   :  { %v7444_v44 = vsel %vm7415_vm6, %v12954_v42, %v26384_v5  ;;  %v26388_v42 = vunpack.i.h.bf16 %v26337_v21  ;;  %v26392_v26 = vunpack.i.h.bf16 %v22466_v32  ;;  %v12620_v21 = vunpack.i.h.bf16 %v26375_v9 }
 0x3b1   :  { %v7445_v58 = vsel %vm7415_vm6, %v12955_v10, %v26387_v11  ;;  %v22942_v47 = vsel %vm8444_vm7, %v26390_v15, %v26389_v31  ;;  %v24972_v31 = vunpack.i.h.bf16 %v22913_v61  ;;  %v24974_v24 = vunpack.i.l.bf16 %v22913_v61 }
 0x3b2   :  { %v7469_v5 = vsel %vm7415_vm6, %v12600_v34, %v26388_v42  ;;  %v7664_v20 = vpack.c.bf16 %v7445_v58, %v7444_v44  ;;  %v22950_v10 = vsel %vm8444_vm7, %v26392_v26, %v26391_v62  ;;  %v7625_v58 = vpack.c.bf16 %v22846_v22, %v22838_v50  ;;  %v22959_v42 = vpop.permute.xlu1 %12962  ;;  %v22971_v22 = vpop.permute.xlu0 %12927 }
 0x3b3   :  { %v7632_v44 = vpack.c.bf16 %v7467_v60, %v7466_v37  ;;  %v26393_v32 = vunpack.i.l.bf16 %v26373_v7  ;;  %v26394_v62 = vunpack.i.h.bf16 %v26373_v7  ;;  %v7631_v37 = vpack.c.bf16 %v22863_v51, %v22857_v53 }
 0x3b4   :  { %7846 = vmatprep.subr.bf16.mxu1 %v7664_v20  ;;  %v7638_v60 = vpack.c.bf16 %v7469_v5, %v7468_v6  ;;  %v24973_v26 = vunpack.i.l.bf16 %v22552_v54  ;;  %6951 = vmatmul.mubr.bf16.vlgmr.msra.gmra.mrb[16].mxu0 %v22288_v28  ;;  %v26395_v20 = vunpack.i.l.bf16 %v26345_v25  ;;  %v24975_v53 = vunpack.i.h.bf16 %v22552_v54 }
 0x3b5   :  { %v7484_v15 = vsel %vm7415_vm6, %v26393_v32, %v12599_v14  ;;  %v7485_v50 = vsel %vm7415_vm6, %v26394_v62, %v12600_v34  ;;  %7847 = vmatpush1.bf16.msra.mxu1 %v7663_v59  ;;  %v26396_v14 = vunpack.i.l.bf16 %v26375_v9  ;;  %v24970_v34 = vunpack.i.h.bf16 %v22971_v22  ;;  %7722 = vmatpush1.bf16.msra.mxu0 %v7625_v58 }
 0x3b6   :  { %v24971_v62 = vunpack.i.l.bf16 %v22971_v22  ;;  %v24977_v51 = vunpack.i.h.bf16 %v22391_v55  ;;  %v24976_v6 = vunpack.i.l.bf16 %v22391_v55  ;;  %6960 = vmatprep.mubr.bf16.mxu0 %v25022_v46  ;;  %v26397_v28 = vunpack.i.h.bf16 %v26345_v25  ;;  %6888 = vmatmul.mubr.bf16.gmra.mrb[52].mxu1 %v22749_v16  ;;  %v12973_v58 = vpop.permute.xlu1 %12972 }
 0x3b7   :  { %v7470_v32 = vsel %vm7415_vm6, %v26396_v14, %v26395_v20  ;;  %7723 = vmatprep.subr.bf16.mxu0 %v7632_v44  ;;  %v23006_v25 = vsel %vm8444_vm7, %v24970_v34, %v24972_v31  ;;  %v26398_v44 = vunpack.i.l.bf16 %v22633_v56  ;;  %6897 = vmatprep.mubr.bf16.mxu1 %v25022_v46  ;;  %v12974_v11 = vunpack.i.l.bf16 %v12973_v58 }
 0x3b8   :  { %v7471_v59 = vsel %vm7415_vm6, %v12620_v21, %v26397_v28  ;;  %v22998_v5 = vsel %vm8444_vm7, %v24971_v62, %v24974_v24  ;;  %v12975_v28 = vunpack.i.h.bf16 %v12973_v58  ;;  %v26399_v34 = vunpack.i.h.bf16 %v22633_v56 }
 0x3b9   :  { %v23014_v20 = vsel %vm8444_vm7, %v26398_v44, %v24973_v26  ;;  %v7637_v26 = vpack.c.bf16 %v7485_v50, %v7484_v15  ;;  %7724 = vmatpush1.bf16.msra.mxu0 %v7631_v37  ;;  %v26400_v14 = vunpack.i.l.bf16 %v21496_v38  ;;  %v26401_v56 = vunpack.i.h.bf16 %v21496_v38 }
 0x3ba   :  { %v23025_v62 = vsel %vm8444_vm7, %v26399_v34, %v24975_v53  ;;  %v12938_v53 = vpop.permute.xlu0 %12937  ;;  %v7446_v15 = vsel %vm7415_vm6, %v12974_v11, %v24976_v6  ;;  %v7447_v50 = vsel %vm7415_vm6, %v12975_v28, %v24977_v51  ;;  %v26402_v37 = vunpack.i.l.bf16 %v26375_v9  ;;  %7725 = vmatprep.subr.bf16.mxu0 %v7638_v60 }
 0x3bb   :  { %v7462_v58 = vsel %vm7415_vm6, %v26400_v14, %v12974_v11  ;;  %v7463_v34 = vsel %vm7415_vm6, %v26401_v56, %v12975_v28  ;;  %v26403_v14 = vunpack.i.l.bf16 %v26207_v8  ;;  %v26404_v56 = vunpack.i.h.bf16 %v26207_v8 }
 0x3bc   :  { %v7644_v31 = vpack.c.bf16 %v7471_v59, %v7470_v32  ;;  %v7670_v11 = vpack.c.bf16 %v7447_v50, %v7446_v15  ;;  %v24991_v6 = vunpack.i.h.bf16 %v22731_v35  ;;  %v7669_v44 = vpack.c.bf16 %v7463_v34, %v7462_v58  ;;  %6961 = vmatmul.mubr.bf16.gmra.mrb[20].mxu0 %v22402_v18  ;;  %v26415_v58 = vld [vmem:[#allocation118_spill] sm:$0xff] }
 0x3bd   :  { %v7486_v38 = vsel %vm7415_vm6, %v26403_v14, %v26402_v37  ;;  %v7487_v24 = vsel %vm7415_vm6, %v26404_v56, %v12620_v21  ;;  %v26405_v28 = vunpack.i.l.bf16 %v22661_v43  ;;  %v26406_v9 = vunpack.i.l.bf16 %v22733_v17  ;;  %7726 = vmatpush1.bf16.msra.mxu0 %v7637_v26  ;;  %6970 = vmatprep.mubr.bf16.mxu0 %v25022_v46  ;;  %v26414_v56 = vld [vmem:[#allocation121_spill] sm:$0xff] }
 0x3be   :  { %v26407_v37 = vunpack.i.h.bf16 %v22661_v43  ;;  %v26408_v8 = vunpack.i.h.bf16 %v22733_v17  ;;  %v24988_v60 = vunpack.i.l.bf16 %v22731_v35  ;;  %v12940_v32 = vunpack.i.h.bf16 %v12938_v53  ;;  %7848 = vmatprep.subr.bf16.mxu1 %v7670_v11  ;;  %v23079_v15 = vpop.permute.xlu0 %12947  ;;  %v23081_v17 = vpop.permute.xlu1 %12982  ;;  %6898 = vmatmul.mubr.bf16.gmra.mrb[56].mxu1 %v22800_v36 }
 0x3bf   :  { %v23064_v51 = vsel %vm8444_vm7, %v26406_v9, %v26405_v28  ;;  %v12939_v59 = vunpack.i.l.bf16 %v12938_v53  ;;  %v7643_v34 = vpack.c.bf16 %v7487_v24, %v7486_v38  ;;  %7727 = vmatprep.subr.bf16.mxu0 %v7644_v31  ;;  %v24978_v50 = vunpack.i.h.bf16 %v23079_v15  ;;  %6907 = vmatprep.mubr.bf16.mxu1 %v25022_v46 }
 0x3c0   :  { %v23072_v21 = vsel %vm8444_vm7, %v26408_v8, %v26407_v37  ;;  %v24979_v18 = vunpack.i.l.bf16 %v23079_v15  ;;  %v26409_v53 = vunpack.i.l.bf16 %v22814_v63  ;;  %v26410_v26 = vunpack.i.h.bf16 %v22814_v63  ;;  %7849 = vmatpush1.bf16.msra.mxu1 %v7669_v44 }
 0x3c1   :  { %v24986_v31 = vunpack.i.h.bf16 %v22766_v12  ;;  %v24987_v38 = vunpack.i.l.bf16 %v22766_v12  ;;  %v23117_v63 = vsel %vm8444_vm7, %v24978_v50, %v12940_v32  ;;  %7728 = vmatpush1.bf16.msra.mxu0 %v7643_v34  ;;  %v26411_v44 = vunpack.i.l.bf16 %v22913_v61 }
 0x3c2   :  { %v23092_v24 = vsel %vm8444_vm7, %v26409_v53, %v24988_v60  ;;  %v23100_v14 = vsel %vm8444_vm7, %v26410_v26, %v24991_v6  ;;  %v23111_v11 = vsel %vm8444_vm7, %v24979_v18, %v12939_v59  ;;  %v26412_v37 = vunpack.i.h.bf16 %v22913_v61  ;;  %v12958_v53 = vpop.permute.xlu0 %12957  ;;  %v23142_v28 = vpop.permute.xlu1 %12992 }
 0x3c3   :  { %v23127_v9 = vsel %vm8444_vm7, %v26411_v44, %v24987_v38  ;;  %v26413_v34 = vpack.c.bf16 %v21684_v49, %v21676_v30  ;;  %v24980_v44 = vunpack.i.l.bf16 %v22828_v33  ;;  %v24981_v61 = vunpack.i.h.bf16 %v22828_v33 }
 0x3c4   :  { %v23135_v8 = vsel %vm8444_vm7, %v26412_v37, %v24986_v31  ;;  %6971 = vmatmul.mubr.bf16.gmra.mrb[24].mxu0 %v22516_v19  ;;  %v26416_v37 = vpack.c.bf16 %v26414_v56, %v26415_v58  ;;  %v12960_v49 = vunpack.i.h.bf16 %v12958_v53  ;;  %v12959_v30 = vunpack.i.l.bf16 %v12958_v53 }
 0x3c5   :  { %7729 = vmatprep.subr.bf16.mxu0 %v26413_v34  ;;  %6980 = vmatprep.mubr.bf16.mxu0 %v25022_v46  ;;  %v26417_v34 = vpack.c.bf16 %v21758_v48, %v21750_v4  ;;  %v23159_v19 = vsel %vm8444_vm7, %v12939_v59, %v24980_v44  ;;  %v24982_v26 = vunpack.i.h.bf16 %v22959_v42  ;;  %v24983_v58 = vunpack.i.l.bf16 %v22959_v42 }
 0x3c6   :  { %7730 = vmatpush1.bf16.msra.mxu0 %v26416_v37  ;;  %6908 = vmatmul.mubr.bf16.gmra.mrb[60].mxu1 %v22851_v13  ;;  %v23164_v56 = vpop.permute.xlu0 %12967  ;;  %v23170_v4 = vsel %vm8444_vm7, %v12940_v32, %v24981_v61  ;;  %v13003_v59 = vpop.permute.xlu1 %13002  ;;  %v26420_v37 = vpack.c.bf16 %v21814_v2, %v21806_v41  ;;  %v24989_v41 = vunpack.i.l.bf16 %v23081_v17  ;;  %v26428_v38 = vunpack.i.h.bf16 %v26361_v3 }
 0x3c7   :  { %7731 = vmatprep.subr.bf16.mxu0 %v26417_v34  ;;  %7866 = vmatprep.mubr.bf16.mxu1 %v25022_v46  ;;  %v24984_v48 = vunpack.i.h.bf16 %v23164_v56  ;;  %v24985_v53 = vunpack.i.l.bf16 %v23164_v56  ;;  %v26418_v34 = vld [vmem:[#allocation61_spill] sm:$0xff]  ;;  %v13005_v18 = vunpack.i.h.bf16 %v13003_v59  ;;  %v13004_v44 = vunpack.i.l.bf16 %v13003_v59 }
 0x3c8   :  { %v26419_v50 = vpack.c.bf16 %v21357_v57, %v26418_v34  ;;  %v23183_v32 = vsel %vm8444_vm7, %v12959_v30, %v24983_v58  ;;  %v23189_v61 = vsel %vm8444_vm7, %v12960_v49, %v24982_v26  ;;  %v23197_v57 = vld [vmem:[%s24435_s1 + $0x1c0] sm:$0xff]   ;;  %v26421_v26 = vunpack.i.l.bf16 %v22554_v1 }
 0x3c9   :  { %v23209_v59 = vsel %vm8444_vm7, %v24984_v48, %v12960_v49  ;;  %v26423_v58 = vunpack.i.h.bf16 %v22554_v1  ;;  %v26426_v1 = vunpack.i.l.bf16 %v26361_v3  ;;  %v12994_v31 = vunpack.i.l.bf16 %v23142_v28 }
 0x3ca   :  { %7732 = vmatpush1.bf16.msra.mxu0 %v26419_v50  ;;  %v23203_v50 = vsel %vm8444_vm7, %v24985_v53, %v12959_v30  ;;  %v12978_v34 = vpop.permute.xlu0 %12977  ;;  %v23220_v30 = vsel %vm8444_vm7, %v13004_v44, %v26421_v26  ;;  %v23230_v53 = vpop.permute.xlu1 %13012  ;;  %v26425_v26 = vpack.c.bf16 %v21494_v29, %v21486_v0  ;;  %v26430_v0 = vld [vmem:[#allocation56_spill] sm:$0xff]  ;;  %v26436_v6 = vunpack.i.l.bf16 %v22436_v40 }
 0x3cb   :  { %7733 = vmatprep.subr.bf16.mxu0 %v26420_v37  ;;  %v24990_v37 = vunpack.i.h.bf16 %v23081_v17  ;;  %26422 = vst [vmem:[#allocation43_spill] sm:$0xff] %v23220_v30  ;;  %v23226_v49 = vsel %vm8444_vm7, %v13005_v18, %v26423_v58  ;;  %v12980_v2 = vunpack.i.h.bf16 %v12978_v34  ;;  %v12979_v48 = vunpack.i.l.bf16 %v12978_v34 }
 0x3cc   :  { %26424 = vst [vmem:[#allocation8_spill] sm:$0xff] %v23226_v49  ;;  %6981 = vmatmul.mubr.bf16.gmra.mrb[28].mxu0 %v22627_v52  ;;  %v26427_v58 = vunpack.i.l.bf16 %v21650_v23  ;;  %v26429_v34 = vunpack.i.h.bf16 %v21650_v23  ;;  %v26431_v29 = vpack.c.bf16 %v21889_v27, %v26430_v0  ;;  %v26433_v0 = vld [vmem:[#allocation133_spill] sm:$0xff] }
 0x3cd   :  { %6990 = vmatprep.mubr.bf16.mxu0 %v25022_v46  ;;  %v23260_v23 = vsel %vm8444_vm7, %v12979_v48, %v24989_v41  ;;  %v23266_v3 = vsel %vm8444_vm7, %v12980_v2, %v24990_v37  ;;  %v23283_v37 = vld [vmem:[%s24435_s1 + $0x1c8] sm:$0xff]  }
 0x3ce   :  { %7734 = vmatpush1.bf16.msra.mxu0 %v26425_v26  ;;  %v7496_v52 = vsel %vm7415_vm6, %v26427_v58, %v26426_v1  ;;  %v7497_v60 = vsel %vm7415_vm6, %v26429_v34, %v26428_v38  ;;  %7867 = vmatmul.mubr.bf16.vlgmr.msra.gmra.mrb[32].mxu1 %v23197_v57  ;;  %v12995_v26 = vunpack.i.h.bf16 %v23142_v28  ;;  %v23269_v27 = vpop.permute.xlu0 %12987  ;;  %v23275_v34 = vpop.permute.xlu1 %13022 }
 0x3cf   :  { %7735 = vmatprep.subr.bf16.mxu0 %v26431_v29  ;;  %7876 = vmatprep.mubr.bf16.mxu1 %v25022_v46  ;;  %26432 = vst [vmem:[#allocation95_spill] sm:$0xff] %v23269_v27  ;;  %v7630_v28 = vpack.c.bf16 %v7497_v60, %v7496_v52  ;;  %v24995_v1 = vunpack.i.h.bf16 %v23269_v27  ;;  %v24994_v58 = vunpack.i.l.bf16 %v23269_v27  ;;  %v26434_v29 = vld [vmem:[#allocation58_spill] sm:$0xff]  ;;  %v8477_v60 = vsel %vm8444_vm7, %v26436_v6, %v12994_v31 }
 0x3d0   :  { %v26435_v41 = vpack.c.bf16 %v26433_v0, %v26434_v29  ;;  %v26437_v52 = vunpack.i.h.bf16 %v22436_v40  ;;  %v26438_v40 = vld [vmem:[#allocation7_spill] sm:$0xff] }
 0x3d2   :  { %7736 = vmatpush1.bf16.msra.mxu0 %v26435_v41  ;;  %v8478_v38 = vsel %vm8444_vm7, %v26437_v52, %v12995_v26  ;;  %v23297_v41 = vsel %vm8444_vm7, %v24994_v58, %v12979_v48  ;;  %v12998_v0 = vpop.permute.xlu0 %12997  ;;  %v13033_v30 = vpop.permute.xlu1 %13032 }
 0x3d3   :  { %7947 = vmatprep.subr.bf16.mxu0 %v7630_v28  ;;  %v23303_v28 = vsel %vm8444_vm7, %v24995_v1, %v12980_v2  ;;  %v13000_v29 = vunpack.i.h.bf16 %v12998_v0  ;;  %v12999_v52 = vunpack.i.l.bf16 %v12998_v0  ;;  %v8656_v49 = vpack.c.bf16 %v8478_v38, %v8477_v60  ;;  %v26441_v0 = vld [vmem:[#allocation69_spill] sm:$0xff] }
 0x3d4   :  { %6991 = vmatmul.mubr.bf16.gmra.mrb[32].mxu0 %v26438_v40  ;;  %v13035_v48 = vunpack.i.h.bf16 %v13033_v30  ;;  %v13034_v58 = vunpack.i.l.bf16 %v13033_v30  ;;  %v26442_v6 = vunpack.i.l.bf16 %v26441_v0 }
 0x3d5   :  { %7000 = vmatprep.mubr.bf16.mxu0 %v25022_v46  ;;  %v23312_v2 = vsel %vm8444_vm7, %v13000_v29, %v13005_v18  ;;  %v23316_v1 = vsel %vm8444_vm7, %v12999_v52, %v13004_v44  ;;  %v8461_v40 = vsel %vm8444_vm7, %v12994_v31, %v12999_v52  ;;  %v8462_v38 = vsel %vm8444_vm7, %v12995_v26, %v13000_v29 }
 0x3d6   :  { %7877 = vmatmul.mubr.bf16.gmra.mrb[36].mxu1 %v23283_v37  ;;  %26439 = vst [vmem:[#allocation98_spill] sm:$0xff] %v23312_v2  ;;  %26440 = vst [vmem:[#allocation110_spill] sm:$0xff] %v23316_v1  ;;  %v8657_v30 = vpack.c.bf16 %v8462_v38, %v8461_v40  ;;  %v23329_v18 = vsel %vm8444_vm7, %v13034_v58, %v26442_v6  ;;  %v26444_v44 = vunpack.i.h.bf16 %v26441_v0  ;;  %v13015_v26 = vunpack.i.h.bf16 %v23230_v53  ;;  %v13008_v52 = vpop.permute.xlu0 %13007  ;;  %v23344_v6 = vld [vmem:[%s24435_s1 + $0x1d0] sm:$0xff]   ;;  %v23355_v40 = vpop.permute.xlu1 %13042 }
 0x3d7   :  { %7886 = vmatprep.mubr.bf16.mxu1 %v25022_v46  ;;  %26443 = vst [vmem:[#allocation94_spill] sm:$0xff] %v23329_v18  ;;  %v13014_v29 = vunpack.i.l.bf16 %v23230_v53  ;;  %v13010_v38 = vunpack.i.h.bf16 %v13008_v52  ;;  %v13009_v60 = vunpack.i.l.bf16 %v13008_v52  ;;  %v26446_v0 = vunpack.i.h.bf16 %v22552_v54 }
 0x3d8   :  { %v23335_v31 = vsel %vm8444_vm7, %v13035_v48, %v26444_v44  ;;  %8863 = vmatprep.subr.bf16.mxu1 %v8657_v30  ;;  %v26447_v53 = vunpack.i.l.bf16 %v22552_v54  ;;  %v26453_v2 = vunpack.i.l.bf16 %v22661_v43 }
 0x3d9   :  { %26445 = vst [vmem:[#allocation76_spill] sm:$0xff] %v23335_v31  ;;  %8864 = vmatpush1.bf16.msra.mxu1 %v8656_v49  ;;  %v8480_v44 = vsel %vm8444_vm7, %v26446_v0, %v13010_v38  ;;  %v8463_v18 = vsel %vm8444_vm7, %v13009_v60, %v13014_v29  ;;  %v8464_v49 = vsel %vm8444_vm7, %v13010_v38, %v13015_v26  ;;  %v26450_v38 = vld [vmem:[#allocation38_spill] sm:$0xff] }
 0x3da   :  { %v8479_v27 = vsel %vm8444_vm7, %v26447_v53, %v13009_v60  ;;  %v13018_v30 = vpop.permute.xlu0 %13017  ;;  %v8663_v54 = vpack.c.bf16 %v8464_v49, %v8463_v18  ;;  %v13025_v53 = vunpack.i.h.bf16 %v23275_v34 }
 0x3db   :  { %v8662_v52 = vpack.c.bf16 %v8480_v44, %v8479_v27  ;;  %v13020_v0 = vunpack.i.h.bf16 %v13018_v30  ;;  %v13019_v31 = vunpack.i.l.bf16 %v13018_v30  ;;  %v26451_v44 = vunpack.i.l.bf16 %v26450_v38 }
 0x3dc   :  { %7001 = vmatmul.mubr.bf16.gmra.mrb[36].mxu0 %v22749_v16  ;;  %v13024_v16 = vunpack.i.l.bf16 %v23275_v34  ;;  %8865 = vmatprep.subr.bf16.mxu1 %v8663_v54 }
 0x3dd   :  { %7010 = vmatprep.mubr.bf16.mxu0 %v25022_v46  ;;  %v23367_v27 = vsel %vm8444_vm7, %v13015_v26, %v13020_v0  ;;  %v23371_v60 = vsel %vm8444_vm7, %v13014_v29, %v13019_v31  ;;  %v23378_v18 = vsel %vm8444_vm7, %v13019_v31, %v26451_v44  ;;  %8866 = vmatpush1.bf16.msra.mxu1 %v8662_v52  ;;  %v26452_v26 = vunpack.i.h.bf16 %v26450_v38  ;;  %v23403_v38 = vpop.permute.xlu1 %13052 }
 0x3de   :  { %7887 = vmatmul.mubr.bf16.gmra.mrb[40].mxu1 %v23344_v6  ;;  %26448 = vst [vmem:[#allocation103_spill] sm:$0xff] %v23367_v27  ;;  %26449 = vst [vmem:[#allocation105_spill] sm:$0xff] %v23371_v60  ;;  %v13028_v30 = vpop.permute.xlu0 %13027  ;;  %v8481_v31 = vsel %vm8444_vm7, %v26453_v2, %v13024_v16  ;;  %v26454_v44 = vunpack.i.h.bf16 %v22661_v43  ;;  %v13045_v43 = vunpack.i.h.bf16 %v23355_v40  ;;  %v13054_v2 = vunpack.i.l.bf16 %v23403_v38 }
 0x3df   :  { %7896 = vmatprep.mubr.bf16.mxu1 %v25022_v46  ;;  %v23386_v29 = vsel %vm8444_vm7, %v13020_v0, %v26452_v26  ;;  %v13030_v49 = vunpack.i.h.bf16 %v13028_v30  ;;  %v13029_v1 = vunpack.i.l.bf16 %v13028_v30  ;;  %v23401_v0 = vld [vmem:[%s24435_s1 + $0x1d8] sm:$0xff]  }
 0x3e0   :  { %v8482_v52 = vsel %vm8444_vm7, %v26454_v44, %v13025_v53  ;;  %v13044_v44 = vunpack.i.l.bf16 %v23355_v40 }
 0x3e1   :  { %v23407_v30 = vsel %vm8444_vm7, %v13030_v49, %v13035_v48  ;;  %v23411_v26 = vsel %vm8444_vm7, %v13029_v1, %v13034_v58  ;;  %v8465_v54 = vsel %vm8444_vm7, %v13024_v16, %v13029_v1  ;;  %v8466_v48 = vsel %vm8444_vm7, %v13025_v53, %v13030_v49 }
 0x3e2   :  { %26455 = vst [vmem:[#allocation46_spill] sm:$0xff] %v23407_v30  ;;  %26456 = vst [vmem:[#allocation121_spill] sm:$0xff] %v23411_v26  ;;  %v13038_v34 = vpop.permute.xlu0 %13037  ;;  %v8668_v60 = vpack.c.bf16 %v8482_v52, %v8481_v31  ;;  %v13063_v26 = vpop.permute.xlu1 %13062  ;;  %v8669_v40 = vpack.c.bf16 %v8466_v48, %v8465_v54  ;;  %v26457_v30 = vunpack.i.h.bf16 %v22731_v35  ;;  %v26458_v53 = vunpack.i.l.bf16 %v22731_v35 }
 0x3e3   :  { %v13040_v58 = vunpack.i.h.bf16 %v13038_v34  ;;  %v13039_v27 = vunpack.i.l.bf16 %v13038_v34  ;;  %v13065_v34 = vunpack.i.h.bf16 %v13063_v26  ;;  %v13064_v49 = vunpack.i.l.bf16 %v13063_v26 }
 0x3e4   :  { %7011 = vmatmul.mubr.bf16.gmra.mrb[40].mxu0 %v22800_v36  ;;  %v13055_v36 = vunpack.i.h.bf16 %v23403_v38  ;;  %8867 = vmatprep.subr.bf16.mxu1 %v8669_v40  ;;  %v26459_v35 = vunpack.i.l.bf16 %v22971_v22 }
 0x3e5   :  { %7020 = vmatprep.mubr.bf16.mxu0 %v25022_v46  ;;  %v8484_v1 = vsel %vm8444_vm7, %v26457_v30, %v13040_v58  ;;  %v8483_v16 = vsel %vm8444_vm7, %v26458_v53, %v13039_v27  ;;  %v8467_v31 = vsel %vm8444_vm7, %v13039_v27, %v13044_v44  ;;  %v8468_v54 = vsel %vm8444_vm7, %v13040_v58, %v13045_v43  ;;  %v23454_v27 = vld [vmem:[%s24435_s1 + $0x1e0] sm:$0xff]  }
 0x3e6   :  { %7897 = vmatmul.mubr.bf16.gmra.mrb[44].mxu1 %v23401_v0  ;;  %v8674_v52 = vpack.c.bf16 %v8484_v1, %v8483_v16  ;;  %v13048_v38 = vpop.permute.xlu0 %13047  ;;  %v8675_v30 = vpack.c.bf16 %v8468_v54, %v8467_v31  ;;  %v23443_v48 = vsel %vm8444_vm7, %v13064_v49, %v26459_v35  ;;  %v26461_v53 = vunpack.i.h.bf16 %v22971_v22 }
 0x3e7   :  { %7906 = vmatprep.mubr.bf16.mxu1 %v25022_v46  ;;  %8868 = vmatpush1.bf16.msra.mxu1 %v8668_v60  ;;  %26460 = vst [vmem:[#allocation118_spill] sm:$0xff] %v23443_v48  ;;  %v13050_v58 = vunpack.i.h.bf16 %v13048_v38  ;;  %v13049_v60 = vunpack.i.l.bf16 %v13048_v38  ;;  %v23456_v40 = vpop.permute.xlu1 %13072  ;;  %v26463_v16 = vunpack.i.l.bf16 %v22766_v12  ;;  %v26464_v31 = vunpack.i.h.bf16 %v22766_v12  ;;  %v26474_v48 = vld [vmem:[#allocation6_spill] sm:$0xff] }
 0x3e8   :  { %v23449_v26 = vsel %vm8444_vm7, %v13065_v34, %v26461_v53  ;;  %8869 = vmatprep.subr.bf16.mxu1 %v8675_v30  ;;  %v26467_v53 = vld [vmem:[#allocation48_spill] sm:$0xff] }
 0x3e9   :  { %26462 = vst [vmem:[#allocation61_spill] sm:$0xff] %v23449_v26  ;;  %v8485_v22 = vsel %vm8444_vm7, %v26463_v16, %v13054_v2  ;;  %v8486_v54 = vsel %vm8444_vm7, %v26464_v31, %v13055_v36  ;;  %v23471_v38 = vsel %vm8444_vm7, %v13045_v43, %v13050_v58  ;;  %v23475_v35 = vsel %vm8444_vm7, %v13044_v44, %v13049_v60  ;;  %v26472_v31 = vld [vmem:[#allocation97_spill] sm:$0xff] }
 0x3ea   :  { %26465 = vst [vmem:[#allocation56_spill] sm:$0xff] %v23471_v38  ;;  %26466 = vst [vmem:[#allocation133_spill] sm:$0xff] %v23475_v35  ;;  %v26468_v1 = vunpack.i.l.bf16 %v26467_v53  ;;  %v26470_v12 = vunpack.i.h.bf16 %v26467_v53  ;;  %v13058_v43 = vpop.permute.xlu0 %13057  ;;  %v26473_v53 = vunpack.i.l.bf16 %v26472_v31  ;;  %v26475_v26 = vunpack.i.l.bf16 %v26474_v48 }
 0x3eb   :  { %8870 = vmatpush1.bf16.msra.mxu1 %v8674_v52  ;;  %v8680_v44 = vpack.c.bf16 %v8486_v54, %v8485_v22 }
 0x3ec   :  { %7021 = vmatmul.mubr.bf16.gmra.mrb[44].mxu0 %v22851_v13  ;;  %v23481_v16 = vsel %vm8444_vm7, %v13049_v60, %v26468_v1  ;;  %v23487_v30 = vsel %vm8444_vm7, %v13050_v58, %v26470_v12  ;;  %v13060_v60 = vunpack.i.h.bf16 %v13058_v43  ;;  %v13059_v1 = vunpack.i.l.bf16 %v13058_v43  ;;  %v23507_v35 = vpop.permute.xlu1 %13082 }
 0x3ed   :  { %26469 = vst [vmem:[#allocation58_spill] sm:$0xff] %v23481_v16  ;;  %26471 = vst [vmem:[#allocation7_spill] sm:$0xff] %v23487_v30  ;;  %7753 = vmatprep.mubr.bf16.mxu0 %v25022_v46  ;;  %v7498_v58 = vsel %vm7415_vm6, %v26475_v26, %v26473_v53  ;;  %v26476_v12 = vunpack.i.h.bf16 %v26472_v31  ;;  %v26477_v13 = vunpack.i.h.bf16 %v26474_v48  ;;  %v13074_v43 = vunpack.i.l.bf16 %v23456_v40 }
 0x3ee   :  { %7907 = vmatmul.mubr.bf16.gmra.mrb[48].mxu1 %v23454_v27  ;;  %v23513_v38 = vsel %vm8444_vm7, %v13060_v60, %v13065_v34  ;;  %v23517_v26 = vsel %vm8444_vm7, %v13059_v1, %v13064_v49  ;;  %v8469_v48 = vsel %vm8444_vm7, %v13054_v2, %v13059_v1  ;;  %v13075_v31 = vunpack.i.h.bf16 %v23456_v40  ;;  %v23529_v34 = vld [vmem:[%s24435_s1 + $0x1e8] sm:$0xff]  }
 0x3ef   :  { %v7499_v52 = vsel %vm7415_vm6, %v26477_v13, %v26476_v12  ;;  %7916 = vmatprep.mubr.bf16.mxu1 %v25022_v46  ;;  %26478 = vst [vmem:[#allocation69_spill] sm:$0xff] %v23517_v26  ;;  %v8470_v13 = vsel %vm8444_vm7, %v13055_v36, %v13060_v60  ;;  %v13068_v53 = vpop.permute.xlu0 %13067  ;;  %v26479_v2 = vunpack.i.l.bf16 %v26373_v7  ;;  %v26480_v1 = vld [vmem:[#allocation116_spill] sm:$0xff]  ;;  %v26482_v60 = vunpack.i.h.bf16 %v26373_v7 }
 0x3f0   :  { %v7636_v54 = vpack.c.bf16 %v7499_v52, %v7498_v58  ;;  %v8681_v12 = vpack.c.bf16 %v8470_v13, %v8469_v48  ;;  %v13070_v49 = vunpack.i.h.bf16 %v13068_v53  ;;  %v13069_v16 = vunpack.i.l.bf16 %v13068_v53 }
 0x3f1   :  { %v26481_v30 = vunpack.i.l.bf16 %v26480_v1  ;;  %v26483_v40 = vunpack.i.h.bf16 %v26480_v1  ;;  %v13093_v52 = vpop.permute.xlu1 %13092  ;;  %v13085_v48 = vunpack.i.h.bf16 %v23507_v35  ;;  %v13084_v13 = vunpack.i.l.bf16 %v23507_v35  ;;  %v26486_v35 = vld [vmem:[#allocation80_spill] sm:$0xff] }
 0x3f2   :  { %8871 = vmatprep.subr.bf16.mxu1 %v8681_v12  ;;  %v13095_v53 = vunpack.i.h.bf16 %v13093_v52  ;;  %v13094_v22 = vunpack.i.l.bf16 %v13093_v52  ;;  %v26484_v26 = vunpack.i.h.bf16 %v22828_v33  ;;  %v8471_v1 = vsel %vm8444_vm7, %v13069_v16, %v13074_v43  ;;  %v26487_v12 = vld [vmem:[#allocation134_spill] sm:$0xff] }
 0x3f3   :  { %v7500_v36 = vsel %vm7415_vm6, %v26481_v30, %v26479_v2  ;;  %v7501_v58 = vsel %vm7415_vm6, %v26483_v40, %v26482_v60  ;;  %v26485_v30 = vunpack.i.l.bf16 %v22828_v33  ;;  %8872 = vmatpush1.bf16.msra.mxu1 %v8680_v44  ;;  %v26488_v60 = vpack.c.bf16 %v26486_v35, %v26487_v12 }
 0x3f4   :  { %7754 = vmatmul.mubr.bf16.vlgmr.msra.gmra.mrb[0].mxu0 %v23197_v57  ;;  %v8488_v7 = vsel %vm8444_vm7, %v26484_v26, %v13070_v49  ;;  %v8472_v26 = vsel %vm8444_vm7, %v13070_v49, %v13075_v31  ;;  %v26489_v33 = vunpack.i.l.bf16 %v23164_v56  ;;  %v7642_v12 = vpack.c.bf16 %v7501_v58, %v7500_v36 }
 0x3f5   :  { %v8487_v2 = vsel %vm8444_vm7, %v26485_v30, %v13069_v16  ;;  %7948 = vmatpush1.bf16.msra.mxu0 %v26488_v60  ;;  %7763 = vmatprep.mubr.bf16.mxu0 %v25022_v46  ;;  %v8687_v35 = vpack.c.bf16 %v8472_v26, %v8471_v1  ;;  %v26492_v49 = vunpack.i.l.bf16 %v22959_v42  ;;  %v13103_v58 = vpop.permute.xlu1 %13102  ;;  %v26495_v26 = vunpack.i.h.bf16 %v23079_v15 }
 0x3f6   :  { %v8686_v40 = vpack.c.bf16 %v8488_v7, %v8487_v2  ;;  %v13078_v52 = vpop.permute.xlu0 %13077  ;;  %v23566_v30 = vsel %vm8444_vm7, %v13094_v22, %v26489_v33  ;;  %7949 = vmatprep.subr.bf16.mxu0 %v7636_v54  ;;  %7917 = vmatmul.mubr.bf16.gmra.mrb[52].mxu1 %v23529_v34  ;;  %v26491_v7 = vunpack.i.h.bf16 %v23164_v56  ;;  %v26493_v33 = vunpack.i.h.bf16 %v22959_v42  ;;  %v26502_v56 = vld [vmem:[#allocation42_spill] sm:$0xff] }
 0x3f7   :  { %26490 = vst [vmem:[#allocation38_spill] sm:$0xff] %v23566_v30  ;;  %v13080_v16 = vunpack.i.h.bf16 %v13078_v52  ;;  %v13079_v44 = vunpack.i.l.bf16 %v13078_v52  ;;  %v8489_v60 = vsel %vm8444_vm7, %v26492_v49, %v13084_v13  ;;  %7926 = vmatprep.mubr.bf16.mxu1 %v25022_v46  ;;  %8873 = vmatprep.subr.bf16.mxu1 %v8687_v35  ;;  %v26494_v42 = vunpack.i.l.bf16 %v23079_v15  ;;  %v26497_v49 = vld [vmem:[#allocation109_spill] sm:$0xff] }
 0x3f8   :  { %v23573_v2 = vsel %vm8444_vm7, %v13095_v53, %v26491_v7  ;;  %v8490_v54 = vsel %vm8444_vm7, %v26493_v33, %v13085_v48  ;;  %8874 = vmatpush1.bf16.msra.mxu1 %v8686_v40  ;;  %v23616_v15 = vld [vmem:[%s24435_s1 + $0x1f0] sm:$0xff]  }
 0x3f9   :  { %v23588_v1 = vsel %vm8444_vm7, %v13075_v31, %v13080_v16  ;;  %v23592_v36 = vsel %vm8444_vm7, %v13074_v43, %v13079_v44  ;;  %v23598_v52 = vsel %vm8444_vm7, %v13079_v44, %v26494_v42  ;;  %v23604_v7 = vsel %vm8444_vm7, %v13080_v16, %v26495_v26  ;;  %v26496_v31 = vld [vmem:[#allocation32_spill] sm:$0xff] }
 0x3fa   :  { %v26498_v33 = vpack.c.bf16 %v26496_v31, %v26497_v49  ;;  %v13088_v35 = vpop.permute.xlu0 %13087  ;;  %v8692_v42 = vpack.c.bf16 %v8490_v54, %v8489_v60  ;;  %v13105_v26 = vunpack.i.h.bf16 %v13103_v58  ;;  %v13104_v31 = vunpack.i.l.bf16 %v13103_v58  ;;  %v26500_v60 = vld [vmem:[#allocation112_spill] sm:$0xff] }
 0x3fb   :  { %v13090_v16 = vunpack.i.h.bf16 %v13088_v35  ;;  %v13089_v44 = vunpack.i.l.bf16 %v13088_v35  ;;  %v26499_v35 = vld [vmem:[#allocation78_spill] sm:$0xff] }
 0x3fc   :  { %7950 = vmatpush1.bf16.msra.mxu0 %v26498_v33  ;;  %v26501_v54 = vpack.c.bf16 %v26499_v35, %v26500_v60  ;;  %v26506_v35 = vunpack.i.l.bf16 %v23081_v17  ;;  %v26508_v60 = vld [vmem:[#allocation102_spill] sm:$0xff] }
 0x3fd   :  { %7951 = vmatprep.subr.bf16.mxu0 %v7642_v12  ;;  %7764 = vmatmul.mubr.bf16.gmra.mrb[4].mxu0 %v23283_v37  ;;  %v23621_v49 = vsel %vm8444_vm7, %v13090_v16, %v13095_v53  ;;  %v23625_v40 = vsel %vm8444_vm7, %v13089_v44, %v13094_v22  ;;  %v8473_v12 = vsel %vm8444_vm7, %v13084_v13, %v13089_v44  ;;  %v26503_v22 = vld [vmem:[#allocation85_spill] sm:$0xff] }
 0x3fe   :  { %v8474_v33 = vsel %vm8444_vm7, %v13085_v48, %v13090_v16  ;;  %7773 = vmatprep.mubr.bf16.mxu0 %v25022_v46  ;;  %v13098_v53 = vpop.permute.xlu0 %13097  ;;  %v26504_v30 = vpack.c.bf16 %v26502_v56, %v26503_v22  ;;  %7927 = vmatmul.mubr.bf16.gmra.mrb[56].mxu1 %v23616_v15  ;;  %v26505_v48 = vunpack.i.h.bf16 %v23081_v17  ;;  %v26510_v22 = vld [vmem:[#allocation47_spill] sm:$0xff]  ;;  %v23663_v17 = vld [vmem:[%s24435_s1 + $0x1f8] sm:$0xff]  }
 0x3ff   :  { %v8693_v43 = vpack.c.bf16 %v8474_v33, %v8473_v12  ;;  %v13100_v13 = vunpack.i.h.bf16 %v13098_v53  ;;  %v13099_v44 = vunpack.i.l.bf16 %v13098_v53  ;;  %7936 = vmatprep.mubr.bf16.mxu1 %v25022_v46  ;;  %v26507_v33 = vld [vmem:[#allocation3_spill] sm:$0xff] }
 0x400   :  { %7952 = vmatpush1.bf16.msra.mxu0 %v26501_v54 }
 0x401   :  { %7953 = vmatprep.subr.bf16.mxu0 %v26504_v30  ;;  %8875 = vmatprep.subr.bf16.mxu1 %v8693_v43  ;;  %v8492_v16 = vsel %vm8444_vm7, %v26505_v48, %v13100_v13  ;;  %v8491_v12 = vsel %vm8444_vm7, %v26506_v35, %v13099_v44  ;;  %v8475_v30 = vsel %vm8444_vm7, %v13099_v44, %v13104_v31  ;;  %v26511_v48 = vld [vmem:[#allocation79_spill] sm:$0xff]  ;;  %v26514_v35 = vld [vmem:[#allocation66_spill] sm:$0xff] }
 0x402   :  { %8876 = vmatpush1.bf16.msra.mxu1 %v8692_v42  ;;  %v8476_v56 = vsel %vm8444_vm7, %v13100_v13, %v13105_v26  ;;  %v26509_v43 = vpack.c.bf16 %v26507_v33, %v26508_v60  ;;  %v8698_v54 = vpack.c.bf16 %v8492_v16, %v8491_v12  ;;  %v26512_v58 = vpack.c.bf16 %v26510_v22, %v26511_v48  ;;  %v26513_v16 = vld [vmem:[#allocation135_spill] sm:$0xff]  ;;  %v26521_v22 = vld [vmem:[#allocation82_spill] sm:$0xff] }
 0x403   :  { %v8699_v53 = vpack.c.bf16 %v8476_v56, %v8475_v30  ;;  %v26515_v12 = vpack.c.bf16 %v26513_v16, %v26514_v35  ;;  %v26516_v56 = vld [vmem:[#allocation50_spill] sm:$0xff]  ;;  %v26518_v60 = vunpack.i.l.bf16 %v22197_v39 }
 0x404   :  { %7954 = vmatpush1.bf16.msra.mxu0 %v26509_v43  ;;  %v23665_v42 = vpop.permute.xlu0 %13107  ;;  %v26517_v33 = vunpack.i.l.bf16 %v26516_v56  ;;  %v26522_v48 = vld [vmem:[#allocation106_spill] sm:$0xff] }
 0x405   :  { %7955 = vmatprep.subr.bf16.mxu0 %v26512_v58  ;;  %8877 = vmatprep.subr.bf16.mxu1 %v8699_v53  ;;  %v13110_v13 = vunpack.i.h.bf16 %v23665_v42  ;;  %v13109_v44 = vunpack.i.l.bf16 %v23665_v42  ;;  %v26520_v53 = vunpack.i.h.bf16 %v22197_v39  ;;  %v26523_v16 = vpack.c.bf16 %v26521_v22, %v26522_v48  ;;  %v26527_v39 = vld [vmem:[#allocation39_spill] sm:$0xff] }
 0x406   :  { %7774 = vmatmul.mubr.bf16.gmra.mrb[8].mxu0 %v23344_v6  ;;  %8878 = vmatpush1.bf16.msra.mxu1 %v8698_v54  ;;  %v7428_v43 = vsel %vm7415_vm6, %v26518_v60, %v26517_v33  ;;  %v26519_v54 = vunpack.i.h.bf16 %v26516_v56  ;;  %v26525_v33 = vld [vmem:[#allocation125_spill] sm:$0xff]  ;;  %v26528_v60 = vunpack.i.h.bf16 %v26527_v39  ;;  %v26530_v22 = vunpack.i.l.bf16 %v26527_v39 }
 0x407   :  { %7783 = vmatprep.mubr.bf16.mxu0 %v25022_v46  ;;  %v23678_v58 = vsel %vm8444_vm7, %v13105_v26, %v13110_v13  ;;  %v23684_v30 = vsel %vm8444_vm7, %v13104_v31, %v13109_v44  ;;  %7937 = vmatmul.mubr.bf16.gmra.mrb[60].mxu1 %v23663_v17  ;;  %v26531_v48 = vunpack.i.l.bf16 %v22391_v55  ;;  %v26532_v31 = vld [vmem:[#allocation137_spill] sm:$0xff] }
 0x408   :  { %7956 = vmatpush1.bf16.msra.mxu0 %v26515_v12  ;;  %v7429_v26 = vsel %vm7415_vm6, %v26520_v53, %v26519_v54  ;;  %8895 = vmatprep.mubr.bf16.mxu1 %v25022_v46  ;;  %v26524_v12 = vld [vmem:[#allocation131_spill] sm:$0xff]  ;;  %v26529_v54 = vunpack.i.h.bf16 %v22391_v55  ;;  %v26536_v55 = vld [vmem:[#allocation88_spill] sm:$0xff]  ;;  %v26597_v42 = vpack.c.bf16 %v23678_v58, %v23684_v30  ;;  %v26599_v30 = vld [vmem:[#allocation14_spill] sm:$0xff] }
 0x409   :  { %7957 = vmatprep.subr.bf16.mxu0 %v26523_v16  ;;  %v7665_v35 = vpack.c.bf16 %v7429_v26, %v7428_v43  ;;  %v26526_v56 = vpack.c.bf16 %v26524_v12, %v26525_v33  ;;  %v7430_v16 = vsel %vm7415_vm6, %v26531_v48, %v26530_v22  ;;  %v26533_v43 = vld [vmem:[#allocation136_spill] sm:$0xff]  ;;  %v23726_v12 = vld [vmem:[%s24435_s1 + $0x200] sm:$0xff]  }
 0x40a   :  { %v7431_v53 = vsel %vm7415_vm6, %v26529_v54, %v26528_v60  ;;  %v26534_v26 = vpack.c.bf16 %v26532_v31, %v26533_v43  ;;  %v23738_v31 = vld [vmem:[%s24435_s1 + $0x208] sm:$0xff]   ;;  %v26538_v60 = vpack.c.bf16 %v22950_v10, %v22942_v47  ;;  %v23759_v47 = vld [vmem:[%s24435_s1 + $0x218] sm:$0xff]   ;;  %v23768_v10 = vld [vmem:[%s24435_s1 + $0x220] sm:$0xff]  }
 0x40b   :  { %v7671_v33 = vpack.c.bf16 %v7431_v53, %v7430_v16  ;;  %v23777_v54 = vld [vmem:[%s24435_s1 + $0x228] sm:$0xff]   ;;  %v26539_v53 = vld [vmem:[#allocation115_spill] sm:$0xff]  ;;  %v26542_v16 = vpack.c.bf16 %v23025_v62, %v23014_v20 }
 0x40c   :  { %7958 = vmatpush1.bf16.msra.mxu0 %v26526_v56  ;;  %v26535_v56 = vld [vmem:[#allocation126_spill] sm:$0xff]  ;;  %v26540_v22 = vld [vmem:[#allocation51_spill] sm:$0xff]  ;;  %v26548_v62 = vld [vmem:[#allocation44_spill] sm:$0xff] }
 0x40d   :  { %7959 = vmatprep.subr.bf16.mxu0 %v26534_v26  ;;  %v26537_v39 = vpack.c.bf16 %v26535_v56, %v26536_v55  ;;  %v26541_v48 = vpack.c.bf16 %v26539_v53, %v26540_v22  ;;  %v26543_v43 = vld [vmem:[#allocation35_spill] sm:$0xff]  ;;  %v26544_v26 = vld [vmem:[#allocation122_spill] sm:$0xff]  ;;  %v23798_v56 = vld [vmem:[%s24435_s1 + $0x230] sm:$0xff]  }
 0x40e   :  { %7784 = vmatmul.mubr.bf16.gmra.mrb[12].mxu0 %v23401_v0  ;;  %v26547_v55 = vld [vmem:[#allocation77_spill] sm:$0xff]  ;;  %v23819_v53 = vld [vmem:[%s24435_s1 + $0x238] sm:$0xff]  }
 0x40f   :  { %7793 = vmatprep.mubr.bf16.mxu0 %v25022_v46  ;;  %8896 = vmatmul.mubr.bf16.vlgmr.msra.gmra.mrb[32].mxu1 %v23726_v12  ;;  %v26549_v20 = vpack.c.bf16 %v26547_v55, %v26548_v62  ;;  %v26579_v22 = vld [vmem:[#allocation58_spill] sm:$0xff]  ;;  %v26589_v62 = vpack.c.bf16 %v23604_v7, %v23598_v52 }
 0x410   :  { %7960 = vmatpush1.bf16.msra.mxu0 %v7665_v35  ;;  %8905 = vmatprep.mubr.bf16.mxu1 %v25022_v46  ;;  %v23750_v35 = vld [vmem:[%s24435_s1 + $0x210] sm:$0xff]   ;;  %v26594_v52 = vld [vmem:[#allocation38_spill] sm:$0xff] }
 0x411   :  { %7961 = vmatprep.subr.bf16.mxu0 %v26537_v39  ;;  %v26550_v39 = vpack.c.bf16 %v23100_v14, %v23092_v24  ;;  %v26555_v24 = vpack.c.bf16 %v23006_v25, %v22998_v5  ;;  %v26556_v14 = vpack.c.bf16 %v23170_v4, %v23159_v19  ;;  %v26559_v5 = vpack.c.bf16 %v23209_v59, %v23203_v50  ;;  %v26563_v19 = vld [vmem:[#allocation43_spill] sm:$0xff]  ;;  %v26565_v4 = vld [vmem:[#allocation98_spill] sm:$0xff] }
 0x412   :  { %v26560_v25 = vpack.c.bf16 %v23266_v3, %v23260_v23  ;;  %v26568_v59 = vpack.c.bf16 %v23386_v29, %v23378_v18  ;;  %v26569_v23 = vld [vmem:[#allocation103_spill] sm:$0xff]  ;;  %v26570_v3 = vld [vmem:[#allocation105_spill] sm:$0xff]  ;;  %v26581_v29 = vld [vmem:[#allocation56_spill] sm:$0xff]  ;;  %v26595_v7 = vpack.c.bf16 %v23573_v2, %v26594_v52 }
 0x414   :  { %7962 = vmatpush1.bf16.msra.mxu0 %v7671_v33  ;;  %v26545_v33 = vpack.c.bf16 %v26543_v43, %v26544_v26  ;;  %v26584_v43 = vld [vmem:[#allocation61_spill] sm:$0xff]  ;;  %v26585_v26 = vld [vmem:[#allocation118_spill] sm:$0xff] }
 0x415   :  { %8750 = vmatprep.subr.bf16.mxu0 %v26538_v60 }
 0x416   :  { %7794 = vmatmul.mubr.bf16.gmra.mrb[48].mxu0 %v23454_v27 }
 0x417   :  { %7803 = vmatprep.mubr.bf16.mxu0 %v25022_v46  ;;  %8906 = vmatmul.mubr.bf16.gmra.mrb[36].mxu1 %v23738_v31 }
 0x418   :  { %8915 = vmatprep.mubr.bf16.mxu1 %v25022_v46 }
 0x41e   :  { %7804 = vmatmul.mubr.bf16.gmra.mrb[52].mxu0 %v23529_v34 }
 0x41f   :  { %7813 = vmatprep.mubr.bf16.mxu0 %v25022_v46  ;;  %8916 = vmatmul.mubr.bf16.gmra.mrb[40].mxu1 %v23750_v35 }
 0x420   :  { %8925 = vmatprep.mubr.bf16.mxu1 %v25022_v46 }
 0x426   :  { %7814 = vmatmul.mubr.bf16.gmra.mrb[56].mxu0 %v23616_v15 }
 0x427   :  { %7823 = vmatprep.mubr.bf16.mxu0 %v25022_v46  ;;  %8926 = vmatmul.mubr.bf16.gmra.mrb[44].mxu1 %v23759_v47 }
 0x428   :  { %8935 = vmatprep.mubr.bf16.mxu1 %v25022_v46 }
 0x42e   :  { %7824 = vmatmul.mubr.bf16.gmra.mrb[60].mxu0 %v23663_v17 }
 0x42f   :  { %7979 = vmatprep.mubr.bf16.mxu0 %v25022_v46  ;;  %8936 = vmatmul.mubr.bf16.gmra.mrb[48].mxu1 %v23768_v10 }
 0x430   :  { %8945 = vmatprep.mubr.bf16.mxu1 %v25022_v46 }
 0x436   :  { %7980 = vmatmul.mubr.bf16.vlgmr.msra.gmra.mrb[16].mxu0 %v23197_v57  ;;  %v26546_v57 = vpack.c.bf16 %v23072_v21, %v23064_v51  ;;  %v26551_v51 = vld [vmem:[#allocation87_spill] sm:$0xff]  ;;  %v26552_v21 = vld [vmem:[#allocation53_spill] sm:$0xff] }
 0x437   :  { %8751 = vmatpush1.bf16.msra.mxu0 %v26541_v48  ;;  %7989 = vmatprep.mubr.bf16.mxu0 %v25022_v46  ;;  %v26553_v60 = vpack.c.bf16 %v26551_v51, %v26552_v21  ;;  %v26582_v48 = vld [vmem:[#allocation133_spill] sm:$0xff] }
 0x438   :  { %8946 = vmatmul.mubr.bf16.gmra.mrb[52].mxu1 %v23777_v54  ;;  %8752 = vmatprep.subr.bf16.mxu0 %v26542_v16  ;;  %v26583_v16 = vpack.c.bf16 %v26581_v29, %v26582_v48 }
 0x439   :  { %8955 = vmatprep.mubr.bf16.mxu1 %v25022_v46 }
 0x43b   :  { %8753 = vmatpush1.bf16.msra.mxu0 %v26545_v33  ;;  %v26586_v33 = vpack.c.bf16 %v26584_v43, %v26585_v26  ;;  %v26604_v43 = vld [vmem:[#allocation18_spill] sm:$0xff] }
 0x43c   :  { %8754 = vmatprep.subr.bf16.mxu0 %v26546_v57  ;;  %v26587_v57 = vld [vmem:[#allocation69_spill] sm:$0xff] }
 0x43d   :  { %v26588_v55 = vpack.c.bf16 %v23513_v38, %v26587_v57 }
 0x43e   :  { %7990 = vmatmul.mubr.bf16.gmra.mrb[20].mxu0 %v23283_v37  ;;  %v26554_v37 = vpack.c.bf16 %v23135_v8, %v23127_v9  ;;  %v26557_v9 = vpack.c.bf16 %v23117_v63, %v23111_v11  ;;  %v26558_v8 = vpack.c.bf16 %v23189_v61, %v23183_v32  ;;  %v26561_v11 = vpack.c.bf16 %v23303_v28, %v23297_v41  ;;  %v26562_v63 = vld [vmem:[#allocation8_spill] sm:$0xff]  ;;  %v26566_v32 = vld [vmem:[#allocation110_spill] sm:$0xff] }
 0x43f   :  { %8755 = vmatpush1.bf16.msra.mxu0 %v26549_v20  ;;  %7999 = vmatprep.mubr.bf16.mxu0 %v25022_v46  ;;  %v26564_v61 = vpack.c.bf16 %v26562_v63, %v26563_v19  ;;  %v26567_v50 = vpack.c.bf16 %v26565_v4, %v26566_v32  ;;  %v26571_v41 = vpack.c.bf16 %v26569_v23, %v26570_v3  ;;  %v26572_v28 = vld [vmem:[#allocation76_spill] sm:$0xff] }
 0x440   :  { %8956 = vmatmul.mubr.bf16.gmra.mrb[56].mxu1 %v23798_v56  ;;  %8756 = vmatprep.subr.bf16.mxu0 %v26550_v39  ;;  %v26590_v20 = vpack.c.bf16 %v23588_v1, %v23592_v36  ;;  %v26591_v39 = vld [vmem:[#allocation95_spill] sm:$0xff]  ;;  %v26596_v36 = vpack.c.bf16 %v23621_v49, %v23625_v40  ;;  %v26602_v4 = vld [vmem:[#allocation16_spill] sm:$0xff] }
 0x441   :  { %8965 = vmatprep.mubr.bf16.mxu1 %v25022_v46  ;;  %v26592_v51 = vunpack.i.l.bf16 %v26591_v39  ;;  %v26593_v38 = vunpack.i.h.bf16 %v26591_v39 }
 0x443   :  { %8757 = vmatpush1.bf16.msra.mxu0 %v26553_v60  ;;  %v8539_v21 = vsel %vm8444_vm7, %v13109_v44, %v26592_v51  ;;  %v8540_v60 = vsel %vm8444_vm7, %v13110_v13, %v26593_v38  ;;  %v26598_v13 = vld [vmem:[#allocation12_spill] sm:$0xff]  ;;  %v26605_v51 = vld [vmem:[#allocation17_spill] sm:$0xff] }
 0x444   :  { %8758 = vmatprep.subr.bf16.mxu0 %v26554_v37  ;;  %v8701_v1 = vpack.c.bf16 %v8540_v60, %v8539_v21 }
 0x446   :  { %8000 = vmatmul.mubr.bf16.gmra.mrb[24].mxu0 %v23344_v6  ;;  %v26573_v6 = vld [vmem:[#allocation94_spill] sm:$0xff] }
 0x447   :  { %8759 = vmatpush1.bf16.msra.mxu0 %v26555_v24  ;;  %8009 = vmatprep.mubr.bf16.mxu0 %v25022_v46 }
 0x448   :  { %8966 = vmatmul.mubr.bf16.gmra.mrb[60].mxu1 %v23819_v53  ;;  %8760 = vmatprep.subr.bf16.mxu0 %v26556_v14  ;;  %v26600_v14 = vld [vmem:[#allocation11_spill] sm:$0xff] }
 0x44b   :  { %8761 = vmatpush1.bf16.msra.mxu0 %v26557_v9 }
 0x44c   :  { %8762 = vmatprep.subr.bf16.mxu0 %v26558_v8 }
 0x44e   :  { %8010 = vmatmul.mubr.bf16.gmra.mrb[28].mxu0 %v23401_v0  ;;  %v26574_v0 = vpack.c.bf16 %v26572_v28, %v26573_v6 }
 0x44f   :  { %8763 = vmatpush1.bf16.msra.mxu0 %v26559_v5  ;;  %8019 = vmatprep.mubr.bf16.mxu0 %v25022_v46  ;;  %v26601_v5 = vld [vmem:[#allocation13_spill] sm:$0xff] }
 0x450   :  { %8764 = vmatprep.subr.bf16.mxu0 %v26560_v25 }
 0x453   :  { %8765 = vmatpush1.bf16.msra.mxu0 %v26561_v11 }
 0x454   :  { %8976 = vmatprep.subr.bf16.mxu0 %v26564_v61 }
 0x456   :  { %8020 = vmatmul.mubr.bf16.gmra.mrb[32].mxu0 %v23454_v27  ;;  %v26575_v27 = vld [vmem:[#allocation46_spill] sm:$0xff] }
 0x457   :  { %8029 = vmatprep.mubr.bf16.mxu0 %v25022_v46 }
 0x45e   :  { %8030 = vmatmul.mubr.bf16.gmra.mrb[36].mxu0 %v23529_v34  ;;  %v26576_v34 = vld [vmem:[#allocation121_spill] sm:$0xff] }
 0x45f   :  { %8039 = vmatprep.mubr.bf16.mxu0 %v25022_v46 }
 0x466   :  { %8040 = vmatmul.mubr.bf16.gmra.mrb[40].mxu0 %v23616_v15  ;;  %v26577_v15 = vpack.c.bf16 %v26575_v27, %v26576_v34 }
 0x467   :  { %8049 = vmatprep.mubr.bf16.mxu0 %v25022_v46 }
 0x46e   :  { %8050 = vmatmul.mubr.bf16.gmra.mrb[44].mxu0 %v23663_v17  ;;  %v26578_v17 = vld [vmem:[#allocation7_spill] sm:$0xff] }
 0x46f   :  { %8782 = vmatprep.mubr.bf16.mxu0 %v25022_v46  ;;  %v26580_v18 = vpack.c.bf16 %v26578_v17, %v26579_v22 }
 0x476   :  { %8783 = vmatmul.mubr.bf16.vlgmr.msra.gmra.mrb[0].mxu0 %v23726_v12 }
 0x477   :  { %8977 = vmatpush1.bf16.msra.mxu0 %v26567_v50  ;;  %8792 = vmatprep.mubr.bf16.mxu0 %v25022_v46 }
 0x478   :  { %8978 = vmatprep.subr.bf16.mxu0 %v26568_v59 }
 0x47b   :  { %8979 = vmatpush1.bf16.msra.mxu0 %v26571_v41  ;;  %v26603_v41 = vld [vmem:[#allocation15_spill] sm:$0xff] }
 0x47c   :  { %8980 = vmatprep.subr.bf16.mxu0 %v26574_v0 }
 0x47e   :  { %8793 = vmatmul.mubr.bf16.gmra.mrb[4].mxu0 %v23738_v31 }
 0x47f   :  { %8981 = vmatpush1.bf16.msra.mxu0 %v26577_v15  ;;  %8802 = vmatprep.mubr.bf16.mxu0 %v25022_v46 }
 0x480   :  { %8982 = vmatprep.subr.bf16.mxu0 %v26580_v18 }
 0x483   :  { %8983 = vmatpush1.bf16.msra.mxu0 %v26583_v16 }
 0x484   :  { %8984 = vmatprep.subr.bf16.mxu0 %v26586_v33 }
 0x486   :  { %8803 = vmatmul.mubr.bf16.gmra.mrb[8].mxu0 %v23750_v35 }
 0x487   :  { %8985 = vmatpush1.bf16.msra.mxu0 %v26588_v55  ;;  %8812 = vmatprep.mubr.bf16.mxu0 %v25022_v46 }
 0x488   :  { %8986 = vmatprep.subr.bf16.mxu0 %v26589_v62 }
 0x48b   :  { %8987 = vmatpush1.bf16.msra.mxu0 %v26590_v20 }
 0x48c   :  { %8988 = vmatprep.subr.bf16.mxu0 %v26595_v7 }
 0x48e   :  { %8813 = vmatmul.mubr.bf16.gmra.mrb[12].mxu0 %v23759_v47 }
 0x48f   :  { %8989 = vmatpush1.bf16.msra.mxu0 %v26596_v36  ;;  %8822 = vmatprep.mubr.bf16.mxu0 %v25022_v46 }
 0x490   :  { %8990 = vmatprep.subr.bf16.mxu0 %v8701_v1 }
 0x493   :  { %8991 = vmatpush1.bf16.msra.mxu0 %v26597_v42 }
 0x496   :  { %8823 = vmatmul.mubr.bf16.gmra.mrb[48].mxu0 %v23768_v10 }
 0x497   :  { %8832 = vmatprep.mubr.bf16.mxu0 %v25022_v46 }
 0x49e   :  { %8833 = vmatmul.mubr.bf16.gmra.mrb[52].mxu0 %v23777_v54 }
 0x49f   :  { %8842 = vmatprep.mubr.bf16.mxu0 %v25022_v46 }
 0x4a6   :  { %8843 = vmatmul.mubr.bf16.gmra.mrb[56].mxu0 %v23798_v56 }
 0x4a7   :  { %8852 = vmatprep.mubr.bf16.mxu0 %v25022_v46 }
 0x4ae   :  { %8853 = vmatmul.mubr.bf16.gmra.mrb[60].mxu0 %v23819_v53 }
 0x4af   :  { %9008 = vmatprep.mubr.bf16.mxu0 %v25022_v46 }
 0x4b6   :  { %9009 = vmatmul.mubr.bf16.vlgmr.msra.gmra.mrb[16].mxu0 %v23726_v12 }
 0x4b7   :  { %9018 = vmatprep.mubr.bf16.mxu0 %v25022_v46 }
 0x4be   :  { %9019 = vmatmul.mubr.bf16.gmra.mrb[20].mxu0 %v23738_v31 }
 0x4bf   :  { %9028 = vmatprep.mubr.bf16.mxu0 %v25022_v46 }
 0x4c6   :  { %9029 = vmatmul.mubr.bf16.gmra.mrb[24].mxu0 %v23750_v35 }
 0x4c7   :  { %9038 = vmatprep.mubr.bf16.mxu0 %v25022_v46 }
 0x4ce   :  { %9039 = vmatmul.mubr.bf16.gmra.mrb[28].mxu0 %v23759_v47 }
 0x4cf   :  { %9048 = vmatprep.mubr.bf16.mxu0 %v25022_v46 }
 0x4d6   :  { %9049 = vmatmul.mubr.bf16.gmra.mrb[32].mxu0 %v23768_v10 }
 0x4d7   :  { %9058 = vmatprep.mubr.bf16.mxu0 %v25022_v46 }
 0x4de   :  { %9059 = vmatmul.mubr.bf16.gmra.mrb[36].mxu0 %v23777_v54 }
 0x4df   :  { %9068 = vmatprep.mubr.bf16.mxu0 %v25022_v46 }
 0x4e2   :  { %v8897_v45 = vpop.f32.mrb[32].mxu1 }
 0x4e3   :  { %v8899_v2 = vpop.f32.mrb[33].mxu1  ;;  %v10385_v44 = vadd.f32 %v8897_v45, %v26598_v13 }
 0x4e4   :  { %v8901_v49 = vpop.f32.mrb[34].mxu1  ;;  %v10386_v58 = vadd.f32 %v8899_v2, %v26598_v13 }
 0x4e5   :  { %v8903_v40 = vpop.f32.mrb[35].mxu1  ;;  %v10387_v12 = vadd.f32 %v8901_v49, %v26599_v30  ;;  %v10235_v31 = vmul.f32 -1.442695, %v10385_v44 }
 0x4e6   :  { %9069 = vmatmul.mubr.bf16.gmra.mrb[40].mxu0 %v23798_v56  ;;  %v10236_v47 = vmul.f32 -1.442695, %v10386_v58  ;;  %v10388_v10 = vadd.f32 %v8903_v40, %v26599_v30 }
 0x4e7   :  { %9078 = vmatprep.mubr.bf16.mxu0 %v25022_v46  ;;  %v10241_v37 = vmul.f32 -1.442695, %v10387_v12  ;;  %13183 = vpow2.f32 %v10235_v31 }
 0x4e8   :  { %13185 = vpow2.f32 %v10236_v47  ;;  %v10242_v46 = vmul.f32 -1.442695, %v10388_v10 }
 0x4e9   :  { %13187 = vpow2.f32 %v10241_v37 }
 0x4ea   :  { %v8907_v35 = vpop.f32.mrb[36].mxu1  ;;  %13189 = vpow2.f32 %v10242_v46 }
 0x4eb   :  { %v8909_v54 = vpop.f32.mrb[37].mxu1  ;;  %v10389_v9 = vadd.f32 %v8907_v35, %v26600_v14 }
 0x4ec   :  { %v8911_v24 = vpop.f32.mrb[38].mxu1  ;;  %v10390_v56 = vadd.f32 %v8909_v54, %v26600_v14 }
 0x4ed   :  { %v8913_v8 = vpop.f32.mrb[39].mxu1  ;;  %v10391_v25 = vadd.f32 %v8911_v24, %v26601_v5  ;;  %v10247_v11 = vmul.f32 -1.442695, %v10389_v9 }
 0x4ee   :  { %9079 = vmatmul.mubr.bf16.gmra.mrb[44].mxu0 %v23819_v53  ;;  %v10392_v63 = vadd.f32 %v8913_v8, %v26601_v5  ;;  %v10248_v61 = vmul.f32 -1.442695, %v10390_v56  ;;  %v26606_v56 = vld [vmem:[#allocation20_spill] sm:$0xff] }
 0x4ef   :  { %v10253_v59 = vmul.f32 -1.442695, %v10391_v25  ;;  %13191 = vpow2.f32 %v10247_v11 }
 0x4f0   :  { %v10254_v3 = vmul.f32 -1.442695, %v10392_v63  ;;  %13193 = vpow2.f32 %v10248_v61 }
 0x4f1   :  { %v13184_v15 = vpop.eup %13183  ;;  %13195 = vpow2.f32 %v10253_v59 }
 0x4f2   :  { %v8917_v19 = vpop.f32.mrb[40].mxu1  ;;  %v13186_v22 = vpop.eup %13185  ;;  %13197 = vpow2.f32 %v10254_v3  ;;  %v9379_v16 = vadd.f32 1.0, %v13184_v15 }
 0x4f3   :  { %v10393_v32 = vadd.f32 %v8917_v19, %v26602_v4  ;;  %v8919_v50 = vpop.f32.mrb[41].mxu1  ;;  %v13188_v29 = vpop.eup %13187  ;;  %v9380_v57 = vadd.f32 1.0, %v13186_v22 }
 0x4f4   :  { %v10394_v53 = vadd.f32 %v8919_v50, %v26602_v4  ;;  %v8921_v23 = vpop.f32.mrb[42].mxu1  ;;  %v13190_v20 = vpop.eup %13189  ;;  %v9385_v39 = vadd.f32 1.0, %v13188_v29 }
 0x4f5   :  { %v10395_v28 = vadd.f32 %v8921_v23, %v26603_v41  ;;  %v8923_v6 = vpop.f32.mrb[43].mxu1  ;;  %v10259_v0 = vmul.f32 -1.442695, %v10393_v32  ;;  %v9386_v36 = vadd.f32 1.0, %v13190_v20  ;;  %v26607_v32 = vld [vmem:[#allocation19_spill] sm:$0xff] }
 0x4f6   :  { %v10396_v27 = vadd.f32 %v8923_v6, %v26603_v41  ;;  %v10260_v34 = vmul.f32 -1.442695, %v10394_v53 }
 0x4f7   :  { %v10265_v17 = vmul.f32 -1.442695, %v10395_v28  ;;  %13199 = vpow2.f32 %v10259_v0 }
 0x4f8   :  { %v10266_v18 = vmul.f32 -1.442695, %v10396_v27  ;;  %13201 = vpow2.f32 %v10260_v34 }
 0x4f9   :  { %13203 = vpow2.f32 %v10265_v17  ;;  %v13192_v52 = vpop.eup %13191 }
 0x4fa   :  { %v8927_v48 = vpop.f32.mrb[44].mxu1  ;;  %13205 = vpow2.f32 %v10266_v18  ;;  %v13194_v42 = vpop.eup %13193  ;;  %v9391_v49 = vadd.f32 1.0, %v13192_v52 }
 0x4fb   :  { %v10397_v26 = vadd.f32 %v8927_v48, %v26604_v43  ;;  %v8929_v33 = vpop.f32.mrb[45].mxu1  ;;  %13207 = vrcp.f32 %v9379_v16  ;;  %v13196_v2 = vpop.eup %13195  ;;  %v9392_v35 = vadd.f32 1.0, %v13194_v42 }
 0x4fc   :  { %v10398_v55 = vadd.f32 %v8929_v33, %v26604_v43  ;;  %v8931_v62 = vpop.f32.mrb[46].mxu1  ;;  %13209 = vrcp.f32 %v9380_v57  ;;  %v13198_v44 = vpop.eup %13197  ;;  %v9397_v54 = vadd.f32 1.0, %v13196_v2  ;;  %v26608_v33 = vld [vmem:[#allocation22_spill] sm:$0xff] }
 0x4fd   :  { %v10399_v21 = vadd.f32 %v8931_v62, %v26605_v51  ;;  %v8933_v38 = vpop.f32.mrb[47].mxu1  ;;  %v10271_v60 = vmul.f32 -1.442695, %v10397_v26  ;;  %13211 = vrcp.f32 %v9385_v39  ;;  %v9398_v9 = vadd.f32 1.0, %v13198_v44 }
 0x4fe   :  { %v10272_v7 = vmul.f32 -1.442695, %v10398_v55  ;;  %v10400_v1 = vadd.f32 %v8933_v38, %v26605_v51 }
 0x4ff   :  { %v10277_v45 = vmul.f32 -1.442695, %v10399_v21  ;;  %13213 = vpow2.f32 %v10271_v60 }
 0x500   :  { %13215 = vpow2.f32 %v10272_v7  ;;  %v10278_v58 = vmul.f32 -1.442695, %v10400_v1  ;;  %v26609_v1 = vld [vmem:[#allocation24_spill] sm:$0xff] }
 0x501   :  { %v13200_v31 = vpop.eup %13199  ;;  %13217 = vrcp.f32 %v9386_v36 }
 0x502   :  { %v8937_v40 = vpop.f32.mrb[48].mxu1  ;;  %v13202_v10 = vpop.eup %13201  ;;  %13219 = vpow2.f32 %v10277_v45  ;;  %v9547_v46 = vadd.f32 1.0, %v13200_v31  ;;  %v26610_v31 = vld [vmem:[#allocation21_spill] sm:$0xff] }
 0x503   :  { %v8939_v12 = vpop.f32.mrb[49].mxu1  ;;  %v13204_v24 = vpop.eup %13203  ;;  %13221 = vrcp.f32 %v9391_v49  ;;  %v10401_v25 = vadd.f32 %v8937_v40, %v26606_v56  ;;  %v9548_v11 = vadd.f32 1.0, %v13202_v10 }
 0x504   :  { %v8941_v47 = vpop.f32.mrb[50].mxu1  ;;  %v13206_v8 = vpop.eup %13205  ;;  %13223 = vpow2.f32 %v10278_v58  ;;  %v10402_v63 = vadd.f32 %v8939_v12, %v26606_v56  ;;  %v9553_v61 = vadd.f32 1.0, %v13204_v24 }
 0x505   :  { %v8943_v37 = vpop.f32.mrb[51].mxu1  ;;  %13225 = vrcp.f32 %v9392_v35  ;;  %v23961_v19 = vpop.eup %13207  ;;  %v10403_v50 = vadd.f32 %v8941_v47, %v26607_v32  ;;  %v9554_v53 = vadd.f32 1.0, %v13206_v8  ;;  %v10283_v6 = vmul.f32 -1.442695, %v10401_v25 }
 0x506   :  { %13227 = vrcp.f32 %v9397_v54  ;;  %v23964_v59 = vpop.eup %13209  ;;  %v10404_v23 = vadd.f32 %v8943_v37, %v26607_v32  ;;  %v10284_v34 = vmul.f32 -1.442695, %v10402_v63  ;;  %v26611_v37 = vld [vmem:[#allocation23_spill] sm:$0xff] }
 0x507   :  { %13229 = vrcp.f32 %v9398_v9  ;;  %v23967_v28 = vpop.eup %13211  ;;  %v10289_v22 = vmul.f32 -1.442695, %v10403_v50 }
 0x508   :  { %13231 = vrcp.f32 %v9547_v46  ;;  %v10290_v48 = vmul.f32 -1.442695, %v10404_v23 }
 0x509   :  { %v13214_v27 = vpop.eup %13213  ;;  %13233 = vrcp.f32 %v9548_v11 }
 0x50a   :  { %v13216_v17 = vpop.eup %13215  ;;  %13235 = vrcp.f32 %v9553_v61  ;;  %v9559_v26 = vadd.f32 1.0, %v13214_v27 }
 0x50b   :  { %v8947_v3 = vpop.f32.mrb[52].mxu1  ;;  %v23969_v29 = vpop.eup %13217  ;;  %13237 = vrcp.f32 %v9554_v53  ;;  %v9560_v62 = vadd.f32 1.0, %v13216_v17  ;;  %v26612_v53 = vld [vmem:[#allocation26_spill] sm:$0xff] }
 0x50c   :  { %v8949_v0 = vpop.f32.mrb[53].mxu1  ;;  %v13220_v16 = vpop.eup %13219  ;;  %13239 = vpow2.f32 %v10283_v6  ;;  %v10405_v57 = vadd.f32 %v8947_v3, %v26608_v33 }
 0x50d   :  { %v8951_v15 = vpop.f32.mrb[54].mxu1  ;;  %v23972_v55 = vpop.eup %13221  ;;  %13241 = vpow2.f32 %v10284_v34  ;;  %v10406_v39 = vadd.f32 %v8949_v0, %v26608_v33  ;;  %v9565_v38 = vadd.f32 1.0, %v13220_v16 }
 0x50e   :  { %v8953_v18 = vpop.f32.mrb[55].mxu1  ;;  %v13224_v20 = vpop.eup %13223  ;;  %13243 = vpow2.f32 %v10289_v22  ;;  %v10295_v7 = vmul.f32 -1.442695, %v10405_v57  ;;  %v10407_v35 = vadd.f32 %v8951_v15, %v26610_v31  ;;  %v9835_v15 = vld [vmem:[%s24436_s3 + $0x10] sm:$0xff] }
 0x50f   :  { %v23975_v21 = vpop.eup %13225  ;;  %13245 = vpow2.f32 %v10290_v48  ;;  %v9566_v2 = vadd.f32 1.0, %v13224_v20  ;;  %v10296_v44 = vmul.f32 -1.442695, %v10406_v39  ;;  %v10408_v54 = vadd.f32 %v8953_v18, %v26610_v31 }
 0x510   :  { %v23977_v52 = vpop.eup %13227  ;;  %13247 = vrcp.f32 %v9559_v26  ;;  %v10301_v11 = vmul.f32 -1.442695, %v10407_v35  ;;  %v26613_v26 = vld [vmem:[#allocation25_spill] sm:$0xff] }
 0x511   :  { %v23980_v45 = vpop.eup %13229  ;;  %13249 = vrcp.f32 %v9560_v62  ;;  %v10302_v50 = vmul.f32 -1.442695, %v10408_v54 }
 0x512   :  { %v13232_v40 = vpop.eup %13231 }
 0x513   :  { %v8957_v60 = vpop.f32.mrb[56].mxu1  ;;  %v13234_v12 = vpop.eup %13233  ;;  %v9859_v20 = vmul.f32 %v13232_v40, %v9835_v15  ;;  %v9841_v40 = vld [vmem:[%s24436_s3 + $0x40] sm:$0xff] }
 0x514   :  { %v10409_v36 = vadd.f32 %v8957_v60, %v26609_v1  ;;  %v8959_v42 = vpop.f32.mrb[57].mxu1  ;;  %v13236_v10 = vpop.eup %13235 }
 0x515   :  { %v8961_v49 = vpop.f32.mrb[58].mxu1  ;;  %v10410_v47 = vadd.f32 %v8959_v42, %v26609_v1  ;;  %v13238_v9 = vpop.eup %13237 }
 0x516   :  { %13251 = vtanh.f32 %v10409_v36  ;;  %v8963_v58 = vpop.f32.mrb[59].mxu1  ;;  %v10411_v24 = vadd.f32 %v8961_v49, %v26611_v37  ;;  %v13240_v46 = vpop.eup %13239  ;;  %v9836_v36 = vld [vmem:[%s24436_s3 + $0x18] sm:$0xff] }
 0x517   :  { %13253 = vrcp.f32 %v9565_v38  ;;  %v10412_v8 = vadd.f32 %v8963_v58, %v26611_v37  ;;  %v13242_v25 = vpop.eup %13241  ;;  %v9715_v0 = vadd.f32 1.0, %v13240_v46  ;;  %v9842_v58 = vld [vmem:[%s24436_s3 + $0x48] sm:$0xff]  ;;  %v9860_v54 = vmul.f32 %v13234_v12, %v9836_v36 }
 0x518   :  { %13255 = vpow2.f32 %v10295_v7  ;;  %v13244_v61 = vpop.eup %13243  ;;  %v9716_v17 = vadd.f32 1.0, %v13242_v25  ;;  %v9865_v25 = vmul.f32 %v13236_v10, %v9841_v40  ;;  %v9848_v10 = vld [vmem:[%s24436_s3 + $0x78] sm:$0xff] }
 0x519   :  { %13257 = vrcp.f32 %v9566_v2  ;;  %v13246_v6 = vpop.eup %13245  ;;  %v9721_v42 = vadd.f32 1.0, %v13244_v61  ;;  %v9866_v61 = vmul.f32 %v13238_v9, %v9842_v58 }
 0x51a   :  { %13259 = vpow2.f32 %v10296_v44  ;;  %v13248_v34 = vpop.eup %13247  ;;  %v9722_v44 = vadd.f32 1.0, %v13246_v6 }
 0x51b   :  { %13261 = vtanh.f32 %v10410_v47  ;;  %v8967_v63 = vpop.f32.mrb[60].mxu1  ;;  %v23991_v18 = vpop.eup %13249 }
 0x51c   :  { %13263 = vtanh.f32 %v10411_v24  ;;  %v10413_v23 = vadd.f32 %v8967_v63, %v26612_v53  ;;  %v8969_v3 = vpop.f32.mrb[61].mxu1  ;;  %v9847_v24 = vld [vmem:[%s24436_s3 + $0x70] sm:$0xff] }
 0x51d   :  { %13265 = vtanh.f32 %v10412_v8  ;;  %v8971_v27 = vpop.f32.mrb[62].mxu1  ;;  %v10414_v48 = vadd.f32 %v8969_v3, %v26612_v53  ;;  %v9871_v12 = vmul.f32 %v13248_v34, %v9847_v24 }
 0x51e   :  { %13267 = vtanh.f32 %v10413_v23  ;;  %v8973_v22 = vpop.f32.mrb[63].mxu1  ;;  %v10415_v57 = vadd.f32 %v8971_v27, %v26613_v26 }
 0x51f   :  { %13269 = vpow2.f32 %v10301_v11  ;;  %v10416_v60 = vadd.f32 %v8973_v22, %v26613_v26 }
 0x520   :  { %v13252_v16 = vpop.eup %13251  ;;  %13271 = vpow2.f32 %v10302_v50 }
 0x521   :  { %v23995_v62 = vpop.eup %13253  ;;  %13273 = vrcp.f32 %v9715_v0  ;;  %v9883_v39 = vmul.f32 %v13252_v16, %v23961_v19  ;;  %v9854_v16 = vld [vmem:[%s24436_s3 + $0xa8] sm:$0xff] }
 0x522   :  { %v13256_v38 = vpop.eup %13255  ;;  %13275 = vrcp.f32 %v9716_v17 }
 0x523   :  { %v23999_v7 = vpop.eup %13257  ;;  %v9907_v2 = vadd.f32 %v9883_v39, %v9859_v20  ;;  %13277 = vtanh.f32 %v10414_v48  ;;  %v9727_v35 = vadd.f32 1.0, %v13256_v38  ;;  %v9872_v48 = vmul.f32 %v23991_v18, %v9848_v10 }
 0x524   :  { %v13260_v49 = vpop.eup %13259  ;;  %13279 = vtanh.f32 %v10415_v57  ;;  %v9878_v40 = vmul.f32 %v23999_v7, %v9854_v16 }
 0x525   :  { %v13262_v19 = vpop.eup %13261  ;;  %13281 = vtanh.f32 %v9907_v2  ;;  %10003 = vst [vmem:[%s24437_s5 + $0x10] sm:$0xff] %v9907_v2  ;;  %v9728_v34 = vadd.f32 1.0, %v13260_v49 }
 0x526   :  { %v13264_v47 = vpop.eup %13263  ;;  %v9884_v8 = vmul.f32 %v13262_v19, %v23964_v59  ;;  %13283 = vtanh.f32 %v10416_v60 }
 0x527   :  { %v13266_v46 = vpop.eup %13265  ;;  %13285 = vrcp.f32 %v9721_v42  ;;  %v9889_v11 = vmul.f32 %v13264_v47, %v23967_v28 }
 0x528   :  { %v13268_v63 = vpop.eup %13267  ;;  %13287 = vrcp.f32 %v9722_v44  ;;  %v9908_v50 = vadd.f32 %v9884_v8, %v9860_v54  ;;  %v9890_v23 = vmul.f32 %v13266_v46, %v23969_v29 }
 0x529   :  { %v13270_v3 = vpop.eup %13269  ;;  %13289 = vrcp.f32 %v9727_v35  ;;  %v9913_v6 = vadd.f32 %v9889_v11, %v9865_v25  ;;  %v9895_v0 = vmul.f32 %v13268_v63, %v23972_v55  ;;  %v9853_v55 = vld [vmem:[%s24436_s3 + $0xa0] sm:$0xff] }
 0x52a   :  { %v13272_v27 = vpop.eup %13271  ;;  %13291 = vtanh.f32 %v9908_v50  ;;  %10004 = vst [vmem:[%s24437_s5 + $0x18] sm:$0xff] %v9908_v50  ;;  %v9914_v59 = vadd.f32 %v9890_v23, %v9866_v61  ;;  %v9733_v17 = vadd.f32 1.0, %v13270_v3  ;;  %v9877_v39 = vmul.f32 %v23995_v62, %v9853_v55  ;;  %v26617_v55 = vld [vmem:[#allocation40_spill] sm:$0xff] }
 0x52b   :  { %v13274_v28 = vpop.eup %13273  ;;  %13293 = vtanh.f32 %v9913_v6  ;;  %10009 = vst [vmem:[%s24437_s5 + $0x40] sm:$0xff] %v9913_v6  ;;  %v9919_v29 = vadd.f32 %v9895_v0, %v9871_v12  ;;  %v9734_v36 = vadd.f32 1.0, %v13272_v27  ;;  %v26614_v12 = vld [vmem:[#allocation68_spill] sm:$0xff]  ;;  %v26615_v0 = vld [vmem:[#allocation70_spill] sm:$0xff] }
 0x52c   :  { %v13276_v9 = vpop.eup %13275  ;;  %13295 = vtanh.f32 %v9914_v59  ;;  %10010 = vst [vmem:[%s24437_s5 + $0x48] sm:$0xff] %v9914_v59  ;;  %v10321_v6 = vadd.f32 %v26614_v12, %v26598_v13  ;;  %v10323_v27 = vadd.f32 %v26615_v0, %v26598_v13  ;;  %v26625_v12 = vld [vmem:[#allocation10_spill] sm:$0xff] }
 0x52d   :  { %v13278_v15 = vpop.eup %13277  ;;  %13297 = vtanh.f32 %v9919_v29  ;;  %10015 = vst [vmem:[%s24437_s5 + $0x70] sm:$0xff] %v9919_v29 }
 0x52e   :  { %v13280_v22 = vpop.eup %13279  ;;  %v9896_v57 = vmul.f32 %v13278_v15, %v23975_v21  ;;  %13299 = vrcp.f32 %v9728_v34  ;;  %v10327_v34 = vadd.f32 %v26617_v55, %v26599_v30 }
 0x52f   :  { %v13282_v20 = vpop.eup %13281  ;;  %v9901_v38 = vmul.f32 %v13280_v22, %v23977_v52  ;;  %13301 = vrcp.f32 %v9733_v17 }
 0x530   :  { %v13284_v60 = vpop.eup %13283  ;;  %v9955_v42 = vmul.f32 %v13282_v20, %v13274_v28  ;;  %v9920_v2 = vadd.f32 %v9896_v57, %v9872_v48  ;;  %v26616_v28 = vld [vmem:[#allocation74_spill] sm:$0xff]  ;;  %v26618_v57 = vld [vmem:[#allocation72_spill] sm:$0xff] }
 0x531   :  { %v13286_v49 = vpop.eup %13285  ;;  %v9925_v18 = vadd.f32 %v9901_v38, %v9877_v39  ;;  %v9902_v44 = vmul.f32 %v13284_v60, %v23980_v45  ;;  %v10325_v10 = vadd.f32 %v26616_v28, %v26599_v30  ;;  %v10329_v20 = vadd.f32 %v26618_v57, %v26600_v14  ;;  %v26619_v38 = vld [vmem:[#allocation4_spill] sm:$0xff] }
 0x532   :  { %v13288_v19 = vpop.eup %13287  ;;  %9979 = vst [vmem:[%s24438_s4 + $0x10] sm:$0xff] %v9955_v42  ;;  %13303 = vtanh.f32 %v9920_v2  ;;  %10016 = vst [vmem:[%s24437_s5 + $0x78] sm:$0xff] %v9920_v2  ;;  %v10331_v60 = vadd.f32 %v26619_v38, %v26600_v14  ;;  %v26620_v2 = vld [vmem:[#allocation81_spill] sm:$0xff] }
 0x533   :  { %v13290_v21 = vpop.eup %13289  ;;  %13305 = vtanh.f32 %v9925_v18  ;;  %10021 = vst [vmem:[%s24437_s5 + $0xa0] sm:$0xff] %v9925_v18  ;;  %v9926_v52 = vadd.f32 %v9902_v44, %v9878_v40 }
 0x534   :  { %v13292_v62 = vpop.eup %13291  ;;  %13307 = vrcp.f32 %v9734_v36 }
 0x535   :  { %v13294_v45 = vpop.eup %13293  ;;  %v9956_v7 = vmul.f32 %v13292_v62, %v13276_v9  ;;  %13309 = vtanh.f32 %v9926_v52  ;;  %10022 = vst [vmem:[%s24437_s5 + $0xa8] sm:$0xff] %v9926_v52 }
 0x536   :  { %v13296_v58 = vpop.eup %13295  ;;  %v9961_v35 = vmul.f32 %v13294_v45, %v13286_v49  ;;  %v10333_v49 = vadd.f32 %v26620_v2, %v26601_v5 }
 0x537   :  { %v13298_v47 = vpop.eup %13297  ;;  %9980 = vst [vmem:[%s24438_s4 + $0x18] sm:$0xff] %v9956_v7  ;;  %v9962_v54 = vmul.f32 %v13296_v58, %v13288_v19  ;;  %v26621_v19 = vld [vmem:[#allocation84_spill] sm:$0xff] }
 0x538   :  { %9985 = vst [vmem:[%s24438_s4 + $0x40] sm:$0xff] %v9961_v35  ;;  %v9967_v24 = vmul.f32 %v13298_v47, %v13290_v21  ;;  %v13300_v8 = vpop.eup %13299  ;;  %v10335_v21 = vadd.f32 %v26621_v19, %v26601_v5 }
 0x539   :  { %9986 = vst [vmem:[%s24438_s4 + $0x48] sm:$0xff] %v9962_v54  ;;  %v13302_v46 = vpop.eup %13301  ;;  %v26622_v54 = vld [vmem:[#allocation54_spill] sm:$0xff] }
 0x53a   :  { %9991 = vst [vmem:[%s24438_s4 + $0x70] sm:$0xff] %v9967_v24  ;;  %v10337_v24 = vadd.f32 %v26622_v54, %v26602_v4 }
 0x53c   :  { %v13304_v25 = vpop.eup %13303 }
 0x53d   :  { %v13306_v11 = vpop.eup %13305  ;;  %v9968_v63 = vmul.f32 %v13304_v25, %v13300_v8 }
 0x53e   :  { %v13308_v61 = vpop.eup %13307  ;;  %v9973_v50 = vmul.f32 %v13306_v11, %v13302_v46  ;;  %v26623_v46 = vld [vmem:[#allocation30_spill] sm:$0xff] }
 0x53f   :  { %v13310_v23 = vpop.eup %13309  ;;  %9992 = vst [vmem:[%s24438_s4 + $0x78] sm:$0xff] %v9968_v63  ;;  %v10339_v25 = vadd.f32 %v26623_v46, %v26602_v4  ;;  %v26624_v63 = vld [vmem:[#allocation37_spill] sm:$0xff] }
 0x540   :  { %9997 = vst [vmem:[%s24438_s4 + $0xa0] sm:$0xff] %v9973_v50  ;;  %v9974_v3 = vmul.f32 %v13310_v23, %v13308_v61  ;;  %v10341_v61 = vadd.f32 %v26624_v63, %v26603_v41 }
 0x542   :  { %9998 = vst [vmem:[%s24438_s4 + $0xa8] sm:$0xff] %v9974_v3 }
 0x549   :  { %v8784_v59 = vpop.f32.mrb[0].mxu0 }
 0x54a   :  { %v10322_v29 = vadd.f32 %v10321_v6, %v8784_v59  ;;  %v8786_v9 = vpop.f32.mrb[1].mxu0  ;;  %v10343_v6 = vadd.f32 %v26625_v12, %v26603_v41 }
 0x54b   :  { %v10324_v15 = vadd.f32 %v10323_v27, %v8786_v9  ;;  %v8788_v17 = vpop.f32.mrb[2].mxu0 }
 0x54c   :  { %v10326_v22 = vadd.f32 %v10325_v10, %v8788_v17  ;;  %v8790_v48 = vpop.f32.mrb[3].mxu0  ;;  %v10233_v39 = vmul.f32 -1.442695, %v10322_v29 }
 0x54d   :  { %v10328_v16 = vadd.f32 %v10327_v34, %v8790_v48  ;;  %v10234_v36 = vmul.f32 -1.442695, %v10324_v15 }
 0x54e   :  { %v10239_v40 = vmul.f32 -1.442695, %v10326_v22  ;;  %13311 = vpow2.f32 %v10233_v39 }
 0x54f   :  { %13313 = vpow2.f32 %v10234_v36  ;;  %v10240_v35 = vmul.f32 -1.442695, %v10328_v16  ;;  %v26626_v16 = vld [vmem:[#allocation27_spill] sm:$0xff] }
 0x550   :  { %13315 = vpow2.f32 %v10239_v40  ;;  %v10345_v57 = vadd.f32 %v26626_v16, %v26604_v43  ;;  %v26628_v36 = vld [vmem:[#allocation31_spill] sm:$0xff] }
 0x551   :  { %v8794_v42 = vpop.f32.mrb[4].mxu0  ;;  %13317 = vpow2.f32 %v10240_v35 }
 0x552   :  { %v10330_v18 = vadd.f32 %v10329_v20, %v8794_v42  ;;  %v8796_v44 = vpop.f32.mrb[5].mxu0  ;;  %v26627_v20 = vld [vmem:[#allocation71_spill] sm:$0xff]  ;;  %v10349_v42 = vadd.f32 %v26628_v36, %v26605_v51 }
 0x553   :  { %v10332_v52 = vadd.f32 %v10331_v60, %v8796_v44  ;;  %v8798_v62 = vpop.f32.mrb[6].mxu0  ;;  %v10347_v39 = vadd.f32 %v26627_v20, %v26604_v43 }
 0x554   :  { %v10334_v45 = vadd.f32 %v10333_v49, %v8798_v62  ;;  %v8800_v7 = vpop.f32.mrb[7].mxu0  ;;  %v10245_v47 = vmul.f32 -1.442695, %v10330_v18  ;;  %v26629_v18 = vld [vmem:[#allocation28_spill] sm:$0xff] }
 0x555   :  { %v10336_v58 = vadd.f32 %v10335_v21, %v8800_v7  ;;  %v10246_v8 = vmul.f32 -1.442695, %v10332_v52  ;;  %v10351_v44 = vadd.f32 %v26629_v18, %v26605_v51 }
 0x556   :  { %v10251_v50 = vmul.f32 -1.442695, %v10334_v45  ;;  %13319 = vpow2.f32 %v10245_v47 }
 0x557   :  { %v10252_v0 = vmul.f32 -1.442695, %v10336_v58  ;;  %13321 = vpow2.f32 %v10246_v8 }
 0x558   :  { %v13312_v34 = vpop.eup %13311  ;;  %13323 = vpow2.f32 %v10251_v50 }
 0x559   :  { %v8804_v11 = vpop.f32.mrb[8].mxu0  ;;  %v13314_v17 = vpop.eup %13313  ;;  %13325 = vpow2.f32 %v10252_v0  ;;  %v9377_v38 = vadd.f32 1.0, %v13312_v34 }
 0x55a   :  { %v10338_v23 = vadd.f32 %v10337_v24, %v8804_v11  ;;  %v8806_v3 = vpop.f32.mrb[9].mxu0  ;;  %v13316_v48 = vpop.eup %13315  ;;  %v9378_v2 = vadd.f32 1.0, %v13314_v17  ;;  %v26630_v11 = vld [vmem:[#allocation128_spill] sm:$0xff] }
 0x55b   :  { %v10340_v27 = vadd.f32 %v10339_v25, %v8806_v3  ;;  %v8808_v59 = vpop.f32.mrb[10].mxu0  ;;  %v9383_v19 = vadd.f32 1.0, %v13316_v48  ;;  %v13318_v62 = vpop.eup %13317  ;;  %v10353_v63 = vadd.f32 %v26630_v11, %v26606_v56 }
 0x55c   :  { %v10257_v28 = vmul.f32 -1.442695, %v10338_v23  ;;  %v10342_v10 = vadd.f32 %v10341_v61, %v8808_v59  ;;  %v8810_v29 = vpop.f32.mrb[11].mxu0  ;;  %v9384_v46 = vadd.f32 1.0, %v13318_v62  ;;  %v26631_v23 = vld [vmem:[#allocation129_spill] sm:$0xff] }
 0x55d   :  { %v10258_v9 = vmul.f32 -1.442695, %v10340_v27  ;;  %v10344_v55 = vadd.f32 %v10343_v6, %v8810_v29  ;;  %v10355_v3 = vadd.f32 %v26631_v23, %v26606_v56  ;;  %v26632_v27 = vld [vmem:[#allocation130_spill] sm:$0xff] }
 0x55e   :  { %v10263_v15 = vmul.f32 -1.442695, %v10342_v10  ;;  %13327 = vpow2.f32 %v10257_v28  ;;  %v10357_v59 = vadd.f32 %v26632_v27, %v26607_v32 }
 0x55f   :  { %v10264_v22 = vmul.f32 -1.442695, %v10344_v55  ;;  %13329 = vpow2.f32 %v10258_v9  ;;  %v26633_v55 = vld [vmem:[#allocation57_spill] sm:$0xff] }
 0x560   :  { %13331 = vpow2.f32 %v10263_v15  ;;  %v13320_v35 = vpop.eup %13319  ;;  %v10359_v34 = vadd.f32 %v26633_v55, %v26607_v32  ;;  %v26638_v55 = vld [vmem:[#allocation62_spill] sm:$0xff] }
 0x561   :  { %v8814_v60 = vpop.f32.mrb[12].mxu0  ;;  %13333 = vpow2.f32 %v10264_v22  ;;  %v13322_v24 = vpop.eup %13321  ;;  %v9389_v61 = vadd.f32 1.0, %v13320_v35 }
 0x562   :  { %v10346_v49 = vadd.f32 %v10345_v57, %v8814_v60  ;;  %v8816_v40 = vpop.f32.mrb[13].mxu0  ;;  %13335 = vrcp.f32 %v9377_v38  ;;  %v13324_v25 = vpop.eup %13323  ;;  %v9390_v12 = vadd.f32 1.0, %v13322_v24 }
 0x563   :  { %v10348_v21 = vadd.f32 %v10347_v39, %v8816_v40  ;;  %v8818_v52 = vpop.f32.mrb[14].mxu0  ;;  %13337 = vrcp.f32 %v9378_v2  ;;  %v13326_v50 = vpop.eup %13325  ;;  %v9395_v15 = vadd.f32 1.0, %v13324_v25  ;;  %v26634_v40 = vld [vmem:[#allocation132_spill] sm:$0xff] }
 0x564   :  { %v10269_v45 = vmul.f32 -1.442695, %v10346_v49  ;;  %v10350_v7 = vadd.f32 %v10349_v42, %v8818_v52  ;;  %v8820_v58 = vpop.f32.mrb[15].mxu0  ;;  %13339 = vrcp.f32 %v9383_v19  ;;  %v9396_v16 = vadd.f32 1.0, %v13326_v50 }
 0x565   :  { %v10270_v47 = vmul.f32 -1.442695, %v10348_v21  ;;  %v10352_v54 = vadd.f32 %v10351_v44, %v8820_v58  ;;  %v10361_v18 = vadd.f32 %v26634_v40, %v26608_v33  ;;  %v26635_v21 = vld [vmem:[#allocation52_spill] sm:$0xff]  ;;  %v26636_v58 = vld [vmem:[#allocation55_spill] sm:$0xff]  ;;  %v26641_v40 = vld [vmem:[#allocation34_spill] sm:$0xff] }
 0x566   :  { %v10275_v8 = vmul.f32 -1.442695, %v10350_v7  ;;  %13341 = vpow2.f32 %v10269_v45  ;;  %v10363_v52 = vadd.f32 %v26635_v21, %v26608_v33  ;;  %v10365_v35 = vadd.f32 %v26636_v58, %v26610_v31 }
 0x567   :  { %13343 = vpow2.f32 %v10270_v47  ;;  %v10276_v28 = vmul.f32 -1.442695, %v10352_v54 }
 0x568   :  { %v13328_v0 = vpop.eup %13327  ;;  %13345 = vpow2.f32 %v10275_v8 }
 0x569   :  { %v8824_v6 = vpop.f32.mrb[48].mxu0  ;;  %v13330_v9 = vpop.eup %13329  ;;  %13347 = vrcp.f32 %v9384_v46  ;;  %v9545_v38 = vadd.f32 1.0, %v13328_v0  ;;  %v26637_v46 = vld [vmem:[#allocation65_spill] sm:$0xff] }
 0x56a   :  { %v10354_v10 = vadd.f32 %v10353_v63, %v8824_v6  ;;  %v8826_v29 = vpop.f32.mrb[49].mxu0  ;;  %v13332_v48 = vpop.eup %13331  ;;  %13349 = vrcp.f32 %v9389_v61  ;;  %v9546_v36 = vadd.f32 1.0, %v13330_v9  ;;  %v10367_v25 = vadd.f32 %v26637_v46, %v26610_v31  ;;  %v26642_v46 = vld [vmem:[#allocation36_spill] sm:$0xff] }
 0x56b   :  { %v10356_v17 = vadd.f32 %v10355_v3, %v8826_v29  ;;  %v8828_v22 = vpop.f32.mrb[50].mxu0  ;;  %v13334_v39 = vpop.eup %13333  ;;  %13351 = vrcp.f32 %v9390_v12  ;;  %v9551_v2 = vadd.f32 1.0, %v13332_v48 }
 0x56c   :  { %v10358_v57 = vadd.f32 %v10357_v59, %v8828_v22  ;;  %v8830_v20 = vpop.f32.mrb[51].mxu0  ;;  %13353 = vpow2.f32 %v10276_v28  ;;  %v24120_v42 = vpop.eup %13335  ;;  %v9552_v44 = vadd.f32 1.0, %v13334_v39  ;;  %v10281_v62 = vmul.f32 -1.442695, %v10354_v10 }
 0x56d   :  { %v10360_v60 = vadd.f32 %v10359_v34, %v8830_v20  ;;  %13355 = vrcp.f32 %v9395_v15  ;;  %v24122_v49 = vpop.eup %13337  ;;  %v10282_v47 = vmul.f32 -1.442695, %v10356_v17  ;;  %v10369_v34 = vadd.f32 %v26638_v55, %v26609_v1  ;;  %v26639_v17 = vld [vmem:[#allocation59_spill] sm:$0xff]  ;;  %v26640_v20 = vld [vmem:[#allocation64_spill] sm:$0xff] }
 0x56e   :  { %13357 = vrcp.f32 %v9396_v16  ;;  %v24126_v19 = vpop.eup %13339  ;;  %v10287_v11 = vmul.f32 -1.442695, %v10358_v57  ;;  %v10371_v22 = vadd.f32 %v26639_v17, %v26609_v1  ;;  %v10373_v39 = vadd.f32 %v26640_v20, %v26611_v37  ;;  %v9833_v20 = vld [vmem:[%s24436_s3] sm:$0xff] }
 0x56f   :  { %13359 = vrcp.f32 %v9545_v38  ;;  %v10288_v23 = vmul.f32 -1.442695, %v10360_v60 }
 0x570   :  { %v13342_v7 = vpop.eup %13341  ;;  %13361 = vrcp.f32 %v9546_v36 }
 0x571   :  { %v8834_v45 = vpop.f32.mrb[52].mxu0  ;;  %v13344_v8 = vpop.eup %13343  ;;  %13363 = vrcp.f32 %v9551_v2  ;;  %v9557_v0 = vadd.f32 1.0, %v13342_v7 }
 0x572   :  { %v10362_v54 = vadd.f32 %v10361_v18, %v8834_v45  ;;  %v8836_v24 = vpop.f32.mrb[53].mxu0  ;;  %v13346_v50 = vpop.eup %13345  ;;  %13365 = vrcp.f32 %v9552_v44  ;;  %v9558_v28 = vadd.f32 1.0, %v13344_v8  ;;  %v10375_v18 = vadd.f32 %v26641_v40, %v26611_v37 }
 0x573   :  { %v10364_v63 = vadd.f32 %v10363_v52, %v8836_v24  ;;  %v8838_v61 = vpop.f32.mrb[54].mxu0  ;;  %v24134_v6 = vpop.eup %13347  ;;  %13367 = vpow2.f32 %v10281_v62  ;;  %v9563_v29 = vadd.f32 1.0, %v13346_v50 }
 0x574   :  { %v10366_v3 = vadd.f32 %v10365_v35, %v8838_v61  ;;  %v8840_v12 = vpop.f32.mrb[55].mxu0  ;;  %v24136_v59 = vpop.eup %13349  ;;  %13369 = vpow2.f32 %v10282_v47  ;;  %v10293_v48 = vmul.f32 -1.442695, %v10362_v54 }
 0x575   :  { %v10368_v27 = vadd.f32 %v10367_v25, %v8840_v12  ;;  %v24138_v10 = vpop.eup %13351  ;;  %13371 = vpow2.f32 %v10287_v11  ;;  %v10294_v38 = vmul.f32 -1.442695, %v10364_v63  ;;  %v10377_v25 = vadd.f32 %v26642_v46, %v26612_v53  ;;  %v26643_v63 = vld [vmem:[#allocation45_spill] sm:$0xff]  ;;  %v26644_v12 = vld [vmem:[#allocation63_spill] sm:$0xff]  ;;  %v9834_v46 = vld [vmem:[%s24436_s3 + $0x8] sm:$0xff] }
 0x576   :  { %v13354_v9 = vpop.eup %13353  ;;  %13373 = vpow2.f32 %v10288_v23  ;;  %v10299_v45 = vmul.f32 -1.442695, %v10366_v3  ;;  %v10379_v61 = vadd.f32 %v26643_v63, %v26612_v53 }
 0x577   :  { %v24142_v15 = vpop.eup %13355  ;;  %13375 = vrcp.f32 %v9557_v0  ;;  %v9564_v44 = vadd.f32 1.0, %v13354_v9  ;;  %v10300_v50 = vmul.f32 -1.442695, %v10368_v27  ;;  %v10381_v0 = vadd.f32 %v26644_v12, %v26613_v26 }
 0x578   :  { %v24146_v57 = vpop.eup %13357  ;;  %13377 = vrcp.f32 %v9558_v28 }
 0x579   :  { %v8844_v16 = vpop.f32.mrb[56].mxu0  ;;  %v13360_v2 = vpop.eup %13359  ;;  %13379 = vrcp.f32 %v9563_v29 }
 0x57a   :  { %v10370_v60 = vadd.f32 %v10369_v34, %v8844_v16  ;;  %v8846_v36 = vpop.f32.mrb[57].mxu0  ;;  %v24152_v62 = vpop.eup %13361  ;;  %v26645_v34 = vld [vmem:[#allocation67_spill] sm:$0xff] }
 0x57b   :  { %v10372_v21 = vadd.f32 %v10371_v22, %v8846_v36  ;;  %v8848_v52 = vpop.f32.mrb[58].mxu0  ;;  %v24154_v35 = vpop.eup %13363  ;;  %v10383_v17 = vadd.f32 %v26645_v34, %v26613_v26 }
 0x57c   :  { %13381 = vtanh.f32 %v10370_v60  ;;  %v10374_v7 = vadd.f32 %v10373_v39, %v8848_v52  ;;  %v8850_v58 = vpop.f32.mrb[59].mxu0  ;;  %v24156_v54 = vpop.eup %13365 }
 0x57d   :  { %13383 = vpow2.f32 %v10293_v48  ;;  %v10376_v47 = vadd.f32 %v10375_v18, %v8850_v58  ;;  %v13368_v24 = vpop.eup %13367 }
 0x57e   :  { %13385 = vpow2.f32 %v10294_v38  ;;  %v13370_v8 = vpop.eup %13369  ;;  %v9713_v28 = vadd.f32 1.0, %v13368_v24  ;;  %v26647_v24 = vld [vmem:[#allocation29_spill] sm:$0xff] }
 0x57f   :  { %13387 = vrcp.f32 %v9564_v44  ;;  %v13372_v11 = vpop.eup %13371  ;;  %v9714_v22 = vadd.f32 1.0, %v13370_v8  ;;  %v10419_v8 = vadd.f32 %v26647_v24, %v26598_v13  ;;  %v26650_v24 = vld [vmem:[#allocation5_spill] sm:$0xff] }
 0x580   :  { %13389 = vpow2.f32 %v10299_v45  ;;  %v13374_v3 = vpop.eup %13373  ;;  %v9719_v39 = vadd.f32 1.0, %v13372_v11 }
 0x581   :  { %13391 = vtanh.f32 %v10372_v21  ;;  %v8854_v23 = vpop.f32.mrb[60].mxu0  ;;  %v24164_v55 = vpop.eup %13375  ;;  %v9857_v21 = vmul.f32 %v13360_v2, %v9833_v20 }
 0x582   :  { %13393 = vtanh.f32 %v10374_v7  ;;  %v10378_v29 = vadd.f32 %v10377_v25, %v8854_v23  ;;  %v8856_v9 = vpop.f32.mrb[61].mxu0  ;;  %v24168_v27 = vpop.eup %13377  ;;  %v26646_v7 = vld [vmem:[#allocation73_spill] sm:$0xff]  ;;  %v9720_v25 = vadd.f32 1.0, %v13374_v3  ;;  %v9840_v3 = vld [vmem:[%s24436_s3 + $0x38] sm:$0xff] }
 0x583   :  { %13395 = vtanh.f32 %v10376_v47  ;;  %v10380_v48 = vadd.f32 %v10379_v61, %v8856_v9  ;;  %v8858_v16 = vpop.f32.mrb[62].mxu0  ;;  %v24173_v36 = vpop.eup %13379  ;;  %v10417_v58 = vadd.f32 %v26646_v7, %v26598_v13 }
 0x584   :  { %13397 = vtanh.f32 %v10378_v29  ;;  %v10382_v38 = vadd.f32 %v10381_v0, %v8858_v16  ;;  %v8860_v60 = vpop.f32.mrb[63].mxu0  ;;  %v9845_v16 = vld [vmem:[%s24436_s3 + $0x60] sm:$0xff] }
 0x585   :  { %13399 = vpow2.f32 %v10300_v50  ;;  %v10384_v40 = vadd.f32 %v10383_v17, %v8860_v60  ;;  %v9839_v50 = vld [vmem:[%s24436_s3 + $0x30] sm:$0xff] }
 0x586   :  { %v13382_v18 = vpop.eup %13381  ;;  %13401 = vrcp.f32 %v9713_v28  ;;  %v26649_v28 = vld [vmem:[#allocation83_spill] sm:$0xff]  ;;  %v9863_v60 = vmul.f32 %v24154_v35, %v9839_v50 }
 0x587   :  { %v13384_v44 = vpop.eup %13383  ;;  %13403 = vrcp.f32 %v9714_v22  ;;  %v9881_v52 = vmul.f32 %v13382_v18, %v24120_v42  ;;  %v26648_v42 = vld [vmem:[#allocation86_spill] sm:$0xff]  ;;  %v10423_v29 = vadd.f32 %v26649_v28, %v26599_v30  ;;  %v26653_v28 = vld [vmem:[#allocation91_spill] sm:$0xff] }
 0x588   :  { %v13386_v45 = vpop.eup %13385  ;;  %13405 = vrcp.f32 %v9719_v39  ;;  %v10421_v61 = vadd.f32 %v26648_v42, %v26599_v30  ;;  %v9725_v23 = vadd.f32 1.0, %v13384_v44 }
 0x589   :  { %v24178_v47 = vpop.eup %13387  ;;  %v9905_v11 = vadd.f32 %v9881_v52, %v9857_v21  ;;  %13407 = vtanh.f32 %v10380_v48  ;;  %v9010_v2 = vpop.f32.mrb[16].mxu0  ;;  %v9726_v9 = vadd.f32 1.0, %v13386_v45  ;;  %v9858_v48 = vmul.f32 %v24152_v62, %v9834_v46 }
 0x58a   :  { %v13390_v63 = vpop.eup %13389  ;;  %13409 = vtanh.f32 %v10382_v38  ;;  %v10418_v12 = vadd.f32 %v10417_v58, %v9010_v2  ;;  %v9012_v13 = vpop.f32.mrb[17].mxu0  ;;  %v9864_v62 = vmul.f32 %v24156_v54, %v9840_v3 }
 0x58b   :  { %v13392_v0 = vpop.eup %13391  ;;  %13411 = vtanh.f32 %v9905_v11  ;;  %10001 = vst [vmem:[%s24437_s5] sm:$0xff] %v9905_v11  ;;  %v10420_v34 = vadd.f32 %v10419_v8, %v9012_v13  ;;  %v9014_v17 = vpop.f32.mrb[18].mxu0 }
 0x58c   :  { %v13394_v22 = vpop.eup %13393  ;;  %v9882_v30 = vmul.f32 %v13392_v0, %v24122_v49  ;;  %13413 = vtanh.f32 %v10384_v40  ;;  %v10422_v20 = vadd.f32 %v10421_v61, %v9014_v17  ;;  %v9016_v39 = vpop.f32.mrb[19].mxu0  ;;  %v9869_v49 = vmul.f32 %v24164_v55, %v9845_v16  ;;  %v26652_v61 = vld [vmem:[#allocation90_spill] sm:$0xff] }
 0x58d   :  { %v13396_v38 = vpop.eup %13395  ;;  %13415 = vrcp.f32 %v9720_v25  ;;  %v9887_v18 = vmul.f32 %v13394_v22, %v24126_v19  ;;  %v24205_v44 = vadd.f32 %v10423_v29, %v9016_v39  ;;  %v10425_v19 = vadd.f32 %v26650_v24, %v26600_v14  ;;  %v9852_v22 = vld [vmem:[%s24436_s3 + $0x98] sm:$0xff] }
 0x58e   :  { %v13398_v21 = vpop.eup %13397  ;;  %13417 = vrcp.f32 %v9725_v23  ;;  %v9906_v52 = vadd.f32 %v9882_v30, %v9858_v48  ;;  %v9888_v45 = vmul.f32 %v13396_v38, %v24134_v6  ;;  %v10237_v8 = vmul.f32 -1.442695, %v10418_v12  ;;  %v26651_v6 = vld [vmem:[#allocation89_spill] sm:$0xff] }
 0x58f   :  { %v13400_v7 = vpop.eup %13399  ;;  %13419 = vrcp.f32 %v9726_v9  ;;  %v9911_v40 = vadd.f32 %v9887_v18, %v9863_v60  ;;  %v9893_v58 = vmul.f32 %v13398_v21, %v24136_v59  ;;  %v10427_v55 = vadd.f32 %v26651_v6, %v26600_v14  ;;  %v9846_v59 = vld [vmem:[%s24436_s3 + $0x68] sm:$0xff]  ;;  %v9851_v14 = vld [vmem:[%s24436_s3 + $0x90] sm:$0xff] }
 0x590   :  { %v13402_v35 = vpop.eup %13401  ;;  %13421 = vtanh.f32 %v9906_v52  ;;  %10002 = vst [vmem:[%s24437_s5 + $0x8] sm:$0xff] %v9906_v52  ;;  %v9912_v54 = vadd.f32 %v9888_v45, %v9864_v62  ;;  %v10238_v11 = vmul.f32 -1.442695, %v10420_v34  ;;  %v10429_v50 = vadd.f32 %v26652_v61, %v26601_v5 }
 0x591   :  { %v24216_v46 = vpop.eup %13403  ;;  %13423 = vtanh.f32 %v9911_v40  ;;  %10007 = vst [vmem:[%s24437_s5 + $0x30] sm:$0xff] %v9911_v40  ;;  %v9917_v25 = vadd.f32 %v9893_v58, %v9869_v49  ;;  %v9020_v2 = vpop.f32.mrb[20].mxu0  ;;  %v9731_v23 = vadd.f32 1.0, %v13390_v63  ;;  %v10431_v29 = vadd.f32 %v26653_v28, %v26601_v5  ;;  %v26654_v40 = vld [vmem:[#allocation75_spill] sm:$0xff] }
 0x592   :  { %v24226_v42 = vpop.eup %13405  ;;  %13425 = vtanh.f32 %v9912_v54  ;;  %10008 = vst [vmem:[%s24437_s5 + $0x38] sm:$0xff] %v9912_v54  ;;  %v10426_v12 = vadd.f32 %v10425_v19, %v9020_v2  ;;  %v9022_v13 = vpop.f32.mrb[21].mxu0  ;;  %v10243_v3 = vmul.f32 -1.442695, %v10422_v20  ;;  %v9870_v17 = vmul.f32 %v24168_v27, %v9846_v59 }
 0x593   :  { %v13408_v0 = vpop.eup %13407  ;;  %13427 = vtanh.f32 %v9917_v25  ;;  %10013 = vst [vmem:[%s24437_s5 + $0x60] sm:$0xff] %v9917_v25  ;;  %v10428_v9 = vadd.f32 %v10427_v55, %v9022_v13  ;;  %v9024_v34 = vpop.f32.mrb[22].mxu0  ;;  %v9875_v39 = vmul.f32 %v24173_v36, %v9851_v14  ;;  %v9732_v18 = vadd.f32 1.0, %v13400_v7  ;;  %v26656_v7 = vld [vmem:[#allocation93_spill] sm:$0xff] }
 0x594   :  { %v13410_v63 = vpop.eup %13409  ;;  %v9894_v48 = vmul.f32 %v13408_v0, %v24138_v10  ;;  %13429 = vpow2.f32 %v10237_v8  ;;  %v10430_v16 = vadd.f32 %v10429_v50, %v9024_v34  ;;  %v9026_v5 = vpop.f32.mrb[23].mxu0  ;;  %v9876_v52 = vmul.f32 %v24178_v47, %v9852_v22  ;;  %v26657_v8 = vld [vmem:[#allocation96_spill] sm:$0xff] }
 0x595   :  { %v13412_v30 = vpop.eup %13411  ;;  %v9899_v38 = vmul.f32 %v13410_v63, %v24142_v15  ;;  %13431 = vpow2.f32 %v10238_v11  ;;  %v10432_v20 = vadd.f32 %v10431_v29, %v9026_v5  ;;  %v10433_v36 = vadd.f32 %v26654_v40, %v26602_v4  ;;  %v26655_v15 = vld [vmem:[#allocation92_spill] sm:$0xff] }
 0x596   :  { %v13414_v60 = vpop.eup %13413  ;;  %13433 = vrcp.f32 %v9731_v23  ;;  %v9953_v27 = vmul.f32 %v13412_v30, %v13402_v35  ;;  %v9918_v21 = vadd.f32 %v9894_v48, %v9870_v17  ;;  %v10435_v58 = vadd.f32 %v26655_v15, %v26602_v4  ;;  %v26658_v17 = vld [vmem:[#allocation99_spill] sm:$0xff] }
 0x597   :  { %v13416_v62 = vpop.eup %13415  ;;  %v9923_v45 = vadd.f32 %v9899_v38, %v9875_v39  ;;  %v9900_v10 = vmul.f32 %v13414_v60, %v24146_v57  ;;  %13435 = vpow2.f32 %v10243_v3  ;;  %v10244_v47 = vmul.f32 -1.442695, %v24205_v44 }
 0x598   :  { %v13418_v49 = vpop.eup %13417  ;;  %9977 = vst [vmem:[%s24438_s4] sm:$0xff] %v9953_v27  ;;  %13437 = vtanh.f32 %v9918_v21  ;;  %10014 = vst [vmem:[%s24437_s5 + $0x68] sm:$0xff] %v9918_v21  ;;  %v10437_v35 = vadd.f32 %v26656_v7, %v26603_v41  ;;  %v10249_v24 = vmul.f32 -1.442695, %v10426_v12  ;;  %v10439_v6 = vadd.f32 %v26657_v8, %v26603_v41 }
 0x599   :  { %v13420_v57 = vpop.eup %13419  ;;  %13439 = vtanh.f32 %v9923_v45  ;;  %10019 = vst [vmem:[%s24437_s5 + $0x90] sm:$0xff] %v9923_v45  ;;  %v9924_v4 = vadd.f32 %v9900_v10, %v9876_v52  ;;  %v9030_v19 = vpop.f32.mrb[24].mxu0  ;;  %v10250_v55 = vmul.f32 -1.442695, %v10428_v9  ;;  %v10255_v2 = vmul.f32 -1.442695, %v10430_v16 }
 0x59a   :  { %v13422_v54 = vpop.eup %13421  ;;  %13441 = vrcp.f32 %v9732_v18  ;;  %v10434_v59 = vadd.f32 %v10433_v36, %v9030_v19  ;;  %v9032_v44 = vpop.f32.mrb[25].mxu0  ;;  %v10256_v41 = vmul.f32 -1.442695, %v10432_v20  ;;  %v10441_v22 = vadd.f32 %v26658_v17, %v26604_v43  ;;  %v26659_v16 = vld [vmem:[#allocation100_spill] sm:$0xff]  ;;  %v26660_v20 = vld [vmem:[#allocation101_spill] sm:$0xff] }
 0x59b   :  { %v13424_v25 = vpop.eup %13423  ;;  %v9954_v11 = vmul.f32 %v13422_v54, %v24216_v46  ;;  %13443 = vtanh.f32 %v9924_v4  ;;  %10020 = vst [vmem:[%s24437_s5 + $0x98] sm:$0xff] %v9924_v4  ;;  %v10436_v61 = vadd.f32 %v10435_v58, %v9032_v44  ;;  %v9034_v50 = vpop.f32.mrb[26].mxu0  ;;  %v10443_v5 = vadd.f32 %v26659_v16, %v26604_v43  ;;  %v26661_v52 = vld [vmem:[#allocation104_spill] sm:$0xff] }
 0x59c   :  { %v13426_v14 = vpop.eup %13425  ;;  %v9959_v23 = vmul.f32 %v13424_v25, %v24226_v42  ;;  %13445 = vpow2.f32 %v10244_v47  ;;  %v10438_v12 = vadd.f32 %v10437_v35, %v9034_v50  ;;  %v9036_v13 = vpop.f32.mrb[27].mxu0  ;;  %v10261_v28 = vmul.f32 -1.442695, %v10434_v59 }
 0x59d   :  { %v13428_v0 = vpop.eup %13427  ;;  %9978 = vst [vmem:[%s24438_s4 + $0x8] sm:$0xff] %v9954_v11  ;;  %v9960_v46 = vmul.f32 %v13426_v14, %v13416_v62  ;;  %13447 = vpow2.f32 %v10249_v24  ;;  %v10440_v29 = vadd.f32 %v10439_v6, %v9036_v13  ;;  %v10262_v42 = vmul.f32 -1.442695, %v10436_v61  ;;  %v26663_v11 = vld [vmem:[#allocation41_spill] sm:$0xff] }
 0x59e   :  { %v13430_v3 = vpop.eup %13429  ;;  %9983 = vst [vmem:[%s24438_s4 + $0x30] sm:$0xff] %v9959_v23  ;;  %v9965_v9 = vmul.f32 %v13428_v0, %v13418_v49  ;;  %13449 = vpow2.f32 %v10250_v55  ;;  %v10445_v60 = vadd.f32 %v26660_v20, %v26605_v51  ;;  %v10447_v45 = vadd.f32 %v26661_v52, %v26605_v51  ;;  %v26662_v55 = vld [vmem:[#allocation107_spill] sm:$0xff]  ;;  %v26664_v23 = vld [vmem:[#allocation108_spill] sm:$0xff] }
 0x59f   :  { %v13432_v34 = vpop.eup %13431  ;;  %9984 = vst [vmem:[%s24438_s4 + $0x38] sm:$0xff] %v9960_v46  ;;  %13451 = vpow2.f32 %v10255_v2  ;;  %v9381_v30 = vadd.f32 1.0, %v13430_v3  ;;  %v10267_v49 = vmul.f32 -1.442695, %v10438_v12  ;;  %v10268_v58 = vmul.f32 -1.442695, %v10440_v29 }
 0x5a0   :  { %v13434_v63 = vpop.eup %13433  ;;  %9989 = vst [vmem:[%s24438_s4 + $0x60] sm:$0xff] %v9965_v9  ;;  %13453 = vpow2.f32 %v10256_v41  ;;  %v9382_v18 = vadd.f32 1.0, %v13432_v34  ;;  %v10449_v59 = vadd.f32 %v26662_v55, %v26606_v56  ;;  %v10451_v2 = vadd.f32 %v26663_v11, %v26606_v56 }
 0x5a1   :  { %v13436_v48 = vpop.eup %13435  ;;  %13455 = vpow2.f32 %v10261_v28  ;;  %v9040_v39 = vpop.f32.mrb[28].mxu0  ;;  %v10453_v41 = vadd.f32 %v26664_v23, %v26607_v32  ;;  %v26665_v28 = vld [vmem:[#allocation111_spill] sm:$0xff] }
 0x5a2   :  { %v13438_v38 = vpop.eup %13437  ;;  %13457 = vpow2.f32 %v10262_v42  ;;  %v10442_v27 = vadd.f32 %v10441_v22, %v9040_v39  ;;  %v9042_v21 = vpop.f32.mrb[29].mxu0  ;;  %v9387_v4 = vadd.f32 1.0, %v13436_v48  ;;  %v10455_v29 = vadd.f32 %v26665_v28, %v26607_v32  ;;  %v26666_v32 = vld [vmem:[#allocation113_spill] sm:$0xff] }
 0x5a3   :  { %v13440_v62 = vpop.eup %13439  ;;  %v9966_v10 = vmul.f32 %v13438_v38, %v13420_v57  ;;  %v10444_v40 = vadd.f32 %v10443_v5, %v9042_v21  ;;  %v9044_v36 = vpop.f32.mrb[30].mxu0  ;;  %13459 = vrcp.f32 %v9381_v30  ;;  %v10457_v38 = vadd.f32 %v26666_v32, %v26608_v33 }
 0x5a4   :  { %v13442_v43 = vpop.eup %13441  ;;  %v9971_v15 = vmul.f32 %v13440_v62, %v13434_v63  ;;  %v10446_v47 = vadd.f32 %v10445_v60, %v9044_v36  ;;  %v9046_v7 = vpop.f32.mrb[31].mxu0  ;;  %13461 = vrcp.f32 %v9382_v18  ;;  %v10273_v57 = vmul.f32 -1.442695, %v10442_v27  ;;  %v26667_v18 = vld [vmem:[#allocation9_spill] sm:$0xff] }
 0x5a5   :  { %v13444_v35 = vpop.eup %13443  ;;  %9990 = vst [vmem:[%s24438_s4 + $0x68] sm:$0xff] %v9966_v10  ;;  %v10448_v24 = vadd.f32 %v10447_v45, %v9046_v7  ;;  %13463 = vpow2.f32 %v10267_v49  ;;  %v10274_v8 = vmul.f32 -1.442695, %v10444_v40  ;;  %v10459_v27 = vadd.f32 %v26667_v18, %v26608_v33  ;;  %v26668_v45 = vld [vmem:[#allocation114_spill] sm:$0xff]  ;;  %v26675_v18 = vld [vmem:[#allocation60_spill] sm:$0xff] }
 0x5a6   :  { %v13446_v19 = vpop.eup %13445  ;;  %9995 = vst [vmem:[%s24438_s4 + $0x90] sm:$0xff] %v9971_v15  ;;  %v9972_v51 = vmul.f32 %v13444_v35, %v13442_v43  ;;  %13465 = vpow2.f32 %v10268_v58  ;;  %v10279_v44 = vmul.f32 -1.442695, %v10446_v47  ;;  %v10461_v10 = vadd.f32 %v26668_v45, %v26610_v31  ;;  %v26669_v15 = vld [vmem:[#allocation117_spill] sm:$0xff] }
 0x5a7   :  { %v13448_v54 = vpop.eup %13447  ;;  %13467 = vrcp.f32 %v9387_v4  ;;  %v9388_v61 = vadd.f32 1.0, %v13446_v19  ;;  %v10280_v20 = vmul.f32 -1.442695, %v10448_v24  ;;  %v10463_v58 = vadd.f32 %v26669_v15, %v26610_v31  ;;  %v26676_v45 = vld [vmem:[#allocation33_spill] sm:$0xff] }
 0x5a8   :  { %v13450_v6 = vpop.eup %13449  ;;  %9996 = vst [vmem:[%s24438_s4 + $0x98] sm:$0xff] %v9972_v51  ;;  %v9393_v12 = vadd.f32 1.0, %v13448_v54  ;;  %13469 = vpow2.f32 %v10273_v57 }
 0x5a9   :  { %v13452_v25 = vpop.eup %13451  ;;  %v9050_v50 = vpop.f32.mrb[32].mxu0  ;;  %v9394_v3 = vadd.f32 1.0, %v13450_v6  ;;  %13471 = vpow2.f32 %v10274_v8 }
 0x5aa   :  { %v13454_v14 = vpop.eup %13453  ;;  %v10450_v13 = vadd.f32 %v10449_v59, %v9050_v50  ;;  %v9052_v0 = vpop.f32.mrb[33].mxu0  ;;  %v9399_v34 = vadd.f32 1.0, %v13452_v25  ;;  %13473 = vpow2.f32 %v10279_v44  ;;  %v26670_v44 = vld [vmem:[#allocation119_spill] sm:$0xff] }
 0x5ab   :  { %v13456_v46 = vpop.eup %13455  ;;  %v10452_v9 = vadd.f32 %v10451_v2, %v9052_v0  ;;  %v9054_v42 = vpop.f32.mrb[34].mxu0  ;;  %13475 = vrcp.f32 %v9388_v61  ;;  %v9400_v22 = vadd.f32 1.0, %v13454_v14  ;;  %v10465_v25 = vadd.f32 %v26670_v44, %v26609_v1  ;;  %v26671_v61 = vld [vmem:[#allocation49_spill] sm:$0xff] }
 0x5ac   :  { %v13458_v56 = vpop.eup %13457  ;;  %v10454_v63 = vadd.f32 %v10453_v41, %v9054_v42  ;;  %v9056_v17 = vpop.f32.mrb[35].mxu0  ;;  %13477 = vrcp.f32 %v9393_v12  ;;  %v9549_v16 = vadd.f32 1.0, %v13456_v46  ;;  %v10285_v21 = vmul.f32 -1.442695, %v10450_v13  ;;  %v26672_v12 = vld [vmem:[#allocation120_spill] sm:$0xff] }
 0x5ad   :  { %v10456_v48 = vadd.f32 %v10455_v29, %v9056_v17  ;;  %v24310_v5 = vpop.eup %13459  ;;  %13479 = vrcp.f32 %v9394_v3  ;;  %v9550_v30 = vadd.f32 1.0, %v13458_v56  ;;  %v10286_v49 = vmul.f32 -1.442695, %v10452_v9  ;;  %v26673_v3 = vld [vmem:[#allocation123_spill] sm:$0xff] }
 0x5ae   :  { %v24312_v39 = vpop.eup %13461  ;;  %13481 = vrcp.f32 %v9399_v34  ;;  %v10291_v47 = vmul.f32 -1.442695, %v10454_v63  ;;  %v10467_v50 = vadd.f32 %v26671_v61, %v26609_v1  ;;  %v10469_v13 = vadd.f32 %v26672_v12, %v26611_v37 }
 0x5af   :  { %v13464_v60 = vpop.eup %13463  ;;  %13483 = vrcp.f32 %v9400_v22  ;;  %v10292_v6 = vmul.f32 -1.442695, %v10456_v48  ;;  %v10471_v9 = vadd.f32 %v26673_v3, %v26611_v37 }
 0x5b0   :  { %v13466_v52 = vpop.eup %13465  ;;  %13485 = vrcp.f32 %v9549_v16  ;;  %v9555_v4 = vadd.f32 1.0, %v13464_v60 }
 0x5b1   :  { %v9060_v62 = vpop.f32.mrb[36].mxu0  ;;  %v24320_v43 = vpop.eup %13467  ;;  %13487 = vrcp.f32 %v9550_v30  ;;  %v9556_v57 = vadd.f32 1.0, %v13466_v52 }
 0x5b2   :  { %v10458_v40 = vadd.f32 %v10457_v38, %v9060_v62  ;;  %v9062_v36 = vpop.f32.mrb[37].mxu0  ;;  %v13470_v35 = vpop.eup %13469  ;;  %13489 = vpow2.f32 %v10280_v20  ;;  %v26674_v20 = vld [vmem:[#allocation124_spill] sm:$0xff] }
 0x5b3   :  { %v10460_v7 = vadd.f32 %v10459_v27, %v9062_v36  ;;  %v9064_v33 = vpop.f32.mrb[38].mxu0  ;;  %v13472_v51 = vpop.eup %13471  ;;  %13491 = vpow2.f32 %v10285_v21  ;;  %v9561_v59 = vadd.f32 1.0, %v13470_v35  ;;  %v10473_v37 = vadd.f32 %v26674_v20, %v26612_v53 }
 0x5b4   :  { %v10462_v24 = vadd.f32 %v10461_v10, %v9064_v33  ;;  %v9066_v19 = vpop.f32.mrb[39].mxu0  ;;  %v13474_v8 = vpop.eup %13473  ;;  %13493 = vpow2.f32 %v10286_v49  ;;  %v9562_v11 = vadd.f32 1.0, %v13472_v51  ;;  %v10297_v0 = vmul.f32 -1.442695, %v10458_v40 }
 0x5b5   :  { %v10464_v54 = vadd.f32 %v10463_v58, %v9066_v19  ;;  %v24324_v55 = vpop.eup %13475  ;;  %13495 = vpow2.f32 %v10291_v47  ;;  %v9567_v14 = vadd.f32 1.0, %v13474_v8  ;;  %v10298_v42 = vmul.f32 -1.442695, %v10460_v7  ;;  %v26677_v58 = vld [vmem:[#allocation127_spill] sm:$0xff] }
 0x5b6   :  { %v24326_v31 = vpop.eup %13477  ;;  %13497 = vrcp.f32 %v9555_v4  ;;  %v10303_v48 = vmul.f32 -1.442695, %v10462_v24  ;;  %v10475_v27 = vadd.f32 %v26675_v18, %v26612_v53  ;;  %v10477_v10 = vadd.f32 %v26676_v45, %v26613_v26 }
 0x5b7   :  { %v24330_v2 = vpop.eup %13479  ;;  %13499 = vrcp.f32 %v9556_v57  ;;  %v10304_v21 = vmul.f32 -1.442695, %v10464_v54  ;;  %v10479_v47 = vadd.f32 %v26677_v58, %v26613_v26  ;;  %v9837_v26 = vld [vmem:[%s24436_s3 + $0x20] sm:$0xff] }
 0x5b8   :  { %v24334_v41 = vpop.eup %13481  ;;  %13501 = vpow2.f32 %v10292_v6 }
 0x5b9   :  { %v9070_v23 = vpop.f32.mrb[40].mxu0  ;;  %v24338_v29 = vpop.eup %13483  ;;  %13503 = vrcp.f32 %v9561_v59 }
 0x5ba   :  { %v10466_v46 = vadd.f32 %v10465_v25, %v9070_v23  ;;  %v9072_v28 = vpop.f32.mrb[41].mxu0  ;;  %v13486_v34 = vpop.eup %13485  ;;  %13505 = vrcp.f32 %v9562_v11  ;;  %v9838_v11 = vld [vmem:[%s24436_s3 + $0x28] sm:$0xff]  ;;  %v9843_v23 = vld [vmem:[%s24436_s3 + $0x50] sm:$0xff] }
 0x5bb   :  { %v10468_v1 = vadd.f32 %v10467_v50, %v9072_v28  ;;  %v9074_v56 = vpop.f32.mrb[42].mxu0  ;;  %v13488_v22 = vpop.eup %13487  ;;  %13507 = vrcp.f32 %v9567_v14  ;;  %v9861_v14 = vmul.f32 %v13486_v34, %v9837_v26 }
 0x5bc   :  { %v10470_v63 = vadd.f32 %v10469_v13, %v9074_v56  ;;  %v9076_v17 = vpop.f32.mrb[43].mxu0  ;;  %v13490_v30 = vpop.eup %13489  ;;  %13509 = vpow2.f32 %v10297_v0  ;;  %v9844_v0 = vld [vmem:[%s24436_s3 + $0x58] sm:$0xff]  ;;  %v9862_v3 = vmul.f32 %v13488_v22, %v9838_v11 }
 0x5bd   :  { %v10472_v16 = vadd.f32 %v10471_v9, %v9076_v17  ;;  %v13492_v32 = vpop.eup %13491  ;;  %13511 = vpow2.f32 %v10298_v42  ;;  %v9568_v49 = vadd.f32 1.0, %v13490_v30 }
 0x5be   :  { %v13494_v38 = vpop.eup %13493  ;;  %13513 = vtanh.f32 %v10466_v46  ;;  %v9717_v7 = vadd.f32 1.0, %v13492_v32 }
 0x5bf   :  { %v13496_v60 = vpop.eup %13495  ;;  %13515 = vpow2.f32 %v10303_v48  ;;  %v9718_v6 = vadd.f32 1.0, %v13494_v38 }
 0x5c0   :  { %v13498_v52 = vpop.eup %13497  ;;  %13517 = vtanh.f32 %v10468_v1  ;;  %v9723_v44 = vadd.f32 1.0, %v13496_v60 }
 0x5c1   :  { %v9080_v62 = vpop.f32.mrb[44].mxu0  ;;  %v13500_v15 = vpop.eup %13499  ;;  %13519 = vtanh.f32 %v10470_v63  ;;  %v9867_v56 = vmul.f32 %v13498_v52, %v9843_v23 }
 0x5c2   :  { %v10474_v40 = vadd.f32 %v10473_v37, %v9080_v62  ;;  %v9082_v36 = vpop.f32.mrb[45].mxu0  ;;  %v13502_v53 = vpop.eup %13501  ;;  %13521 = vtanh.f32 %v10472_v16  ;;  %v9868_v63 = vmul.f32 %v13500_v15, %v9844_v0  ;;  %v9855_v37 = vld [vmem:[%s24436_s3 + $0xb0] sm:$0xff] }
 0x5c3   :  { %v10476_v33 = vadd.f32 %v10475_v27, %v9082_v36  ;;  %v9084_v35 = vpop.f32.mrb[46].mxu0  ;;  %v13504_v19 = vpop.eup %13503  ;;  %13523 = vpow2.f32 %v10304_v21  ;;  %v9724_v61 = vadd.f32 1.0, %v13502_v53  ;;  %v9856_v21 = vld [vmem:[%s24436_s3 + $0xb8] sm:$0xff] }
 0x5c4   :  { %v10478_v4 = vadd.f32 %v10477_v10, %v9084_v35  ;;  %v9086_v24 = vpop.f32.mrb[47].mxu0  ;;  %v13506_v57 = vpop.eup %13505  ;;  %13525 = vrcp.f32 %v9568_v49 }
 0x5c5   :  { %v10480_v51 = vadd.f32 %v10479_v47, %v9086_v24  ;;  %v24350_v54 = vpop.eup %13507  ;;  %13527 = vrcp.f32 %v9717_v7 }
 0x5c6   :  { %v13510_v8 = vpop.eup %13509  ;;  %13529 = vtanh.f32 %v10474_v40  ;;  %v9879_v40 = vmul.f32 %v24350_v54, %v9855_v37 }
 0x5c7   :  { %v13512_v59 = vpop.eup %13511  ;;  %13531 = vtanh.f32 %v10476_v33  ;;  %v9729_v46 = vadd.f32 1.0, %v13510_v8 }
 0x5c8   :  { %v13514_v25 = vpop.eup %13513  ;;  %13533 = vtanh.f32 %v10478_v4  ;;  %v9730_v16 = vadd.f32 1.0, %v13512_v59 }
 0x5c9   :  { %v13516_v50 = vpop.eup %13515  ;;  %v9885_v12 = vmul.f32 %v13514_v25, %v24310_v5  ;;  %13535 = vtanh.f32 %v10480_v51 }
 0x5ca   :  { %v13518_v13 = vpop.eup %13517  ;;  %13537 = vrcp.f32 %v9718_v6  ;;  %v9735_v38 = vadd.f32 1.0, %v13516_v50 }
 0x5cb   :  { %v13520_v28 = vpop.eup %13519  ;;  %13539 = vrcp.f32 %v9723_v44  ;;  %v9909_v9 = vadd.f32 %v9885_v12, %v9861_v14  ;;  %v9886_v42 = vmul.f32 %v13518_v13, %v24312_v39  ;;  %v9849_v39 = vld [vmem:[%s24436_s3 + $0x80] sm:$0xff] }
 0x5cc   :  { %v13522_v1 = vpop.eup %13521  ;;  %13541 = vrcp.f32 %v9724_v61  ;;  %v9891_v34 = vmul.f32 %v13520_v28, %v24320_v43  ;;  %v9850_v43 = vld [vmem:[%s24436_s3 + $0x88] sm:$0xff]  ;;  %v9873_v27 = vmul.f32 %v13504_v19, %v9849_v39 }
 0x5cd   :  { %v13524_v5 = vpop.eup %13523  ;;  %13543 = vtanh.f32 %v9909_v9  ;;  %10005 = vst [vmem:[%s24437_s5 + $0x20] sm:$0xff] %v9909_v9  ;;  %v9910_v17 = vadd.f32 %v9886_v42, %v9862_v3  ;;  %v9892_v48 = vmul.f32 %v13522_v1, %v24324_v55  ;;  %v9874_v45 = vmul.f32 %v13506_v57, %v9850_v43 }
 0x5ce   :  { %v13526_v22 = vpop.eup %13525  ;;  %13545 = vrcp.f32 %v9729_v46  ;;  %v9915_v30 = vadd.f32 %v9891_v34, %v9867_v56  ;;  %v9736_v60 = vadd.f32 1.0, %v13524_v5 }
 0x5cf   :  { %v13528_v32 = vpop.eup %13527  ;;  %13547 = vtanh.f32 %v9910_v17  ;;  %10006 = vst [vmem:[%s24437_s5 + $0x28] sm:$0xff] %v9910_v17  ;;  %v9916_v55 = vadd.f32 %v9892_v48, %v9868_v63  ;;  %v9880_v47 = vmul.f32 %v13526_v22, %v9856_v21 }
 0x5d0   :  { %v13530_v20 = vpop.eup %13529  ;;  %13549 = vtanh.f32 %v9915_v30  ;;  %10011 = vst [vmem:[%s24437_s5 + $0x50] sm:$0xff] %v9915_v30 }
 0x5d1   :  { %v13532_v18 = vpop.eup %13531  ;;  %13551 = vtanh.f32 %v9916_v55  ;;  %10012 = vst [vmem:[%s24437_s5 + $0x58] sm:$0xff] %v9916_v55  ;;  %v9897_v62 = vmul.f32 %v13530_v20, %v24326_v31 }
 0x5d2   :  { %v13534_v52 = vpop.eup %13533  ;;  %13553 = vrcp.f32 %v9730_v16  ;;  %v9898_v10 = vmul.f32 %v13532_v18, %v24330_v2 }
 0x5d3   :  { %v13536_v49 = vpop.eup %13535  ;;  %13555 = vrcp.f32 %v9735_v38  ;;  %v9921_v36 = vadd.f32 %v9897_v62, %v9873_v27  ;;  %v9903_v15 = vmul.f32 %v13534_v52, %v24334_v41 }
 0x5d4   :  { %v13538_v58 = vpop.eup %13537  ;;  %13557 = vrcp.f32 %v9736_v60  ;;  %v9922_v7 = vadd.f32 %v9898_v10, %v9874_v45  ;;  %v9904_v33 = vmul.f32 %v13536_v49, %v24338_v29 }
 0x5d5   :  { %v13540_v35 = vpop.eup %13539  ;;  %13559 = vtanh.f32 %v9921_v36  ;;  %10017 = vst [vmem:[%s24437_s5 + $0x80] sm:$0xff] %v9921_v36  ;;  %v9927_v31 = vadd.f32 %v9903_v15, %v9879_v40 }
 0x5d6   :  { %v13542_v2 = vpop.eup %13541  ;;  %13561 = vtanh.f32 %v9922_v7  ;;  %10018 = vst [vmem:[%s24437_s5 + $0x88] sm:$0xff] %v9922_v7  ;;  %v9928_v41 = vadd.f32 %v9904_v33, %v9880_v47 }
 0x5d7   :  { %v13544_v53 = vpop.eup %13543  ;;  %13563 = vtanh.f32 %v9927_v31  ;;  %10023 = vst [vmem:[%s24437_s5 + $0xb0] sm:$0xff] %v9927_v31 }
 0x5d8   :  { %v13546_v29 = vpop.eup %13545  ;;  %v9957_v4 = vmul.f32 %v13544_v53, %v13528_v32  ;;  %13565 = vtanh.f32 %v9928_v41  ;;  %10024 = vst [vmem:[%s24437_s5 + $0xb8] sm:$0xff] %v9928_v41 }
 0x5d9   :  { %v13548_v24 = vpop.eup %13547 }
 0x5da   :  { %v13550_v19 = vpop.eup %13549  ;;  %9981 = vst [vmem:[%s24438_s4 + $0x20] sm:$0xff] %v9957_v4  ;;  %v9958_v51 = vmul.f32 %v13548_v24, %v13538_v58 }
 0x5db   :  { %v13552_v57 = vpop.eup %13551  ;;  %v9963_v54 = vmul.f32 %v13550_v19, %v13540_v35 }
 0x5dc   :  { %v13554_v8 = vpop.eup %13553  ;;  %9982 = vst [vmem:[%s24438_s4 + $0x28] sm:$0xff] %v9958_v51  ;;  %v9964_v26 = vmul.f32 %v13552_v57, %v13542_v2 }
 0x5dd   :  { %v13556_v6 = vpop.eup %13555  ;;  %9987 = vst [vmem:[%s24438_s4 + $0x50] sm:$0xff] %v9963_v54 }
 0x5de   :  { %v13558_v59 = vpop.eup %13557  ;;  %9988 = vst [vmem:[%s24438_s4 + $0x58] sm:$0xff] %v9964_v26 }
 0x5df   :  { %v13560_v44 = vpop.eup %13559 }
 0x5e0   :  { %v13562_v25 = vpop.eup %13561  ;;  %v9969_v11 = vmul.f32 %v13560_v44, %v13546_v29 }
 0x5e1   :  { %v13564_v61 = vpop.eup %13563  ;;  %v9970_v50 = vmul.f32 %v13562_v25, %v13554_v8 }
 0x5e2   :  { %v13566_v14 = vpop.eup %13565  ;;  %9993 = vst [vmem:[%s24438_s4 + $0x80] sm:$0xff] %v9969_v11  ;;  %v9975_v23 = vmul.f32 %v13564_v61, %v13556_v6 }
 0x5e3   :  { %9994 = vst [vmem:[%s24438_s4 + $0x88] sm:$0xff] %v9970_v50  ;;  %v9976_v12 = vmul.f32 %v13566_v14, %v13558_v59 }
 0x5e4   :  { %9999 = vst [vmem:[%s24438_s4 + $0xb0] sm:$0xff] %v9975_v23 }
 0x5e5   :  { %10000 = vst [vmem:[%s24438_s4 + $0xb8] sm:$0xff] %v9976_v12 }

</bundles_post_ra>
